<compile_context>
chip_gen: v6e
topology: v6e:2x2x1
jax: 0.10.0
libtpu: 0.0.40
codegen_flags: <defaults>
</compile_context>

<pallas_src>
import functools
import math

import jax
import jax.numpy as jnp
from jax import lax
from jax.experimental import pallas as pl
from jax.experimental.pallas import tpu as pltpu

_LANE = 128
_SUBLANE = 8
_CHUNK_ROWS = 128            # target output rows per MXU matmul chunk (~64 KiB f32 acc)


def _round_up(x, m):
    return (x + m - 1) // m * m


def _zero_border(ref, H, W):
    """Zero the 1-px spatial border of a (H+2, Wp, C) padded scratch buffer."""
    Wp, C = ref.shape[1], ref.shape[2]
    dt = ref.dtype
    ref[0:1, :, :] = jnp.zeros((1, Wp, C), dt)
    ref[H + 1:H + 2, :, :] = jnp.zeros((1, Wp, C), dt)
    ref[:, 0:1, :] = jnp.zeros((H + 2, 1, C), dt)
    ref[:, W + 1:W + 2, :] = jnp.zeros((H + 2, 1, C), dt)


def _conv3x3_taps(src_ref, w_ref, r0, rb, W, Cp):
    """Sum of 9 per-tap MXU matmuls (bf16 x bf16 -> f32) for output rows [r0, r0+rb)."""
    acc = None
    for kh in range(3):
        for kw in range(3):
            lhs = src_ref[r0 + kh:r0 + kh + rb, kw:kw + W, :].reshape(rb * W, Cp)
            d = jnp.dot(lhs, w_ref[kh * 3 + kw],
                        preferred_element_type=jnp.float32)
            acc = d if acc is None else acc + d
    return acc


def _basic_block_kernel(x_ref, w1_ref, w2_ref, bn_ref, o_ref,
                        xpad_ref, mid_ref, *, rb):
    # x_ref : (H, W, Cp)  f32   one batch element (feeds conv path + residual)
    # w*_ref: (9, Cp, Cp) bf16  per-tap conv weights, (ci, co) layout
    # bn_ref: (8, Cp)     f32   rows 0..3 = [s1, b1, s2, b2] (folded BatchNorm)
    # o_ref : (H, W, Cp)  f32
    # xpad_ref / mid_ref: (H+2, Wp, Cp) bf16 zero-padded activation scratch
    H, W, Cp = x_ref.shape

    s1 = bn_ref[0:1, :]
    b1 = bn_ref[1:2, :]
    s2 = bn_ref[2:3, :]
    b2 = bn_ref[3:4, :]

    # ---- padded bf16 input: cast once, border zeros only (interior overwritten) ----
    _zero_border(xpad_ref, H, W)
    for r0 in range(0, H, rb):
        xpad_ref[1 + r0:1 + r0 + rb, 1:1 + W, :] = (
            x_ref[r0:r0 + rb, :, :].astype(jnp.bfloat16))
    _zero_border(mid_ref, H, W)

    # ---- conv1 + bn1 + relu, chunked over output rows ----
    for r0 in range(0, H, rb):
        acc = _conv3x3_taps(xpad_ref, w1_ref, r0, rb, W, Cp)
        y = jnp.maximum(acc * s1 + b1, 0.0)
        mid_ref[1 + r0:1 + r0 + rb, 1:1 + W, :] = (
            y.reshape(rb, W, Cp).astype(jnp.bfloat16))

    # ---- conv2 + bn2 + residual (f32 identity) + relu, chunked ----
    for r0 in range(0, H, rb):
        acc = _conv3x3_taps(mid_ref, w2_ref, r0, rb, W, Cp)
        res = x_ref[r0:r0 + rb, :, :].reshape(rb * W, Cp)
        y = jnp.maximum(acc * s2 + b2 + res, 0.0)
        o_ref[r0:r0 + rb, :, :] = y.reshape(rb, W, Cp)


def _fold_bn(gamma, beta, mean, var, eps=1e-5):
    scale = gamma / jnp.sqrt(var + eps)
    bias = beta - mean * scale
    return scale.astype(jnp.float32), bias.astype(jnp.float32)


def prepare_block_params(params, cin):
    """One-time param prep: fold BN, pad channels to lanes, per-tap weight layout."""
    planes = params["w1"].shape[0]
    assert cin == planes, "identity path requires inplanes == planes"
    cp = _round_up(max(cin, _LANE), _LANE)

    def prep_w(w):   # PyTorch (out, in, 3, 3) -> (9, Cp_in, Cp_out) bf16 per tap
        w = jnp.transpose(w, (2, 3, 1, 0))                        # (3, 3, in, out)
        w = jnp.pad(w, ((0, 0), (0, 0), (0, cp - cin), (0, cp - planes)))
        return w.reshape(9, cp, cp).astype(jnp.bfloat16)

    s1, b1 = _fold_bn(params["bn1_g"], params["bn1_b"],
                      params["bn1_m"], params["bn1_v"])
    s2, b2 = _fold_bn(params["bn2_g"], params["bn2_b"],
                      params["bn2_m"], params["bn2_v"])
    bn = jnp.stack([s1, b1, s2, b2], axis=0)                      # (4, planes)
    bn = jnp.pad(bn, ((0, 4), (0, cp - planes))).astype(jnp.float32)  # (8, Cp)

    return {"w1": prep_w(params["w1"]), "w2": prep_w(params["w2"]),
            "bn": bn, "cp": cp, "planes": planes}


def basic_block_forward_nhwc(x, prepped):
    """Fused BasicBlock on padded-NHWC activations (N, H, W, Cp) f32 -> same shape."""
    N, H, W, cp = x.shape
    assert cp == prepped["cp"]
    wp = _round_up(W + 2, _SUBLANE)

    rb = max(1, min(H, _CHUNK_ROWS // max(W, 1)))
    while H % rb:
        rb -= 1

    # Per-shape VMEM budget (double-buffered in/out blocks + weights + scratch
    # + accumulator headroom), capped for v7x's 64 MiB physical VMEM.
    blk = H * W * cp * 4
    w_bytes = 2 * 9 * cp * cp * 2
    scratch_bytes = 2 * (H + 2) * wp * cp * 2
    acc_bytes = 4 * rb * W * cp * 4
    needed = 2 * (2 * blk) + 2 * w_bytes + 2 * 8 * cp * 4 + scratch_bytes + acc_bytes
    vmem_limit = int(min(max(needed * 1.25 + (2 << 20), 8 << 20), 56 << 20))

    kernel = functools.partial(_basic_block_kernel, rb=rb)

    return pl.pallas_call(
        kernel,
        out_shape=jax.ShapeDtypeStruct((N, H, W, cp), jnp.float32),
        grid_spec=pltpu.PrefetchScalarGridSpec(
            num_scalar_prefetch=0,
            grid=(N,),
            in_specs=[
                pl.BlockSpec((None, H, W, cp), lambda n: (n, 0, 0, 0)),
                pl.BlockSpec((9, cp, cp), lambda n: (0, 0, 0)),
                pl.BlockSpec((9, cp, cp), lambda n: (0, 0, 0)),
                pl.BlockSpec((8, cp), lambda n: (0, 0)),
            ],
            out_specs=pl.BlockSpec((None, H, W, cp), lambda n: (n, 0, 0, 0)),
            scratch_shapes=[
                pltpu.VMEM((H + 2, wp, cp), jnp.bfloat16),     # padded input
                pltpu.VMEM((H + 2, wp, cp), jnp.bfloat16),     # padded conv1 output
            ],
        ),
        compiler_params=pltpu.CompilerParams(
            dimension_semantics=("parallel",),
            vmem_limit_bytes=vmem_limit,
        ),
    )(x, prepped["w1"], prepped["w2"], prepped["bn"])


def basic_block_forward(x_nchw, params):
    """NCHW convenience wrapper (layout plumbing for the PyTorch-layout harness)."""
    N, C, H, W = x_nchw.shape
    prepped = prepare_block_params(params, C)
    cp = prepped["cp"]
    x = jnp.transpose(x_nchw, (0, 2, 3, 1))
    x = jnp.pad(x, ((0, 0), (0, 0), (0, 0), (0, cp - C)))
    out = basic_block_forward_nhwc(x, prepped)
    out = out[..., :prepped["planes"]]
    return jnp.transpose(out, (0, 3, 1, 2))


def basic_block_reference(x, params):
    """Pure-JAX (XLA) f32 reference, NCHW, for correctness checking."""
    s1, b1 = _fold_bn(params["bn1_g"], params["bn1_b"],
                      params["bn1_m"], params["bn1_v"])
    s2, b2 = _fold_bn(params["bn2_g"], params["bn2_b"],
                      params["bn2_m"], params["bn2_v"])
    dn = ("NCHW", "OIHW", "NCHW")
    out = jnp.pad(x, ((0, 0), (0, 0), (1, 1), (1, 1)))
    out = lax.conv_general_dilated(out, params["w1"], (1, 1), "VALID",
                                   dimension_numbers=dn)
    out = out * s1[None, :, None, None] + b1[None, :, None, None]
    out = jnp.maximum(out, 0.0)
    out = jnp.pad(out, ((0, 0), (0, 0), (1, 1), (1, 1)))
    out = lax.conv_general_dilated(out, params["w2"], (1, 1), "VALID",
                                   dimension_numbers=dn)
    out = out * s2[None, :, None, None] + b2[None, :, None, None]
    out = out + x
    return jnp.maximum(out, 0.0)


if __name__ == "__main__":
    key = jax.random.PRNGKey(0)
    N, C, H, W = 2, 4, 16, 16      # inplanes = planes = 4, stride = 1
    ks = jax.random.split(key, 11)

    x = jax.random.normal(ks[0], (N, C, H, W), jnp.float32)
    params = {
        "w1": 0.1 * jax.random.normal(ks[1], (C, C, 3, 3), jnp.float32),
        "w2": 0.1 * jax.random.normal(ks[2], (C, C, 3, 3), jnp.float32),
        # BatchNorm (inference mode: running stats folded into scale/bias)
        "bn1_g": 1.0 + 0.1 * jax.random.normal(ks[3], (C,), jnp.float32),
        "bn1_b": 0.1 * jax.random.normal(ks[4], (C,), jnp.float32),
        "bn1_m": 0.1 * jax.random.normal(ks[5], (C,), jnp.float32),
        "bn1_v": 1.0 + 0.1 * jax.random.uniform(ks[6], (C,), jnp.float32),
        "bn2_g": 1.0 + 0.1 * jax.random.normal(ks[7], (C,), jnp.float32),
        "bn2_b": 0.1 * jax.random.normal(ks[8], (C,), jnp.float32),
        "bn2_m": 0.1 * jax.random.normal(ks[9], (C,), jnp.float32),
        "bn2_v": 1.0 + 0.1 * jax.random.uniform(ks[10], (C,), jnp.float32),
    }

    out = jax.block_until_ready(basic_block_forward(x, params))
    ref = jax.block_until_ready(basic_block_reference(x, params))

    assert out.shape == (N, C, H, W)
    err = float(jnp.max(jnp.abs(out - ref)))
    # bf16 MXU operands (f32 accumulation) -> loosened tolerance vs f32 ref.
    assert err < 5e-2, f"mismatch vs reference: max abs err {err}"

    print("KERNEL_OK")
</pallas_src>

<mosaic_0001>
module attributes {stable_mosaic.version = 11 : i64} {
  func.func @_basic_block_kernel(%arg0: i32, %arg1: memref<1x16x16x128xf32, #tpu.memory_space<vmem>>, %arg2: memref<9x128x128xbf16, #tpu.memory_space<vmem>>, %arg3: memref<9x128x128xbf16, #tpu.memory_space<vmem>>, %arg4: memref<8x128xf32, #tpu.memory_space<vmem>>, %arg5: memref<1x16x16x128xf32, #tpu.memory_space<vmem>>, %arg6: memref<18x24x128xbf16, #tpu.memory_space<vmem>>, %arg7: memref<18x24x128xbf16, #tpu.memory_space<vmem>>) attributes {dimension_semantics = [#tpu.dimension_semantics<parallel>], iteration_bounds = array<i64: 2>, scalar_prefetch = 0 : i64, scratch_operands = 2 : i64, tpu.core_type = #tpu.core_type<tc>, window_params = [{transform_indices = @transform_0, window_bounds = array<i64: 1, 16, 16, 128>}, {pipeline_mode = #tpu.pipeline_mode<synchronous>, transform_indices = @transform_1, window_bounds = array<i64: 9, 128, 128>}, {pipeline_mode = #tpu.pipeline_mode<synchronous>, transform_indices = @transform_2, window_bounds = array<i64: 9, 128, 128>}, {pipeline_mode = #tpu.pipeline_mode<synchronous>, transform_indices = @transform_3, window_bounds = array<i64: 8, 128>}, {transform_indices = @transform_4, window_bounds = array<i64: 1, 16, 16, 128>}]} {
    %c0 = arith.constant 0 : index
    %c0_0 = arith.constant 0 : index
    %0 = vector.load %arg4[%c0, %c0_0] : memref<8x128xf32, #tpu.memory_space<vmem>>, vector<1x128xf32>
    %c1 = arith.constant 1 : index
    %c0_1 = arith.constant 0 : index
    %1 = vector.load %arg4[%c1, %c0_1] : memref<8x128xf32, #tpu.memory_space<vmem>>, vector<1x128xf32>
    %c2 = arith.constant 2 : index
    %c0_2 = arith.constant 0 : index
    %2 = vector.load %arg4[%c2, %c0_2] : memref<8x128xf32, #tpu.memory_space<vmem>>, vector<1x128xf32>
    %c3 = arith.constant 3 : index
    %c0_3 = arith.constant 0 : index
    %3 = vector.load %arg4[%c3, %c0_3] : memref<8x128xf32, #tpu.memory_space<vmem>>, vector<1x128xf32>
    %cst = arith.constant 0.000000e+00 : bf16
    %4 = vector.broadcast %cst : bf16 to vector<1x24x128xbf16>
    %c0_4 = arith.constant 0 : index
    %c0_5 = arith.constant 0 : index
    %c0_6 = arith.constant 0 : index
    %5 = vector.load %arg6[%c0_4, %c0_5, %c0_6] : memref<18x24x128xbf16, #tpu.memory_space<vmem>>, vector<1x24x128xbf16>
    tpu.vector_store %arg6[%c0_4, %c0_5, %c0_6], %4 {strides = array<i32>} : memref<18x24x128xbf16, #tpu.memory_space<vmem>>, vector<1x24x128xbf16>,
    %cst_7 = arith.constant 0.000000e+00 : bf16
    %6 = vector.broadcast %cst_7 : bf16 to vector<1x24x128xbf16>
    %c17 = arith.constant 17 : index
    %c0_8 = arith.constant 0 : index
    %c0_9 = arith.constant 0 : index
    %7 = vector.load %arg6[%c17, %c0_8, %c0_9] : memref<18x24x128xbf16, #tpu.memory_space<vmem>>, vector<1x24x128xbf16>
    tpu.vector_store %arg6[%c17, %c0_8, %c0_9], %6 {strides = array<i32>} : memref<18x24x128xbf16, #tpu.memory_space<vmem>>, vector<1x24x128xbf16>,
    %cst_10 = arith.constant 0.000000e+00 : bf16
    %8 = vector.broadcast %cst_10 : bf16 to vector<18x1x128xbf16>
    %c0_11 = arith.constant 0 : index
    %c0_12 = arith.constant 0 : index
    %c0_13 = arith.constant 0 : index
    %9 = vector.load %arg6[%c0_11, %c0_12, %c0_13] : memref<18x24x128xbf16, #tpu.memory_space<vmem>>, vector<18x1x128xbf16>
    tpu.vector_store %arg6[%c0_11, %c0_12, %c0_13], %8 {strides = array<i32>} : memref<18x24x128xbf16, #tpu.memory_space<vmem>>, vector<18x1x128xbf16>,
    %cst_14 = arith.constant 0.000000e+00 : bf16
    %10 = vector.broadcast %cst_14 : bf16 to vector<18x1x128xbf16>
    %c0_15 = arith.constant 0 : index
    %c17_16 = arith.constant 17 : index
    %c0_17 = arith.constant 0 : index
    %11 = vector.load %arg6[%c0_15, %c17_16, %c0_17] : memref<18x24x128xbf16, #tpu.memory_space<vmem>>, vector<18x1x128xbf16>
    tpu.vector_store %arg6[%c0_15, %c17_16, %c0_17], %10 {strides = array<i32>} : memref<18x24x128xbf16, #tpu.memory_space<vmem>>, vector<18x1x128xbf16>,
    %c0_18 = arith.constant 0 : index
    %c0_19 = arith.constant 0 : index
    %c0_20 = arith.constant 0 : index
    %c0_21 = arith.constant 0 : index
    %12 = vector.load %arg1[%c0_18, %c0_19, %c0_20, %c0_21] : memref<1x16x16x128xf32, #tpu.memory_space<vmem>>, vector<1x8x16x128xf32>
    %13 = vector.shape_cast %12 : vector<1x8x16x128xf32> to vector<8x16x128xf32>
    %14 = arith.truncf %13 : vector<8x16x128xf32> to vector<8x16x128xbf16>
    %c1_22 = arith.constant 1 : index
    %c1_23 = arith.constant 1 : index
    %c0_24 = arith.constant 0 : index
    %15 = vector.load %arg6[%c1_22, %c1_23, %c0_24] : memref<18x24x128xbf16, #tpu.memory_space<vmem>>, vector<8x16x128xbf16>
    tpu.vector_store %arg6[%c1_22, %c1_23, %c0_24], %14 {strides = array<i32>} : memref<18x24x128xbf16, #tpu.memory_space<vmem>>, vector<8x16x128xbf16>,
    %c0_25 = arith.constant 0 : index
    %c8 = arith.constant 8 : index
    %c0_26 = arith.constant 0 : index
    %c0_27 = arith.constant 0 : index
    %16 = vector.load %arg1[%c0_25, %c8, %c0_26, %c0_27] : memref<1x16x16x128xf32, #tpu.memory_space<vmem>>, vector<1x8x16x128xf32>
    %17 = vector.shape_cast %16 : vector<1x8x16x128xf32> to vector<8x16x128xf32>
    %18 = arith.truncf %17 : vector<8x16x128xf32> to vector<8x16x128xbf16>
    %c9 = arith.constant 9 : index
    %c1_28 = arith.constant 1 : index
    %c0_29 = arith.constant 0 : index
    %19 = vector.load %arg6[%c9, %c1_28, %c0_29] : memref<18x24x128xbf16, #tpu.memory_space<vmem>>, vector<8x16x128xbf16>
    tpu.vector_store %arg6[%c9, %c1_28, %c0_29], %18 {strides = array<i32>} : memref<18x24x128xbf16, #tpu.memory_space<vmem>>, vector<8x16x128xbf16>,
    %cst_30 = arith.constant 0.000000e+00 : bf16
    %20 = vector.broadcast %cst_30 : bf16 to vector<1x24x128xbf16>
    %c0_31 = arith.constant 0 : index
    %c0_32 = arith.constant 0 : index
    %c0_33 = arith.constant 0 : index
    %21 = vector.load %arg7[%c0_31, %c0_32, %c0_33] : memref<18x24x128xbf16, #tpu.memory_space<vmem>>, vector<1x24x128xbf16>
    tpu.vector_store %arg7[%c0_31, %c0_32, %c0_33], %20 {strides = array<i32>} : memref<18x24x128xbf16, #tpu.memory_space<vmem>>, vector<1x24x128xbf16>,
    %cst_34 = arith.constant 0.000000e+00 : bf16
    %22 = vector.broadcast %cst_34 : bf16 to vector<1x24x128xbf16>
    %c17_35 = arith.constant 17 : index
    %c0_36 = arith.constant 0 : index
    %c0_37 = arith.constant 0 : index
    %23 = vector.load %arg7[%c17_35, %c0_36, %c0_37] : memref<18x24x128xbf16, #tpu.memory_space<vmem>>, vector<1x24x128xbf16>
    tpu.vector_store %arg7[%c17_35, %c0_36, %c0_37], %22 {strides = array<i32>} : memref<18x24x128xbf16, #tpu.memory_space<vmem>>, vector<1x24x128xbf16>,
    %cst_38 = arith.constant 0.000000e+00 : bf16
    %24 = vector.broadcast %cst_38 : bf16 to vector<18x1x128xbf16>
    %c0_39 = arith.constant 0 : index
    %c0_40 = arith.constant 0 : index
    %c0_41 = arith.constant 0 : index
    %25 = vector.load %arg7[%c0_39, %c0_40, %c0_41] : memref<18x24x128xbf16, #tpu.memory_space<vmem>>, vector<18x1x128xbf16>
    tpu.vector_store %arg7[%c0_39, %c0_40, %c0_41], %24 {strides = array<i32>} : memref<18x24x128xbf16, #tpu.memory_space<vmem>>, vector<18x1x128xbf16>,
    %cst_42 = arith.constant 0.000000e+00 : bf16
    %26 = vector.broadcast %cst_42 : bf16 to vector<18x1x128xbf16>
    %c0_43 = arith.constant 0 : index
    %c17_44 = arith.constant 17 : index
    %c0_45 = arith.constant 0 : index
    %27 = vector.load %arg7[%c0_43, %c17_44, %c0_45] : memref<18x24x128xbf16, #tpu.memory_space<vmem>>, vector<18x1x128xbf16>
    tpu.vector_store %arg7[%c0_43, %c17_44, %c0_45], %26 {strides = array<i32>} : memref<18x24x128xbf16, #tpu.memory_space<vmem>>, vector<18x1x128xbf16>,
    %c0_46 = arith.constant 0 : index
    %c0_47 = arith.constant 0 : index
    %c0_48 = arith.constant 0 : index
    %28 = vector.load %arg6[%c0_46, %c0_47, %c0_48] : memref<18x24x128xbf16, #tpu.memory_space<vmem>>, vector<8x16x128xbf16>
    %29 = vector.shape_cast %28 : vector<8x16x128xbf16> to vector<128x128xbf16>
    %c0_49 = arith.constant 0 : index
    %c0_50 = arith.constant 0 : index
    %c0_51 = arith.constant 0 : index
    %30 = vector.load %arg2[%c0_49, %c0_50, %c0_51] : memref<9x128x128xbf16, #tpu.memory_space<vmem>>, vector<1x128x128xbf16>
    %31 = vector.shape_cast %30 : vector<1x128x128xbf16> to vector<128x128xbf16>
    %cst_52 = arith.constant dense<0.000000e+00> : vector<128x128xf32>
    %32 = tpu.matmul %29, %31, %cst_52 {dimension_numbers = #tpu.dot_dimension_numbers<[1], [0], [0], [1], [0, 0, 1, 1], [], []>} : vector<128x128xbf16>, vector<128x128xbf16>, vector<128x128xf32> -> vector<128x128xf32>
    %c0_53 = arith.constant 0 : index
    %c1_54 = arith.constant 1 : index
    %c0_55 = arith.constant 0 : index
    %33 = vector.load %arg6[%c0_53, %c1_54, %c0_55] : memref<18x24x128xbf16, #tpu.memory_space<vmem>>, vector<8x16x128xbf16>
    %34 = vector.shape_cast %33 : vector<8x16x128xbf16> to vector<128x128xbf16>
    %c1_56 = arith.constant 1 : index
    %c0_57 = arith.constant 0 : index
    %c0_58 = arith.constant 0 : index
    %35 = vector.load %arg2[%c1_56, %c0_57, %c0_58] : memref<9x128x128xbf16, #tpu.memory_space<vmem>>, vector<1x128x128xbf16>
    %36 = vector.shape_cast %35 : vector<1x128x128xbf16> to vector<128x128xbf16>
    %cst_59 = arith.constant dense<0.000000e+00> : vector<128x128xf32>
    %37 = tpu.matmul %34, %36, %cst_59 {dimension_numbers = #tpu.dot_dimension_numbers<[1], [0], [0], [1], [0, 0, 1, 1], [], []>} : vector<128x128xbf16>, vector<128x128xbf16>, vector<128x128xf32> -> vector<128x128xf32>
    %38 = arith.addf %32, %37 : vector<128x128xf32>
    %c0_60 = arith.constant 0 : index
    %c2_61 = arith.constant 2 : index
    %c0_62 = arith.constant 0 : index
    %39 = vector.load %arg6[%c0_60, %c2_61, %c0_62] : memref<18x24x128xbf16, #tpu.memory_space<vmem>>, vector<8x16x128xbf16>
    %40 = vector.shape_cast %39 : vector<8x16x128xbf16> to vector<128x128xbf16>
    %c2_63 = arith.constant 2 : index
    %c0_64 = arith.constant 0 : index
    %c0_65 = arith.constant 0 : index
    %41 = vector.load %arg2[%c2_63, %c0_64, %c0_65] : memref<9x128x128xbf16, #tpu.memory_space<vmem>>, vector<1x128x128xbf16>
    %42 = vector.shape_cast %41 : vector<1x128x128xbf16> to vector<128x128xbf16>
    %cst_66 = arith.constant dense<0.000000e+00> : vector<128x128xf32>
    %43 = tpu.matmul %40, %42, %cst_66 {dimension_numbers = #tpu.dot_dimension_numbers<[1], [0], [0], [1], [0, 0, 1, 1], [], []>} : vector<128x128xbf16>, vector<128x128xbf16>, vector<128x128xf32> -> vector<128x128xf32>
    %44 = arith.addf %38, %43 : vector<128x128xf32>
    %c1_67 = arith.constant 1 : index
    %c0_68 = arith.constant 0 : index
    %c0_69 = arith.constant 0 : index
    %45 = vector.load %arg6[%c1_67, %c0_68, %c0_69] : memref<18x24x128xbf16, #tpu.memory_space<vmem>>, vector<8x16x128xbf16>
    %46 = vector.shape_cast %45 : vector<8x16x128xbf16> to vector<128x128xbf16>
    %c3_70 = arith.constant 3 : index
    %c0_71 = arith.constant 0 : index
    %c0_72 = arith.constant 0 : index
    %47 = vector.load %arg2[%c3_70, %c0_71, %c0_72] : memref<9x128x128xbf16, #tpu.memory_space<vmem>>, vector<1x128x128xbf16>
    %48 = vector.shape_cast %47 : vector<1x128x128xbf16> to vector<128x128xbf16>
    %cst_73 = arith.constant dense<0.000000e+00> : vector<128x128xf32>
    %49 = tpu.matmul %46, %48, %cst_73 {dimension_numbers = #tpu.dot_dimension_numbers<[1], [0], [0], [1], [0, 0, 1, 1], [], []>} : vector<128x128xbf16>, vector<128x128xbf16>, vector<128x128xf32> -> vector<128x128xf32>
    %50 = arith.addf %44, %49 : vector<128x128xf32>
    %c1_74 = arith.constant 1 : index
    %c1_75 = arith.constant 1 : index
    %c0_76 = arith.constant 0 : index
    %51 = vector.load %arg6[%c1_74, %c1_75, %c0_76] : memref<18x24x128xbf16, #tpu.memory_space<vmem>>, vector<8x16x128xbf16>
    %52 = vector.shape_cast %51 : vector<8x16x128xbf16> to vector<128x128xbf16>
    %c4 = arith.constant 4 : index
    %c0_77 = arith.constant 0 : index
    %c0_78 = arith.constant 0 : index
    %53 = vector.load %arg2[%c4, %c0_77, %c0_78] : memref<9x128x128xbf16, #tpu.memory_space<vmem>>, vector<1x128x128xbf16>
    %54 = vector.shape_cast %53 : vector<1x128x128xbf16> to vector<128x128xbf16>
    %cst_79 = arith.constant dense<0.000000e+00> : vector<128x128xf32>
    %55 = tpu.matmul %52, %54, %cst_79 {dimension_numbers = #tpu.dot_dimension_numbers<[1], [0], [0], [1], [0, 0, 1, 1], [], []>} : vector<128x128xbf16>, vector<128x128xbf16>, vector<128x128xf32> -> vector<128x128xf32>
    %56 = arith.addf %50, %55 : vector<128x128xf32>
    %c1_80 = arith.constant 1 : index
    %c2_81 = arith.constant 2 : index
    %c0_82 = arith.constant 0 : index
    %57 = vector.load %arg6[%c1_80, %c2_81, %c0_82] : memref<18x24x128xbf16, #tpu.memory_space<vmem>>, vector<8x16x128xbf16>
    %58 = vector.shape_cast %57 : vector<8x16x128xbf16> to vector<128x128xbf16>
    %c5 = arith.constant 5 : index
    %c0_83 = arith.constant 0 : index
    %c0_84 = arith.constant 0 : index
    %59 = vector.load %arg2[%c5, %c0_83, %c0_84] : memref<9x128x128xbf16, #tpu.memory_space<vmem>>, vector<1x128x128xbf16>
    %60 = vector.shape_cast %59 : vector<1x128x128xbf16> to vector<128x128xbf16>
    %cst_85 = arith.constant dense<0.000000e+00> : vector<128x128xf32>
    %61 = tpu.matmul %58, %60, %cst_85 {dimension_numbers = #tpu.dot_dimension_numbers<[1], [0], [0], [1], [0, 0, 1, 1], [], []>} : vector<128x128xbf16>, vector<128x128xbf16>, vector<128x128xf32> -> vector<128x128xf32>
    %62 = arith.addf %56, %61 : vector<128x128xf32>
    %c2_86 = arith.constant 2 : index
    %c0_87 = arith.constant 0 : index
    %c0_88 = arith.constant 0 : index
    %63 = vector.load %arg6[%c2_86, %c0_87, %c0_88] : memref<18x24x128xbf16, #tpu.memory_space<vmem>>, vector<8x16x128xbf16>
    %64 = vector.shape_cast %63 : vector<8x16x128xbf16> to vector<128x128xbf16>
    %c6 = arith.constant 6 : index
    %c0_89 = arith.constant 0 : index
    %c0_90 = arith.constant 0 : index
    %65 = vector.load %arg2[%c6, %c0_89, %c0_90] : memref<9x128x128xbf16, #tpu.memory_space<vmem>>, vector<1x128x128xbf16>
    %66 = vector.shape_cast %65 : vector<1x128x128xbf16> to vector<128x128xbf16>
    %cst_91 = arith.constant dense<0.000000e+00> : vector<128x128xf32>
    %67 = tpu.matmul %64, %66, %cst_91 {dimension_numbers = #tpu.dot_dimension_numbers<[1], [0], [0], [1], [0, 0, 1, 1], [], []>} : vector<128x128xbf16>, vector<128x128xbf16>, vector<128x128xf32> -> vector<128x128xf32>
    %68 = arith.addf %62, %67 : vector<128x128xf32>
    %c2_92 = arith.constant 2 : index
    %c1_93 = arith.constant 1 : index
    %c0_94 = arith.constant 0 : index
    %69 = vector.load %arg6[%c2_92, %c1_93, %c0_94] : memref<18x24x128xbf16, #tpu.memory_space<vmem>>, vector<8x16x128xbf16>
    %70 = vector.shape_cast %69 : vector<8x16x128xbf16> to vector<128x128xbf16>
    %c7 = arith.constant 7 : index
    %c0_95 = arith.constant 0 : index
    %c0_96 = arith.constant 0 : index
    %71 = vector.load %arg2[%c7, %c0_95, %c0_96] : memref<9x128x128xbf16, #tpu.memory_space<vmem>>, vector<1x128x128xbf16>
    %72 = vector.shape_cast %71 : vector<1x128x128xbf16> to vector<128x128xbf16>
    %cst_97 = arith.constant dense<0.000000e+00> : vector<128x128xf32>
    %73 = tpu.matmul %70, %72, %cst_97 {dimension_numbers = #tpu.dot_dimension_numbers<[1], [0], [0], [1], [0, 0, 1, 1], [], []>} : vector<128x128xbf16>, vector<128x128xbf16>, vector<128x128xf32> -> vector<128x128xf32>
    %74 = arith.addf %68, %73 : vector<128x128xf32>
    %c2_98 = arith.constant 2 : index
    %c2_99 = arith.constant 2 : index
    %c0_100 = arith.constant 0 : index
    %75 = vector.load %arg6[%c2_98, %c2_99, %c0_100] : memref<18x24x128xbf16, #tpu.memory_space<vmem>>, vector<8x16x128xbf16>
    %76 = vector.shape_cast %75 : vector<8x16x128xbf16> to vector<128x128xbf16>
    %c8_101 = arith.constant 8 : index
    %c0_102 = arith.constant 0 : index
    %c0_103 = arith.constant 0 : index
    %77 = vector.load %arg2[%c8_101, %c0_102, %c0_103] : memref<9x128x128xbf16, #tpu.memory_space<vmem>>, vector<1x128x128xbf16>
    %78 = vector.shape_cast %77 : vector<1x128x128xbf16> to vector<128x128xbf16>
    %cst_104 = arith.constant dense<0.000000e+00> : vector<128x128xf32>
    %79 = tpu.matmul %76, %78, %cst_104 {dimension_numbers = #tpu.dot_dimension_numbers<[1], [0], [0], [1], [0, 0, 1, 1], [], []>} : vector<128x128xbf16>, vector<128x128xbf16>, vector<128x128xf32> -> vector<128x128xf32>
    %80 = arith.addf %74, %79 : vector<128x128xf32>
    %81 = vector.broadcast %0 : vector<1x128xf32> to vector<128x128xf32>
    %82 = arith.mulf %80, %81 : vector<128x128xf32>
    %83 = vector.broadcast %1 : vector<1x128xf32> to vector<128x128xf32>
    %84 = arith.addf %82, %83 : vector<128x128xf32>
    %cst_105 = arith.constant 0.000000e+00 : f32
    %85 = vector.broadcast %cst_105 : f32 to vector<128x128xf32>
    %86 = arith.maximumf %84, %85 : vector<128x128xf32>
    %87 = vector.shape_cast %86 : vector<128x128xf32> to vector<8x16x128xf32>
    %88 = arith.truncf %87 : vector<8x16x128xf32> to vector<8x16x128xbf16>
    %c1_106 = arith.constant 1 : index
    %c1_107 = arith.constant 1 : index
    %c0_108 = arith.constant 0 : index
    %89 = vector.load %arg7[%c1_106, %c1_107, %c0_108] : memref<18x24x128xbf16, #tpu.memory_space<vmem>>, vector<8x16x128xbf16>
    tpu.vector_store %arg7[%c1_106, %c1_107, %c0_108], %88 {strides = array<i32>} : memref<18x24x128xbf16, #tpu.memory_space<vmem>>, vector<8x16x128xbf16>,
    %c8_109 = arith.constant 8 : index
    %c0_110 = arith.constant 0 : index
    %c0_111 = arith.constant 0 : index
    %90 = vector.load %arg6[%c8_109, %c0_110, %c0_111] : memref<18x24x128xbf16, #tpu.memory_space<vmem>>, vector<8x16x128xbf16>
    %91 = vector.shape_cast %90 : vector<8x16x128xbf16> to vector<128x128xbf16>
    %c0_112 = arith.constant 0 : index
    %c0_113 = arith.constant 0 : index
    %c0_114 = arith.constant 0 : index
    %92 = vector.load %arg2[%c0_112, %c0_113, %c0_114] : memref<9x128x128xbf16, #tpu.memory_space<vmem>>, vector<1x128x128xbf16>
    %93 = vector.shape_cast %92 : vector<1x128x128xbf16> to vector<128x128xbf16>
    %cst_115 = arith.constant dense<0.000000e+00> : vector<128x128xf32>
    %94 = tpu.matmul %91, %93, %cst_115 {dimension_numbers = #tpu.dot_dimension_numbers<[1], [0], [0], [1], [0, 0, 1, 1], [], []>} : vector<128x128xbf16>, vector<128x128xbf16>, vector<128x128xf32> -> vector<128x128xf32>
    %c8_116 = arith.constant 8 : index
    %c1_117 = arith.constant 1 : index
    %c0_118 = arith.constant 0 : index
    %95 = vector.load %arg6[%c8_116, %c1_117, %c0_118] : memref<18x24x128xbf16, #tpu.memory_space<vmem>>, vector<8x16x128xbf16>
    %96 = vector.shape_cast %95 : vector<8x16x128xbf16> to vector<128x128xbf16>
    %c1_119 = arith.constant 1 : index
    %c0_120 = arith.constant 0 : index
    %c0_121 = arith.constant 0 : index
    %97 = vector.load %arg2[%c1_119, %c0_120, %c0_121] : memref<9x128x128xbf16, #tpu.memory_space<vmem>>, vector<1x128x128xbf16>
    %98 = vector.shape_cast %97 : vector<1x128x128xbf16> to vector<128x128xbf16>
    %cst_122 = arith.constant dense<0.000000e+00> : vector<128x128xf32>
    %99 = tpu.matmul %96, %98, %cst_122 {dimension_numbers = #tpu.dot_dimension_numbers<[1], [0], [0], [1], [0, 0, 1, 1], [], []>} : vector<128x128xbf16>, vector<128x128xbf16>, vector<128x128xf32> -> vector<128x128xf32>
    %100 = arith.addf %94, %99 : vector<128x128xf32>
    %c8_123 = arith.constant 8 : index
    %c2_124 = arith.constant 2 : index
    %c0_125 = arith.constant 0 : index
    %101 = vector.load %arg6[%c8_123, %c2_124, %c0_125] : memref<18x24x128xbf16, #tpu.memory_space<vmem>>, vector<8x16x128xbf16>
    %102 = vector.shape_cast %101 : vector<8x16x128xbf16> to vector<128x128xbf16>
    %c2_126 = arith.constant 2 : index
    %c0_127 = arith.constant 0 : index
    %c0_128 = arith.constant 0 : index
    %103 = vector.load %arg2[%c2_126, %c0_127, %c0_128] : memref<9x128x128xbf16, #tpu.memory_space<vmem>>, vector<1x128x128xbf16>
    %104 = vector.shape_cast %103 : vector<1x128x128xbf16> to vector<128x128xbf16>
    %cst_129 = arith.constant dense<0.000000e+00> : vector<128x128xf32>
    %105 = tpu.matmul %102, %104, %cst_129 {dimension_numbers = #tpu.dot_dimension_numbers<[1], [0], [0], [1], [0, 0, 1, 1], [], []>} : vector<128x128xbf16>, vector<128x128xbf16>, vector<128x128xf32> -> vector<128x128xf32>
    %106 = arith.addf %100, %105 : vector<128x128xf32>
    %c9_130 = arith.constant 9 : index
    %c0_131 = arith.constant 0 : index
    %c0_132 = arith.constant 0 : index
    %107 = vector.load %arg6[%c9_130, %c0_131, %c0_132] : memref<18x24x128xbf16, #tpu.memory_space<vmem>>, vector<8x16x128xbf16>
    %108 = vector.shape_cast %107 : vector<8x16x128xbf16> to vector<128x128xbf16>
    %c3_133 = arith.constant 3 : index
    %c0_134 = arith.constant 0 : index
    %c0_135 = arith.constant 0 : index
    %109 = vector.load %arg2[%c3_133, %c0_134, %c0_135] : memref<9x128x128xbf16, #tpu.memory_space<vmem>>, vector<1x128x128xbf16>
    %110 = vector.shape_cast %109 : vector<1x128x128xbf16> to vector<128x128xbf16>
    %cst_136 = arith.constant dense<0.000000e+00> : vector<128x128xf32>
    %111 = tpu.matmul %108, %110, %cst_136 {dimension_numbers = #tpu.dot_dimension_numbers<[1], [0], [0], [1], [0, 0, 1, 1], [], []>} : vector<128x128xbf16>, vector<128x128xbf16>, vector<128x128xf32> -> vector<128x128xf32>
    %112 = arith.addf %106, %111 : vector<128x128xf32>
    %c9_137 = arith.constant 9 : index
    %c1_138 = arith.constant 1 : index
    %c0_139 = arith.constant 0 : index
    %113 = vector.load %arg6[%c9_137, %c1_138, %c0_139] : memref<18x24x128xbf16, #tpu.memory_space<vmem>>, vector<8x16x128xbf16>
    %114 = vector.shape_cast %113 : vector<8x16x128xbf16> to vector<128x128xbf16>
    %c4_140 = arith.constant 4 : index
    %c0_141 = arith.constant 0 : index
    %c0_142 = arith.constant 0 : index
    %115 = vector.load %arg2[%c4_140, %c0_141, %c0_142] : memref<9x128x128xbf16, #tpu.memory_space<vmem>>, vector<1x128x128xbf16>
    %116 = vector.shape_cast %115 : vector<1x128x128xbf16> to vector<128x128xbf16>
    %cst_143 = arith.constant dense<0.000000e+00> : vector<128x128xf32>
    %117 = tpu.matmul %114, %116, %cst_143 {dimension_numbers = #tpu.dot_dimension_numbers<[1], [0], [0], [1], [0, 0, 1, 1], [], []>} : vector<128x128xbf16>, vector<128x128xbf16>, vector<128x128xf32> -> vector<128x128xf32>
    %118 = arith.addf %112, %117 : vector<128x128xf32>
    %c9_144 = arith.constant 9 : index
    %c2_145 = arith.constant 2 : index
    %c0_146 = arith.constant 0 : index
    %119 = vector.load %arg6[%c9_144, %c2_145, %c0_146] : memref<18x24x128xbf16, #tpu.memory_space<vmem>>, vector<8x16x128xbf16>
    %120 = vector.shape_cast %119 : vector<8x16x128xbf16> to vector<128x128xbf16>
    %c5_147 = arith.constant 5 : index
    %c0_148 = arith.constant 0 : index
    %c0_149 = arith.constant 0 : index
    %121 = vector.load %arg2[%c5_147, %c0_148, %c0_149] : memref<9x128x128xbf16, #tpu.memory_space<vmem>>, vector<1x128x128xbf16>
    %122 = vector.shape_cast %121 : vector<1x128x128xbf16> to vector<128x128xbf16>
    %cst_150 = arith.constant dense<0.000000e+00> : vector<128x128xf32>
    %123 = tpu.matmul %120, %122, %cst_150 {dimension_numbers = #tpu.dot_dimension_numbers<[1], [0], [0], [1], [0, 0, 1, 1], [], []>} : vector<128x128xbf16>, vector<128x128xbf16>, vector<128x128xf32> -> vector<128x128xf32>
    %124 = arith.addf %118, %123 : vector<128x128xf32>
    %c10 = arith.constant 10 : index
    %c0_151 = arith.constant 0 : index
    %c0_152 = arith.constant 0 : index
    %125 = vector.load %arg6[%c10, %c0_151, %c0_152] : memref<18x24x128xbf16, #tpu.memory_space<vmem>>, vector<8x16x128xbf16>
    %126 = vector.shape_cast %125 : vector<8x16x128xbf16> to vector<128x128xbf16>
    %c6_153 = arith.constant 6 : index
    %c0_154 = arith.constant 0 : index
    %c0_155 = arith.constant 0 : index
    %127 = vector.load %arg2[%c6_153, %c0_154, %c0_155] : memref<9x128x128xbf16, #tpu.memory_space<vmem>>, vector<1x128x128xbf16>
    %128 = vector.shape_cast %127 : vector<1x128x128xbf16> to vector<128x128xbf16>
    %cst_156 = arith.constant dense<0.000000e+00> : vector<128x128xf32>
    %129 = tpu.matmul %126, %128, %cst_156 {dimension_numbers = #tpu.dot_dimension_numbers<[1], [0], [0], [1], [0, 0, 1, 1], [], []>} : vector<128x128xbf16>, vector<128x128xbf16>, vector<128x128xf32> -> vector<128x128xf32>
    %130 = arith.addf %124, %129 : vector<128x128xf32>
    %c10_157 = arith.constant 10 : index
    %c1_158 = arith.constant 1 : index
    %c0_159 = arith.constant 0 : index
    %131 = vector.load %arg6[%c10_157, %c1_158, %c0_159] : memref<18x24x128xbf16, #tpu.memory_space<vmem>>, vector<8x16x128xbf16>
    %132 = vector.shape_cast %131 : vector<8x16x128xbf16> to vector<128x128xbf16>
    %c7_160 = arith.constant 7 : index
    %c0_161 = arith.constant 0 : index
    %c0_162 = arith.constant 0 : index
    %133 = vector.load %arg2[%c7_160, %c0_161, %c0_162] : memref<9x128x128xbf16, #tpu.memory_space<vmem>>, vector<1x128x128xbf16>
    %134 = vector.shape_cast %133 : vector<1x128x128xbf16> to vector<128x128xbf16>
    %cst_163 = arith.constant dense<0.000000e+00> : vector<128x128xf32>
    %135 = tpu.matmul %132, %134, %cst_163 {dimension_numbers = #tpu.dot_dimension_numbers<[1], [0], [0], [1], [0, 0, 1, 1], [], []>} : vector<128x128xbf16>, vector<128x128xbf16>, vector<128x128xf32> -> vector<128x128xf32>
    %136 = arith.addf %130, %135 : vector<128x128xf32>
    %c10_164 = arith.constant 10 : index
    %c2_165 = arith.constant 2 : index
    %c0_166 = arith.constant 0 : index
    %137 = vector.load %arg6[%c10_164, %c2_165, %c0_166] : memref<18x24x128xbf16, #tpu.memory_space<vmem>>, vector<8x16x128xbf16>
    %138 = vector.shape_cast %137 : vector<8x16x128xbf16> to vector<128x128xbf16>
    %c8_167 = arith.constant 8 : index
    %c0_168 = arith.constant 0 : index
    %c0_169 = arith.constant 0 : index
    %139 = vector.load %arg2[%c8_167, %c0_168, %c0_169] : memref<9x128x128xbf16, #tpu.memory_space<vmem>>, vector<1x128x128xbf16>
    %140 = vector.shape_cast %139 : vector<1x128x128xbf16> to vector<128x128xbf16>
    %cst_170 = arith.constant dense<0.000000e+00> : vector<128x128xf32>
    %141 = tpu.matmul %138, %140, %cst_170 {dimension_numbers = #tpu.dot_dimension_numbers<[1], [0], [0], [1], [0, 0, 1, 1], [], []>} : vector<128x128xbf16>, vector<128x128xbf16>, vector<128x128xf32> -> vector<128x128xf32>
    %142 = arith.addf %136, %141 : vector<128x128xf32>
    %143 = vector.broadcast %0 : vector<1x128xf32> to vector<128x128xf32>
    %144 = arith.mulf %142, %143 : vector<128x128xf32>
    %145 = vector.broadcast %1 : vector<1x128xf32> to vector<128x128xf32>
    %146 = arith.addf %144, %145 : vector<128x128xf32>
    %cst_171 = arith.constant 0.000000e+00 : f32
    %147 = vector.broadcast %cst_171 : f32 to vector<128x128xf32>
    %148 = arith.maximumf %146, %147 : vector<128x128xf32>
    %149 = vector.shape_cast %148 : vector<128x128xf32> to vector<8x16x128xf32>
    %150 = arith.truncf %149 : vector<8x16x128xf32> to vector<8x16x128xbf16>
    %c9_172 = arith.constant 9 : index
    %c1_173 = arith.constant 1 : index
    %c0_174 = arith.constant 0 : index
    %151 = vector.load %arg7[%c9_172, %c1_173, %c0_174] : memref<18x24x128xbf16, #tpu.memory_space<vmem>>, vector<8x16x128xbf16>
    tpu.vector_store %arg7[%c9_172, %c1_173, %c0_174], %150 {strides = array<i32>} : memref<18x24x128xbf16, #tpu.memory_space<vmem>>, vector<8x16x128xbf16>,
    %c0_175 = arith.constant 0 : index
    %c0_176 = arith.constant 0 : index
    %c0_177 = arith.constant 0 : index
    %152 = vector.load %arg7[%c0_175, %c0_176, %c0_177] : memref<18x24x128xbf16, #tpu.memory_space<vmem>>, vector<8x16x128xbf16>
    %153 = vector.shape_cast %152 : vector<8x16x128xbf16> to vector<128x128xbf16>
    %c0_178 = arith.constant 0 : index
    %c0_179 = arith.constant 0 : index
    %c0_180 = arith.constant 0 : index
    %154 = vector.load %arg3[%c0_178, %c0_179, %c0_180] : memref<9x128x128xbf16, #tpu.memory_space<vmem>>, vector<1x128x128xbf16>
    %155 = vector.shape_cast %154 : vector<1x128x128xbf16> to vector<128x128xbf16>
    %cst_181 = arith.constant dense<0.000000e+00> : vector<128x128xf32>
    %156 = tpu.matmul %153, %155, %cst_181 {dimension_numbers = #tpu.dot_dimension_numbers<[1], [0], [0], [1], [0, 0, 1, 1], [], []>} : vector<128x128xbf16>, vector<128x128xbf16>, vector<128x128xf32> -> vector<128x128xf32>
    %c0_182 = arith.constant 0 : index
    %c1_183 = arith.constant 1 : index
    %c0_184 = arith.constant 0 : index
    %157 = vector.load %arg7[%c0_182, %c1_183, %c0_184] : memref<18x24x128xbf16, #tpu.memory_space<vmem>>, vector<8x16x128xbf16>
    %158 = vector.shape_cast %157 : vector<8x16x128xbf16> to vector<128x128xbf16>
    %c1_185 = arith.constant 1 : index
    %c0_186 = arith.constant 0 : index
    %c0_187 = arith.constant 0 : index
    %159 = vector.load %arg3[%c1_185, %c0_186, %c0_187] : memref<9x128x128xbf16, #tpu.memory_space<vmem>>, vector<1x128x128xbf16>
    %160 = vector.shape_cast %159 : vector<1x128x128xbf16> to vector<128x128xbf16>
    %cst_188 = arith.constant dense<0.000000e+00> : vector<128x128xf32>
    %161 = tpu.matmul %158, %160, %cst_188 {dimension_numbers = #tpu.dot_dimension_numbers<[1], [0], [0], [1], [0, 0, 1, 1], [], []>} : vector<128x128xbf16>, vector<128x128xbf16>, vector<128x128xf32> -> vector<128x128xf32>
    %162 = arith.addf %156, %161 : vector<128x128xf32>
    %c0_189 = arith.constant 0 : index
    %c2_190 = arith.constant 2 : index
    %c0_191 = arith.constant 0 : index
    %163 = vector.load %arg7[%c0_189, %c2_190, %c0_191] : memref<18x24x128xbf16, #tpu.memory_space<vmem>>, vector<8x16x128xbf16>
    %164 = vector.shape_cast %163 : vector<8x16x128xbf16> to vector<128x128xbf16>
    %c2_192 = arith.constant 2 : index
    %c0_193 = arith.constant 0 : index
    %c0_194 = arith.constant 0 : index
    %165 = vector.load %arg3[%c2_192, %c0_193, %c0_194] : memref<9x128x128xbf16, #tpu.memory_space<vmem>>, vector<1x128x128xbf16>
    %166 = vector.shape_cast %165 : vector<1x128x128xbf16> to vector<128x128xbf16>
    %cst_195 = arith.constant dense<0.000000e+00> : vector<128x128xf32>
    %167 = tpu.matmul %164, %166, %cst_195 {dimension_numbers = #tpu.dot_dimension_numbers<[1], [0], [0], [1], [0, 0, 1, 1], [], []>} : vector<128x128xbf16>, vector<128x128xbf16>, vector<128x128xf32> -> vector<128x128xf32>
    %168 = arith.addf %162, %167 : vector<128x128xf32>
    %c1_196 = arith.constant 1 : index
    %c0_197 = arith.constant 0 : index
    %c0_198 = arith.constant 0 : index
    %169 = vector.load %arg7[%c1_196, %c0_197, %c0_198] : memref<18x24x128xbf16, #tpu.memory_space<vmem>>, vector<8x16x128xbf16>
    %170 = vector.shape_cast %169 : vector<8x16x128xbf16> to vector<128x128xbf16>
    %c3_199 = arith.constant 3 : index
    %c0_200 = arith.constant 0 : index
    %c0_201 = arith.constant 0 : index
    %171 = vector.load %arg3[%c3_199, %c0_200, %c0_201] : memref<9x128x128xbf16, #tpu.memory_space<vmem>>, vector<1x128x128xbf16>
    %172 = vector.shape_cast %171 : vector<1x128x128xbf16> to vector<128x128xbf16>
    %cst_202 = arith.constant dense<0.000000e+00> : vector<128x128xf32>
    %173 = tpu.matmul %170, %172, %cst_202 {dimension_numbers = #tpu.dot_dimension_numbers<[1], [0], [0], [1], [0, 0, 1, 1], [], []>} : vector<128x128xbf16>, vector<128x128xbf16>, vector<128x128xf32> -> vector<128x128xf32>
    %174 = arith.addf %168, %173 : vector<128x128xf32>
    %c1_203 = arith.constant 1 : index
    %c1_204 = arith.constant 1 : index
    %c0_205 = arith.constant 0 : index
    %175 = vector.load %arg7[%c1_203, %c1_204, %c0_205] : memref<18x24x128xbf16, #tpu.memory_space<vmem>>, vector<8x16x128xbf16>
    %176 = vector.shape_cast %175 : vector<8x16x128xbf16> to vector<128x128xbf16>
    %c4_206 = arith.constant 4 : index
    %c0_207 = arith.constant 0 : index
    %c0_208 = arith.constant 0 : index
    %177 = vector.load %arg3[%c4_206, %c0_207, %c0_208] : memref<9x128x128xbf16, #tpu.memory_space<vmem>>, vector<1x128x128xbf16>
    %178 = vector.shape_cast %177 : vector<1x128x128xbf16> to vector<128x128xbf16>
    %cst_209 = arith.constant dense<0.000000e+00> : vector<128x128xf32>
    %179 = tpu.matmul %176, %178, %cst_209 {dimension_numbers = #tpu.dot_dimension_numbers<[1], [0], [0], [1], [0, 0, 1, 1], [], []>} : vector<128x128xbf16>, vector<128x128xbf16>, vector<128x128xf32> -> vector<128x128xf32>
    %180 = arith.addf %174, %179 : vector<128x128xf32>
    %c1_210 = arith.constant 1 : index
    %c2_211 = arith.constant 2 : index
    %c0_212 = arith.constant 0 : index
    %181 = vector.load %arg7[%c1_210, %c2_211, %c0_212] : memref<18x24x128xbf16, #tpu.memory_space<vmem>>, vector<8x16x128xbf16>
    %182 = vector.shape_cast %181 : vector<8x16x128xbf16> to vector<128x128xbf16>
    %c5_213 = arith.constant 5 : index
    %c0_214 = arith.constant 0 : index
    %c0_215 = arith.constant 0 : index
    %183 = vector.load %arg3[%c5_213, %c0_214, %c0_215] : memref<9x128x128xbf16, #tpu.memory_space<vmem>>, vector<1x128x128xbf16>
    %184 = vector.shape_cast %183 : vector<1x128x128xbf16> to vector<128x128xbf16>
    %cst_216 = arith.constant dense<0.000000e+00> : vector<128x128xf32>
    %185 = tpu.matmul %182, %184, %cst_216 {dimension_numbers = #tpu.dot_dimension_numbers<[1], [0], [0], [1], [0, 0, 1, 1], [], []>} : vector<128x128xbf16>, vector<128x128xbf16>, vector<128x128xf32> -> vector<128x128xf32>
    %186 = arith.addf %180, %185 : vector<128x128xf32>
    %c2_217 = arith.constant 2 : index
    %c0_218 = arith.constant 0 : index
    %c0_219 = arith.constant 0 : index
    %187 = vector.load %arg7[%c2_217, %c0_218, %c0_219] : memref<18x24x128xbf16, #tpu.memory_space<vmem>>, vector<8x16x128xbf16>
    %188 = vector.shape_cast %187 : vector<8x16x128xbf16> to vector<128x128xbf16>
    %c6_220 = arith.constant 6 : index
    %c0_221 = arith.constant 0 : index
    %c0_222 = arith.constant 0 : index
    %189 = vector.load %arg3[%c6_220, %c0_221, %c0_222] : memref<9x128x128xbf16, #tpu.memory_space<vmem>>, vector<1x128x128xbf16>
    %190 = vector.shape_cast %189 : vector<1x128x128xbf16> to vector<128x128xbf16>
    %cst_223 = arith.constant dense<0.000000e+00> : vector<128x128xf32>
    %191 = tpu.matmul %188, %190, %cst_223 {dimension_numbers = #tpu.dot_dimension_numbers<[1], [0], [0], [1], [0, 0, 1, 1], [], []>} : vector<128x128xbf16>, vector<128x128xbf16>, vector<128x128xf32> -> vector<128x128xf32>
    %192 = arith.addf %186, %191 : vector<128x128xf32>
    %c2_224 = arith.constant 2 : index
    %c1_225 = arith.constant 1 : index
    %c0_226 = arith.constant 0 : index
    %193 = vector.load %arg7[%c2_224, %c1_225, %c0_226] : memref<18x24x128xbf16, #tpu.memory_space<vmem>>, vector<8x16x128xbf16>
    %194 = vector.shape_cast %193 : vector<8x16x128xbf16> to vector<128x128xbf16>
    %c7_227 = arith.constant 7 : index
    %c0_228 = arith.constant 0 : index
    %c0_229 = arith.constant 0 : index
    %195 = vector.load %arg3[%c7_227, %c0_228, %c0_229] : memref<9x128x128xbf16, #tpu.memory_space<vmem>>, vector<1x128x128xbf16>
    %196 = vector.shape_cast %195 : vector<1x128x128xbf16> to vector<128x128xbf16>
    %cst_230 = arith.constant dense<0.000000e+00> : vector<128x128xf32>
    %197 = tpu.matmul %194, %196, %cst_230 {dimension_numbers = #tpu.dot_dimension_numbers<[1], [0], [0], [1], [0, 0, 1, 1], [], []>} : vector<128x128xbf16>, vector<128x128xbf16>, vector<128x128xf32> -> vector<128x128xf32>
    %198 = arith.addf %192, %197 : vector<128x128xf32>
    %c2_231 = arith.constant 2 : index
    %c2_232 = arith.constant 2 : index
    %c0_233 = arith.constant 0 : index
    %199 = vector.load %arg7[%c2_231, %c2_232, %c0_233] : memref<18x24x128xbf16, #tpu.memory_space<vmem>>, vector<8x16x128xbf16>
    %200 = vector.shape_cast %199 : vector<8x16x128xbf16> to vector<128x128xbf16>
    %c8_234 = arith.constant 8 : index
    %c0_235 = arith.constant 0 : index
    %c0_236 = arith.constant 0 : index
    %201 = vector.load %arg3[%c8_234, %c0_235, %c0_236] : memref<9x128x128xbf16, #tpu.memory_space<vmem>>, vector<1x128x128xbf16>
    %202 = vector.shape_cast %201 : vector<1x128x128xbf16> to vector<128x128xbf16>
    %cst_237 = arith.constant dense<0.000000e+00> : vector<128x128xf32>
    %203 = tpu.matmul %200, %202, %cst_237 {dimension_numbers = #tpu.dot_dimension_numbers<[1], [0], [0], [1], [0, 0, 1, 1], [], []>} : vector<128x128xbf16>, vector<128x128xbf16>, vector<128x128xf32> -> vector<128x128xf32>
    %204 = arith.addf %198, %203 : vector<128x128xf32>
    %c0_238 = arith.constant 0 : index
    %c0_239 = arith.constant 0 : index
    %c0_240 = arith.constant 0 : index
    %c0_241 = arith.constant 0 : index
    %205 = vector.load %arg1[%c0_238, %c0_239, %c0_240, %c0_241] : memref<1x16x16x128xf32, #tpu.memory_space<vmem>>, vector<1x8x16x128xf32>
    %206 = vector.shape_cast %205 : vector<1x8x16x128xf32> to vector<8x16x128xf32>
    %207 = vector.shape_cast %206 : vector<8x16x128xf32> to vector<128x128xf32>
    %208 = vector.broadcast %2 : vector<1x128xf32> to vector<128x128xf32>
    %209 = arith.mulf %204, %208 : vector<128x128xf32>
    %210 = vector.broadcast %3 : vector<1x128xf32> to vector<128x128xf32>
    %211 = arith.addf %209, %210 : vector<128x128xf32>
    %212 = arith.addf %211, %207 : vector<128x128xf32>
    %cst_242 = arith.constant 0.000000e+00 : f32
    %213 = vector.broadcast %cst_242 : f32 to vector<128x128xf32>
    %214 = arith.maximumf %212, %213 : vector<128x128xf32>
    %215 = vector.shape_cast %214 : vector<128x128xf32> to vector<8x16x128xf32>
    %c0_243 = arith.constant 0 : index
    %c0_244 = arith.constant 0 : index
    %c0_245 = arith.constant 0 : index
    %c0_246 = arith.constant 0 : index
    %216 = vector.load %arg5[%c0_243, %c0_244, %c0_245, %c0_246] : memref<1x16x16x128xf32, #tpu.memory_space<vmem>>, vector<1x8x16x128xf32>
    %217 = vector.shape_cast %216 : vector<1x8x16x128xf32> to vector<8x16x128xf32>
    %218 = vector.shape_cast %215 : vector<8x16x128xf32> to vector<1x8x16x128xf32>
    tpu.vector_store %arg5[%c0_243, %c0_244, %c0_245, %c0_246], %218 {strides = array<i32>} : memref<1x16x16x128xf32, #tpu.memory_space<vmem>>, vector<1x8x16x128xf32>,
    %c8_247 = arith.constant 8 : index
    %c0_248 = arith.constant 0 : index
    %c0_249 = arith.constant 0 : index
    %219 = vector.load %arg7[%c8_247, %c0_248, %c0_249] : memref<18x24x128xbf16, #tpu.memory_space<vmem>>, vector<8x16x128xbf16>
    %220 = vector.shape_cast %219 : vector<8x16x128xbf16> to vector<128x128xbf16>
    %c0_250 = arith.constant 0 : index
    %c0_251 = arith.constant 0 : index
    %c0_252 = arith.constant 0 : index
    %221 = vector.load %arg3[%c0_250, %c0_251, %c0_252] : memref<9x128x128xbf16, #tpu.memory_space<vmem>>, vector<1x128x128xbf16>
    %222 = vector.shape_cast %221 : vector<1x128x128xbf16> to vector<128x128xbf16>
    %cst_253 = arith.constant dense<0.000000e+00> : vector<128x128xf32>
    %223 = tpu.matmul %220, %222, %cst_253 {dimension_numbers = #tpu.dot_dimension_numbers<[1], [0], [0], [1], [0, 0, 1, 1], [], []>} : vector<128x128xbf16>, vector<128x128xbf16>, vector<128x128xf32> -> vector<128x128xf32>
    %c8_254 = arith.constant 8 : index
    %c1_255 = arith.constant 1 : index
    %c0_256 = arith.constant 0 : index
    %224 = vector.load %arg7[%c8_254, %c1_255, %c0_256] : memref<18x24x128xbf16, #tpu.memory_space<vmem>>, vector<8x16x128xbf16>
    %225 = vector.shape_cast %224 : vector<8x16x128xbf16> to vector<128x128xbf16>
    %c1_257 = arith.constant 1 : index
    %c0_258 = arith.constant 0 : index
    %c0_259 = arith.constant 0 : index
    %226 = vector.load %arg3[%c1_257, %c0_258, %c0_259] : memref<9x128x128xbf16, #tpu.memory_space<vmem>>, vector<1x128x128xbf16>
    %227 = vector.shape_cast %226 : vector<1x128x128xbf16> to vector<128x128xbf16>
    %cst_260 = arith.constant dense<0.000000e+00> : vector<128x128xf32>
    %228 = tpu.matmul %225, %227, %cst_260 {dimension_numbers = #tpu.dot_dimension_numbers<[1], [0], [0], [1], [0, 0, 1, 1], [], []>} : vector<128x128xbf16>, vector<128x128xbf16>, vector<128x128xf32> -> vector<128x128xf32>
    %229 = arith.addf %223, %228 : vector<128x128xf32>
    %c8_261 = arith.constant 8 : index
    %c2_262 = arith.constant 2 : index
    %c0_263 = arith.constant 0 : index
    %230 = vector.load %arg7[%c8_261, %c2_262, %c0_263] : memref<18x24x128xbf16, #tpu.memory_space<vmem>>, vector<8x16x128xbf16>
    %231 = vector.shape_cast %230 : vector<8x16x128xbf16> to vector<128x128xbf16>
    %c2_264 = arith.constant 2 : index
    %c0_265 = arith.constant 0 : index
    %c0_266 = arith.constant 0 : index
    %232 = vector.load %arg3[%c2_264, %c0_265, %c0_266] : memref<9x128x128xbf16, #tpu.memory_space<vmem>>, vector<1x128x128xbf16>
    %233 = vector.shape_cast %232 : vector<1x128x128xbf16> to vector<128x128xbf16>
    %cst_267 = arith.constant dense<0.000000e+00> : vector<128x128xf32>
    %234 = tpu.matmul %231, %233, %cst_267 {dimension_numbers = #tpu.dot_dimension_numbers<[1], [0], [0], [1], [0, 0, 1, 1], [], []>} : vector<128x128xbf16>, vector<128x128xbf16>, vector<128x128xf32> -> vector<128x128xf32>
    %235 = arith.addf %229, %234 : vector<128x128xf32>
    %c9_268 = arith.constant 9 : index
    %c0_269 = arith.constant 0 : index
    %c0_270 = arith.constant 0 : index
    %236 = vector.load %arg7[%c9_268, %c0_269, %c0_270] : memref<18x24x128xbf16, #tpu.memory_space<vmem>>, vector<8x16x128xbf16>
    %237 = vector.shape_cast %236 : vector<8x16x128xbf16> to vector<128x128xbf16>
    %c3_271 = arith.constant 3 : index
    %c0_272 = arith.constant 0 : index
    %c0_273 = arith.constant 0 : index
    %238 = vector.load %arg3[%c3_271, %c0_272, %c0_273] : memref<9x128x128xbf16, #tpu.memory_space<vmem>>, vector<1x128x128xbf16>
    %239 = vector.shape_cast %238 : vector<1x128x128xbf16> to vector<128x128xbf16>
    %cst_274 = arith.constant dense<0.000000e+00> : vector<128x128xf32>
    %240 = tpu.matmul %237, %239, %cst_274 {dimension_numbers = #tpu.dot_dimension_numbers<[1], [0], [0], [1], [0, 0, 1, 1], [], []>} : vector<128x128xbf16>, vector<128x128xbf16>, vector<128x128xf32> -> vector<128x128xf32>
    %241 = arith.addf %235, %240 : vector<128x128xf32>
    %c9_275 = arith.constant 9 : index
    %c1_276 = arith.constant 1 : index
    %c0_277 = arith.constant 0 : index
    %242 = vector.load %arg7[%c9_275, %c1_276, %c0_277] : memref<18x24x128xbf16, #tpu.memory_space<vmem>>, vector<8x16x128xbf16>
    %243 = vector.shape_cast %242 : vector<8x16x128xbf16> to vector<128x128xbf16>
    %c4_278 = arith.constant 4 : index
    %c0_279 = arith.constant 0 : index
    %c0_280 = arith.constant 0 : index
    %244 = vector.load %arg3[%c4_278, %c0_279, %c0_280] : memref<9x128x128xbf16, #tpu.memory_space<vmem>>, vector<1x128x128xbf16>
    %245 = vector.shape_cast %244 : vector<1x128x128xbf16> to vector<128x128xbf16>
    %cst_281 = arith.constant dense<0.000000e+00> : vector<128x128xf32>
    %246 = tpu.matmul %243, %245, %cst_281 {dimension_numbers = #tpu.dot_dimension_numbers<[1], [0], [0], [1], [0, 0, 1, 1], [], []>} : vector<128x128xbf16>, vector<128x128xbf16>, vector<128x128xf32> -> vector<128x128xf32>
    %247 = arith.addf %241, %246 : vector<128x128xf32>
    %c9_282 = arith.constant 9 : index
    %c2_283 = arith.constant 2 : index
    %c0_284 = arith.constant 0 : index
    %248 = vector.load %arg7[%c9_282, %c2_283, %c0_284] : memref<18x24x128xbf16, #tpu.memory_space<vmem>>, vector<8x16x128xbf16>
    %249 = vector.shape_cast %248 : vector<8x16x128xbf16> to vector<128x128xbf16>
    %c5_285 = arith.constant 5 : index
    %c0_286 = arith.constant 0 : index
    %c0_287 = arith.constant 0 : index
    %250 = vector.load %arg3[%c5_285, %c0_286, %c0_287] : memref<9x128x128xbf16, #tpu.memory_space<vmem>>, vector<1x128x128xbf16>
    %251 = vector.shape_cast %250 : vector<1x128x128xbf16> to vector<128x128xbf16>
    %cst_288 = arith.constant dense<0.000000e+00> : vector<128x128xf32>
    %252 = tpu.matmul %249, %251, %cst_288 {dimension_numbers = #tpu.dot_dimension_numbers<[1], [0], [0], [1], [0, 0, 1, 1], [], []>} : vector<128x128xbf16>, vector<128x128xbf16>, vector<128x128xf32> -> vector<128x128xf32>
    %253 = arith.addf %247, %252 : vector<128x128xf32>
    %c10_289 = arith.constant 10 : index
    %c0_290 = arith.constant 0 : index
    %c0_291 = arith.constant 0 : index
    %254 = vector.load %arg7[%c10_289, %c0_290, %c0_291] : memref<18x24x128xbf16, #tpu.memory_space<vmem>>, vector<8x16x128xbf16>
    %255 = vector.shape_cast %254 : vector<8x16x128xbf16> to vector<128x128xbf16>
    %c6_292 = arith.constant 6 : index
    %c0_293 = arith.constant 0 : index
    %c0_294 = arith.constant 0 : index
    %256 = vector.load %arg3[%c6_292, %c0_293, %c0_294] : memref<9x128x128xbf16, #tpu.memory_space<vmem>>, vector<1x128x128xbf16>
    %257 = vector.shape_cast %256 : vector<1x128x128xbf16> to vector<128x128xbf16>
    %cst_295 = arith.constant dense<0.000000e+00> : vector<128x128xf32>
    %258 = tpu.matmul %255, %257, %cst_295 {dimension_numbers = #tpu.dot_dimension_numbers<[1], [0], [0], [1], [0, 0, 1, 1], [], []>} : vector<128x128xbf16>, vector<128x128xbf16>, vector<128x128xf32> -> vector<128x128xf32>
    %259 = arith.addf %253, %258 : vector<128x128xf32>
    %c10_296 = arith.constant 10 : index
    %c1_297 = arith.constant 1 : index
    %c0_298 = arith.constant 0 : index
    %260 = vector.load %arg7[%c10_296, %c1_297, %c0_298] : memref<18x24x128xbf16, #tpu.memory_space<vmem>>, vector<8x16x128xbf16>
    %261 = vector.shape_cast %260 : vector<8x16x128xbf16> to vector<128x128xbf16>
    %c7_299 = arith.constant 7 : index
    %c0_300 = arith.constant 0 : index
    %c0_301 = arith.constant 0 : index
    %262 = vector.load %arg3[%c7_299, %c0_300, %c0_301] : memref<9x128x128xbf16, #tpu.memory_space<vmem>>, vector<1x128x128xbf16>
    %263 = vector.shape_cast %262 : vector<1x128x128xbf16> to vector<128x128xbf16>
    %cst_302 = arith.constant dense<0.000000e+00> : vector<128x128xf32>
    %264 = tpu.matmul %261, %263, %cst_302 {dimension_numbers = #tpu.dot_dimension_numbers<[1], [0], [0], [1], [0, 0, 1, 1], [], []>} : vector<128x128xbf16>, vector<128x128xbf16>, vector<128x128xf32> -> vector<128x128xf32>
    %265 = arith.addf %259, %264 : vector<128x128xf32>
    %c10_303 = arith.constant 10 : index
    %c2_304 = arith.constant 2 : index
    %c0_305 = arith.constant 0 : index
    %266 = vector.load %arg7[%c10_303, %c2_304, %c0_305] : memref<18x24x128xbf16, #tpu.memory_space<vmem>>, vector<8x16x128xbf16>
    %267 = vector.shape_cast %266 : vector<8x16x128xbf16> to vector<128x128xbf16>
    %c8_306 = arith.constant 8 : index
    %c0_307 = arith.constant 0 : index
    %c0_308 = arith.constant 0 : index
    %268 = vector.load %arg3[%c8_306, %c0_307, %c0_308] : memref<9x128x128xbf16, #tpu.memory_space<vmem>>, vector<1x128x128xbf16>
    %269 = vector.shape_cast %268 : vector<1x128x128xbf16> to vector<128x128xbf16>
    %cst_309 = arith.constant dense<0.000000e+00> : vector<128x128xf32>
    %270 = tpu.matmul %267, %269, %cst_309 {dimension_numbers = #tpu.dot_dimension_numbers<[1], [0], [0], [1], [0, 0, 1, 1], [], []>} : vector<128x128xbf16>, vector<128x128xbf16>, vector<128x128xf32> -> vector<128x128xf32>
    %271 = arith.addf %265, %270 : vector<128x128xf32>
    %c0_310 = arith.constant 0 : index
    %c8_311 = arith.constant 8 : index
    %c0_312 = arith.constant 0 : index
    %c0_313 = arith.constant 0 : index
    %272 = vector.load %arg1[%c0_310, %c8_311, %c0_312, %c0_313] : memref<1x16x16x128xf32, #tpu.memory_space<vmem>>, vector<1x8x16x128xf32>
    %273 = vector.shape_cast %272 : vector<1x8x16x128xf32> to vector<8x16x128xf32>
    %274 = vector.shape_cast %273 : vector<8x16x128xf32> to vector<128x128xf32>
    %275 = vector.broadcast %2 : vector<1x128xf32> to vector<128x128xf32>
    %276 = arith.mulf %271, %275 : vector<128x128xf32>
    %277 = vector.broadcast %3 : vector<1x128xf32> to vector<128x128xf32>
    %278 = arith.addf %276, %277 : vector<128x128xf32>
    %279 = arith.addf %278, %274 : vector<128x128xf32>
    %cst_314 = arith.constant 0.000000e+00 : f32
    %280 = vector.broadcast %cst_314 : f32 to vector<128x128xf32>
    %281 = arith.maximumf %279, %280 : vector<128x128xf32>
    %282 = vector.shape_cast %281 : vector<128x128xf32> to vector<8x16x128xf32>
    %c0_315 = arith.constant 0 : index
    %c8_316 = arith.constant 8 : index
    %c0_317 = arith.constant 0 : index
    %c0_318 = arith.constant 0 : index
    %283 = vector.load %arg5[%c0_315, %c8_316, %c0_317, %c0_318] : memref<1x16x16x128xf32, #tpu.memory_space<vmem>>, vector<1x8x16x128xf32>
    %284 = vector.shape_cast %283 : vector<1x8x16x128xf32> to vector<8x16x128xf32>
    %285 = vector.shape_cast %282 : vector<8x16x128xf32> to vector<1x8x16x128xf32>
    tpu.vector_store %arg5[%c0_315, %c8_316, %c0_317, %c0_318], %285 {strides = array<i32>} : memref<1x16x16x128xf32, #tpu.memory_space<vmem>>, vector<1x8x16x128xf32>,
    return
  }
  func.func @transform_0(%arg0: i32) -> (i32, i32, i32, i32) {
    %c0_i32 = arith.constant 0 : i32
    %c0_i32_0 = arith.constant 0 : i32
    %c0_i32_1 = arith.constant 0 : i32
    %c0_i32_2 = arith.constant 0 : i32
    return %arg0, %c0_i32, %c0_i32_0, %c0_i32_1 : i32, i32, i32, i32
  }
  func.func @transform_1(%arg0: i32) -> (i32, i32, i32) {
    %c0_i32 = arith.constant 0 : i32
    %c0_i32_0 = arith.constant 0 : i32
    %c0_i32_1 = arith.constant 0 : i32
    %c0_i32_2 = arith.constant 0 : i32
    return %c0_i32, %c0_i32_0, %c0_i32_1 : i32, i32, i32
  }
  func.func @transform_2(%arg0: i32) -> (i32, i32, i32) {
    %c0_i32 = arith.constant 0 : i32
    %c0_i32_0 = arith.constant 0 : i32
    %c0_i32_1 = arith.constant 0 : i32
    %c0_i32_2 = arith.constant 0 : i32
    return %c0_i32, %c0_i32_0, %c0_i32_1 : i32, i32, i32
  }
  func.func @transform_3(%arg0: i32) -> (i32, i32) {
    %c0_i32 = arith.constant 0 : i32
    %c0_i32_0 = arith.constant 0 : i32
    %c0_i32_1 = arith.constant 0 : i32
    return %c0_i32, %c0_i32_0 : i32, i32
  }
  func.func @transform_4(%arg0: i32) -> (i32, i32, i32, i32) {
    %c0_i32 = arith.constant 0 : i32
    %c0_i32_0 = arith.constant 0 : i32
    %c0_i32_1 = arith.constant 0 : i32
    %c0_i32_2 = arith.constant 0 : i32
    return %arg0, %c0_i32, %c0_i32_0, %c0_i32_1 : i32, i32, i32, i32
  }
}

</mosaic_0001>

<bundles_post_ra>
// kernel: tpu_custom_call.1
= control target key start
LH: loop header
LB: loop body
LE: loop exit
PB: predicated region body
PF: predicated region fallthrough
CT: control target
= control target key end

     0   :  { %9 = vsyncpa [#allocation5], 0  ;;  %s21868_s0 = inlined_call_operand.hbm [shape: f32[2,16,16,128], index: 0, kind: input, shape index: {}]   ;;  %s21869_s1 = inlined_call_operand.hbm [shape: bf16[9,128,128], index: 1, kind: input, shape index: {}]   ;;  %s21870_s2 = inlined_call_operand.hbm [shape: bf16[9,128,128], index: 2, kind: input, shape index: {}]   ;;  %s21871_s3 = inlined_call_operand.hbm [shape: f32[8,128], index: 3, kind: input, shape index: {}]   ;;  %s21872_s4 = inlined_call_operand.hbm [shape: f32[2,16,16,128], index: 4, kind: output, shape index: {}]  }
   0x1   :  { %11 = vsyncpa [#allocation5 + $0x1], 0 }
   0x2   :  { %12 = vsyncpa [#allocation8], 0 }
   0x3   :  { %13 = vsyncpa [#allocation11], 0 }
   0x4   :  { %14 = vsyncpa [#allocation6], 0 }
   0x5   :  { %16 = vsyncpa [#allocation6 + $0x1], 0  ;;  %s16679_s15 = smov 0   ;;  %s16681_s16 = smov 0  }
   0x6   :  { %s16683_s17 = smov 0   ;;  %s16685_s18 = smov 0  }
   0x7 LB: > { %s16700_s19 = sadd.s32 4294967295, %s16640_s18   ;;  %s13376_s20 = sadd.s32 4294967294, %s16640_s18   ;;  %s16640_s18 = sphi %s16685_s18, %s22310_s18   ;;  %s16636_s17 = sphi %s16683_s17, %s22309_s17   ;;  %s16632_s16 = sphi %s16681_s16, %s22308_s16   ;;  %s16628_s15 = sphi %s16679_s15, %s22307_s15  }
   0x8   : > { %p42_p0 = scmp.ne.s32.totalorder %s16632_s16, %s16628_s15  ;;  %p21873_p1 = scmp.eq.s32.totalorder %s16700_s19, 0 }
   0x9   : > { %p135_p3 = scmp.eq.s32.totalorder %s13376_s20, 1  ;;  %p13377_p5 = scmp.ge.s32.totalorder %s16640_s18, 1 }
   0xa   : > { %p16709_p4 = por %p21873_p1, %p42_p0  ;;  %p142_p7 = scmp.lt.s32.totalorder %s16640_s18, 3 }
   0xb   : > { %p16714_p6 = por %p135_p3, %p42_p0  ;;  %s16642_s24 = smov [#allocation7]  }
   0xc   : > { %s21914_s21 = scalar_select %p16709_p4, 1, 0 }
   0xd   : > { %s21915_s22 = scalar_select %p16714_p6, 1, 0 }
   0xe   : > { %p16719_p8 = pnand %p13377_p5, %p142_p7  ;;  %s154_s25 = sshll.u32 %s16642_s24, 4  ;;  %s155_s25 = int_to_ptr.vmem [resolvable:$true] %s154_s25 }
   0xf   : > { %s16643_s27 = smov [#allocation9]   ;;  %s16644_s29 = smov [#allocation10]  }
  0x10   : > { %s21916_s23 = scalar_select %p16719_p8, 1, 0 }
  0x11   : > { %p15994_p9 = pneg %p16719_p8  ;;  %s167_s28 = sshll.u32 %s16643_s27, 4  ;;  %s168_s28 = int_to_ptr.vmem [resolvable:$true] %s167_s28 }
  0x12   : > { %s181_s30 = sshll.u32 %s16644_s29, 4  ;;  %s16473_s5 = scalar_lea.vmem %s155_s25, 9216  ;;  %s182_s30 = int_to_ptr.vmem [resolvable:$true] %s181_s30 }
  0x13   : > { %p16728_p11 = pnand %p15994_p9, %p21873_p1  ;;  %p16474_p13 = scmp.ne.s32.totalorder %s155_s25, %s16473_s5 }
  0x14   : > { %p16481_p5 = scmp.lt.s32.totalorder %s155_s25, %s155_s25  ;;  %p16482_p7 = scmp.lt.s32.totalorder %s16473_s5, %s16473_s5 }
  0x15   : > { %p16464_p12 = pneg %p16728_p11 }
  0x16   : > { %p16483_p9 = por %p16482_p7, %p16481_p5 }
  0x17   : > { %p16476_p0 = pnand %p16474_p13, %p16464_p12 }
  0x19   : > { %p16477_p3 = pneg %p16476_p0 }
  0x1b   : > { %p16484_p10 = pnand %p16483_p9, %p16477_p3 }
  0x1d   : > { %16487 = shalt.err (!%p16484_p10)
}
  0x1e   : > { %s16645_s6 = smov 64   ;;  %s16646_s7 = smov 4  }
  0x1f   : > { %15997 = dma.hbm_to_vmem [thread:$0]  (!%p16728_p11), %s21869_s1, 9216, %s155_s25, [#allocation8], %s16645_s6, %s16645_s6, %s16646_s7  }
  0x20   : > { %s16499_s10 = scalar_lea.vmem %s168_s28, 9216  ;;  %p16507_p2 = scmp.lt.s32.totalorder %s168_s28, %s168_s28 }
  0x21   : > { %p16500_p1 = scmp.ne.s32.totalorder %s168_s28, %s16499_s10  ;;  %p16508_p6 = scmp.lt.s32.totalorder %s16499_s10, %s16499_s10 }
  0x23   : > { %p16502_p13 = pnand %p16500_p1, %p16464_p12  ;;  %p16509_p5 = por %p16508_p6, %p16507_p2 }
  0x25   : > { %p16503_p0 = pneg %p16502_p13 }
  0x27   : > { %p16510_p3 = pnand %p16509_p5, %p16503_p0 }
  0x29   : > { %16513 = shalt.err (!%p16510_p3)
}
  0x2a   : > { %16000 = dma.hbm_to_vmem [thread:$0]  (!%p16728_p11), %s21870_s2, 9216, %s168_s28, [#allocation8], %s16645_s6, %s16645_s6, %s16646_s7  }
  0x2b   : > { %s16525_s13 = scalar_lea.vmem %s182_s30, 128  ;;  %p16533_p9 = scmp.lt.s32.totalorder %s182_s30, %s182_s30 }
  0x2c   : > { %p16526_p10 = scmp.ne.s32.totalorder %s182_s30, %s16525_s13  ;;  %p16534_p13 = scmp.lt.s32.totalorder %s16525_s13, %s16525_s13 }
  0x2e   : > { %p16528_p7 = pnand %p16526_p10, %p16464_p12  ;;  %p16535_p4 = por %p16534_p13, %p16533_p9 }
  0x30   : > { %p16529_p1 = pneg %p16528_p7 }
  0x32   : > { %p16536_p2 = pnand %p16535_p4, %p16529_p1 }
  0x34   : > { %16539 = shalt.err (!%p16536_p2)
}
  0x35   : > { %16003 = dma.hbm_to_vmem [thread:$0]  (!%p16728_p11), %s21871_s3, 128, %s182_s30, [#allocation11]  }
  0x36   : > { %s16759_s24 = sadd.s32 1, %s16640_s18   ;;  %s29_s26 = sadd.s32 1, %s16636_s17 }
  0x37   : > { %s26_s25 = ssub.s32 %s16640_s18, %s16759_s24  ;;  %p36_p6 = scmp.ne.s32.totalorder %s16636_s17, %s16632_s16 }
  0x38   : > { %p27_p4 = scmp.eq.s32.totalorder %s26_s25, 0  ;;  %p37_p12 = scmp.eq.s32.totalorder %s16640_s18, 0 }
  0x39   : > { %p16015_p0 = scmp.lt.s32.totalorder %s16640_s18, 2  ;;  %p21918_p3 = scmp.eq.s32.totalorder %s16700_s19, 1 }
  0x3a   : > { %s16769_s27 = scalar_select %p27_p4, %s16636_s17, %s29_s26  }
  0x3b   : > { %p38_p5 = por %p37_p12, %p36_p6  ;;  %p16773_p10 = por %p21918_p3, %p36_p6 }
  0x3c   : > { %s192_s29 = sand.u32 1, %s16636_s17   ;;  %s14184_s5 = sshll.u32 %s16640_s18, 12 }
  0x3d   : > { %s21919_s28 = scalar_select %p16773_p10, 1, 0 }
  0x3e   : > { %s13382_s30 = sshll.u32 %s192_s29, 8  ;;  %s16782_s8 = scalar_lea.hbm %s21868_s0, %s14184_s5 }
  0x3f   : > { %s196_s9 = scalar_lea.vmem [#allocation4], %s13382_s30  ;;  %p16784_p11 = pnand %p16015_p0, %p38_p5 }
  0x40   : > { %s203_s10 = sshll.u32 %s196_s9, 4  ;;  %s16790_s12 = scalar_lea.sflag [#allocation5], %s192_s29  ;;  %s16788_s10 = int_to_ptr.vmem [resolvable:$true] %s203_s10 }
  0x41   : > { %s16540_s13 = scalar_lea.hbm %s16782_s8, 4096  ;;  %p16542_p1 = pneg %p16784_p11 }
  0x42   : > { %p16541_p7 = scmp.ne.s32.totalorder %s16782_s8, %s16540_s13  ;;  %s16545_s25 = scalar_lea.hbm %s21868_s0, 8192 }
  0x43   : > { %p16546_p2 = scmp.lt.s32.totalorder %s16782_s8, %s21868_s0  ;;  %p16547_p4 = scmp.lt.s32.totalorder %s16545_s25, %s16540_s13 }
  0x44   : > { %p16543_p9 = pnand %p16542_p1, %p16541_p7 }
  0x45   : > { %p16548_p6 = por %p16547_p4, %p16546_p2 }
  0x46   : > { %p16544_p13 = pneg %p16543_p9 }
  0x48   : > { %p16549_p12 = pnand %p16548_p6, %p16544_p13 }
  0x4a   : > { %16552 = shalt.err (!%p16549_p12)
}
  0x4b   : > { %s16553_s29 = scalar_lea.vmem %s16788_s10, 4096  ;;  %s16647_s30 = smov [#allocation4]  }
  0x4c   : > { %p16554_p0 = scmp.ne.s32.totalorder %s16788_s10, %s16553_s29  ;;  %s16558_s6 = sshll.u32 %s16647_s30, 4  ;;  %s16559_s6 = int_to_ptr.vmem [resolvable:$false] %s16558_s6 }
  0x4d   : > { %s16560_s7 = scalar_lea.vmem %s16559_s6, 8192  ;;  %p16561_p7 = scmp.lt.s32.totalorder %s16788_s10, %s16559_s6 }
  0x4e   : > { %p16556_p5 = pnand %p16554_p0, %p16542_p1  ;;  %p16562_p9 = scmp.lt.s32.totalorder %s16560_s7, %s16553_s29 }
  0x50   : > { %p16557_p3 = pneg %p16556_p5  ;;  %p16563_p10 = por %p16562_p9, %p16561_p7 }
  0x52   : > { %p16564_p8 = pnand %p16563_p10, %p16557_p3 }
  0x54   : > { %16567 = shalt.err (!%p16564_p8)
}
  0x55   : > { %s16648_s9 = smov 128   ;;  %s16649_s13 = smov 8  }
  0x56   : > { %16007 = dma.hbm_to_vmem [thread:$0]  (!%p16784_p11), %s16782_s8, 4096, %s16788_s10, %s16790_s12, %s16648_s9, %s16648_s9, %s16649_s13  }
  0x57   : > { %p21921_p1 = scmp.ne.s32.totalorder %s21916_s23, 0 }
  0x59   : > { %215 = sbr.rel (%p21921_p1) target bundleno = 1193 (0x4a9), region = 36 }
  0x5e   : > { %s16814_s14 = sand.u32 1, %s16632_s16   ;;  %p21922_p8 = scmp.ne.s32.totalorder %s21914_s21, 0 }
  0x5f   : > { %s13386_s20 = sshll.u32 %s16814_s14, 8  ;;  %s218_s25 = scalar_lea.sflag [#allocation5], %s16814_s14 }
  0x60   : > { %s16820_s26 = scalar_lea.vmem [#allocation4], %s13386_s20 }
  0x61   : > { %16611 = dma.done.wait (%p21922_p8), %s218_s25, 4096  }
  0x62   : > { %16613 = vsyncadd (%p21922_p8), %s218_s25, 4294963200  ;;  %p21923_p10 = scmp.eq.s32.totalorder %s16700_s19, 0 }
  0x64   : > { %16615 = dma.done.wait (%p21923_p10), [#allocation8], 18432   ;;  %p21924_p11 = pmov %p21923_p10 }
  0x65   : > { %p21925_p13 = pmov %p21923_p10 }
  0x66   : > { %16617 = vsyncadd (%p21924_p11), [#allocation8], 4294948864 }
  0x67   : > { %16619 = dma.done.wait (%p21925_p13), [#allocation11], 128   ;;  %p21926_p2 = pmov %p21923_p10 }
  0x68   : > { %v16650_v0 = vmov 0   ;;  %v16062_v1 = vld [vmem:[#allocation7 + $0x78] sm:$0xff]   ;;  %v16064_v3 = vld [vmem:[#allocation7 + $0x70] sm:$0xff]   ;;  %v16066_v5 = vld [vmem:[#allocation7 + $0x68] sm:$0xff]   ;;  %vm270_vm0 = vcmask 1040384   ;;  %v21927_v9 = vmov 0 }
  0x69   : > { %16621 = vsyncadd (%p21926_p2), [#allocation11], 4294967168  ;;  %263 = vst [vmem:[#allocation2] sm:$0xf] %v16650_v0  ;;  %v16063_v2 = vld [vmem:[#allocation7 + $0x38] sm:$0xff]   ;;  %14826 = vmatprep.subr.bf16.mxu0 %v16062_v1  ;;  %v16065_v4 = vld [vmem:[#allocation7 + $0x30] sm:$0xff]  }
  0x6a   : > { %264 = vst [vmem:[#allocation2 + $0x4] sm:$0xf] %v16650_v0  ;;  %265 = vst [vmem:[#allocation2 + $0x8] sm:$0xf] %v16650_v0  ;;  %14858 = vmatprep.subr.bf16.mxu1 %v16063_v2  ;;  %14827 = vmatpush3.bf16.msra.mxu0 %v16062_v1  ;;  %v16067_v6 = vld [vmem:[#allocation7 + $0x28] sm:$0xff]   ;;  %v16068_v7 = vld [vmem:[#allocation7 + $0x60] sm:$0xff]  }
  0x6b   : > { %267 = vst [vmem:[#allocation2 + $0xcc] sm:$0xf] %v16650_v0  ;;  %268 = vst [vmem:[#allocation2 + $0xd0] sm:$0xf] %v16650_v0  ;;  %14859 = vmatpush3.bf16.msra.mxu1 %v16063_v2  ;;  %14828 = vmatprep.subr.bf16.mxu0 %v16064_v3  ;;  %vm271_vm1 = vsmask.f32 256 }
  0x6c   : > { %269 = vst [vmem:[#allocation2 + $0xd4] sm:$0xf] %v16650_v0  ;;  %950 = vst [vmem:[#allocation3] sm:$0xf] %v16650_v0  ;;  %14860 = vmatprep.subr.bf16.mxu1 %v16065_v4  ;;  %vm327_vm2 = vsmask.f32 7938 }
  0x6d   : > { %951 = vst [vmem:[#allocation3 + $0x4] sm:$0xf] %v16650_v0  ;;  %952 = vst [vmem:[#allocation3 + $0x8] sm:$0xf] %v16650_v0  ;;  %v16069_v8 = vld [vmem:[#allocation7 + $0x20] sm:$0xff]   ;;  %v21930_v10 = vmov 0 }
  0x6e   : > { %954 = vst [vmem:[#allocation3 + $0xcc] sm:$0xf] %v16650_v0  ;;  %955 = vst [vmem:[#allocation3 + $0xd0] sm:$0xf] %v16650_v0  ;;  %14829 = vmatpush3.bf16.msra.mxu0 %v16064_v3  ;;  %v16070_v11 = vld [vmem:[#allocation7 + $0x58] sm:$0xff]   ;;  %v16072_v13 = vld [vmem:[#allocation7 + $0x50] sm:$0xff]  }
  0x6f   : > { %956 = vst [vmem:[#allocation3 + $0xd4] sm:$0xf] %v16650_v0  ;;  %14861 = vmatpush3.bf16.msra.mxu1 %v16065_v4  ;;  %14830 = vmatprep.subr.bf16.mxu0 %v16066_v5  ;;  %vm16835_vm3 = vmand %vm270_vm0, %vm271_vm1  ;;  %v16071_v12 = vld [vmem:[#allocation7 + $0x18] sm:$0xff]   ;;  %v16073_v14 = vld [vmem:[#allocation7 + $0x10] sm:$0xff]   ;;  %vm447_vm5 = vsmask.f32 4368 }
  0x70   : > { %14862 = vmatprep.subr.bf16.mxu1 %v16067_v6  ;;  %v21928_v9 = vsel %vm16835_vm3, 4294967295, %v21927_v9  ;;  %vm16840_vm4 = vmand %vm270_vm0, %vm327_vm2  ;;  %v273_v15 = vld [vmem:[#allocation2] sm:$0x1]  ;;  %vm1105_vm6 = vsmask.f32 3328  ;;  %v383_v25 = vld [vmem:[%s16820_s26] sm:$0xff] }
  0x71   : > { %21929 = vst [vmem:[#allocation17_spill] sm:$0xff] %v21928_v9  ;;  %v21931_v10 = vsel %vm16840_vm4, 4294967295, %v21930_v10  ;;  %v329_v16 = vld [vmem:[#allocation2 + $0x8] sm:$0x1]  ;;  %v16844_v17 = vld [vmem:[#allocation2 + $0x4] sm:$0xf]  ;;  %v14185_v31 = vpack.c.bf16 %v383_v25, %v383_v25  ;;  %vm16880_vm10 = vmor %vm271_vm1, %vm447_vm5 }
  0x72   : > { %14831 = vmatpush3.bf16.msra.mxu0 %v16066_v5  ;;  %21932 = vst [vmem:[#allocation18_spill] sm:$0xff] %v21931_v10  ;;  %v274_v18 = vsel %vm16835_vm3, 0, %v273_v15  ;;  %v330_v19 = vsel %vm16840_vm4, 0, %v329_v16  ;;  %vm1106_vm7 = vsmask.f32 7440  ;;  %v1118_v20 = vshll.u32 %v16844_v17, 16 }
  0x73   : > { %14863 = vmatpush3.bf16.msra.mxu1 %v16067_v6  ;;  %14832 = vmatprep.subr.bf16.mxu0 %v16068_v7  ;;  %v1122_v21 = vshrl.u32 %v16844_v17, 16  ;;  %v276_v22 = vld [vmem:[#allocation2 + $0xc] sm:$0x1]  ;;  %275 = vst [vmem:[#allocation2] sm:$0x1] %v274_v18  ;;  %v384_v26 = vld [vmem:[%s16820_s26 + $0x8] sm:$0xff]  ;;  %vm16892_vm11 = vmor %vm1105_vm6, %vm1106_vm7 }
  0x74   : > { %14864 = vmatprep.subr.bf16.mxu1 %v16069_v8  ;;  %331 = vst [vmem:[#allocation2 + $0x8] sm:$0x1] %v330_v19  ;;  %v277_v23 = vsel %vm16835_vm3, 0, %v276_v22  ;;  %v332_v24 = vld [vmem:[#allocation2 + $0x14] sm:$0x1]  ;;  %vm610_vm8 = vcmask 1043456   ;;  %v14186_v32 = vpack.c.bf16 %v384_v26, %v384_v26 }
  0x75   : > { %v16074_v27 = vld [vmem:[#allocation7 + $0x48] sm:$0xff]   ;;  %v16856_v28 = vrot.slane %v1118_v20, 5  ;;  %v1124_v29 = vrot.slane %v1122_v21, 4  ;;  %278 = vst [vmem:[#allocation2 + $0xc] sm:$0x1] %v277_v23  ;;  %v333_v30 = vsel %vm16840_vm4, 0, %v332_v24  ;;  %vm16867_vm9 = vmand %vm610_vm8, %vm327_vm2 }
  0x76   : > { %14833 = vmatpush3.bf16.msra.mxu0 %v16068_v7  ;;  %334 = vst [vmem:[#allocation2 + $0x14] sm:$0x1] %v333_v30  ;;  %v16075_v33 = vld [vmem:[#allocation7 + $0x8] sm:$0xff]   ;;  %v450_v35 = vshrl.u32 %v14185_v31, 16  ;;  %v453_v36 = vshll.u32 %v14185_v31, 16  ;;  %v16076_v37 = vld [vmem:[#allocation7 + $0x40] sm:$0xff]  }
  0x77   : > { %14865 = vmatpush3.bf16.msra.mxu1 %v16069_v8  ;;  %14834 = vmatprep.subr.bf16.mxu0 %v16070_v11  ;;  %v1125_v34 = vor.u32 %v1124_v29, %v16856_v28  ;;  %v458_v38 = vshrl.u32 %v14186_v32, 16  ;;  %v16861_v39 = vld [vmem:[#allocation7] sm:$0xff]   ;;  %v461_v42 = vshll.u32 %v14186_v32, 16  ;;  %v21933_v43 = vmov 0  ;;  %v385_v44 = vld [vmem:[%s16820_s26 + $0x10] sm:$0xff]  ;;  %v386_v48 = vld [vmem:[%s16820_s26 + $0x18] sm:$0xff] }
  0x78   : > { %14866 = vmatprep.subr.bf16.mxu1 %v16071_v12  ;;  %v452_v41 = vrot.slane %v450_v35, 7  ;;  %v21934_v43 = vsel %vm16867_vm9, 4294967295, %v21933_v43  ;;  %v279_v46 = vld [vmem:[#allocation2 + $0x18] sm:$0x1]  ;;  %v335_v47 = vld [vmem:[#allocation2 + $0x20] sm:$0x1]  ;;  %v14187_v54 = vpack.c.bf16 %v385_v44, %v385_v44  ;;  %v14188_v61 = vpack.c.bf16 %v386_v48, %v386_v48 }
  0x79   : > { %v16863_v40 = vrot.slane %v1125_v34, 4  ;;  %21935 = vst [vmem:[#allocation19_spill] sm:$0xff] %v21934_v43  ;;  %v460_v45 = vrot.slane %v458_v38, 7  ;;  %v280_v53 = vsel %vm16835_vm3, 0, %v279_v46  ;;  %v21936_v58 = vmov 0  ;;  %v16884_v60 = vld [vmem:[#allocation7 + $0xb8] sm:$0xff]  }
  0x7a   : > { %14835 = vmatpush3.bf16.msra.mxu0 %v16070_v11  ;;  %v1065_v49 = vld [vmem:[#allocation2] sm:$0xf]  ;;  %v455_v51 = vor.u32 %v453_v36, %v452_v41  ;;  %v456_v52 = vrot.slane %v452_v41, 4  ;;  %v21937_v58 = vsel %vm16880_vm10, 4294967295, %v21936_v58  ;;  %281 = vst [vmem:[#allocation2 + $0x18] sm:$0x1] %v280_v53 }
  0x7b   : > { %14867 = vmatpush3.bf16.msra.mxu1 %v16071_v12  ;;  %14836 = vmatprep.subr.bf16.mxu0 %v16072_v13  ;;  %v16873_v50 = vld [vmem:[#allocation2 + $0x8] sm:$0x1]  ;;  %v1109_v55 = vshrl.u32 %v1065_v49, 16  ;;  %v1112_v56 = vshll.u32 %v1065_v49, 16  ;;  %21938 = vst [vmem:[#allocation20_spill] sm:$0xff] %v21937_v58  ;;  %v13455_v62 = vcombine.low %v1065_v49, %v16844_v17  ;;  %v463_v63 = vor.u32 %v461_v42, %v460_v45  ;;  %v387_v4 = vld [vmem:[%s16820_s26 + $0x20] sm:$0xff] }
  0x7c   : > { %14868 = vmatprep.subr.bf16.mxu1 %v16073_v14  ;;  %v1128_v57 = vshll.u32 %v16873_v50, 16  ;;  %v612_v59 = vld [vmem:[#allocation2 + $0xc] sm:$0xf]  ;;  %v465_v0 = vrot.slane %v460_v45, 4  ;;  %v282_v3 = vld [vmem:[#allocation2 + $0x24] sm:$0x1]  ;;  %v14189_v26 = vpack.c.bf16 %v387_v4, %v387_v4 }
  0x7d   : > { %v613_v1 = vsel %vm16867_vm9, %v455_v51, %v612_v59  ;;  %v616_v2 = vld [vmem:[#allocation2 + $0x14] sm:$0x1]  ;;  %v1111_v6 = vrot.slane %v1109_v55, 4  ;;  %v1114_v7 = vrot.slane %v1112_v56, 5  ;;  %v336_v11 = vsel %vm16840_vm4, 0, %v335_v47  ;;  %14874 = vmatprep.mubr.bf16.mxu1 %v13455_v62  ;;  %v16903_v15 = vld [vmem:[#allocation7 + $0xf8] sm:$0xff]  }
  0x7e   : > { %14837 = vmatpush3.bf16.msra.mxu0 %v16072_v13  ;;  %v1130_v8 = vrot.slane %v1128_v57, 5  ;;  %614 = vst [vmem:[#allocation2 + $0xc] sm:$0xf] %v613_v1  ;;  %v338_v12 = vld [vmem:[#allocation2 + $0x2c] sm:$0x1]  ;;  %v464_v13 = vsel %vm16880_vm10, %v456_v52, %v463_v63  ;;  %v467_v16 = vshrl.u32 %v14187_v54, 16 }
  0x7f   : > { %14869 = vmatpush3.bf16.msra.mxu1 %v16073_v14  ;;  %14838 = vmatprep.subr.bf16.mxu0 %v16074_v27  ;;  %v617_v14 = vsel %vm16835_vm3, %v465_v0, %v616_v2  ;;  %337 = vst [vmem:[#allocation2 + $0x20] sm:$0x1] %v336_v11  ;;  %v470_v18 = vshll.u32 %v14187_v54, 16  ;;  %v388_v19 = vld [vmem:[%s16820_s26 + $0x28] sm:$0xff]  ;;  %v1115_v20 = vor.u32 %v1114_v7, %v1111_v6  ;;  %615 = vst [vmem:[#allocation2 + $0x10] sm:$0xf] %v464_v13 }
  0x80   : > { %14870 = vmatprep.subr.bf16.mxu1 %v16075_v33  ;;  %618 = vst [vmem:[#allocation2 + $0x14] sm:$0x1] %v617_v14  ;;  %v475_v21 = vshrl.u32 %v14188_v61, 16  ;;  %v478_v22 = vshll.u32 %v14188_v61, 16  ;;  %v469_v23 = vrot.slane %v467_v16, 7  ;;  %v283_v24 = vsel %vm16835_vm3, 0, %v282_v3 }
  0x81   : > { %v339_v25 = vsel %vm16840_vm4, 0, %v338_v12  ;;  %v1131_v29 = vsel %vm16892_vm11, %v16863_v40, %v1130_v8  ;;  %284 = vst [vmem:[#allocation2 + $0x24] sm:$0x1] %v283_v24  ;;  %v14190_v31 = vpack.c.bf16 %v388_v19, %v388_v19  ;;  %v619_v34 = vld [vmem:[#allocation2 + $0x18] sm:$0xf]  ;;  %v484_v35 = vshrl.u32 %v14189_v26, 16 }
  0x82   : > { %14839 = vmatpush3.bf16.msra.mxu0 %v16074_v27  ;;  %v1116_v27 = vrot.slane %v1115_v20, 4  ;;  %v477_v30 = vrot.slane %v475_v21, 7  ;;  %340 = vst [vmem:[#allocation2 + $0x2c] sm:$0x1] %v339_v25  ;;  %v472_v32 = vor.u32 %v470_v18, %v469_v23  ;;  %v487_v36 = vshll.u32 %v14189_v26, 16  ;;  %v389_v53 = vld [vmem:[%s16820_s26 + $0x30] sm:$0xff] }
  0x83   : > { %14871 = vmatpush3.bf16.msra.mxu1 %v16075_v33  ;;  %14840 = vmatprep.subr.bf16.mxu0 %v16076_v37  ;;  %v473_v33 = vrot.slane %v469_v23, 4  ;;  %v492_v40 = vshrl.u32 %v14190_v31, 16  ;;  %v486_v45 = vrot.slane %v484_v35, 7  ;;  %v495_v46 = vshll.u32 %v14190_v31, 16  ;;  %v285_v0 = vld [vmem:[#allocation2 + $0x30] sm:$0x1] }
  0x84   : > { %14872 = vmatprep.subr.bf16.mxu1 %v16861_v39  ;;  %v480_v38 = vor.u32 %v478_v22, %v477_v30  ;;  %v620_v44 = vsel %vm16867_vm9, %v472_v32, %v619_v34  ;;  %v16083_v3 = vld [vmem:[#allocation7 + $0xf0] sm:$0xff]   ;;  %v14191_v8 = vpack.c.bf16 %v389_v53, %v389_v53  ;;  %v341_v16 = vld [vmem:[#allocation2 + $0x38] sm:$0x1]  ;;  %v390_v18 = vld [vmem:[%s16820_s26 + $0x38] sm:$0xff]  ;;  %v286_v22 = vsel %vm16835_vm3, 0, %v285_v0  ;;  %s21402_s21 = scalar_lea.vmem [#allocation12], %s13386_s20 }
  0x85   : > { %v1067_v42 = vld [vmem:[#allocation2 + $0xc] sm:$0xf]  ;;  %621 = vst [vmem:[#allocation2 + $0x18] sm:$0xf] %v620_v44  ;;  %v494_v52 = vrot.slane %v492_v40, 7  ;;  %v489_v56 = vor.u32 %v487_v36, %v486_v45  ;;  %v490_v57 = vrot.slane %v486_v45, 4  ;;  %v16946_v31 = vpack.c.bf16 %v390_v18, %v390_v18 }
  0x86   : > { %14841 = vmatpush3.bf16.msra.mxu0 %v16076_v37  ;;  %v1121_v37 = vsel %vm16892_vm11, %v1116_v27, %v16856_v28  ;;  %v1133_v47 = vshrl.u32 %v1067_v42, 16  ;;  %v1136_v48 = vshll.u32 %v1067_v42, 16  ;;  %v481_v49 = vsel %vm16880_vm10, %v473_v33, %v480_v38  ;;  %v623_v51 = vld [vmem:[#allocation2 + $0x20] sm:$0x1]  ;;  %v16924_v28 = vld [vmem:[#allocation2 + $0x10] sm:$0xf] }
  0x87   : > { %14873 = vmatpush3.bf16.msra.mxu1 %v16861_v39  ;;  %14890 = vmatprep.subr.bf16.mxu0 %v16884_v60  ;;  %v482_v39 = vrot.slane %v477_v30, 4  ;;  %v13439_v41 = vcombine.low %v1121_v37, %v1131_v29  ;;  %v16926_v54 = vld [vmem:[#allocation2 + $0x14] sm:$0x1]  ;;  %622 = vst [vmem:[#allocation2 + $0x1c] sm:$0xf] %v481_v49  ;;  %v1142_v62 = vshll.u32 %v16924_v28, 16  ;;  %v13456_v2 = vcombine.low %v1067_v42, %v16924_v28 }
  0x88   : > { %14922 = vmatprep.subr.bf16.mxu1 %v16903_v15  ;;  %v1135_v59 = vrot.slane %v1133_v47, 4  ;;  %v1138_v61 = vrot.slane %v1136_v48, 5  ;;  %v1146_v63 = vshrl.u32 %v16924_v28, 16  ;;  %v1152_v1 = vshll.u32 %v16926_v54, 16  ;;  %v626_v6 = vld [vmem:[#allocation2 + $0x24] sm:$0xf] }
  0x89   : > { %14842 = vmatprep.mubr.bf16.mxu0 %v13439_v41  ;;  %v624_v55 = vsel %vm16835_vm3, %v482_v39, %v623_v51  ;;  %v497_v4 = vor.u32 %v495_v46, %v494_v52  ;;  %v630_v7 = vld [vmem:[#allocation2 + $0x2c] sm:$0x1]  ;;  %v1144_v12 = vrot.slane %v1142_v62, 5  ;;  %v499_v14 = vrot.slane %v494_v52, 4  ;;  %v288_v23 = vld [vmem:[#allocation2 + $0x3c] sm:$0x1] }
  0x8a   : > { %625 = vst [vmem:[#allocation2 + $0x20] sm:$0x1] %v624_v55  ;;  %v1139_v11 = vor.u32 %v1138_v61, %v1135_v59  ;;  %v1148_v13 = vrot.slane %v1146_v63, 4  ;;  %v1154_v19 = vrot.slane %v1152_v1, 5  ;;  %14875 = vmatmul.mubr.bf16.vlgmr.msra.gmra.mxu1 %v13456_v2  ;;  %v627_v21 = vsel %vm16867_vm9, %v489_v56, %v626_v6  ;;  %287 = vst [vmem:[#allocation2 + $0x30] sm:$0x1] %v286_v22 }
  0x8b   : > { %v498_v20 = vsel %vm16880_vm10, %v490_v57, %v497_v4  ;;  %14923 = vmatpush3.bf16.msra.mxu1 %v16903_v15  ;;  %628 = vst [vmem:[#allocation2 + $0x24] sm:$0xf] %v627_v21  ;;  %v631_v26 = vsel %vm16835_vm3, %v499_v14, %v630_v7  ;;  %v342_v27 = vsel %vm16840_vm4, 0, %v341_v16  ;;  %v16087_v30 = vld [vmem:[#allocation7 + $0xe8] sm:$0xff]   ;;  %v501_v32 = vshrl.u32 %v14191_v8, 16  ;;  %v16082_v40 = vld [vmem:[#allocation7 + $0xb0] sm:$0xff]  }
  0x8c   : > { %v1140_v24 = vrot.slane %v1139_v11, 4  ;;  %v1149_v25 = vor.u32 %v1148_v13, %v1144_v12  ;;  %629 = vst [vmem:[#allocation2 + $0x28] sm:$0xf] %v498_v20  ;;  %14924 = vmatprep.subr.bf16.mxu1 %v16083_v3  ;;  %v1069_v29 = vld [vmem:[#allocation2 + $0x18] sm:$0xf]  ;;  %v504_v33 = vshll.u32 %v14191_v8, 16 }
  0x8d   : > { %632 = vst [vmem:[#allocation2 + $0x2c] sm:$0x1] %v631_v26  ;;  %343 = vst [vmem:[#allocation2 + $0x38] sm:$0x1] %v342_v27  ;;  %v289_v15 = vsel %vm16835_vm3, 0, %v288_v23  ;;  %v1157_v37 = vshrl.u32 %v1069_v29, 16 }
  0x8e   : > { %v1145_v34 = vsel %vm16892_vm11, %v1140_v24, %v1144_v12  ;;  %v1150_v35 = vrot.slane %v1149_v25, 4  ;;  %v16952_v36 = vld [vmem:[#allocation2 + $0x1c] sm:$0xf]  ;;  %v1160_v38 = vshll.u32 %v1069_v29, 16  ;;  %290 = vst [vmem:[#allocation2 + $0x3c] sm:$0x1] %v289_v15 }
  0x8f   : > { %v344_v39 = vld [vmem:[#allocation2 + $0x44] sm:$0x1]  ;;  %v1166_v42 = vshll.u32 %v16952_v36, 16  ;;  %v1170_v44 = vshrl.u32 %v16952_v36, 16  ;;  %v13457_v45 = vcombine.low %v1069_v29, %v16952_v36  ;;  %v16089_v46 = vld [vmem:[#allocation7 + $0xe0] sm:$0xff]   ;;  %v16959_v47 = vrot.slane %v501_v32, 7  ;;  %14925 = vmatpush3.bf16.msra.mxu1 %v16083_v3 }
  0x90   : > { %v1155_v48 = vsel %vm16892_vm11, %v1150_v35, %v1154_v19  ;;  %v1159_v49 = vrot.slane %v1157_v37, 4  ;;  %v1162_v51 = vrot.slane %v1160_v38, 5  ;;  %v391_v53 = vld [vmem:[%s16820_s26 + $0x40] sm:$0xff]  ;;  %14926 = vmatprep.subr.bf16.mxu1 %v16087_v30  ;;  %v509_v0 = vshrl.u32 %v16946_v31, 16  ;;  %v16970_v4 = vld [vmem:[#allocation7 + $0xa8] sm:$0xff]   ;;  %v16093_v22 = vld [vmem:[#allocation7 + $0xd8] sm:$0xff]  }
  0x91   : > { %v16954_v41 = vld [vmem:[#allocation2 + $0x20] sm:$0x1]  ;;  %v13440_v55 = vcombine.low %v1145_v34, %v1155_v48  ;;  %v1168_v56 = vrot.slane %v1166_v42, 5  ;;  %v1172_v57 = vrot.slane %v1170_v44, 4  ;;  %14878 = vmatprep.mubr.bf16.mxu1 %v13457_v45  ;;  %v506_v59 = vor.u32 %v504_v33, %v16959_v47  ;;  %v392_v27 = vld [vmem:[%s16820_s26 + $0x48] sm:$0xff]  ;;  %v16989_v32 = vld [vmem:[#allocation7 + $0xa0] sm:$0xff]  }
  0x92   : > { %v1176_v52 = vshll.u32 %v16954_v41, 16  ;;  %v1163_v61 = vor.u32 %v1162_v51, %v1159_v49  ;;  %v507_v63 = vrot.slane %v16959_v47, 4  ;;  %v1071_v2 = vld [vmem:[#allocation2 + $0x24] sm:$0xf]  ;;  %v512_v6 = vshll.u32 %v16946_v31, 16  ;;  %s14249_s23 = sshll.u32 %s16700_s19, 12 }
  0x93   : > { %14843 = vmatmul.mubr.bf16.vlgmr.msra.gmra.mxu0 %v13440_v55  ;;  %v1173_v1 = vor.u32 %v1172_v57, %v1168_v56  ;;  %v16968_v3 = vld [vmem:[#allocation2 + $0x28] sm:$0xf]  ;;  %v345_v7 = vsel %vm16840_vm4, 0, %v344_v39  ;;  %v16975_v8 = vpack.c.bf16 %v391_v53, %v391_v53  ;;  %v1181_v13 = vshrl.u32 %v1071_v2, 16  ;;  %14927 = vmatpush3.bf16.msra.mxu1 %v16087_v30  ;;  %v16095_v34 = vld [vmem:[#allocation7 + $0xd0] sm:$0xff]   ;;  %s13274_s8 = sshll.u32 %s21402_s21, 4  ;;  %s21821_s12 = scalar_lea.hbm %s21872_s4, %s14249_s23  ;;  %s21823_s8 = int_to_ptr.vmem [resolvable:$true] %s13274_s8 }
  0x94   : > { %v1178_v62 = vrot.slane %v1176_v52, 5  ;;  %14891 = vmatpush3.bf16.msra.mxu0 %v16884_v60  ;;  %v1164_v11 = vrot.slane %v1163_v61, 4  ;;  %v16978_v12 = vld [vmem:[#allocation2 + $0x2c] sm:$0x1]  ;;  %v1184_v14 = vshll.u32 %v1071_v2, 16  ;;  %v1190_v16 = vshll.u32 %v16968_v3, 16  ;;  %14928 = vmatprep.subr.bf16.mxu1 %v16089_v46 }
  0x95   : > { %346 = vst [vmem:[#allocation2 + $0x44] sm:$0x1] %v345_v7  ;;  %14892 = vmatprep.subr.bf16.mxu0 %v16082_v40  ;;  %v1174_v18 = vrot.slane %v1173_v1, 4  ;;  %v1194_v19 = vshrl.u32 %v16968_v3, 16  ;;  %v1200_v20 = vshll.u32 %v16978_v12, 16  ;;  %v13458_v21 = vcombine.low %v1071_v2, %v16968_v3  ;;  %v393_v42 = vld [vmem:[%s16820_s26 + $0x50] sm:$0xff] }
  0x96   : > { %v633_v60 = vld [vmem:[#allocation2 + $0x30] sm:$0xf]  ;;  %v1169_v23 = vsel %vm16892_vm11, %v1164_v11, %v1168_v56  ;;  %v1183_v24 = vrot.slane %v1181_v13, 4  ;;  %v1186_v25 = vrot.slane %v1184_v14, 5  ;;  %v1192_v26 = vrot.slane %v1190_v16, 5  ;;  %v394_v52 = vld [vmem:[%s16820_s26 + $0x58] sm:$0xff] }
  0x97   : > { %v1179_v29 = vsel %vm16892_vm11, %v1174_v18, %v1178_v62  ;;  %v1196_v30 = vrot.slane %v1194_v19, 4  ;;  %v1202_v31 = vrot.slane %v1200_v20, 5  ;;  %14879 = vmatmul.mubr.bf16.gmra.mxu1 %v13458_v21  ;;  %v511_v33 = vrot.slane %v509_v0, 7  ;;  %v637_v15 = vld [vmem:[#allocation2 + $0x38] sm:$0x1]  ;;  %v16092_v21 = vld [vmem:[#allocation7 + $0x98] sm:$0xff]  }
  0x98   : > { %14893 = vmatpush3.bf16.msra.mxu0 %v16082_v40  ;;  %v13441_v35 = vcombine.low %v1169_v23, %v1179_v29  ;;  %v1187_v37 = vor.u32 %v1186_v25, %v1183_v24  ;;  %14929 = vmatpush3.bf16.msra.mxu1 %v16089_v46  ;;  %v634_v38 = vsel %vm16867_vm9, %v506_v59, %v633_v60  ;;  %v518_v39 = vshrl.u32 %v16975_v8, 16  ;;  %v640_v51 = vld [vmem:[#allocation2 + $0x3c] sm:$0xf]  ;;  %v291_v40 = vld [vmem:[#allocation2 + $0x48] sm:$0x1]  ;;  %s13261_s5 = scalar_lea.sflag [#allocation6], %s16814_s14 }
  0x99   : > { %v1197_v44 = vor.u32 %v1196_v30, %v1192_v26  ;;  %14894 = vmatprep.subr.bf16.mxu0 %v16970_v4  ;;  %v514_v45 = vor.u32 %v512_v6, %v511_v33  ;;  %v516_v48 = vrot.slane %v511_v33, 4  ;;  %635 = vst [vmem:[#allocation2 + $0x30] sm:$0xf] %v634_v38  ;;  %v14194_v49 = vpack.c.bf16 %v392_v27, %v392_v27  ;;  %v347_v57 = vld [vmem:[#allocation2 + $0x50] sm:$0x1]  ;;  %v17007_v7 = vld [vmem:[#allocation7 + $0xc8] sm:$0xff]  }
  0x9a   : > { %14930 = vmatprep.subr.bf16.mxu1 %v16093_v22  ;;  %14846 = vmatprep.mubr.bf16.mxu0 %v13441_v35  ;;  %v1188_v46 = vrot.slane %v1187_v37, 4  ;;  %v520_v53 = vrot.slane %v518_v39, 7  ;;  %v521_v55 = vshll.u32 %v16975_v8, 16  ;;  %v292_v56 = vsel %vm16835_vm3, 0, %v291_v40  ;;  %v294_v1 = vld [vmem:[#allocation2 + $0x54] sm:$0x1] }
  0x9b   : > { %v1198_v59 = vrot.slane %v1197_v44, 4  ;;  %v515_v61 = vsel %vm16880_vm10, %v507_v63, %v514_v45  ;;  %v638_v62 = vsel %vm16835_vm3, %v516_v48, %v637_v15  ;;  %v526_v0 = vshrl.u32 %v14194_v49, 16  ;;  %293 = vst [vmem:[#allocation2 + $0x48] sm:$0x1] %v292_v56  ;;  %v350_v2 = vld [vmem:[#allocation2 + $0x5c] sm:$0x1] }
  0x9c   : > { %v395_v6 = vld [vmem:[%s16820_s26 + $0x60] sm:$0xff]  ;;  %v1193_v8 = vsel %vm16892_vm11, %v1188_v46, %v1192_v26  ;;  %14895 = vmatpush3.bf16.msra.mxu0 %v16970_v4  ;;  %636 = vst [vmem:[#allocation2 + $0x34] sm:$0xf] %v515_v61  ;;  %639 = vst [vmem:[#allocation2 + $0x38] sm:$0x1] %v638_v62  ;;  %v523_v47 = vor.u32 %v521_v55, %v520_v53  ;;  %v524_v11 = vrot.slane %v520_v53, 4  ;;  %14931 = vmatpush3.bf16.msra.mxu1 %v16093_v22 }
  0x9d   : > { %v529_v63 = vshll.u32 %v14194_v49, 16  ;;  %v644_v13 = vld [vmem:[#allocation2 + $0x44] sm:$0x1]  ;;  %v1203_v14 = vsel %vm16892_vm11, %v1198_v59, %v1202_v31  ;;  %14896 = vmatprep.subr.bf16.mxu0 %v16989_v32  ;;  %v528_v16 = vrot.slane %v526_v0, 7  ;;  %14932 = vmatprep.subr.bf16.mxu1 %v16095_v34  ;;  %v348_v18 = vsel %vm16840_vm4, 0, %v347_v57  ;;  %v396_v57 = vld [vmem:[%s16820_s26 + $0x68] sm:$0xff] }
  0x9e   : > { %v14195_v19 = vpack.c.bf16 %v393_v42, %v393_v42  ;;  %v13442_v20 = vcombine.low %v1193_v8, %v1203_v14  ;;  %v641_v4 = vsel %vm16867_vm9, %v523_v47, %v640_v51  ;;  %349 = vst [vmem:[#allocation2 + $0x50] sm:$0x1] %v348_v18  ;;  %v14196_v60 = vpack.c.bf16 %v394_v52, %v394_v52  ;;  %v16094_v39 = vld [vmem:[#allocation7 + $0x90] sm:$0xff]   ;;  %v16098_v59 = vld [vmem:[#allocation7 + $0x88] sm:$0xff]   ;;  %s16568_s19 = scalar_lea.vmem %s21823_s8, 4096  ;;  %p22304_p6 = scmp.ne.s32.totalorder %s21919_s28, 0 }
  0x9f   : > { %v295_v22 = vsel %vm16835_vm3, 0, %v294_v1  ;;  %v531_v23 = vor.u32 %v529_v63, %v528_v16  ;;  %v533_v24 = vrot.slane %v528_v16, 4  ;;  %642 = vst [vmem:[#allocation2 + $0x3c] sm:$0xf] %v641_v4  ;;  %v351_v31 = vsel %vm16840_vm4, 0, %v350_v2  ;;  %p16569_p4 = scmp.ne.s32.totalorder %s21823_s8, %s16568_s19  ;;  %s16651_s29 = smov [#allocation12]  }
  0xa0   : > { %v535_v25 = vshrl.u32 %v14195_v19, 16  ;;  %v538_v26 = vshll.u32 %v14195_v19, 16  ;;  %296 = vst [vmem:[#allocation2 + $0x54] sm:$0x1] %v295_v22  ;;  %14847 = vmatmul.mubr.bf16.gmra.mxu0 %v13442_v20  ;;  %v1073_v27 = vld [vmem:[#allocation2 + $0x30] sm:$0xf]  ;;  %14933 = vmatpush3.bf16.msra.mxu1 %v16095_v34  ;;  %v17023_v33 = vpack.c.bf16 %v395_v6, %v395_v6 }
  0xa1   : > { %v543_v29 = vshrl.u32 %v14196_v60, 16  ;;  %v546_v30 = vshll.u32 %v14196_v60, 16  ;;  %14897 = vmatpush3.bf16.msra.mxu0 %v16989_v32  ;;  %v1205_v15 = vshrl.u32 %v1073_v27, 16  ;;  %v1208_v35 = vshll.u32 %v1073_v27, 16  ;;  %352 = vst [vmem:[#allocation2 + $0x5c] sm:$0x1] %v351_v31  ;;  %14934 = vmatprep.subr.bf16.mxu1 %v17007_v7  ;;  %p16570_p12 = pnand %p16569_p4, %p22304_p6 }
  0xa2   : > { %v532_v37 = vsel %vm16880_vm10, %v524_v11, %v531_v23  ;;  %v645_v38 = vsel %vm16835_vm3, %v533_v24, %v644_v13  ;;  %v16101_v34 = vld [vmem:[#allocation7 + $0xc0] sm:$0xff]   ;;  %14898 = vmatprep.subr.bf16.mxu0 %v16092_v21  ;;  %v537_v42 = vrot.slane %v535_v25, 7  ;;  %v552_v32 = vshrl.u32 %v17023_v33, 16  ;;  %v647_v52 = vld [vmem:[#allocation2 + $0x48] sm:$0xf]  ;;  %s16572_s30 = sshll.u32 %s16651_s29, 4  ;;  %s16573_s30 = int_to_ptr.vmem [resolvable:$false] %s16572_s30 }
  0xa3   : > { %643 = vst [vmem:[#allocation2 + $0x40] sm:$0xf] %v532_v37  ;;  %646 = vst [vmem:[#allocation2 + $0x44] sm:$0x1] %v645_v38  ;;  %v545_v44 = vrot.slane %v543_v29, 7  ;;  %vm1711_vm12 = vcmask 1042432   ;;  %p16571_p0 = pneg %p16570_p12  ;;  %p16575_p5 = scmp.lt.s32.totalorder %s21823_s8, %s16573_s30 }
  0xa4   : > { %vm1712_vm13 = vcmask 1046532   ;;  %v1716_v45 = vrot.slane %v16844_v17, 5  ;;  %v17033_v48 = vld [vmem:[#allocation2 + $0x34] sm:$0xf]  ;;  %v17035_v49 = vld [vmem:[#allocation2 + $0x38] sm:$0x1]  ;;  %14935 = vmatpush3.bf16.msra.mxu1 %v17007_v7  ;;  %v540_v62 = vor.u32 %v538_v26, %v537_v42 }
  0xa5   : > { %v1207_v51 = vrot.slane %v1205_v15, 4  ;;  %v1210_v40 = vrot.slane %v1208_v35, 5  ;;  %v1214_v46 = vshll.u32 %v17033_v48, 16  ;;  %v1218_v53 = vshrl.u32 %v17033_v48, 16  ;;  %14899 = vmatpush3.bf16.msra.mxu0 %v16092_v21  ;;  %v651_v2 = vld [vmem:[#allocation2 + $0x50] sm:$0x1]  ;;  %14936 = vmatprep.subr.bf16.mxu1 %v16101_v34  ;;  %vm17071_vm14 = vmor %vm1711_vm12, %vm1712_vm13 }
  0xa6   : > { %v1224_v55 = vshll.u32 %v17035_v49, 16  ;;  %v13459_v56 = vcombine.low %v1073_v27, %v17033_v48  ;;  %v541_v0 = vrot.slane %v537_v42, 4  ;;  %v548_v1 = vor.u32 %v546_v30, %v545_v44  ;;  %v17043_v6 = vld [vmem:[#allocation7 + $0x178] sm:$0xff]   ;;  %v1075_v63 = vld [vmem:[#allocation2 + $0x3c] sm:$0xf]  ;;  %14900 = vmatprep.subr.bf16.mxu0 %v16094_v39  ;;  %v16100_v60 = vld [vmem:[#allocation7 + $0x80] sm:$0xff]  }
  0xa7   : > { %v1211_v61 = vor.u32 %v1210_v40, %v1207_v51  ;;  %v1216_v8 = vrot.slane %v1214_v46, 5  ;;  %v1220_v47 = vrot.slane %v1218_v53, 4  ;;  %v550_v13 = vrot.slane %v545_v44, 4  ;;  %v1687_v29 = vld [vmem:[#allocation2] sm:$0xe]  ;;  %s16574_s6 = scalar_lea.vmem %s16573_s30, 8192 }
  0xa8   : > { %v1226_v11 = vrot.slane %v1224_v55, 5  ;;  %14882 = vmatprep.mubr.bf16.mxu1 %v13459_v56  ;;  %v1229_v16 = vshrl.u32 %v1075_v63, 16  ;;  %v1232_v18 = vshll.u32 %v1075_v63, 16  ;;  %v549_v7 = vsel %vm16880_vm10, %v541_v0, %v548_v1  ;;  %14937 = vmatpush3.bf16.msra.mxu1 %v16101_v34  ;;  %v654_v37 = vld [vmem:[#allocation2 + $0x54] sm:$0xf]  ;;  %p16576_p3 = scmp.lt.s32.totalorder %s16574_s6, %s16568_s19 }
  0xa9   : > { %v1212_v14 = vrot.slane %v1211_v61, 4  ;;  %v1221_v19 = vor.u32 %v1220_v47, %v1216_v8  ;;  %v648_v20 = vsel %vm16867_vm9, %v540_v62, %v647_v52  ;;  %650 = vst [vmem:[#allocation2 + $0x4c] sm:$0xf] %v549_v7  ;;  %v652_v4 = vsel %vm16835_vm3, %v550_v13, %v651_v2  ;;  %14901 = vmatpush3.bf16.msra.mxu0 %v16094_v39  ;;  %v17077_v62 = vld [vmem:[#allocation7 + $0x138] sm:$0xff]  }
  0xaa   : > { %v17051_v21 = vrot.slane %v552_v32, 7  ;;  %v17055_v23 = vld [vmem:[#allocation2 + $0x40] sm:$0xf]  ;;  %v17057_v24 = vld [vmem:[#allocation2 + $0x44] sm:$0x1]  ;;  %v1231_v25 = vrot.slane %v1229_v16, 4  ;;  %v14198_v27 = vpack.c.bf16 %v396_v57, %v396_v57  ;;  %14986 = vmatprep.subr.bf16.mxu1 %v17043_v6  ;;  %14902 = vmatprep.subr.bf16.mxu0 %v16098_v59  ;;  %p16577_p7 = por %p16576_p3, %p16575_p5 }
  0xab   : > { %v1217_v22 = vsel %vm16892_vm11, %v1212_v14, %v1216_v8  ;;  %v1234_v26 = vrot.slane %v1232_v18, 5  ;;  %649 = vst [vmem:[#allocation2 + $0x48] sm:$0xf] %v648_v20  ;;  %653 = vst [vmem:[#allocation2 + $0x50] sm:$0x1] %v652_v4  ;;  %v1222_v30 = vrot.slane %v1221_v19, 4  ;;  %v13460_v39 = vcombine.low %v1075_v63, %v17055_v23 }
  0xac   : > { %v1238_v31 = vshll.u32 %v17055_v23, 16  ;;  %v1242_v15 = vshrl.u32 %v17055_v23, 16  ;;  %v1248_v35 = vshll.u32 %v17057_v24, 16  ;;  %v1719_v38 = vrot.slane %v16873_v50, 5  ;;  %p16578_p9 = pnand %p16577_p7, %p16571_p0 }
  0xad   : > { %v1235_v34 = vor.u32 %v1234_v26, %v1231_v25  ;;  %v555_v42 = vshll.u32 %v17023_v33, 16  ;;  %v1227_v44 = vsel %vm16892_vm11, %v1222_v30, %v1226_v11  ;;  %14883 = vmatmul.mubr.bf16.gmra.mxu1 %v13460_v39  ;;  %v560_v55 = vshrl.u32 %v14198_v27, 16  ;;  %14903 = vmatpush3.bf16.msra.mxu0 %v16098_v59 }
  0xae   : > { %v1240_v32 = vrot.slane %v1238_v31, 5  ;;  %v1244_v51 = vrot.slane %v1242_v15, 4  ;;  %v1250_v40 = vrot.slane %v1248_v35, 5  ;;  %v13443_v52 = vcombine.low %v1217_v22, %v1227_v44  ;;  %14904 = vmatprep.subr.bf16.mxu0 %v16100_v60  ;;  %v1688_v15 = vld [vmem:[#allocation2 + $0xc] sm:$0xe] }
  0xaf   : > { %v1236_v46 = vrot.slane %v1235_v34, 4  ;;  %v557_v53 = vor.u32 %v555_v42, %v17051_v21  ;;  %v21941_v50 = vmov 0  ;;  %v563_v56 = vshll.u32 %v14198_v27, 16  ;;  %v1689_v42 = vld [vmem:[#allocation2 + $0x18] sm:$0xe] }
  0xb0   : > { %v21942_v50 = vsel %vm17071_vm14, 4294967295, %v21941_v50  ;;  %v1245_v33 = vor.u32 %v1244_v51, %v1240_v32  ;;  %v13471_v57 = vrot.slane %v1687_v29, 9  ;;  %v1718_v61 = vrot.slane %v1716_v45, 4  ;;  %14850 = vmatprep.mubr.bf16.mxu0 %v13443_v52  ;;  %v17081_v59 = vld [vmem:[#allocation2 + $0x4c] sm:$0xf] }
  0xb1   : > { %21943 = vst [vmem:[#allocation21_spill] sm:$0xff] %v21942_v50  ;;  %v1241_v0 = vsel %vm16892_vm11, %v1236_v46, %v1240_v32  ;;  %v558_v1 = vrot.slane %v17051_v21, 4  ;;  %v562_v2 = vrot.slane %v560_v55, 7  ;;  %v655_v8 = vsel %vm16867_vm9, %v557_v53, %v654_v37  ;;  %14905 = vmatpush3.bf16.msra.mxu0 %v16100_v60  ;;  %v18080_v50 = vld [vmem:[#allocation7 + $0x170] sm:$0xff]  }
  0xb2   : > { %v1246_v47 = vrot.slane %v1245_v33, 4  ;;  %v1077_v11 = vld [vmem:[#allocation2 + $0x48] sm:$0xf]  ;;  %v17086_v63 = vld [vmem:[#allocation2 + $0x50] sm:$0x1]  ;;  %v1262_v13 = vshll.u32 %v17081_v59, 16  ;;  %v17093_v14 = vsel %vm17071_vm14, %v13471_v57, %v1716_v45  ;;  %v17097_v16 = vsel %vm17071_vm14, %v1718_v61, %v1719_v38  ;;  %14954 = vmatprep.subr.bf16.mxu0 %v17077_v62 }
  0xb3   : > { %656 = vst [vmem:[#allocation2 + $0x54] sm:$0xf] %v655_v8  ;;  %v1253_v18 = vshrl.u32 %v1077_v11, 16  ;;  %v1256_v7 = vshll.u32 %v1077_v11, 16  ;;  %v1266_v19 = vshrl.u32 %v17081_v59, 16  ;;  %v1272_v20 = vshll.u32 %v17086_v63, 16 }
  0xb4   : > { %v1251_v4 = vsel %vm16892_vm11, %v1246_v47, %v1250_v40  ;;  %v1264_v21 = vrot.slane %v1262_v13, 5  ;;  %v13461_v17 = vcombine.low %v1077_v11, %v17081_v59  ;;  %v565_v22 = vor.u32 %v563_v56, %v562_v2  ;;  %v658_v45 = vld [vmem:[#allocation2 + $0x5c] sm:$0x1]  ;;  %v1690_v40 = vld [vmem:[#allocation2 + $0x24] sm:$0xe] }
  0xb5   : > { %v13444_v25 = vcombine.low %v1241_v0, %v1251_v4  ;;  %v1255_v26 = vrot.slane %v1253_v18, 4  ;;  %v1258_v27 = vrot.slane %v1256_v7, 5  ;;  %v1268_v29 = vrot.slane %v1266_v19, 4  ;;  %v1691_v7 = vld [vmem:[#allocation2 + $0x30] sm:$0xe] }
  0xb6   : > { %14886 = vmatprep.mubr.bf16.mxu1 %v13461_v17  ;;  %v566_v30 = vsel %vm16880_vm10, %v558_v1, %v565_v22  ;;  %v567_v31 = vrot.slane %v562_v2, 4  ;;  %v13479_v60 = vcombine.low %v17093_v14, %v17097_v16  ;;  %v1274_v38 = vrot.slane %v1272_v20, 5  ;;  %v16102_v2 = vld [vmem:[#allocation2 + $0xc] sm:$0xff]  }
  0xb7   : > { %14851 = vmatmul.mubr.bf16.gmra.mxu0 %v13444_v25  ;;  %v1259_v35 = vor.u32 %v1258_v27, %v1255_v26  ;;  %v1269_v37 = vor.u32 %v1268_v29, %v1264_v21  ;;  %657 = vst [vmem:[#allocation2 + $0x58] sm:$0xf] %v566_v30  ;;  %v1726_v34 = vrot.slane %v16926_v54, 5  ;;  %v13472_v53 = vrot.slane %v1688_v15, 9  ;;  %v1692_v27 = vld [vmem:[#allocation2 + $0x3c] sm:$0xe] }
  0xb8   : > { %v659_v39 = vsel %vm16835_vm3, %v567_v31, %v658_v45  ;;  %v1723_v55 = vrot.slane %v16924_v28, 5  ;;  %v1730_v56 = vrot.slane %v16952_v36, 5  ;;  %v1737_v57 = vrot.slane %v16968_v3, 5 }
  0xb9   : > { %v1260_v44 = vrot.slane %v1259_v35, 4  ;;  %v1270_v32 = vrot.slane %v1269_v37, 4  ;;  %660 = vst [vmem:[#allocation2 + $0x5c] sm:$0x1] %v659_v39  ;;  %v13473_v8 = vrot.slane %v1689_v42, 9  ;;  %v1733_v47 = vrot.slane %v16954_v41, 5 }
  0xba   : > { %v1079_v51 = vld [vmem:[#allocation2 + $0x54] sm:$0xf]  ;;  %v1725_v13 = vrot.slane %v1723_v55, 4  ;;  %v13474_v18 = vrot.slane %v1690_v40, 9  ;;  %v1732_v4 = vrot.slane %v1730_v56, 4  ;;  %v1740_v17 = vrot.slane %v16978_v12, 5 }
  0xbb   : > { %v1277_v52 = vshrl.u32 %v1079_v51, 16  ;;  %v1280_v46 = vshll.u32 %v1079_v51, 16  ;;  %v1265_v33 = vsel %vm16892_vm11, %v1260_v44, %v1264_v21  ;;  %v1275_v54 = vsel %vm16892_vm11, %v1270_v32, %v1274_v38  ;;  %v16103_v35 = vld [vmem:[#allocation2 + $0x18] sm:$0xff]  }
  0xbc   : > { %v13445_v61 = vcombine.low %v1265_v33, %v1275_v54  ;;  %v1739_v21 = vrot.slane %v1737_v57, 4  ;;  %v1744_v41 = vrot.slane %v17033_v48, 5  ;;  %v13475_v29 = vrot.slane %v1691_v7, 9  ;;  %v1694_v54 = vld [vmem:[#allocation2 + $0x54] sm:$0xe] }
  0xbd   : > { %v1279_v0 = vrot.slane %v1277_v52, 4  ;;  %v1282_v1 = vrot.slane %v1280_v46, 5  ;;  %v1747_v30 = vrot.slane %v17035_v49, 5  ;;  %v1751_v37 = vrot.slane %v17055_v23, 5  ;;  %v16107_v49 = vld [vmem:[#allocation7 + $0x170] sm:$0xff]   ;;  %v16109_v7 = vld [vmem:[#allocation2 + $0x30] sm:$0xff]  }
  0xbe   : > { %14854 = vmatprep.mubr.bf16.mxu0 %v13445_v61  ;;  %v17120_v11 = vld [vmem:[#allocation2 + $0x58] sm:$0xf]  ;;  %v17134_v12 = vsel %vm17071_vm14, %v13472_v53, %v1723_v55  ;;  %v1746_v48 = vrot.slane %v1744_v41, 4  ;;  %v13476_v38 = vrot.slane %v1692_v27, 9  ;;  %v17140_v44 = vsel %vm17071_vm14, %v1725_v13, %v1726_v34  ;;  %v16108_v55 = vld [vmem:[#allocation2 + $0x24] sm:$0xff]  }
  0xbf   : > { %v1283_v28 = vor.u32 %v1282_v1, %v1279_v0  ;;  %v1286_v19 = vshll.u32 %v17120_v11, 16  ;;  %v1290_v36 = vshrl.u32 %v17120_v11, 16  ;;  %v13462_v3 = vcombine.low %v1079_v51, %v17120_v11  ;;  %v1693_v51 = vld [vmem:[#allocation2 + $0x48] sm:$0xe] }
  0xc0   : > { %v17125_v20 = vld [vmem:[#allocation2 + $0x5c] sm:$0x1]  ;;  %v1754_v32 = vrot.slane %v17057_v24, 5  ;;  %v17147_v40 = vsel %vm17071_vm14, %v13473_v8, %v1730_v56  ;;  %v1753_v52 = vrot.slane %v1751_v37, 4  ;;  %v1758_v46 = vrot.slane %v17081_v59, 5  ;;  %v397_v8 = vld [vmem:[%s16820_s26 + $0x70] sm:$0xff] }
  0xc1   : > { %v1284_v22 = vrot.slane %v1283_v28, 4  ;;  %v1288_v45 = vrot.slane %v1286_v19, 5  ;;  %v1292_v25 = vrot.slane %v1290_v36, 4  ;;  %v1296_v26 = vshll.u32 %v17125_v20, 16  ;;  %14887 = vmatmul.mubr.bf16.gmra.mxu1 %v13462_v3  ;;  %v16111_v59 = vld [vmem:[#allocation7 + $0x168] sm:$0xff]  }
  0xc2   : > { %14938 = vmatprep.mubr.bf16.mxu1 %v16102_v2  ;;  %v13480_v34 = vcombine.low %v17134_v12, %v17140_v44  ;;  %v17154_v24 = vsel %vm17071_vm14, %v1732_v4, %v1733_v47  ;;  %v17158_v33 = vsel %vm17071_vm14, %v13474_v18, %v1737_v57  ;;  %v17162_v56 = vsel %vm17071_vm14, %v1739_v21, %v1740_v17  ;;  %v297_v2 = vld [vmem:[#allocation2 + $0x60] sm:$0x1]  ;;  %v398_v57 = vld [vmem:[%s16820_s26 + $0x78] sm:$0xff] }
  0xc3   : > { %v1293_v31 = vor.u32 %v1292_v25, %v1288_v45  ;;  %v1298_v15 = vrot.slane %v1296_v26, 5  ;;  %v1289_v39 = vsel %vm16892_vm11, %v1284_v22, %v1288_v45  ;;  %v17166_v61 = vsel %vm17071_vm14, %v13475_v29, %v1744_v41  ;;  %v17195_v22 = vld [vmem:[#allocation7 + $0x130] sm:$0xff]   ;;  %v2222_v26 = vld [vmem:[#allocation2 + $0xc] sm:$0xf] }
  0xc4   : > { %v17170_v0 = vsel %vm17071_vm14, %v1746_v48, %v1747_v30  ;;  %v13477_v1 = vrot.slane %v1693_v51, 9  ;;  %v1765_v47 = vrot.slane %v17120_v11, 5  ;;  %v298_v28 = vsel %vm16835_vm3, 0, %v297_v2  ;;  %v16110_v2 = vld [vmem:[#allocation7 + $0x128] sm:$0xff]  }
  0xc5   : > { %v1294_v42 = vrot.slane %v1293_v31, 4  ;;  %v14199_v13 = vpack.c.bf16 %v397_v8, %v397_v8  ;;  %v14200_v18 = vpack.c.bf16 %v398_v57, %v398_v57  ;;  %v17183_v19 = vsel %vm17071_vm14, %v13476_v38, %v1751_v37  ;;  %299 = vst [vmem:[#allocation2 + $0x60] sm:$0x1] %v298_v28  ;;  %v17211_v31 = vld [vmem:[#allocation2 + $0x10] sm:$0xf]  ;;  %v16117_v8 = vld [vmem:[#allocation7 + $0x158] sm:$0xff]  }
  0xc6   : > { %v1760_v11 = vrot.slane %v1758_v46, 4  ;;  %v1761_v36 = vrot.slane %v17086_v63, 5  ;;  %v13478_v3 = vrot.slane %v1694_v54, 9  ;;  %v1768_v4 = vrot.slane %v17125_v20, 5  ;;  %v16113_v37 = vld [vmem:[#allocation7 + $0x160] sm:$0xff]  }
  0xc7   : > { %v1299_v23 = vsel %vm16892_vm11, %v1294_v42, %v1298_v15  ;;  %v569_v14 = vshrl.u32 %v14199_v13, 16  ;;  %v572_v16 = vshll.u32 %v14199_v13, 16  ;;  %v13482_v21 = vcombine.low %v17158_v33, %v17162_v56  ;;  %v17213_v15 = vld [vmem:[#allocation2 + $0x14] sm:$0x1] }
  0xc8   : > { %v13446_v53 = vcombine.low %v1289_v39, %v1299_v23  ;;  %v577_v17 = vshrl.u32 %v14200_v18, 16  ;;  %v580_v41 = vshll.u32 %v14200_v18, 16  ;;  %v13483_v63 = vcombine.low %v17166_v61, %v17170_v0  ;;  %v17238_v18 = vld [vmem:[#allocation2 + $0x20] sm:$0x1] }
  0xc9   : > { %14939 = vmatmul.mubr.bf16.vlgmr.msra.gmra.mxu1 %v16103_v35  ;;  %v1767_v20 = vrot.slane %v1765_v47, 4  ;;  %v571_v25 = vrot.slane %v569_v14, 7  ;;  %v17203_v27 = vsel %vm17071_vm14, %v13477_v1, %v1758_v46  ;;  %v17207_v29 = vsel %vm17071_vm14, %v1760_v11, %v1761_v36  ;;  %v2225_v46 = vld [vmem:[#allocation2 + $0x18] sm:$0xf] }
  0xca   : > { %14855 = vmatmul.mubr.bf16.gmra.mxu0 %v13446_v53  ;;  %14987 = vmatpush3.bf16.msra.mxu1 %v17043_v6  ;;  %v17187_v6 = vsel %vm17071_vm14, %v1753_v52, %v1754_v32  ;;  %v17209_v30 = vrot.slane %v577_v17, 7  ;;  %v2247_v35 = vshrl.u32 %v2222_v26, 16  ;;  %v2250_v39 = vshll.u32 %v2222_v26, 16  ;;  %v16114_v32 = vld [vmem:[#allocation2 + $0x3c] sm:$0xff]  }
  0xcb   : > { %14906 = vmatprep.mubr.bf16.mxu0 %v13479_v60  ;;  %14988 = vmatprep.subr.bf16.mxu1 %v16107_v49  ;;  %v13481_v60 = vcombine.low %v17147_v40, %v17154_v24  ;;  %v13484_v45 = vcombine.low %v17183_v19, %v17187_v6  ;;  %v574_v48 = vor.u32 %v572_v16, %v571_v25  ;;  %v575_v38 = vrot.slane %v571_v25, 4  ;;  %v2649_v16 = vld [vmem:[#allocation2 + $0x18] sm:$0xe]  ;;  %v16119_v17 = vld [vmem:[#allocation7 + $0x150] sm:$0xff]  }
  0xcc   : > { %14942 = vmatprep.mubr.bf16.mxu1 %v16108_v55  ;;  %v2256_v42 = vshll.u32 %v17211_v31, 16  ;;  %v17218_v51 = vsel %vm17071_vm14, %v13478_v3, %v1765_v47  ;;  %v582_v23 = vor.u32 %v580_v41, %v17209_v30  ;;  %v2249_v40 = vrot.slane %v2247_v35, 4  ;;  %v661_v53 = vld [vmem:[#allocation2 + $0x60] sm:$0xf]  ;;  %v16115_v47 = vld [vmem:[#allocation2 + $0x48] sm:$0xff]  }
  0xcd   : > { %v2260_v52 = vshrl.u32 %v17211_v31, 16  ;;  %v2252_v24 = vrot.slane %v2250_v39, 5  ;;  %v2266_v54 = vshll.u32 %v17213_v15, 16  ;;  %v662_v12 = vsel %vm16867_vm9, %v574_v48, %v661_v53 }
  0xce   : > { %14989 = vmatpush3.bf16.msra.mxu1 %v16107_v49  ;;  %v2648_v49 = vld [vmem:[#allocation2 + $0xc] sm:$0xe]  ;;  %v17225_v55 = vrot.slane %v2256_v42, 5  ;;  %v583_v57 = vsel %vm16880_vm10, %v575_v38, %v582_v23  ;;  %663 = vst [vmem:[#allocation2 + $0x60] sm:$0xf] %v662_v12  ;;  %v2685_v13 = vrot.slane %v17213_v15, 5  ;;  %v17242_v11 = vsel %vm17071_vm14, %v1767_v20, %v1768_v4 }
  0xcf   : > { %14990 = vmatprep.subr.bf16.mxu1 %v16111_v59  ;;  %v13527_v1 = vrot.slane %v2648_v49, 9  ;;  %v2262_v44 = vrot.slane %v2260_v52, 4  ;;  %664 = vst [vmem:[#allocation2 + $0x64] sm:$0xf] %v583_v57  ;;  %v2268_v28 = vrot.slane %v2266_v54, 5  ;;  %v2274_v14 = vshll.u32 %v2225_v46, 16 }
  0xd0   : > { %v16120_v15 = vld [vmem:[#allocation2 + $0x54] sm:$0xff]   ;;  %v584_v4 = vrot.slane %v17209_v30, 4  ;;  %v2290_v48 = vshll.u32 %v17238_v18, 16  ;;  %v13485_v52 = vcombine.low %v17203_v27, %v17207_v29  ;;  %v13528_v53 = vrot.slane %v2649_v16, 9  ;;  %v2228_v54 = vld [vmem:[#allocation2 + $0x24] sm:$0xf] }
  0xd1   : > { %14943 = vmatmul.mubr.bf16.gmra.mxu1 %v16109_v7  ;;  %v2271_v7 = vshrl.u32 %v2225_v46, 16  ;;  %v2263_v36 = vor.u32 %v2262_v44, %v17225_v55  ;;  %v2276_v35 = vrot.slane %v2274_v14, 5  ;;  %v16116_v27 = vld [vmem:[#allocation7 + $0x118] sm:$0xff]   ;;  %v2295_v12 = vshrl.u32 %v2228_v54, 16 }
  0xd2   : > { %14907 = vmatmul.mubr.bf16.vlgmr.msra.gmra.mxu0 %v13480_v34  ;;  %14991 = vmatpush3.bf16.msra.mxu1 %v16111_v59  ;;  %v2682_v34 = vrot.slane %v17211_v31, 5  ;;  %v17234_v59 = vld [vmem:[#allocation2 + $0x1c] sm:$0xf]  ;;  %v2230_v57 = vld [vmem:[#allocation2 + $0x2c] sm:$0x1] }
  0xd3   : > { %14955 = vmatpush3.bf16.msra.mxu0 %v17077_v62  ;;  %14910 = vmatprep.mubr.bf16.mxu0 %v13481_v60  ;;  %v2253_v62 = vor.u32 %v2252_v24, %v2249_v40  ;;  %v16112_v60 = vld [vmem:[#allocation7 + $0x120] sm:$0xff]   ;;  %v2273_v25 = vrot.slane %v2271_v7, 4  ;;  %v2280_v26 = vshll.u32 %v17234_v59, 16  ;;  %v2284_v31 = vshrl.u32 %v17234_v59, 16 }
  0xd4   : > { %14956 = vmatprep.subr.bf16.mxu0 %v17195_v22  ;;  %14992 = vmatprep.subr.bf16.mxu1 %v16113_v37  ;;  %v2684_v3 = vrot.slane %v2682_v34, 4  ;;  %v2264_v20 = vrot.slane %v2263_v36, 4  ;;  %v2292_v40 = vrot.slane %v2290_v48, 5  ;;  %v2689_v24 = vrot.slane %v17234_v59, 5  ;;  %v2650_v59 = vld [vmem:[#allocation2 + $0x24] sm:$0xe] }
  0xd5   : > { %14946 = vmatprep.mubr.bf16.mxu1 %v16114_v32  ;;  %v2254_v41 = vrot.slane %v2253_v62, 4  ;;  %v2282_v39 = vrot.slane %v2280_v26, 5  ;;  %v2286_v42 = vrot.slane %v2284_v31, 4  ;;  %v2277_v23 = vor.u32 %v2276_v35, %v2273_v25  ;;  %v16125_v62 = vld [vmem:[#allocation7 + $0x140] sm:$0xff]   ;;  %v17293_v25 = vld [vmem:[#allocation2 + $0x38] sm:$0x1] }
  0xd6   : > { %14993 = vmatpush3.bf16.msra.mxu1 %v16113_v37  ;;  %v17252_v37 = vsel %vm17071_vm14, %v13527_v1, %v2682_v34  ;;  %v17256_v38 = vsel %vm17071_vm14, %v2684_v3, %v2685_v13  ;;  %v2269_v32 = vsel %vm16892_vm11, %v2264_v20, %v2268_v28  ;;  %v2229_v1 = vld [vmem:[#allocation2 + $0x28] sm:$0xf]  ;;  %v16121_v61 = vld [vmem:[#allocation2 + $0x60] sm:$0xff]   ;;  %v17285_v13 = vsel %vm17071_vm14, %v13528_v53, %v2689_v24  ;;  %v2231_v36 = vld [vmem:[#allocation2 + $0x30] sm:$0xf] }
  0xd7   : > { %14957 = vmatpush3.bf16.msra.mxu0 %v17195_v22  ;;  %14994 = vmatprep.subr.bf16.mxu1 %v16117_v8  ;;  %v16123_v22 = vld [vmem:[#allocation7 + $0x148] sm:$0xff]   ;;  %v2259_v49 = vsel %vm16892_vm11, %v2254_v41, %v17225_v55  ;;  %v2287_v46 = vor.u32 %v2286_v42, %v2282_v39  ;;  %v13486_v55 = vcombine.low %v17218_v51, %v17242_v11  ;;  %v2278_v56 = vrot.slane %v2277_v23, 4  ;;  %v17291_v41 = vld [vmem:[#allocation2 + $0x34] sm:$0xf]  ;;  %v16127_v35 = vld [vmem:[#allocation7 + $0x1f8] sm:$0xff]  }
  0xd8   : > { %14958 = vmatprep.subr.bf16.mxu0 %v16110_v2  ;;  %v13535_v33 = vcombine.low %v17252_v37, %v17256_v38  ;;  %v17277_v29 = vcombine.low %v2259_v49, %v2269_v32  ;;  %v2304_v44 = vshll.u32 %v2229_v1, 16  ;;  %v2308_v34 = vshrl.u32 %v2229_v1, 16  ;;  %v2651_v49 = vld [vmem:[#allocation2 + $0x30] sm:$0xe]  ;;  %v16131_v11 = vld [vmem:[#allocation7 + $0x1e8] sm:$0xff]  }
  0xd9   : > { %14947 = vmatmul.mubr.bf16.gmra.mxu1 %v16115_v47  ;;  %v2283_v0 = vsel %vm16892_vm11, %v2278_v56, %v2282_v39  ;;  %v16118_v47 = vld [vmem:[#allocation7 + $0x110] sm:$0xff]   ;;  %v2314_v7 = vshll.u32 %v2230_v57, 16  ;;  %v2696_v20 = vrot.slane %v2229_v1, 5  ;;  %v2699_v48 = vrot.slane %v2230_v57, 5  ;;  %v16122_v56 = vld [vmem:[#allocation7 + $0x108] sm:$0xff]  }
  0xda   : > { %14911 = vmatmul.mubr.bf16.gmra.mxu0 %v13482_v21  ;;  %14995 = vmatpush3.bf16.msra.mxu1 %v16117_v8  ;;  %v2692_v21 = vrot.slane %v17238_v18, 5  ;;  %v2288_v8 = vrot.slane %v2287_v46, 4  ;;  %v2297_v18 = vrot.slane %v2295_v12, 4  ;;  %v2310_v26 = vrot.slane %v2308_v34, 4  ;;  %v17323_v34 = vld [vmem:[#allocation2 + $0x44] sm:$0x1] }
  0xdb   : > { %14959 = vmatpush3.bf16.msra.mxu0 %v16110_v2  ;;  %14914 = vmatprep.mubr.bf16.mxu0 %v13483_v63  ;;  %v2691_v2 = vrot.slane %v2689_v24, 4  ;;  %v2298_v63 = vshll.u32 %v2228_v54, 16  ;;  %v2316_v31 = vrot.slane %v2314_v7, 5  ;;  %v2319_v39 = vshrl.u32 %v2231_v36, 16 }
  0xdc   : > { %14960 = vmatprep.subr.bf16.mxu0 %v16112_v60  ;;  %14996 = vmatprep.subr.bf16.mxu1 %v16119_v17  ;;  %v2293_v28 = vsel %vm16892_vm11, %v2288_v8, %v2292_v40  ;;  %v2322_v42 = vshll.u32 %v2231_v36, 16  ;;  %v2698_v40 = vrot.slane %v2696_v20, 4  ;;  %v2328_v46 = vshll.u32 %v17291_v41, 16 }
  0xdd   : > { %14950 = vmatprep.mubr.bf16.mxu1 %v16120_v15  ;;  %v17287_v3 = vcombine.low %v2283_v0, %v2293_v28  ;;  %v2693_v14 = vsel %vm17071_vm14, %v2691_v2, %v2692_v21  ;;  %v2300_v16 = vrot.slane %v2298_v63, 5  ;;  %v13529_v15 = vrot.slane %v2650_v59, 9  ;;  %v2234_v0 = vld [vmem:[#allocation2 + $0x3c] sm:$0xf]  ;;  %v16124_v59 = vld [vmem:[#allocation7 + $0x100] sm:$0xff]  }
  0xde   : > { %14997 = vmatpush3.bf16.msra.mxu1 %v16119_v17  ;;  %v2306_v17 = vrot.slane %v2304_v44, 5  ;;  %v2321_v24 = vrot.slane %v2319_v39, 4  ;;  %v2324_v54 = vrot.slane %v2322_v42, 5  ;;  %v2332_v1 = vshrl.u32 %v17291_v41, 16  ;;  %v2235_v44 = vld [vmem:[#allocation2 + $0x40] sm:$0xf] }
  0xdf   : > { %14961 = vmatpush3.bf16.msra.mxu0 %v16112_v60  ;;  %14998 = vmatprep.subr.bf16.mxu1 %v16123_v22  ;;  %v2301_v60 = vor.u32 %v2300_v16, %v2297_v18  ;;  %v17300_v23 = vsel %vm17071_vm14, %v13529_v15, %v2696_v20  ;;  %v2700_v6 = vsel %vm17071_vm14, %v2698_v40, %v2699_v48  ;;  %v13530_v12 = vrot.slane %v2651_v49, 9  ;;  %v2237_v15 = vld [vmem:[#allocation2 + $0x48] sm:$0xf]  ;;  %v2238_v48 = vld [vmem:[#allocation2 + $0x4c] sm:$0xf] }
  0xe0   : > { %14962 = vmatprep.subr.bf16.mxu0 %v16116_v27  ;;  %v2311_v32 = vor.u32 %v2310_v26, %v2306_v17  ;;  %v2334_v8 = vrot.slane %v2332_v1, 4  ;;  %v13537_v37 = vcombine.low %v17300_v23, %v2700_v6  ;;  %v2706_v63 = vrot.slane %v17293_v25, 5  ;;  %v16126_v20 = vld [vmem:[#allocation7 + $0x1b8] sm:$0xff]   ;;  %v16128_v6 = vld [vmem:[#allocation7 + $0x1b0] sm:$0xff]  }
  0xe1   : > { %14951 = vmatmul.mubr.bf16.gmra.mxu1 %v16121_v61  ;;  %v2302_v53 = vrot.slane %v2301_v60, 4  ;;  %v2703_v61 = vrot.slane %v17291_v41, 5  ;;  %v2343_v18 = vshrl.u32 %v2234_v0, 16  ;;  %v2346_v7 = vshll.u32 %v2234_v0, 16  ;;  %v2653_v23 = vld [vmem:[#allocation2 + $0x48] sm:$0xe] }
  0xe2   : > { %14915 = vmatmul.mubr.bf16.gmra.mxu0 %v13484_v45  ;;  %14999 = vmatpush3.bf16.msra.mxu1 %v16123_v22  ;;  %v2312_v19 = vrot.slane %v2311_v32, 4  ;;  %v17306_v45 = vrot.slane %v2328_v46, 5  ;;  %v2338_v22 = vshll.u32 %v17293_v25, 16  ;;  %v2356_v16 = vshrl.u32 %v2235_v44, 16  ;;  %v17346_v32 = vld [vmem:[#allocation2 + $0x50] sm:$0x1] }
  0xe3   : > { %14963 = vmatpush3.bf16.msra.mxu0 %v16116_v27  ;;  %14918 = vmatprep.mubr.bf16.mxu0 %v13485_v52  ;;  %v13536_v52 = vcombine.low %v17285_v13, %v2693_v14  ;;  %v2307_v21 = vsel %vm16892_vm11, %v2302_v53, %v2306_v17  ;;  %v2325_v27 = vor.u32 %v2324_v54, %v2321_v24  ;;  %v2705_v13 = vrot.slane %v2703_v61, 4  ;;  %v2652_v17 = vld [vmem:[#allocation2 + $0x3c] sm:$0xe] }
  0xe4   : > { %14964 = vmatprep.subr.bf16.mxu0 %v16118_v47  ;;  %15000 = vmatprep.subr.bf16.mxu1 %v16125_v62  ;;  %v2317_v2 = vsel %vm16892_vm11, %v2312_v19, %v2316_v31  ;;  %v17317_v57 = vrot.slane %v2338_v22, 5  ;;  %v2704_v36 = vsel %vm17071_vm14, %v13530_v12, %v2703_v61  ;;  %v2352_v14 = vshll.u32 %v2235_v44, 16 }
  0xe5   : > { %15002 = vmatprep.mubr.bf16.mxu1 %v13535_v33  ;;  %v2326_v38 = vrot.slane %v2325_v27, 4  ;;  %v2335_v33 = vor.u32 %v2334_v8, %v17306_v45  ;;  %v17325_v28 = vcombine.low %v2307_v21, %v2317_v2  ;;  %v2707_v41 = vsel %vm17071_vm14, %v2705_v13, %v2706_v63  ;;  %v16133_v8 = vld [vmem:[#allocation7 + $0x1e0] sm:$0xff]  }
  0xe6   : > { %15001 = vmatpush3.bf16.msra.mxu1 %v16125_v62  ;;  %v16129_v62 = vld [vmem:[#allocation7 + $0x1f0] sm:$0xff]   ;;  %v2345_v25 = vrot.slane %v2343_v18, 4  ;;  %v2348_v26 = vrot.slane %v2346_v7, 5  ;;  %v2362_v31 = vshll.u32 %v17323_v34, 16  ;;  %v13538_v39 = vcombine.low %v2704_v36, %v2707_v41 }
  0xe7   : > { %14965 = vmatpush3.bf16.msra.mxu0 %v16118_v47  ;;  %15050 = vmatprep.subr.bf16.mxu1 %v16127_v35  ;;  %v2336_v47 = vrot.slane %v2335_v33, 4  ;;  %v2331_v60 = vsel %vm16892_vm11, %v2326_v38, %v17306_v45  ;;  %v2710_v46 = vrot.slane %v2235_v44, 5  ;;  %v2713_v53 = vrot.slane %v17323_v34, 5 }
  0xe8   : > { %14966 = vmatprep.subr.bf16.mxu0 %v16122_v56  ;;  %v2349_v42 = vor.u32 %v2348_v26, %v2345_v25  ;;  %v17344_v49 = vrot.slane %v2362_v31, 5  ;;  %v2367_v24 = vshrl.u32 %v2237_v15, 16  ;;  %v2370_v1 = vshll.u32 %v2237_v15, 16 }
  0xe9   : > { %15003 = vmatmul.mubr.bf16.vlgmr.msra.gmra.mxu1 %v13536_v52  ;;  %v2341_v51 = vsel %vm16892_vm11, %v2336_v47, %v17317_v57  ;;  %v2380_v19 = vshrl.u32 %v2238_v48, 16  ;;  %v2712_v52 = vrot.slane %v2710_v46, 4  ;;  %v13532_v38 = vrot.slane %v2653_v23, 9  ;;  %v17371_v47 = vld [vmem:[#allocation2 + $0x5c] sm:$0x1] }
  0xea   : > { %14919 = vmatmul.mubr.bf16.gmra.mxu0 %v13486_v55  ;;  %15051 = vmatpush3.bf16.msra.mxu1 %v16127_v35  ;;  %v17342_v55 = vrot.slane %v2352_v14, 5  ;;  %v2358_v35 = vrot.slane %v2356_v16, 4  ;;  %v2350_v54 = vrot.slane %v2349_v42, 4  ;;  %v2369_v21 = vrot.slane %v2367_v24, 4  ;;  %v16130_v14 = vld [vmem:[#allocation7 + $0x1a8] sm:$0xff]  }
  0xeb   : > { %14967 = vmatpush3.bf16.msra.mxu0 %v16122_v56  ;;  %14970 = vmatprep.mubr.bf16.mxu0 %v17277_v29  ;;  %v13531_v29 = vrot.slane %v2652_v17, 9  ;;  %v2376_v56 = vshll.u32 %v2238_v48, 16  ;;  %v17352_v27 = vcombine.low %v2331_v60, %v2341_v51  ;;  %v2372_v2 = vrot.slane %v2370_v1, 5  ;;  %v16132_v60 = vld [vmem:[#allocation7 + $0x1a0] sm:$0xff]   ;;  %v2243_v42 = vld [vmem:[#allocation2 + $0x60] sm:$0xf] }
  0xec   : > { %14968 = vmatprep.subr.bf16.mxu0 %v16124_v59  ;;  %15052 = vmatprep.subr.bf16.mxu1 %v16129_v62  ;;  %v2359_v40 = vor.u32 %v2358_v35, %v17342_v55  ;;  %v2382_v12 = vrot.slane %v2380_v19, 4  ;;  %v2355_v61 = vsel %vm16892_vm11, %v2350_v54, %v17342_v55  ;;  %v2714_v0 = vsel %vm17071_vm14, %v2712_v52, %v2713_v53  ;;  %v16137_v55 = vld [vmem:[#allocation7 + $0x1d0] sm:$0xff]  }
  0xed   : > { %15006 = vmatprep.mubr.bf16.mxu1 %v13537_v37  ;;  %v2711_v22 = vsel %vm17071_vm14, %v13531_v29, %v2710_v46  ;;  %v17354_v57 = vrot.slane %v2376_v56, 5  ;;  %v2386_v37 = vshll.u32 %v17346_v32, 16  ;;  %v2373_v44 = vor.u32 %v2372_v2, %v2369_v21 }
  0xee   : > { %15053 = vmatpush3.bf16.msra.mxu1 %v16129_v62  ;;  %v2360_v45 = vrot.slane %v2359_v40, 4  ;;  %v13539_v63 = vcombine.low %v2711_v22, %v2714_v0  ;;  %v2717_v34 = vrot.slane %v2238_v48, 5  ;;  %v2241_v62 = vld [vmem:[#allocation2 + $0x58] sm:$0xf]  ;;  %v2720_v7 = vrot.slane %v17346_v32, 5 }
  0xef   : > { %14969 = vmatpush3.bf16.msra.mxu0 %v16124_v59  ;;  %15054 = vmatprep.subr.bf16.mxu1 %v16131_v11  ;;  %v2240_v59 = vld [vmem:[#allocation2 + $0x54] sm:$0xf]  ;;  %v2383_v13 = vor.u32 %v2382_v12, %v17354_v57  ;;  %v17368_v18 = vrot.slane %v2386_v37, 5  ;;  %v2374_v16 = vrot.slane %v2373_v44, 4  ;;  %v2400_v31 = vshll.u32 %v2241_v62, 16  ;;  %v16139_v0 = vld [vmem:[#allocation7 + $0x1c8] sm:$0xff]  }
  0xf0   : > { %15018 = vmatprep.subr.bf16.mxu0 %v16126_v20  ;;  %v2365_v33 = vsel %vm16892_vm11, %v2360_v45, %v17344_v49  ;;  %v2391_v36 = vshrl.u32 %v2240_v59, 16  ;;  %v2718_v17 = vsel %vm17071_vm14, %v13532_v38, %v2717_v34  ;;  %v2719_v41 = vrot.slane %v2717_v34, 4  ;;  %v17381_v40 = vld [vmem:[#allocation2 + $0x64] sm:$0xf]  ;;  %v16134_v45 = vld [vmem:[#allocation7 + $0x198] sm:$0xff]  }
  0xf1   : > { %15007 = vmatmul.mubr.bf16.gmra.mxu1 %v13538_v39  ;;  %v2394_v25 = vshll.u32 %v2240_v59, 16  ;;  %v2404_v15 = vshrl.u32 %v2241_v62, 16  ;;  %v13515_v51 = vcombine.low %v2355_v61, %v2365_v33  ;;  %v2410_v48 = vshll.u32 %v17371_v47, 16  ;;  %v353_v39 = vld [vmem:[#allocation2 + $0x68] sm:$0x1] }
  0xf2   : > { %14971 = vmatmul.mubr.bf16.vlgmr.msra.gmra.mxu0 %v17287_v3  ;;  %15055 = vmatpush3.bf16.msra.mxu1 %v16131_v11  ;;  %v16135_v3 = vld [vmem:[#allocation7 + $0x1d8] sm:$0xff]   ;;  %v2393_v26 = vrot.slane %v2391_v36, 4  ;;  %v2721_v11 = vsel %vm17071_vm14, %v2719_v41, %v2720_v7  ;;  %v2379_v49 = vsel %vm16892_vm11, %v2374_v16, %v17354_v57  ;;  %v2402_v32 = vrot.slane %v2400_v31, 5  ;;  %v17396_v33 = vld [vmem:[#allocation2 + $0x60] sm:$0xe] }
  0xf3   : > { %15019 = vmatpush3.bf16.msra.mxu0 %v16126_v20  ;;  %14974 = vmatprep.mubr.bf16.mxu0 %v17325_v28  ;;  %v2384_v28 = vrot.slane %v2383_v13, 4  ;;  %v2654_v20 = vld [vmem:[#allocation2 + $0x54] sm:$0xe]  ;;  %v2396_v35 = vrot.slane %v2394_v25, 5  ;;  %v13540_v29 = vcombine.low %v2718_v17, %v2721_v11  ;;  %v2406_v23 = vrot.slane %v2404_v15, 4 }
  0xf4   : > { %15020 = vmatprep.subr.bf16.mxu0 %v16128_v6  ;;  %15056 = vmatprep.subr.bf16.mxu1 %v16133_v8  ;;  %v2412_v24 = vrot.slane %v2410_v48, 5  ;;  %v13533_v54 = vrot.slane %v2654_v20, 9  ;;  %v2724_v56 = vrot.slane %v2241_v62, 5  ;;  %v2727_v19 = vrot.slane %v17371_v47, 5  ;;  %v16136_v62 = vld [vmem:[#allocation7 + $0x190] sm:$0xff]  }
  0xf5   : > { %15010 = vmatprep.mubr.bf16.mxu1 %v13539_v63  ;;  %v2389_v46 = vsel %vm16892_vm11, %v2384_v28, %v17368_v18  ;;  %v2397_v53 = vor.u32 %v2396_v35, %v2393_v26  ;;  %v2407_v1 = vor.u32 %v2406_v23, %v2402_v32  ;;  %v2415_v52 = vshrl.u32 %v2243_v42, 16  ;;  %v3189_v47 = vld [vmem:[#allocation2 + $0x18] sm:$0xf]  ;;  %v17407_v16 = vld [vmem:[#allocation2 + $0x20] sm:$0x1]  ;;  %v16141_v26 = vld [vmem:[#allocation7 + $0x1c0] sm:$0xff]  }
  0xf6   : > { %15057 = vmatpush3.bf16.msra.mxu1 %v16133_v8  ;;  %v2418_v21 = vshll.u32 %v2243_v42, 16  ;;  %v2424_v8 = vshll.u32 %v17381_v40, 16  ;;  %v2725_v57 = vsel %vm17071_vm14, %v13533_v54, %v2724_v56  ;;  %v2726_v12 = vrot.slane %v2724_v56, 4 }
  0xf7   : > { %15021 = vmatpush3.bf16.msra.mxu0 %v16128_v6  ;;  %15058 = vmatprep.subr.bf16.mxu1 %v16135_v3  ;;  %v354_v6 = vsel %vm16840_vm4, 0, %v353_v39  ;;  %v2398_v22 = vrot.slane %v2397_v53, 4  ;;  %v2408_v2 = vrot.slane %v2407_v1, 4  ;;  %v2428_v61 = vshrl.u32 %v17381_v40, 16  ;;  %v16138_v39 = vld [vmem:[#allocation7 + $0x188] sm:$0xff]  }
  0xf8   : > { %15022 = vmatprep.subr.bf16.mxu0 %v16130_v14  ;;  %355 = vst [vmem:[#allocation2 + $0x68] sm:$0x1] %v354_v6  ;;  %v2417_v37 = vrot.slane %v2415_v52, 4  ;;  %v2420_v38 = vrot.slane %v2418_v21, 5  ;;  %v13516_v63 = vcombine.low %v2379_v49, %v2389_v46  ;;  %v2728_v34 = vsel %vm17071_vm14, %v2726_v12, %v2727_v19  ;;  %v17426_v46 = vld [vmem:[#allocation2 + $0x28] sm:$0xf] }
  0xf9   : > { %15011 = vmatmul.mubr.bf16.gmra.mxu1 %v13540_v29  ;;  %v2413_v44 = vsel %vm16892_vm11, %v2408_v2, %v2412_v24  ;;  %v17402_v59 = vrot.slane %v2424_v8, 5  ;;  %v13541_v13 = vcombine.low %v2725_v57, %v2728_v34  ;;  %v2430_v7 = vrot.slane %v2428_v61, 4  ;;  %v3192_v29 = vld [vmem:[#allocation2 + $0x24] sm:$0xf]  ;;  %v17428_v53 = vld [vmem:[#allocation2 + $0x2c] sm:$0x1] }
  0xfa   : > { %14975 = vmatmul.mubr.bf16.gmra.mxu0 %v17352_v27  ;;  %15059 = vmatpush3.bf16.msra.mxu1 %v16135_v3  ;;  %v2403_v27 = vsel %vm16892_vm11, %v2398_v22, %v2402_v32  ;;  %v2421_v18 = vor.u32 %v2420_v38, %v2417_v37  ;;  %v2731_v3 = vrot.slane %v17381_v40, 5  ;;  %v3214_v17 = vshrl.u32 %v3189_v47, 16  ;;  %v16140_v52 = vld [vmem:[#allocation7 + $0x180] sm:$0xff]  }
  0xfb   : > { %15023 = vmatpush3.bf16.msra.mxu0 %v16130_v14  ;;  %14978 = vmatprep.mubr.bf16.mxu0 %v13515_v51  ;;  %v13517_v36 = vcombine.low %v2403_v27, %v2413_v44  ;;  %v17405_v14 = vld [vmem:[#allocation2 + $0x1c] sm:$0xf]  ;;  %v3217_v41 = vshll.u32 %v3189_v47, 16  ;;  %v13534_v28 = vrot.slane %v17396_v33, 9  ;;  %v2431_v48 = vor.u32 %v2430_v7, %v17402_v59  ;;  %v3195_v38 = vld [vmem:[#allocation2 + $0x30] sm:$0xf] }
  0xfc   : > { %15024 = vmatprep.subr.bf16.mxu0 %v16132_v60  ;;  %15060 = vmatprep.subr.bf16.mxu1 %v16137_v55  ;;  %v17409_v25 = vrot.slane %v2421_v18, 4  ;;  %v3223_v31 = vshll.u32 %v17405_v14, 16  ;;  %v17415_v20 = vrot.slane %v2731_v3, 4  ;;  %v3227_v11 = vshrl.u32 %v17405_v14, 16  ;;  %v17453_v18 = vld [vmem:[#allocation2 + $0x34] sm:$0xf] }
  0xfd   : > { %15014 = vmatprep.mubr.bf16.mxu1 %v13541_v13  ;;  %v3219_v51 = vrot.slane %v3217_v41, 5  ;;  %v3233_v49 = vshll.u32 %v17407_v16, 16  ;;  %v3238_v30 = vshrl.u32 %v3192_v29, 16  ;;  %v3241_v24 = vshll.u32 %v3192_v29, 16  ;;  %v17451_v13 = vld [vmem:[#allocation7 + $0x238] sm:$0xff]   ;;  %v16142_v29 = vld [vmem:[#allocation2 + $0x18] sm:$0xff]  }
  0xfe   : > { %15061 = vmatpush3.bf16.msra.mxu1 %v16137_v55  ;;  %v17418_v55 = vld [vmem:[#allocation7 + $0x78] sm:$0xff]   ;;  %v3225_v42 = vrot.slane %v3223_v31, 5  ;;  %v3229_v23 = vrot.slane %v3227_v11, 4  ;;  %v3247_v54 = vshll.u32 %v17426_v46, 16  ;;  %v3251_v1 = vshrl.u32 %v17426_v46, 16 }
  0xff   : > { %15025 = vmatpush3.bf16.msra.mxu0 %v16132_v60  ;;  %15062 = vmatprep.subr.bf16.mxu1 %v16139_v0  ;;  %v665_v15 = vld [vmem:[#allocation2 + $0x68] sm:$0x1]  ;;  %v3216_v60 = vrot.slane %v3214_v17, 4  ;;  %v3240_v6 = vrot.slane %v3238_v30, 4  ;;  %v2432_v22 = vrot.slane %v2431_v48, 4  ;;  %v3243_v21 = vrot.slane %v3241_v24, 5 }
 0x100   : > { %15026 = vmatprep.subr.bf16.mxu0 %v16134_v45  ;;  %v666_v35 = vsel %vm16835_vm3, %v584_v4, %v665_v15  ;;  %v3235_v4 = vrot.slane %v3233_v49, 5  ;;  %v3230_v19 = vor.u32 %v3229_v23, %v3225_v42  ;;  %v17433_v8 = vrot.slane %v3247_v54, 5 }
 0x101   : > { %667 = vst [vmem:[#allocation2 + $0x68] sm:$0x1] %v666_v35  ;;  %v3220_v32 = vor.u32 %v3219_v51, %v3216_v60  ;;  %v3253_v2 = vrot.slane %v3251_v1, 4  ;;  %v3244_v61 = vor.u32 %v3243_v21, %v3240_v6  ;;  %v2732_v44 = vsel %vm17071_vm14, %v13534_v28, %v2731_v3  ;;  %v3198_v60 = vld [vmem:[#allocation2 + $0x3c] sm:$0xf] }
 0x102   : > { %14979 = vmatmul.mubr.bf16.gmra.mxu0 %v13516_v63  ;;  %15063 = vmatpush3.bf16.msra.mxu1 %v16139_v0  ;;  %v3231_v57 = vrot.slane %v3230_v19, 4  ;;  %v2427_v63 = vsel %vm16892_vm11, %v17409_v25, %v17402_v59  ;;  %v3262_v17 = vshrl.u32 %v3195_v38, 16  ;;  %v3265_v41 = vshll.u32 %v3195_v38, 16  ;;  %v17468_v51 = vld [vmem:[#allocation2 + $0x40] sm:$0xf] }
 0x103   : > { %15027 = vmatpush3.bf16.msra.mxu0 %v16134_v45  ;;  %14982 = vmatprep.mubr.bf16.mxu0 %v13517_v36  ;;  %v3221_v56 = vrot.slane %v3220_v32, 4  ;;  %v3257_v45 = vshll.u32 %v17428_v53, 16  ;;  %v3254_v0 = vor.u32 %v3253_v2, %v17433_v8  ;;  %v3245_v34 = vrot.slane %v3244_v61, 4  ;;  %v17455_v36 = vld [vmem:[#allocation2 + $0x38] sm:$0x1]  ;;  %v16147_v61 = vld [vmem:[#allocation7 + $0x70] sm:$0xff]  }
 0x104   : > { %15028 = vmatprep.subr.bf16.mxu0 %v16136_v62  ;;  %15064 = vmatprep.subr.bf16.mxu1 %v16141_v26  ;;  %v3236_v37 = vsel %vm16892_vm11, %v3231_v57, %v3235_v4  ;;  %v3271_v3 = vshll.u32 %v17453_v18, 16  ;;  %v3275_v25 = vshrl.u32 %v17453_v18, 16  ;;  %v3264_v15 = vrot.slane %v3262_v17, 4  ;;  %v16143_v57 = vld [vmem:[#allocation2 + $0x24] sm:$0xff]  }
 0x105   : > { %v17435_v12 = vrot.slane %v3257_v45, 5  ;;  %v3226_v27 = vsel %vm16892_vm11, %v3221_v56, %v3225_v42  ;;  %v3250_v40 = vsel %vm16892_vm11, %v3245_v34, %v17433_v8  ;;  %v3267_v35 = vrot.slane %v3265_v41, 5  ;;  %v17470_v42 = vld [vmem:[#allocation2 + $0x44] sm:$0x1]  ;;  %v16148_v41 = vld [vmem:[#allocation2 + $0x30] sm:$0xff]  }
 0x106   : > { %15065 = vmatpush3.bf16.msra.mxu1 %v16141_v26  ;;  %v13567_v59 = vcombine.low %v3226_v27, %v3236_v37  ;;  %v3273_v48 = vrot.slane %v3271_v3, 5  ;;  %v3286_v32 = vshrl.u32 %v3198_v60, 16  ;;  %v3289_v23 = vshll.u32 %v3198_v60, 16  ;;  %v16146_v34 = vld [vmem:[#allocation7 + $0x230] sm:$0xff]  }
 0x107   : > { %15029 = vmatpush3.bf16.msra.mxu0 %v16136_v62  ;;  %15114 = vmatprep.subr.bf16.mxu1 %v17418_v55  ;;  %v3255_v62 = vrot.slane %v3254_v0, 4  ;;  %v3268_v4 = vor.u32 %v3267_v35, %v3264_v15  ;;  %v3295_v54 = vshll.u32 %v17468_v51, 16  ;;  %v3299_v6 = vshrl.u32 %v17468_v51, 16 }
 0x108   : > { %15030 = vmatprep.subr.bf16.mxu0 %v16138_v39  ;;  %v2245_v33 = vld [vmem:[#allocation2 + $0x68] sm:$0x1]  ;;  %v3288_v56 = vrot.slane %v3286_v32, 4  ;;  %v3291_v19 = vrot.slane %v3289_v23, 5  ;;  %v3305_v21 = vshll.u32 %v17470_v42, 16  ;;  %v16150_v32 = vld [vmem:[#allocation7 + $0x228] sm:$0xff]  }
 0x109   : > { %v2434_v7 = vshll.u32 %v2245_v33, 16  ;;  %v2734_v47 = vrot.slane %v2245_v33, 5  ;;  %v3260_v31 = vsel %vm16892_vm11, %v3255_v62, %v17435_v12  ;;  %v3269_v45 = vrot.slane %v3268_v4, 4  ;;  %v17483_v62 = vld [vmem:[#allocation2 + $0x4c] sm:$0xf] }
 0x10a   : > { %v3292_v8 = vor.u32 %v3291_v19, %v3288_v56  ;;  %v3301_v2 = vrot.slane %v3299_v6, 4  ;;  %v13568_v12 = vcombine.low %v3250_v40, %v3260_v31  ;;  %v3319_v40 = vshll.u32 %v17483_v62, 16  ;;  %v16153_v56 = vld [vmem:[#allocation7 + $0x60] sm:$0xff]  }
 0x10b   : > { %15031 = vmatpush3.bf16.msra.mxu0 %v16138_v39  ;;  %v2436_v28 = vrot.slane %v2434_v7, 5  ;;  %v2735_v26 = vsel %vm17071_vm14, %v17415_v20, %v2734_v47  ;;  %v3277_v39 = vrot.slane %v3275_v25, 4  ;;  %v3281_v20 = vshll.u32 %v17455_v36, 16  ;;  %v17485_v7 = vld [vmem:[#allocation2 + $0x50] sm:$0x1]  ;;  %v16151_v25 = vld [vmem:[#allocation7 + $0x68] sm:$0xff]  }
 0x10c   : > { %15032 = vmatprep.subr.bf16.mxu0 %v16140_v52  ;;  %v13542_v11 = vcombine.low %v2732_v44, %v2735_v26  ;;  %v3274_v0 = vsel %vm16892_vm11, %v3269_v45, %v3273_v48  ;;  %v3293_v38 = vrot.slane %v3292_v8, 4  ;;  %v3201_v44 = vld [vmem:[#allocation2 + $0x48] sm:$0xf]  ;;  %v3323_v3 = vshrl.u32 %v17483_v62, 16 }
 0x10d   : > { %v2437_v49 = vsel %vm16892_vm11, %v2432_v22, %v2436_v28  ;;  %v3278_v24 = vor.u32 %v3277_v39, %v3273_v48  ;;  %v3283_v1 = vrot.slane %v3281_v20, 5  ;;  %v3310_v47 = vshrl.u32 %v3201_v44, 16  ;;  %v3204_v48 = vld [vmem:[#allocation2 + $0x54] sm:$0xf]  ;;  %v17495_v39 = vld [vmem:[#allocation2 + $0x58] sm:$0xf] }
 0x10e   : > { %v13518_v30 = vcombine.low %v2427_v63, %v2437_v49  ;;  %15015 = vmatmul.mubr.bf16.gmra.mxu1 %v13542_v11  ;;  %v3307_v63 = vrot.slane %v3305_v21, 5  ;;  %v3313_v17 = vshll.u32 %v3201_v44, 16  ;;  %v3329_v31 = vshll.u32 %v17485_v7, 16  ;;  %v17497_v20 = vld [vmem:[#allocation2 + $0x5c] sm:$0x1]  ;;  %v16157_v44 = vld [vmem:[#allocation7 + $0x58] sm:$0xff]  }
 0x10f   : > { %15033 = vmatpush3.bf16.msra.mxu0 %v16140_v52  ;;  %15066 = vmatprep.mubr.bf16.mxu1 %v13567_v59  ;;  %v3279_v22 = vrot.slane %v3278_v24, 4  ;;  %v3297_v52 = vrot.slane %v3295_v54, 5  ;;  %v3312_v28 = vrot.slane %v3310_v47, 4  ;;  %v3321_v11 = vrot.slane %v3319_v40, 5  ;;  %v16149_v54 = vld [vmem:[#allocation2 + $0x3c] sm:$0xff]  }
 0x110   : > { %15082 = vmatprep.subr.bf16.mxu0 %v17451_v13  ;;  %14983 = vmatmul.mubr.bf16.gmra.mxu0 %v13518_v30  ;;  %v3315_v26 = vrot.slane %v3313_v17, 5  ;;  %v3325_v35 = vrot.slane %v3323_v3, 4  ;;  %v3337_v30 = vshll.u32 %v3204_v48, 16  ;;  %v3343_v4 = vshll.u32 %v17495_v39, 16  ;;  %v3207_v47 = vld [vmem:[#allocation2 + $0x60] sm:$0xf] }
 0x111   : > { %15034 = vmatprep.mubr.bf16.mxu0 %v16142_v29  ;;  %v3284_v27 = vsel %vm16892_vm11, %v3279_v22, %v3283_v1  ;;  %v3302_v33 = vor.u32 %v3301_v2, %v3297_v52  ;;  %v3298_v15 = vsel %vm16892_vm11, %v3293_v38, %v3297_v52  ;;  %v3331_v29 = vrot.slane %v3329_v31, 5  ;;  %v13407_v22 = vld [vmem:[%s16820_s26 + $0x80] sm:$0xff]  ;;  %v17511_v17 = vld [vmem:[#allocation2 + $0x64] sm:$0xf]  ;;  %v17513_v3 = vld [vmem:[#allocation2 + $0x68] sm:$0x1] }
 0x112   : > { %v13569_v37 = vcombine.low %v3274_v0, %v3284_v27  ;;  %v3316_v49 = vor.u32 %v3315_v26, %v3312_v28  ;;  %v3326_v23 = vor.u32 %v3325_v35, %v3321_v11  ;;  %v3347_v24 = vshrl.u32 %v17495_v39, 16  ;;  %v13408_v27 = vld [vmem:[%s16820_s26 + $0x88] sm:$0xff] }
 0x113   : > { %v3303_v59 = vrot.slane %v3302_v33, 4  ;;  %v3353_v45 = vshll.u32 %v17497_v20, 16  ;;  %v3339_v21 = vrot.slane %v3337_v30, 5  ;;  %v3345_v8 = vrot.slane %v3343_v4, 5  ;;  %v16156_v30 = vld [vmem:[#allocation7 + $0x218] sm:$0xff]  }
 0x114   : > { %v3317_v19 = vrot.slane %v3316_v49, 4  ;;  %v3327_v52 = vrot.slane %v3326_v23, 4  ;;  %v3349_v2 = vrot.slane %v3347_v24, 4  ;;  %v3358_v28 = vshrl.u32 %v3207_v47, 16 }
 0x115   : > { %v3308_v60 = vsel %vm16892_vm11, %v3303_v59, %v3307_v63  ;;  %v3355_v0 = vrot.slane %v3353_v45, 5  ;;  %v3367_v26 = vshll.u32 %v17511_v17, 16  ;;  %v3371_v31 = vshrl.u32 %v17511_v17, 16 }
 0x116   : > { %15067 = vmatmul.mubr.bf16.vlgmr.msra.gmra.mxu1 %v13568_v12  ;;  %v13570_v1 = vcombine.low %v3298_v15, %v3308_v60  ;;  %v3322_v12 = vsel %vm16892_vm11, %v3317_v19, %v3321_v11  ;;  %v3332_v38 = vsel %vm16892_vm11, %v3327_v52, %v3331_v29  ;;  %v3377_v15 = vshll.u32 %v17513_v3, 16  ;;  %v300_v60 = vld [vmem:[#allocation2 + $0x6c] sm:$0x1]  ;;  %v356_v29 = vld [vmem:[#allocation2 + $0x74] sm:$0x1] }
 0x117   : > { %15115 = vmatpush3.bf16.msra.mxu1 %v17418_v55  ;;  %15070 = vmatprep.mubr.bf16.mxu1 %v13569_v37  ;;  %v3334_v55 = vshrl.u32 %v3204_v48, 16  ;;  %v17507_v37 = vpack.c.bf16 %v13407_v22, %v13407_v22  ;;  %v13571_v63 = vcombine.low %v3322_v12, %v3332_v38  ;;  %v3360_v48 = vrot.slane %v3358_v28, 4  ;;  %v16158_v22 = vld [vmem:[#allocation7 + $0x210] sm:$0xff]  }
 0x118   : > { %15035 = vmatmul.mubr.bf16.vlgmr.msra.gmra.mxu0 %v16143_v57  ;;  %15116 = vmatprep.subr.bf16.mxu1 %v16147_v61  ;;  %v16152_v57 = vld [vmem:[#allocation7 + $0x220] sm:$0xff]   ;;  %v3369_v4 = vrot.slane %v3367_v26, 5  ;;  %v3373_v24 = vrot.slane %v3371_v31, 4  ;;  %v301_v19 = vsel %vm16835_vm3, 0, %v300_v60  ;;  %v3656_v28 = vrot.slane %v17426_v46, 5  ;;  %v16162_v26 = vld [vmem:[#allocation7 + $0x208] sm:$0xff]  }
 0x119   : > { %15083 = vmatpush3.bf16.msra.mxu0 %v17451_v13  ;;  %15038 = vmatprep.mubr.bf16.mxu0 %v16148_v41  ;;  %v3336_v6 = vrot.slane %v3334_v55, 4  ;;  %v16154_v13 = vld [vmem:[#allocation2 + $0x48] sm:$0xff]   ;;  %v14202_v41 = vpack.c.bf16 %v13408_v27, %v13408_v27  ;;  %v734_v11 = vshrl.u32 %v17507_v37, 16  ;;  %v16155_v55 = vld [vmem:[#allocation2 + $0x54] sm:$0xff]   ;;  %v737_v45 = vshll.u32 %v17507_v37, 16 }
 0x11a   : > { %15084 = vmatprep.subr.bf16.mxu0 %v16146_v34  ;;  %v3374_v52 = vor.u32 %v3373_v24, %v3369_v4  ;;  %302 = vst [vmem:[#allocation2 + $0x6c] sm:$0x1] %v301_v19  ;;  %v17539_v31 = vld [vmem:[#allocation2 + $0x68] sm:$0x1]  ;;  %v16164_v24 = vld [vmem:[#allocation7 + $0x200] sm:$0xff]  }
 0x11b   : > { %15117 = vmatpush3.bf16.msra.mxu1 %v16147_v61  ;;  %v3340_v33 = vor.u32 %v3339_v21, %v3336_v6  ;;  %v3350_v61 = vor.u32 %v3349_v2, %v3345_v8  ;;  %v736_v6 = vrot.slane %v734_v11, 7  ;;  %v742_v21 = vshrl.u32 %v14202_v41, 16  ;;  %v16165_v11 = vld [vmem:[#allocation7 + $0x40] sm:$0xff]  }
 0x11c   : > { %15118 = vmatprep.subr.bf16.mxu1 %v16151_v25  ;;  %v357_v2 = vsel %vm16840_vm4, 0, %v356_v29 }
 0x11d   : > { %15085 = vmatpush3.bf16.msra.mxu0 %v16146_v34  ;;  %v3341_v59 = vrot.slane %v3340_v33, 4  ;;  %v3351_v40 = vrot.slane %v3350_v61, 4  ;;  %v3361_v34 = vshll.u32 %v3207_v47, 16  ;;  %v740_v12 = vrot.slane %v736_v6, 4  ;;  %358 = vst [vmem:[#allocation2 + $0x74] sm:$0x1] %v357_v2 }
 0x11e   : > { %15071 = vmatmul.mubr.bf16.gmra.mxu1 %v13570_v1  ;;  %15086 = vmatprep.subr.bf16.mxu0 %v16150_v32  ;;  %v744_v27 = vrot.slane %v742_v21, 7  ;;  %v739_v38 = vor.u32 %v737_v45, %v736_v6  ;;  %v16163_v33 = vld [vmem:[#allocation7 + $0x48] sm:$0xff]   ;;  %v3652_v47 = vrot.slane %v17407_v16, 5  ;;  %v3659_v21 = vrot.slane %v17428_v53, 5 }
 0x11f   : > { %15119 = vmatpush3.bf16.msra.mxu1 %v16151_v25  ;;  %v3346_v25 = vsel %vm16892_vm11, %v3341_v59, %v3345_v8  ;;  %v3356_v35 = vsel %vm16892_vm11, %v3351_v40, %v3355_v0  ;;  %v3363_v49 = vrot.slane %v3361_v34, 5  ;;  %15074 = vmatprep.mubr.bf16.mxu1 %v13571_v63  ;;  %v745_v8 = vshll.u32 %v14202_v41, 16  ;;  %v3615_v61 = vld [vmem:[#allocation2 + $0x18] sm:$0xe]  ;;  %v17534_v40 = vld [vmem:[#allocation2 + $0x60] sm:$0xf] }
 0x120   : > { %15039 = vmatmul.mubr.bf16.gmra.mxu0 %v16149_v54  ;;  %15120 = vmatprep.subr.bf16.mxu1 %v16153_v56  ;;  %v13572_v23 = vcombine.low %v3346_v25, %v3356_v35  ;;  %v3379_v54 = vrot.slane %v3377_v15, 5  ;;  %v3375_v0 = vrot.slane %v3374_v52, 4  ;;  %v3649_v63 = vrot.slane %v17405_v14, 5  ;;  %v3616_v35 = vld [vmem:[#allocation2 + $0x24] sm:$0xe] }
 0x121   : > { %15087 = vmatpush3.bf16.msra.mxu0 %v16150_v32  ;;  %15042 = vmatprep.mubr.bf16.mxu0 %v16154_v13  ;;  %v16159_v32 = vld [vmem:[#allocation7 + $0x50] sm:$0xff]   ;;  %v3364_v1 = vor.u32 %v3363_v49, %v3360_v48  ;;  %v747_v41 = vor.u32 %v745_v8, %v744_v27  ;;  %v749_v59 = vrot.slane %v744_v27, 4  ;;  %v13583_v14 = vrot.slane %v3615_v61, 9  ;;  %v894_v48 = vld [vmem:[#allocation2 + $0x6c] sm:$0xf] }
 0x122   : > { %15088 = vmatprep.subr.bf16.mxu0 %v16152_v57  ;;  %v16160_v13 = vld [vmem:[#allocation2 + $0x60] sm:$0xff]   ;;  %v4276_v16 = vshrl.u32 %v17534_v40, 16  ;;  %v4279_v15 = vshll.u32 %v17534_v40, 16  ;;  %v3651_v49 = vrot.slane %v3649_v63, 4  ;;  %v13584_v45 = vrot.slane %v3616_v35, 9 }
 0x123   : > { %15121 = vmatpush3.bf16.msra.mxu1 %v16153_v56  ;;  %v3365_v56 = vrot.slane %v3364_v1, 4  ;;  %v748_v60 = vsel %vm16880_vm10, %v740_v12, %v747_v41  ;;  %v3658_v52 = vrot.slane %v3656_v28, 4  ;;  %v3650_v8 = vsel %vm17071_vm14, %v13583_v14, %v3649_v63  ;;  %v3617_v27 = vld [vmem:[#allocation2 + $0x30] sm:$0xe]  ;;  %v13409_v63 = vld [vmem:[%s16820_s26 + $0x90] sm:$0xff] }
 0x124   : > { %15122 = vmatprep.subr.bf16.mxu1 %v16157_v44  ;;  %897 = vst [vmem:[#allocation2 + $0x70] sm:$0xf] %v748_v60  ;;  %v4278_v29 = vrot.slane %v4276_v16, 4  ;;  %v17559_v12 = vsel %vm17071_vm14, %v13584_v45, %v3656_v28  ;;  %v3663_v61 = vrot.slane %v17453_v18, 5  ;;  %v3666_v14 = vrot.slane %v17455_v36, 5  ;;  %v13410_v16 = vld [vmem:[%s16820_s26 + $0x98] sm:$0xff] }
 0x125   : > { %15089 = vmatpush3.bf16.msra.mxu0 %v16152_v57  ;;  %v3370_v37 = vsel %vm16892_vm11, %v3365_v56, %v3369_v4  ;;  %v3380_v57 = vsel %vm16892_vm11, %v3375_v0, %v3379_v54  ;;  %v898_v4 = vld [vmem:[#allocation2 + $0x74] sm:$0x1]  ;;  %v17561_v0 = vld [vmem:[#allocation7 + $0xb8] sm:$0xff]  }
 0x126   : > { %15075 = vmatmul.mubr.bf16.gmra.mxu1 %v13572_v23  ;;  %15090 = vmatprep.subr.bf16.mxu0 %v16156_v30  ;;  %v13573_v34 = vcombine.low %v3370_v37, %v3380_v57  ;;  %v4295_v23 = vshll.u32 %v17539_v31, 16  ;;  %v17567_v37 = vsel %vm17071_vm14, %v3658_v52, %v3659_v21 }
 0x127   : > { %15123 = vmatpush3.bf16.msra.mxu1 %v16157_v44  ;;  %v17536_v44 = vld [vmem:[#allocation2 + $0x64] sm:$0xf] }
 0x128   : > { %15043 = vmatmul.mubr.bf16.gmra.mxu0 %v16155_v55  ;;  %15124 = vmatprep.subr.bf16.mxu1 %v16159_v32  ;;  %v4285_v25 = vshll.u32 %v17536_v44, 16  ;;  %v4289_v46 = vshrl.u32 %v17536_v44, 16  ;;  %v4281_v55 = vrot.slane %v4279_v15, 5  ;;  %v4297_v6 = vrot.slane %v4295_v23, 5 }
 0x129   : > { %15091 = vmatpush3.bf16.msra.mxu0 %v16156_v30  ;;  %15046 = vmatprep.mubr.bf16.mxu0 %v16160_v13  ;;  %v895_v30 = vsel %vm16867_vm9, %v739_v38, %v894_v48  ;;  %v17569_v38 = vld [vmem:[#allocation7 + $0x38] sm:$0xff]   ;;  %v17592_v48 = vpack.c.bf16 %v13409_v63, %v13409_v63 }
 0x12a   : > { %15092 = vmatprep.subr.bf16.mxu0 %v16158_v22  ;;  %15078 = vmatprep.mubr.bf16.mxu1 %v13573_v34  ;;  %v4287_v54 = vrot.slane %v4285_v25, 5  ;;  %v4291_v1 = vrot.slane %v4289_v46, 4  ;;  %896 = vst [vmem:[#allocation2 + $0x6c] sm:$0xf] %v895_v30  ;;  %v4282_v19 = vor.u32 %v4281_v55, %v4278_v29  ;;  %v13592_v46 = vcombine.low %v17559_v12, %v17567_v37 }
 0x12b   : > { %15125 = vmatpush3.bf16.msra.mxu1 %v16159_v32  ;;  %v899_v32 = vsel %vm16835_vm3, %v749_v59, %v898_v4  ;;  %v17577_v59 = vld [vmem:[#allocation2 + $0x70] sm:$0xf] }
 0x12c   : > { %15126 = vmatprep.subr.bf16.mxu1 %v16163_v33  ;;  %900 = vst [vmem:[#allocation2 + $0x74] sm:$0x1] %v899_v32  ;;  %v4292_v13 = vor.u32 %v4291_v1, %v4287_v54  ;;  %v4283_v2 = vrot.slane %v4282_v19, 4  ;;  %v4309_v18 = vshll.u32 %v17577_v59, 16  ;;  %v4313_v35 = vshrl.u32 %v17577_v59, 16 }
 0x12d   : > { %15093 = vmatpush3.bf16.msra.mxu0 %v16158_v22  ;;  %v3653_v22 = vsel %vm17071_vm14, %v3651_v49, %v3652_v47  ;;  %v17573_v47 = vld [vmem:[#allocation2 + $0x70] sm:$0xf]  ;;  %v14204_v32 = vpack.c.bf16 %v13410_v16, %v13410_v16 }
 0x12e   : > { %15094 = vmatprep.subr.bf16.mxu0 %v16162_v26  ;;  %v4293_v56 = vrot.slane %v4292_v13, 4  ;;  %v4288_v53 = vsel %vm16892_vm11, %v4283_v2, %v4287_v54  ;;  %v13591_v57 = vcombine.low %v3650_v8, %v3653_v22  ;;  %v3391_v34 = vshll.u32 %v17573_v47, 16  ;;  %v303_v13 = vld [vmem:[#allocation2 + $0x78] sm:$0x1]  ;;  %v359_v2 = vld [vmem:[#allocation2 + $0x80] sm:$0x1] }
 0x12f   : > { %15127 = vmatpush3.bf16.msra.mxu1 %v16163_v33  ;;  %v13585_v33 = vrot.slane %v3617_v27, 9  ;;  %v17601_v54 = vrot.slane %v4309_v18, 5  ;;  %v4315_v8 = vrot.slane %v4313_v35, 4 }
 0x130   : > { %15128 = vmatprep.subr.bf16.mxu1 %v16165_v11  ;;  %v4298_v41 = vsel %vm16892_vm11, %v4293_v56, %v4297_v6  ;;  %v3393_v55 = vrot.slane %v3391_v34, 5  ;;  %v3618_v34 = vld [vmem:[#allocation2 + $0x3c] sm:$0xe] }
 0x131   : > { %15095 = vmatpush3.bf16.msra.mxu0 %v16162_v26  ;;  %v3395_v26 = vshrl.u32 %v17573_v47, 16  ;;  %v16161_v15 = vld [vmem:[#allocation2 + $0x6c] sm:$0xff]   ;;  %v17586_v25 = vcombine.low %v4288_v53, %v4298_v41  ;;  %v3664_v1 = vsel %vm17071_vm14, %v13585_v33, %v3663_v61  ;;  %v3665_v53 = vrot.slane %v3663_v61, 4  ;;  %v16168_v41 = vld [vmem:[#allocation7 + $0x30] sm:$0xff]  }
 0x132   : > { %15096 = vmatprep.subr.bf16.mxu0 %v16164_v24  ;;  %v3210_v60 = vld [vmem:[#allocation2 + $0x6c] sm:$0xf]  ;;  %15047 = vmatmul.mubr.bf16.gmra.mxu0 %v16161_v15  ;;  %v4316_v33 = vor.u32 %v4315_v8, %v17601_v54  ;;  %v360_v61 = vsel %vm16840_vm4, 0, %v359_v2  ;;  %v13411_v8 = vld [vmem:[%s16820_s26 + $0xa0] sm:$0xff] }
 0x133   : > { %15129 = vmatpush3.bf16.msra.mxu1 %v16165_v11  ;;  %v17594_v49 = vld [vmem:[#allocation2 + $0x74] sm:$0x1]  ;;  %v3382_v11 = vshrl.u32 %v3210_v60, 16  ;;  %v3385_v29 = vshll.u32 %v3210_v60, 16  ;;  %v3397_v36 = vrot.slane %v3395_v26, 4  ;;  %15098 = vmatprep.mubr.bf16.mxu0 %v13591_v57  ;;  %v304_v57 = vsel %vm16835_vm3, 0, %v303_v13 }
 0x134   : > { %15178 = vmatprep.subr.bf16.mxu1 %v17561_v0  ;;  %v3401_v23 = vshll.u32 %v17594_v49, 16  ;;  %v17597_v30 = vld [vmem:[#allocation2 + $0x6c] sm:$0xf]  ;;  %v17599_v4 = vld [vmem:[#allocation2 + $0x74] sm:$0x1]  ;;  %v3667_v16 = vsel %vm17071_vm14, %v3665_v53, %v3666_v14  ;;  %v4317_v60 = vrot.slane %v4316_v33, 4 }
 0x135   : > { %15097 = vmatpush3.bf16.msra.mxu0 %v16164_v24  ;;  %v3384_v19 = vrot.slane %v3382_v11, 4  ;;  %v3387_v6 = vrot.slane %v3385_v29, 5  ;;  %v3398_v45 = vor.u32 %v3397_v36, %v3393_v55  ;;  %v4300_v24 = vshrl.u32 %v17597_v30, 16  ;;  %305 = vst [vmem:[#allocation2 + $0x78] sm:$0x1] %v304_v57 }
 0x136   : > { %15146 = vmatprep.subr.bf16.mxu0 %v17569_v38  ;;  %v3403_v52 = vrot.slane %v3401_v23, 5  ;;  %v4303_v21 = vshll.u32 %v17597_v30, 16  ;;  %v4319_v22 = vshll.u32 %v17599_v4, 16  ;;  %v13593_v35 = vcombine.low %v3664_v1, %v3667_v16  ;;  %361 = vst [vmem:[#allocation2 + $0x80] sm:$0x1] %v360_v61  ;;  %v17643_v16 = vld [vmem:[#allocation7 + $0x20] sm:$0xff]  }
 0x137   : > { %v3388_v56 = vor.u32 %v3387_v6, %v3384_v19  ;;  %v3399_v12 = vrot.slane %v3398_v45, 4  ;;  %v4302_v27 = vrot.slane %v4300_v24, 4  ;;  %v751_v11 = vshrl.u32 %v17592_v48, 16  ;;  %v306_v29 = vld [vmem:[#allocation2 + $0x84] sm:$0x1] }
 0x138   : > { %v4305_v37 = vrot.slane %v4303_v21, 5  ;;  %v4321_v63 = vrot.slane %v4319_v22, 5  ;;  %v754_v23 = vshll.u32 %v17592_v48, 16  ;;  %v759_v19 = vshrl.u32 %v14204_v32, 16  ;;  %v362_v6 = vld [vmem:[#allocation2 + $0x8c] sm:$0x1] }
 0x139   : > { %v3389_v26 = vrot.slane %v3388_v56, 4  ;;  %v3404_v18 = vsel %vm16892_vm11, %v3399_v12, %v3403_v52  ;;  %v762_v14 = vshll.u32 %v14204_v32, 16  ;;  %v753_v13 = vrot.slane %v751_v11, 7  ;;  %v13412_v22 = vld [vmem:[%s16820_s26 + $0xa8] sm:$0xff]  ;;  %v3619_v12 = vld [vmem:[#allocation2 + $0x48] sm:$0xe] }
 0x13a   : > { %v4306_v15 = vor.u32 %v4305_v37, %v4302_v27  ;;  %15099 = vmatmul.mubr.bf16.vlgmr.msra.gmra.mxu0 %v13592_v46  ;;  %v4322_v1 = vsel %vm16892_vm11, %v4317_v60, %v4321_v63  ;;  %v761_v52 = vrot.slane %v759_v19, 7  ;;  %v13586_v21 = vrot.slane %v3618_v34, 9  ;;  %v16170_v56 = vld [vmem:[#allocation7 + $0x28] sm:$0xff]   ;;  %v309_v34 = vld [vmem:[#allocation2 + $0x90] sm:$0x1]  ;;  %v13414_v19 = vld [vmem:[%s16820_s26 + $0xb8] sm:$0xff] }
 0x13b   : > { %v3394_v36 = vsel %vm16892_vm11, %v3389_v26, %v3393_v55  ;;  %15147 = vmatpush3.bf16.msra.mxu0 %v17569_v38  ;;  %15102 = vmatprep.mubr.bf16.mxu0 %v13593_v35  ;;  %v3670_v55 = vrot.slane %v17468_v51, 5  ;;  %v3673_v48 = vrot.slane %v17470_v42, 5  ;;  %v756_v32 = vor.u32 %v754_v23, %v753_v13  ;;  %v365_v60 = vld [vmem:[#allocation2 + $0x98] sm:$0x1]  ;;  %v17646_v35 = vld [vmem:[#allocation7 + $0xb0] sm:$0xff]  }
 0x13c   : > { %v13574_v45 = vcombine.low %v3394_v36, %v3404_v18  ;;  %v4307_v24 = vrot.slane %v4306_v15, 4  ;;  %15148 = vmatprep.subr.bf16.mxu0 %v16168_v41  ;;  %v757_v2 = vrot.slane %v753_v13, 4  ;;  %v307_v38 = vsel %vm16835_vm3, 0, %v306_v29  ;;  %v901_v37 = vld [vmem:[#allocation2 + $0x78] sm:$0xf]  ;;  %v13413_v23 = vld [vmem:[%s16820_s26 + $0xb0] sm:$0xff] }
 0x13d   : > { %v764_v27 = vor.u32 %v762_v14, %v761_v52  ;;  %v766_v42 = vrot.slane %v761_v52, 4  ;;  %v3671_v53 = vsel %vm17071_vm14, %v13586_v21, %v3670_v55  ;;  %308 = vst [vmem:[#allocation2 + $0x84] sm:$0x1] %v307_v38  ;;  %v3672_v33 = vrot.slane %v3670_v55, 4  ;;  %v905_v18 = vld [vmem:[#allocation2 + $0x80] sm:$0x1] }
 0x13e   : > { %15079 = vmatmul.mubr.bf16.gmra.mxu1 %v13574_v45  ;;  %v4312_v46 = vsel %vm16892_vm11, %v4307_v24, %v17601_v54  ;;  %v363_v54 = vsel %vm16840_vm4, 0, %v362_v6  ;;  %v14205_v63 = vpack.c.bf16 %v13411_v8, %v13411_v8  ;;  %v14206_v57 = vpack.c.bf16 %v13412_v22, %v13412_v22  ;;  %v17656_v24 = vld [vmem:[#allocation2 + $0x54] sm:$0xe] }
 0x13f   : > { %15130 = vmatprep.mubr.bf16.mxu1 %v17586_v25  ;;  %v13626_v51 = vcombine.low %v4312_v46, %v4322_v1  ;;  %15149 = vmatpush3.bf16.msra.mxu0 %v16168_v41  ;;  %v765_v26 = vsel %vm16880_vm10, %v757_v2, %v764_v27  ;;  %v902_v25 = vsel %vm16867_vm9, %v756_v32, %v901_v37  ;;  %v13587_v61 = vrot.slane %v3619_v12, 9  ;;  %v16174_v37 = vld [vmem:[#allocation7 + $0x18] sm:$0xff]  }
 0x140   : > { %364 = vst [vmem:[#allocation2 + $0x8c] sm:$0x1] %v363_v54  ;;  %v3677_v15 = vrot.slane %v17483_v62, 5  ;;  %903 = vst [vmem:[#allocation2 + $0x78] sm:$0xf] %v902_v25  ;;  %v906_v41 = vsel %vm16835_vm3, %v766_v42, %v905_v18  ;;  %v3674_v11 = vsel %vm17071_vm14, %v3672_v33, %v3673_v48  ;;  %v768_v29 = vshrl.u32 %v14205_v63, 16  ;;  %15150 = vmatprep.subr.bf16.mxu0 %v16170_v56 }
 0x141   : > { %904 = vst [vmem:[#allocation2 + $0x7c] sm:$0xf] %v765_v26  ;;  %v771_v36 = vshll.u32 %v14205_v63, 16  ;;  %907 = vst [vmem:[#allocation2 + $0x80] sm:$0x1] %v906_v41  ;;  %v13594_v14 = vcombine.low %v3671_v53, %v3674_v11  ;;  %v776_v6 = vshrl.u32 %v14206_v57, 16  ;;  %v14207_v8 = vpack.c.bf16 %v13413_v23, %v13413_v23 }
 0x142   : > { %v779_v62 = vshll.u32 %v14206_v57, 16  ;;  %v3678_v45 = vsel %vm17071_vm14, %v13587_v61, %v3677_v15  ;;  %v770_v1 = vrot.slane %v768_v29, 7  ;;  %v3679_v13 = vrot.slane %v3677_v15, 4  ;;  %v16171_v33 = vld [vmem:[#allocation7 + $0xa8] sm:$0xff]  }
 0x143   : > { %v3680_v52 = vrot.slane %v17485_v7, 5  ;;  %v310_v21 = vsel %vm16835_vm3, 0, %v309_v34  ;;  %15103 = vmatmul.mubr.bf16.gmra.mxu0 %v13594_v14  ;;  %v778_v55 = vrot.slane %v776_v6, 7  ;;  %v366_v48 = vsel %vm16840_vm4, 0, %v365_v60  ;;  %v312_v23 = vld [vmem:[#allocation2 + $0x9c] sm:$0x1] }
 0x144   : > { %311 = vst [vmem:[#allocation2 + $0x90] sm:$0x1] %v310_v21  ;;  %v14208_v22 = vpack.c.bf16 %v13414_v19, %v13414_v19  ;;  %v773_v46 = vor.u32 %v771_v36, %v770_v1  ;;  %v774_v32 = vrot.slane %v770_v1, 4  ;;  %v908_v2 = vld [vmem:[#allocation2 + $0x84] sm:$0xf]  ;;  %15151 = vmatpush3.bf16.msra.mxu0 %v16170_v56  ;;  %v13588_v7 = vrot.slane %v17656_v24, 9 }
 0x145   : > { %v3681_v38 = vsel %vm17071_vm14, %v3679_v13, %v3680_v52  ;;  %367 = vst [vmem:[#allocation2 + $0x98] sm:$0x1] %v366_v48  ;;  %v781_v12 = vor.u32 %v779_v62, %v778_v55  ;;  %v783_v27 = vrot.slane %v778_v55, 4  ;;  %15152 = vmatprep.subr.bf16.mxu0 %v17643_v16  ;;  %v785_v53 = vshrl.u32 %v14207_v8, 16  ;;  %v17686_v36 = vld [vmem:[#allocation7 + $0xa0] sm:$0xff]  }
 0x146   : > { %15131 = vmatmul.mubr.bf16.vlgmr.msra.gmra.mxu1 %v13626_v51  ;;  %v13595_v42 = vcombine.low %v3678_v45, %v3681_v38  ;;  %v909_v56 = vsel %vm16867_vm9, %v773_v46, %v908_v2  ;;  %v788_v54 = vshll.u32 %v14207_v8, 16  ;;  %v793_v63 = vshrl.u32 %v14208_v22, 16  ;;  %v368_v62 = vld [vmem:[#allocation2 + $0xa4] sm:$0x1] }
 0x147   : > { %15179 = vmatpush3.bf16.msra.mxu1 %v17561_v0  ;;  %v912_v51 = vld [vmem:[#allocation2 + $0x8c] sm:$0x1]  ;;  %v796_v57 = vshll.u32 %v14208_v22, 16  ;;  %v17671_v34 = vld [vmem:[#allocation2 + $0x78] sm:$0xf]  ;;  %v782_v26 = vsel %vm16880_vm10, %v774_v32, %v781_v12  ;;  %v787_v18 = vrot.slane %v785_v53, 7 }
 0x148   : > { %15180 = vmatprep.subr.bf16.mxu1 %v17646_v35  ;;  %v17673_v0 = vld [vmem:[#allocation2 + $0x7c] sm:$0xf]  ;;  %910 = vst [vmem:[#allocation2 + $0x84] sm:$0xf] %v909_v56  ;;  %v913_v25 = vsel %vm16835_vm3, %v783_v27, %v912_v51  ;;  %15106 = vmatprep.mubr.bf16.mxu0 %v13595_v42  ;;  %v3684_v61 = vrot.slane %v17495_v39, 5  ;;  %v4324_v60 = vshrl.u32 %v17671_v34, 16 }
 0x149   : > { %v17680_v15 = vld [vmem:[#allocation2 + $0x80] sm:$0x1]  ;;  %v4327_v41 = vshll.u32 %v17671_v34, 16  ;;  %v4333_v11 = vshll.u32 %v17673_v0, 16  ;;  %v4337_v29 = vshrl.u32 %v17673_v0, 16  ;;  %15153 = vmatpush3.bf16.msra.mxu0 %v17643_v16  ;;  %v790_v19 = vor.u32 %v788_v54, %v787_v18  ;;  %v13415_v22 = vld [vmem:[%s16820_s26 + $0xc0] sm:$0xff] }
 0x14a   : > { %911 = vst [vmem:[#allocation2 + $0x88] sm:$0xf] %v782_v26  ;;  %914 = vst [vmem:[#allocation2 + $0x8c] sm:$0x1] %v913_v25  ;;  %v4343_v39 = vshll.u32 %v17680_v15, 16  ;;  %v791_v14 = vrot.slane %v787_v18, 4  ;;  %15154 = vmatprep.subr.bf16.mxu0 %v16174_v37  ;;  %v17694_v46 = vpop.f32.mrf.mxu1  ;;  %v3685_v38 = vsel %vm17071_vm14, %v13588_v7, %v3684_v61 }
 0x14b   : > { %15181 = vmatpush3.bf16.msra.mxu1 %v17646_v35  ;;  %v795_v6 = vrot.slane %v793_v63, 7  ;;  %v16176_v45 = vld [vmem:[#allocation7 + $0x10] sm:$0xff]   ;;  %v4326_v24 = vrot.slane %v4324_v60, 4  ;;  %v4329_v1 = vrot.slane %v4327_v41, 5  ;;  %v4335_v13 = vrot.slane %v4333_v11, 5  ;;  %v13416_v27 = vld [vmem:[%s16820_s26 + $0xc8] sm:$0xff] }
 0x14c   : > { %v4339_v52 = vrot.slane %v4337_v29, 4  ;;  %15182 = vmatprep.subr.bf16.mxu1 %v16171_v33  ;;  %v915_v21 = vld [vmem:[#allocation2 + $0x90] sm:$0xf]  ;;  %v4345_v16 = vrot.slane %v4343_v39, 5  ;;  %v919_v8 = vld [vmem:[#allocation2 + $0x98] sm:$0x1]  ;;  %v17721_v60 = vpack.c.bf16 %v13416_v27, %v13416_v27  ;;  %v17723_v41 = vpop.f32.mrf.mxu1 }
 0x14d   : > { %v798_v55 = vor.u32 %v796_v57, %v795_v6  ;;  %v800_v48 = vrot.slane %v795_v6, 4  ;;  %v916_v35 = vsel %vm16867_vm9, %v790_v19, %v915_v21  ;;  %v4330_v32 = vor.u32 %v4329_v1, %v4326_v24  ;;  %15155 = vmatpush3.bf16.msra.mxu0 %v16174_v37  ;;  %v17731_v19 = vld [vmem:[#allocation7 + $0x90] sm:$0xff]  }
 0x14e   : > { %v4340_v2 = vor.u32 %v4339_v52, %v4335_v13  ;;  %917 = vst [vmem:[#allocation2 + $0x90] sm:$0xf] %v916_v35  ;;  %v3686_v12 = vrot.slane %v3684_v61, 4  ;;  %v3687_v56 = vrot.slane %v17497_v20, 5  ;;  %v313_v51 = vsel %vm16835_vm3, 0, %v312_v23  ;;  %15156 = vmatprep.subr.bf16.mxu0 %v16176_v45  ;;  %v16175_v20 = vld [vmem:[#allocation7 + $0x98] sm:$0xff]  }
 0x14f   : > { %15183 = vmatpush3.bf16.msra.mxu1 %v16171_v33  ;;  %v799_v42 = vsel %vm16880_vm10, %v791_v14, %v798_v55  ;;  %v920_v53 = vsel %vm16835_vm3, %v800_v48, %v919_v8  ;;  %v4331_v54 = vrot.slane %v4330_v32, 4  ;;  %v17706_v57 = vld [vmem:[#allocation2 + $0x84] sm:$0xf]  ;;  %314 = vst [vmem:[#allocation2 + $0x9c] sm:$0x1] %v313_v51  ;;  %v369_v7 = vsel %vm16840_vm4, 0, %v368_v62 }
 0x150   : > { %v4341_v63 = vrot.slane %v4340_v2, 4  ;;  %15184 = vmatprep.subr.bf16.mxu1 %v17686_v36  ;;  %918 = vst [vmem:[#allocation2 + $0x94] sm:$0xf] %v799_v42  ;;  %921 = vst [vmem:[#allocation2 + $0x98] sm:$0x1] %v920_v53  ;;  %v17711_v37 = vpack.c.bf16 %v13415_v22, %v13415_v22  ;;  %v4348_v25 = vshrl.u32 %v17706_v57, 16  ;;  %v3688_v61 = vsel %vm17071_vm14, %v3686_v12, %v3687_v56 }
 0x151   : > { %v17713_v33 = vld [vmem:[#allocation2 + $0x88] sm:$0xf]  ;;  %v17715_v26 = vld [vmem:[#allocation2 + $0x8c] sm:$0x1]  ;;  %v4351_v18 = vshll.u32 %v17706_v57, 16  ;;  %v4336_v11 = vsel %vm16892_vm11, %v4331_v54, %v4335_v13  ;;  %15157 = vmatpush3.bf16.msra.mxu0 %v16176_v45  ;;  %v13417_v14 = vld [vmem:[%s16820_s26 + $0xd0] sm:$0xff] }
 0x152   : > { %370 = vst [vmem:[#allocation2 + $0xa4] sm:$0x1] %v369_v7  ;;  %v4346_v29 = vsel %vm16892_vm11, %v4341_v63, %v4345_v16  ;;  %v4357_v23 = vshll.u32 %v17713_v33, 16  ;;  %v4361_v39 = vshrl.u32 %v17713_v33, 16  ;;  %v4350_v62 = vrot.slane %v4348_v25, 4  ;;  %v16178_v13 = vld [vmem:[#allocation7 + $0x8] sm:$0xff]  }
 0x153   : > { %v13627_v6 = vcombine.low %v4336_v11, %v4346_v29  ;;  %v4353_v24 = vrot.slane %v4351_v18, 5  ;;  %v4367_v1 = vshll.u32 %v17715_v26, 16  ;;  %15185 = vmatpush3.bf16.msra.mxu1 %v17686_v36  ;;  %v13596_v16 = vcombine.low %v3685_v38, %v3688_v61  ;;  %v13418_v48 = vld [vmem:[%s16820_s26 + $0xd8] sm:$0xff]  ;;  %15158 = vmatprep.subr.bf16.mxu0 %v16178_v13  ;;  %v16180_v2 = vld [vmem:[#allocation7] sm:$0xff]   ;;  %v17742_v36 = vpop.f32.mrf.mxu1  ;;  %v17748_v53 = vld [vmem:[#allocation7 + $0x88] sm:$0xff]   ;;  %v17750_v56 = vpop.f32.mrf.mxu0 }
 0x154   : > { %v4359_v52 = vrot.slane %v4357_v23, 5  ;;  %v4363_v21 = vrot.slane %v4361_v39, 4  ;;  %v802_v55 = vshrl.u32 %v17711_v37, 16  ;;  %15186 = vmatprep.subr.bf16.mxu1 %v16175_v20  ;;  %v805_v22 = vshll.u32 %v17711_v37, 16  ;;  %v3621_v37 = vld [vmem:[#allocation2 + $0x60] sm:$0xe] }
 0x155   : > { %15134 = vmatprep.mubr.bf16.mxu1 %v13627_v6  ;;  %v4354_v35 = vor.u32 %v4353_v24, %v4350_v62  ;;  %v4369_v8 = vrot.slane %v4367_v1, 5  ;;  %v17738_v45 = vld [vmem:[#allocation2 + $0x90] sm:$0xf]  ;;  %v810_v32 = vshrl.u32 %v17721_v60, 16  ;;  %15107 = vmatmul.mubr.bf16.gmra.mxu0 %v13596_v16  ;;  %v17756_v25 = vpack.c.bf16 %v13417_v14, %v13417_v14  ;;  %v315_v1 = vld [vmem:[#allocation2 + $0xa8] sm:$0x1] }
 0x156   : > { %v4364_v12 = vor.u32 %v4363_v21, %v4359_v52  ;;  %v4372_v38 = vshrl.u32 %v17738_v45, 16  ;;  %v4375_v27 = vshll.u32 %v17738_v45, 16  ;;  %v17746_v42 = vrot.slane %v802_v55, 7  ;;  %15159 = vmatpush3.bf16.msra.mxu0 %v16178_v13  ;;  %v922_v39 = vld [vmem:[#allocation2 + $0x9c] sm:$0xf]  ;;  %v17767_v21 = vpop.f32.mrf.mxu1 }
 0x157   : > { %v4355_v51 = vrot.slane %v4354_v35, 4  ;;  %v17752_v54 = vld [vmem:[#allocation2 + $0x94] sm:$0xf]  ;;  %v17754_v63 = vld [vmem:[#allocation2 + $0x98] sm:$0x1]  ;;  %v812_v7 = vrot.slane %v810_v32, 7  ;;  %15187 = vmatpush3.bf16.msra.mxu1 %v16175_v20  ;;  %v17758_v18 = vpack.c.bf16 %v13418_v48, %v13418_v48  ;;  %15160 = vmatprep.subr.bf16.mxu0 %v16180_v2  ;;  %v17772_v32 = vpop.f32.mrf.mxu0 }
 0x158   : > { %v4365_v61 = vrot.slane %v4364_v12, 4  ;;  %v4374_v11 = vrot.slane %v4372_v38, 4  ;;  %v4377_v29 = vrot.slane %v4375_v27, 5  ;;  %v4381_v23 = vshll.u32 %v17752_v54, 16  ;;  %15188 = vmatprep.subr.bf16.mxu1 %v17731_v19  ;;  %v371_v13 = vld [vmem:[#allocation2 + $0xb0] sm:$0x1] }
 0x159   : > { %v4360_v6 = vsel %vm16892_vm11, %v4355_v51, %v4359_v52  ;;  %v4385_v20 = vshrl.u32 %v17752_v54, 16  ;;  %v4391_v14 = vshll.u32 %v17754_v63, 16  ;;  %v807_v62 = vor.u32 %v805_v22, %v17746_v42  ;;  %v926_v24 = vld [vmem:[#allocation2 + $0xa4] sm:$0x1]  ;;  %v17776_v22 = vld [vmem:[#allocation7 + $0xf8] sm:$0xff]  }
 0x15a   : > { %v4370_v16 = vsel %vm16892_vm11, %v4365_v61, %v4369_v8  ;;  %v4378_v55 = vor.u32 %v4377_v29, %v4374_v11  ;;  %v4383_v48 = vrot.slane %v4381_v23, 5  ;;  %v808_v35 = vrot.slane %v17746_v42, 4  ;;  %15161 = vmatpush3.bf16.msra.mxu0 %v16180_v2  ;;  %v16181_v42 = vld [vmem:[#allocation7 + $0x80] sm:$0xff]   ;;  %v3622_v2 = vld [vmem:[#allocation2 + $0x6c] sm:$0xe]  ;;  %v17784_v23 = vpop.f32.mrf.mxu1 }
 0x15b   : > { %v13628_v52 = vcombine.low %v4360_v6, %v4370_v16  ;;  %v4387_v12 = vrot.slane %v4385_v20, 4  ;;  %v4393_v38 = vrot.slane %v4391_v14, 5  ;;  %v813_v27 = vshll.u32 %v17721_v60, 16  ;;  %15189 = vmatpush3.bf16.msra.mxu1 %v17731_v19  ;;  %15210 = vmatprep.subr.bf16.mxu0 %v17776_v22  ;;  %v17794_v20 = vpop.f32.mrf.mxu0 }
 0x15c   : > { %v4379_v51 = vrot.slane %v4378_v55, 4  ;;  %v817_v28 = vrot.slane %v812_v7, 4  ;;  %v923_v8 = vsel %vm16867_vm9, %v807_v62, %v922_v39  ;;  %v13589_v61 = vrot.slane %v3621_v37, 9  ;;  %15190 = vmatprep.subr.bf16.mxu1 %v17748_v53 }
 0x15d   : > { %15135 = vmatmul.mubr.bf16.gmra.mxu1 %v13628_v52  ;;  %v4388_v11 = vor.u32 %v4387_v12, %v4383_v48  ;;  %v815_v29 = vor.u32 %v813_v27, %v812_v7  ;;  %924 = vst [vmem:[#allocation2 + $0x9c] sm:$0xf] %v923_v8  ;;  %v3691_v60 = vrot.slane %v17511_v17, 5  ;;  %v3694_v19 = vrot.slane %v17513_v3, 5  ;;  %v318_v17 = vld [vmem:[#allocation2 + $0xb4] sm:$0x1]  ;;  %v17812_v12 = vpop.f32.mrf.mxu1 }
 0x15e   : > { %v4384_v39 = vsel %vm16892_vm11, %v4379_v51, %v4383_v48  ;;  %v927_v37 = vsel %vm16835_vm3, %v817_v28, %v926_v24  ;;  %v316_v6 = vsel %vm16835_vm3, 0, %v315_v1  ;;  %v372_v7 = vsel %vm16840_vm4, 0, %v371_v13  ;;  %v17810_v52 = vld [vmem:[#allocation7 + $0x138] sm:$0xff]   ;;  %v374_v8 = vld [vmem:[#allocation2 + $0xbc] sm:$0x1] }
 0x15f   : > { %v4389_v3 = vrot.slane %v4388_v11, 4  ;;  %v816_v14 = vsel %vm16880_vm10, %v808_v35, %v815_v29  ;;  %928 = vst [vmem:[#allocation2 + $0xa4] sm:$0x1] %v927_v37  ;;  %v3692_v62 = vsel %vm17071_vm14, %v13589_v61, %v3691_v60  ;;  %v3693_v16 = vrot.slane %v3691_v60, 4  ;;  %317 = vst [vmem:[#allocation2 + $0xa8] sm:$0x1] %v316_v6  ;;  %15191 = vmatpush3.bf16.msra.mxu1 %v17748_v53  ;;  %v17814_v61 = vpop.f32.mrf.mxu0 }
 0x160   : > { %373 = vst [vmem:[#allocation2 + $0xb0] sm:$0x1] %v372_v7  ;;  %925 = vst [vmem:[#allocation2 + $0xa0] sm:$0xf] %v816_v14  ;;  %v819_v28 = vshrl.u32 %v17756_v25, 16  ;;  %v822_v24 = vshll.u32 %v17756_v25, 16  ;;  %15192 = vmatprep.subr.bf16.mxu1 %v16181_v42 }
 0x161   : > { %v827_v1 = vshrl.u32 %v17758_v18, 16  ;;  %v830_v13 = vshll.u32 %v17758_v18, 16  ;;  %v4394_v55 = vsel %vm16892_vm11, %v4389_v3, %v4393_v38  ;;  %v3695_v48 = vsel %vm17071_vm14, %v3693_v16, %v3694_v19  ;;  %v13419_v60 = vld [vmem:[%s16820_s26 + $0xe0] sm:$0xff]  ;;  %v13420_v19 = vld [vmem:[%s16820_s26 + $0xe8] sm:$0xff] }
 0x162   : > { %v13590_v35 = vrot.slane %v3622_v2, 9  ;;  %v3698_v53 = vrot.slane %v17573_v47, 5  ;;  %v13629_v25 = vcombine.low %v4384_v39, %v4394_v55  ;;  %v13597_v27 = vcombine.low %v3692_v62, %v3695_v48  ;;  %v4853_v48 = vld [vmem:[#allocation2 + $0x60] sm:$0xe] }
 0x163   : > { %v821_v51 = vrot.slane %v819_v28, 7  ;;  %v829_v18 = vrot.slane %v827_v1, 7  ;;  %v3701_v29 = vrot.slane %v17594_v49, 5  ;;  %v319_v47 = vsel %vm16835_vm3, 0, %v318_v17  ;;  %15193 = vmatpush3.bf16.msra.mxu1 %v16181_v42  ;;  %v17832_v42 = vpop.f32.mrf.mxu1 }
 0x164   : > { %v3699_v38 = vsel %vm17071_vm14, %v13590_v35, %v3698_v53  ;;  %v3700_v11 = vrot.slane %v3698_v53, 4  ;;  %15138 = vmatprep.mubr.bf16.mxu1 %v13629_v25  ;;  %v17823_v2 = vld [vmem:[#allocation2 + $0x9c] sm:$0xf]  ;;  %15110 = vmatprep.mubr.bf16.mxu0 %v13597_v27  ;;  %320 = vst [vmem:[#allocation2 + $0xb4] sm:$0x1] %v319_v47  ;;  %v375_v17 = vsel %vm16840_vm4, 0, %v374_v8  ;;  %v14214_v55 = vpack.c.bf16 %v13420_v19, %v13420_v19  ;;  %v17838_v35 = vpop.f32.mrf.mxu0 }
 0x165   : > { %v824_v39 = vor.u32 %v822_v24, %v821_v51  ;;  %v825_v37 = vrot.slane %v821_v51, 4  ;;  %v832_v6 = vor.u32 %v830_v13, %v829_v18  ;;  %v834_v7 = vrot.slane %v829_v18, 4  ;;  %15242 = vmatprep.subr.bf16.mxu1 %v17810_v52  ;;  %376 = vst [vmem:[#allocation2 + $0xbc] sm:$0x1] %v375_v17 }
 0x166   : > { %v4396_v3 = vshrl.u32 %v17823_v2, 16  ;;  %v4399_v14 = vshll.u32 %v17823_v2, 16  ;;  %v3702_v49 = vsel %vm17071_vm14, %v3700_v11, %v3701_v29  ;;  %v17834_v62 = vld [vmem:[#allocation2 + $0xa4] sm:$0x1]  ;;  %v929_v28 = vld [vmem:[#allocation2 + $0xa8] sm:$0xf]  ;;  %v14213_v13 = vpack.c.bf16 %v13419_v60, %v13419_v60 }
 0x167   : > { %v833_v16 = vsel %vm16880_vm10, %v825_v37, %v832_v6  ;;  %v933_v24 = vld [vmem:[#allocation2 + $0xb0] sm:$0x1]  ;;  %v13598_v1 = vcombine.low %v3699_v38, %v3702_v49  ;;  %v17840_v53 = vld [vmem:[#allocation2 + $0xa0] sm:$0xf]  ;;  %v4415_v51 = vshll.u32 %v17834_v62, 16  ;;  %v930_v18 = vsel %vm16867_vm9, %v824_v39, %v929_v28  ;;  %v17852_v39 = vpop.f32.mrf.mxu1 }
 0x168   : > { %v4398_v25 = vrot.slane %v4396_v3, 4  ;;  %v4401_v27 = vrot.slane %v4399_v14, 5  ;;  %932 = vst [vmem:[#allocation2 + $0xac] sm:$0xf] %v833_v16  ;;  %v4405_v8 = vshll.u32 %v17840_v53, 16  ;;  %v4409_v38 = vshrl.u32 %v17840_v53, 16  ;;  %v17854_v16 = vpop.f32.mrf.mxu0 }
 0x169   : > { %931 = vst [vmem:[#allocation2 + $0xa8] sm:$0xf] %v930_v18  ;;  %v934_v11 = vsel %vm16835_vm3, %v834_v7, %v933_v24  ;;  %15111 = vmatmul.mubr.bf16.gmra.mxu0 %v13598_v1  ;;  %v836_v29 = vshrl.u32 %v14213_v13, 16  ;;  %v4417_v60 = vrot.slane %v4415_v51, 5  ;;  %v839_v19 = vshll.u32 %v14213_v13, 16  ;;  %21945 = vst [vmem:[#allocation22_spill] sm:$0xff] %v17852_v39 }
 0x16a   : > { %v4402_v47 = vor.u32 %v4401_v27, %v4398_v25  ;;  %935 = vst [vmem:[#allocation2 + $0xb0] sm:$0x1] %v934_v11  ;;  %v844_v37 = vshrl.u32 %v14214_v55, 16  ;;  %v21944_v6 = vcombine.low %v17534_v40, %v17536_v44  ;;  %v4407_v3 = vrot.slane %v4405_v8, 5 }
 0x16b   : > { %v4411_v14 = vrot.slane %v4409_v38, 4  ;;  %v838_v49 = vrot.slane %v836_v29, 7  ;;  %v847_v17 = vshll.u32 %v14214_v55, 16  ;;  %v936_v24 = vld [vmem:[#allocation2 + $0xb4] sm:$0xf]  ;;  %v13657_v1 = vrot.slane %v4853_v48, 9 }
 0x16c   : > { %15162 = vmatprep.mubr.bf16.mxu0 %v21944_v6  ;;  %v4403_v7 = vrot.slane %v4402_v47, 4  ;;  %v846_v28 = vrot.slane %v844_v37, 7  ;;  %v4879_v25 = vrot.slane %v17536_v44, 5  ;;  %v4882_v40 = vrot.slane %v17539_v31, 5  ;;  %v940_v11 = vld [vmem:[#allocation2 + $0xbc] sm:$0x1]  ;;  %v17872_v6 = vpop.f32.mrf.mxu0 }
 0x16d   : > { %v4412_v13 = vor.u32 %v4411_v14, %v4407_v3  ;;  %v841_v27 = vor.u32 %v839_v19, %v838_v49  ;;  %v842_v51 = vrot.slane %v838_v49, 4  ;;  %v17864_v29 = vpop.f32.mrf.mxu1  ;;  %v13642_v31 = vcombine.low %v17597_v30, %v17577_v59  ;;  %v16186_v37 = vld [vmem:[#allocation7 + $0xf0] sm:$0xff]  }
 0x16e   : > { %v4408_v18 = vsel %vm16892_vm11, %v4403_v7, %v4407_v3  ;;  %v849_v8 = vor.u32 %v847_v17, %v846_v28  ;;  %v851_v38 = vrot.slane %v846_v28, 4  ;;  %v17862_v55 = vsel %vm17071_vm14, %v13657_v1, %v4879_v25  ;;  %v4854_v28 = vld [vmem:[#allocation2 + $0x6c] sm:$0xe] }
 0x16f   : > { %v4413_v48 = vrot.slane %v4412_v13, 4  ;;  %v17866_v47 = vld [vmem:[#allocation2 + $0xac] sm:$0xf]  ;;  %v937_v44 = vsel %vm16867_vm9, %v841_v27, %v936_v24  ;;  %v4881_v19 = vrot.slane %v4879_v25, 4  ;;  %v4855_v27 = vld [vmem:[#allocation2 + $0x78] sm:$0xe] }
 0x170   : > { %v17874_v3 = vld [vmem:[#allocation2 + $0xa8] sm:$0xf]  ;;  %v4429_v14 = vshll.u32 %v17866_v47, 16  ;;  %v4433_v49 = vshrl.u32 %v17866_v47, 16  ;;  %v850_v17 = vsel %vm16880_vm10, %v842_v51, %v849_v8  ;;  %938 = vst [vmem:[#allocation2 + $0xb4] sm:$0xf] %v937_v44  ;;  %v941_v7 = vsel %vm16835_vm3, %v851_v38, %v940_v11 }
 0x171   : > { %v4418_v30 = vsel %vm16892_vm11, %v4413_v48, %v4417_v60  ;;  %v17884_v24 = vld [vmem:[#allocation2 + $0xb0] sm:$0x1]  ;;  %v4420_v1 = vshrl.u32 %v17874_v3, 16  ;;  %v4423_v25 = vshll.u32 %v17874_v3, 16  ;;  %939 = vst [vmem:[#allocation2 + $0xb8] sm:$0xf] %v850_v17  ;;  %v17890_v13 = vsel %vm17071_vm14, %v4881_v19, %v4882_v40  ;;  %15163 = vmatmul.mubr.bf16.vlgmr.msra.gmra.mxu0 %v13642_v31  ;;  %v17894_v60 = vpop.f32.mrf.mxu1 }
 0x172   : > { %942 = vst [vmem:[#allocation2 + $0xbc] sm:$0x1] %v941_v7  ;;  %v13630_v51 = vcombine.low %v4408_v18, %v4418_v30  ;;  %v4431_v8 = vrot.slane %v4429_v14, 5  ;;  %v4435_v38 = vrot.slane %v4433_v49, 4  ;;  %v4439_v11 = vshll.u32 %v17884_v24, 16  ;;  %15211 = vmatpush3.bf16.msra.mxu0 %v17776_v22  ;;  %21946 = vst [vmem:[#allocation23_spill] sm:$0xff] %v17894_v60  ;;  %v17896_v7 = vpop.f32.mrf.mxu0 }
 0x173   : > { %v4422_v48 = vrot.slane %v4420_v1, 4  ;;  %v4425_v44 = vrot.slane %v4423_v25, 5  ;;  %v13658_v43 = vrot.slane %v4854_v28, 9  ;;  %15212 = vmatprep.subr.bf16.mxu0 %v16186_v37  ;;  %v16190_v17 = vld [vmem:[#allocation7 + $0xe8] sm:$0xff]   ;;  %21947 = vst [vmem:[#allocation24_spill] sm:$0xff] %v17896_v7  ;;  %v4886_v18 = vrot.slane %v17577_v59, 5 }
 0x174   : > { %15139 = vmatmul.mubr.bf16.gmra.mxu1 %v13630_v51  ;;  %v4436_v40 = vor.u32 %v4435_v38, %v4431_v8  ;;  %v4441_v19 = vrot.slane %v4439_v11, 5  ;;  %v4889_v31 = vrot.slane %v17599_v4, 5  ;;  %v13643_v49 = vcombine.low %v17671_v34, %v17673_v0  ;;  %v16192_v30 = vld [vmem:[#allocation7 + $0xe0] sm:$0xff]   ;;  %v17906_v11 = vpop.f32.mrf.mxu1 }
 0x175   : > { %v4426_v14 = vor.u32 %v4425_v44, %v4422_v48  ;;  %v4893_v28 = vrot.slane %v17673_v0, 5  ;;  %v4888_v25 = vrot.slane %v4886_v18, 4  ;;  %v13659_v51 = vrot.slane %v4855_v27, 9  ;;  %21948 = vst [vmem:[#allocation25_spill] sm:$0xff] %v17906_v11  ;;  %v4856_v44 = vld [vmem:[#allocation2 + $0x84] sm:$0xe] }
 0x176   : > { %v4437_v1 = vrot.slane %v4436_v40, 4  ;;  %15213 = vmatpush3.bf16.msra.mxu0 %v16186_v37  ;;  %v4896_v38 = vrot.slane %v17680_v15, 5  ;;  %v17912_v48 = vsel %vm17071_vm14, %v13658_v43, %v4886_v18  ;;  %15166 = vmatprep.mubr.bf16.mxu0 %v13643_v49  ;;  %v13644_v0 = vcombine.low %v17706_v57, %v17713_v33 }
 0x177   : > { %v4427_v59 = vrot.slane %v4426_v14, 4  ;;  %v17908_v4 = vld [vmem:[#allocation2 + $0xb4] sm:$0xf]  ;;  %v4895_v34 = vrot.slane %v4893_v28, 4  ;;  %15214 = vmatprep.subr.bf16.mxu0 %v16190_v17  ;;  %v17916_v37 = vpop.f32.mrf.mxu0  ;;  %v17928_v18 = vsel %vm17071_vm14, %v4888_v25, %v4889_v31  ;;  %v17937_v11 = vsel %vm17071_vm14, %v13659_v51, %v4893_v28  ;;  %v4858_v31 = vld [vmem:[#allocation2 + $0x9c] sm:$0xe]  ;;  %v17939_v25 = vpop.f32.mrf.mxu1 }
 0x178   : > { %v4442_v15 = vsel %vm16892_vm11, %v4437_v1, %v4441_v19  ;;  %v17920_v27 = vld [vmem:[#allocation2 + $0xb8] sm:$0xf]  ;;  %v4444_v14 = vshrl.u32 %v17908_v4, 16  ;;  %v4447_v43 = vshll.u32 %v17908_v4, 16  ;;  %v4857_v1 = vld [vmem:[#allocation2 + $0x90] sm:$0xe] }
 0x179   : > { %v17922_v40 = vld [vmem:[#allocation2 + $0xbc] sm:$0x1]  ;;  %v4432_v57 = vsel %vm16892_vm11, %v4427_v59, %v4431_v8  ;;  %v4453_v49 = vshll.u32 %v17920_v27, 16  ;;  %v4457_v22 = vshrl.u32 %v17920_v27, 16  ;;  %15167 = vmatmul.mubr.bf16.gmra.mxu0 %v13644_v0  ;;  %v16196_v0 = vld [vmem:[#allocation7 + $0xd8] sm:$0xff]   ;;  %v17943_v7 = vpop.f32.mrf.mxu0  ;;  %v17947_v28 = vsel %vm17071_vm14, %v4895_v34, %v4896_v38 }
 0x17a   : > { %v4463_v19 = vshll.u32 %v17922_v40, 16  ;;  %v13631_v58 = vcombine.low %v4432_v57, %v4442_v15  ;;  %v4446_v10 = vrot.slane %v4444_v14, 4  ;;  %v4449_v9 = vrot.slane %v4447_v43, 5  ;;  %15215 = vmatpush3.bf16.msra.mxu0 %v16190_v17 }
 0x17b   : > { %v4455_v8 = vrot.slane %v4453_v49, 5  ;;  %v4459_v59 = vrot.slane %v4457_v22, 4  ;;  %15216 = vmatprep.subr.bf16.mxu0 %v16192_v30  ;;  %v13660_v17 = vrot.slane %v4856_v44, 9  ;;  %v4900_v51 = vrot.slane %v17713_v33, 5  ;;  %v4859_v49 = vld [vmem:[#allocation2 + $0xa8] sm:$0xe] }
 0x17c   : > { %v4465_v60 = vrot.slane %v4463_v19, 5  ;;  %15142 = vmatprep.mubr.bf16.mxu1 %v13631_v58  ;;  %v4450_v15 = vor.u32 %v4449_v9, %v4446_v10  ;;  %v4903_v22 = vrot.slane %v17715_v26, 5  ;;  %v13645_v43 = vcombine.low %v17738_v45, %v17752_v54  ;;  %v16198_v44 = vld [vmem:[#allocation7 + $0xd0] sm:$0xff]  }
 0x17d   : > { %v4460_v14 = vor.u32 %v4459_v59, %v4455_v8  ;;  %v13661_v57 = vrot.slane %v4857_v1, 9  ;;  %v17955_v58 = vsel %vm17071_vm14, %v13660_v17, %v4900_v51  ;;  %v4902_v9 = vrot.slane %v4900_v51, 4  ;;  %v17963_v1 = vpop.f32.mrf.mxu0  ;;  %v4860_v51 = vld [vmem:[#allocation2 + $0xb4] sm:$0xe] }
 0x17e   : > { %v4451_v19 = vrot.slane %v4450_v15, 4  ;;  %15217 = vmatpush3.bf16.msra.mxu0 %v16192_v30  ;;  %v4907_v10 = vrot.slane %v17752_v54, 5  ;;  %15170 = vmatprep.mubr.bf16.mxu0 %v13645_v43  ;;  %v4910_v26 = vrot.slane %v17754_v63, 5  ;;  %v13646_v45 = vcombine.low %v17823_v2, %v17840_v53 }
 0x17f   : > { %v4461_v33 = vrot.slane %v4460_v14, 4  ;;  %v13662_v34 = vrot.slane %v4858_v31, 9  ;;  %15218 = vmatprep.subr.bf16.mxu0 %v16196_v0  ;;  %v17971_v30 = vsel %vm17071_vm14, %v4902_v9, %v4903_v22  ;;  %v4917_v17 = vrot.slane %v17834_v62, 5  ;;  %v5383_v9 = vld [vmem:[#allocation2 + $0x6c] sm:$0xf] }
 0x180   : > { %v4456_v59 = vsel %vm16892_vm11, %v4451_v19, %v4455_v8  ;;  %v4909_v15 = vrot.slane %v4907_v10, 4  ;;  %v17979_v31 = vsel %vm17071_vm14, %v13661_v57, %v4907_v10  ;;  %v4914_v8 = vrot.slane %v17840_v53, 5  ;;  %v17998_v10 = vld [vmem:[#allocation2 + $0x70] sm:$0xf]  ;;  %v18036_v22 = vld [vmem:[#allocation2 + $0x80] sm:$0x1] }
 0x181   : > { %v17958_v38 = vpop.f32.mrf.mxu1  ;;  %v4466_v2 = vsel %vm16892_vm11, %v4461_v33, %v4465_v60  ;;  %15171 = vmatmul.mubr.bf16.gmra.mxu0 %v13646_v45  ;;  %v13647_v43 = vcombine.low %v17874_v3, %v17866_v47  ;;  %v13663_v19 = vrot.slane %v4859_v49, 9  ;;  %v16202_v60 = vld [vmem:[#allocation7 + $0xc8] sm:$0xff]   ;;  %21951 = vst [vmem:[#allocation28_spill] sm:$0xff] %v17998_v10  ;;  %v18000_v3 = vpop.f32.mrf.mxu0  ;;  %v4924_v49 = vrot.slane %v17884_v24, 5 }
 0x182   : > { %v13632_v14 = vcombine.low %v4456_v59, %v4466_v2  ;;  %15219 = vmatpush3.bf16.msra.mxu0 %v16196_v0  ;;  %v17991_v57 = vsel %vm17071_vm14, %v4909_v15, %v4910_v26  ;;  %v17995_v62 = vsel %vm17071_vm14, %v13662_v34, %v4914_v8  ;;  %v4916_v53 = vrot.slane %v4914_v8, 4  ;;  %v16206_v34 = vld [vmem:[#allocation2 + $0x6c] sm:$0xff]   ;;  %v18006_v15 = vld [vmem:[#allocation2 + $0x74] sm:$0x1] }
 0x183   : > { %v17973_v63 = vpop.f32.mrf.mxu1  ;;  %15220 = vmatprep.subr.bf16.mxu0 %v16198_v44  ;;  %v4921_v0 = vrot.slane %v17866_v47, 5  ;;  %15174 = vmatprep.mubr.bf16.mxu0 %v13647_v43  ;;  %v13648_v26 = vcombine.low %v17908_v4, %v17920_v27  ;;  %v13664_v45 = vrot.slane %v4860_v51, 9  ;;  %v4928_v59 = vrot.slane %v17920_v27, 5  ;;  %21952 = vst [vmem:[#allocation29_spill] sm:$0xff] %v18006_v15  ;;  %v5386_v51 = vld [vmem:[#allocation2 + $0x78] sm:$0xf] }
 0x184   : > { %21949 = vst [vmem:[#allocation26_spill] sm:$0xff] %v17973_v63  ;;  %15143 = vmatmul.mubr.bf16.gmra.mxu1 %v13632_v14  ;;  %v21954_v47 = vcombine.low %v17862_v55, %v17890_v13  ;;  %v18015_v8 = vsel %vm17071_vm14, %v4916_v53, %v4917_v17  ;;  %v4931_v27 = vrot.slane %v17922_v40, 5  ;;  %v5408_v13 = vshrl.u32 %v5383_v9, 16  ;;  %v16204_v40 = vld [vmem:[#allocation7 + $0xc0] sm:$0xff]  }
 0x185   : > { %v17987_v33 = vpop.f32.mrf.mxu1  ;;  %v18019_v24 = vsel %vm17071_vm14, %v13663_v19, %v4921_v0  ;;  %v4923_v4 = vrot.slane %v4921_v0, 4  ;;  %v4930_v55 = vrot.slane %v4928_v59, 4  ;;  %v5411_v53 = vshll.u32 %v5383_v9, 16  ;;  %v16187_v9 = vld [vmem:[#allocation7 + $0x130] sm:$0xff]  }
 0x186   : > { %21950 = vst [vmem:[#allocation27_spill] sm:$0xff] %v17987_v33  ;;  %15194 = vmatprep.mubr.bf16.mxu1 %v21954_v47  ;;  %15221 = vmatpush3.bf16.msra.mxu0 %v16198_v44  ;;  %v18026_v47 = vld [vmem:[#allocation2 + $0x7c] sm:$0xf]  ;;  %v5417_v0 = vshll.u32 %v17998_v10, 16  ;;  %v5421_v14 = vshrl.u32 %v17998_v10, 16  ;;  %v18044_v54 = vsel %vm17071_vm14, %v13664_v45, %v4928_v59  ;;  %v18057_v59 = vadd.f32 %v17694_v46, %v17750_v56 }
 0x187   : > { %v18008_v2 = vpop.f32.mrf.mxu1  ;;  %v18032_v19 = vsel %vm17071_vm14, %v4923_v4, %v4924_v49  ;;  %15222 = vmatprep.subr.bf16.mxu0 %v16202_v60  ;;  %v5410_v49 = vrot.slane %v5408_v13, 4  ;;  %v5427_v4 = vshll.u32 %v18006_v15, 16  ;;  %v5413_v10 = vrot.slane %v5411_v53, 5  ;;  %v18068_v46 = vld [vmem:[#allocation7 + $0x128] sm:$0xff]  }
 0x188   : > { %21953 = vst [vmem:[#allocation30_spill] sm:$0xff] %v18008_v2  ;;  %v5419_v2 = vrot.slane %v5417_v0, 5  ;;  %v5423_v33 = vrot.slane %v5421_v14, 4  ;;  %v5432_v13 = vshrl.u32 %v5386_v51, 16  ;;  %v5435_v43 = vshll.u32 %v5386_v51, 16  ;;  %v16207_v56 = vld [vmem:[#allocation2 + $0x78] sm:$0xff]  }
 0x189   : > { %v18028_v17 = vpop.f32.mrf.mxu1  ;;  %15175 = vmatmul.mubr.bf16.gmra.mxu0 %v13648_v26  ;;  %v5429_v45 = vrot.slane %v5427_v4, 5  ;;  %v5441_v53 = vshll.u32 %v18026_v47, 16  ;;  %v5445_v14 = vshrl.u32 %v18026_v47, 16  ;;  %v5451_v4 = vshll.u32 %v18036_v22, 16 }
 0x18a   : > { %21955 = vst [vmem:[#allocation31_spill] sm:$0xff] %v18028_v17  ;;  %v18038_v44 = vpop.f32.mrf.mxu0  ;;  %v18051_v17 = vsel %vm17071_vm14, %v4930_v55, %v4931_v27  ;;  %15223 = vmatpush3.bf16.msra.mxu0 %v16202_v60  ;;  %15226 = vmatprep.mubr.bf16.mxu0 %v16206_v34  ;;  %v5414_v27 = vor.u32 %v5413_v10, %v5410_v49  ;;  %v5434_v34 = vrot.slane %v5432_v13, 4  ;;  %v5437_v51 = vrot.slane %v5435_v43, 5  ;;  %v16212_v43 = vld [vmem:[#allocation2 + $0x84] sm:$0xff]  }
 0x18b   : > { %v18047_v39 = vpop.f32.mrf.mxu1  ;;  %15224 = vmatprep.subr.bf16.mxu0 %v16204_v40  ;;  %v5424_v55 = vor.u32 %v5423_v33, %v5419_v2  ;;  %v21958_v60 = vcombine.low %v17912_v48, %v17928_v18  ;;  %v21960_v49 = vcombine.low %v17937_v11, %v17947_v28  ;;  %v18078_v18 = vrot.slane %v5441_v53, 5  ;;  %v5389_v13 = vld [vmem:[#allocation2 + $0x84] sm:$0xf]  ;;  %v18091_v28 = vld [vmem:[#allocation2 + $0x88] sm:$0xf] }
 0x18c   : > { %21956 = vst [vmem:[#allocation32_spill] sm:$0xff] %v18047_v39  ;;  %v18053_v63 = vpop.f32.mrf.mxu0  ;;  %v16208_v39 = vld [vmem:[#allocation7 + $0x178] sm:$0xff]   ;;  %v5438_v10 = vor.u32 %v5437_v51, %v5434_v34  ;;  %v18089_v11 = vadd.f32 %v17723_v41, %v17772_v32  ;;  %v5392_v41 = vld [vmem:[#allocation2 + $0x90] sm:$0xf] }
 0x18d   : > { %v18059_v26 = vpop.f32.mrf.mxu1  ;;  %15195 = vmatmul.mubr.bf16.vlgmr.msra.gmra.mxu1 %v21958_v60  ;;  %v5425_v48 = vrot.slane %v5424_v55, 4  ;;  %v5447_v60 = vrot.slane %v5445_v14, 4  ;;  %v18102_v14 = vadd.f32 %v17742_v36, %v17794_v20  ;;  %v18104_v34 = vld [vmem:[#allocation2 + $0x8c] sm:$0x1]  ;;  %v18108_v51 = vld [vmem:[#allocation7 + $0x120] sm:$0xff]   ;;  %v5459_v20 = vshll.u32 %v5389_v13, 16 }
 0x18e   : > { %21957 = vst [vmem:[#allocation33_spill] sm:$0xff] %v18059_v26  ;;  %v18063_v0 = vpop.f32.mrf.mxu0  ;;  %15243 = vmatpush3.bf16.msra.mxu1 %v17810_v52  ;;  %15198 = vmatprep.mubr.bf16.mxu1 %v21960_v49  ;;  %v5415_v26 = vrot.slane %v5414_v27, 4  ;;  %21962 = vst [vmem:[#allocation36_spill] sm:$0xff] %v18104_v34  ;;  %v18116_v49 = vld [vmem:[#allocation2 + $0x94] sm:$0xf]  ;;  %v5469_v52 = vshrl.u32 %v18091_v28, 16 }
 0x18f   : > { %v18072_v33 = vpop.f32.mrf.mxu1  ;;  %15244 = vmatprep.subr.bf16.mxu1 %v16187_v9  ;;  %15225 = vmatpush3.bf16.msra.mxu0 %v16204_v40  ;;  %v5430_v53 = vsel %vm16892_vm11, %v5425_v48, %v5429_v45  ;;  %v5448_v40 = vor.u32 %v5447_v60, %v18078_v18  ;;  %v18114_v45 = vrot.slane %v5438_v10, 4  ;;  %21963 = vst [vmem:[#allocation37_spill] sm:$0xff] %v18116_v49  ;;  %v5465_v60 = vshll.u32 %v18091_v28, 16 }
 0x190   : > { %21959 = vst [vmem:[#allocation34_spill] sm:$0xff] %v18072_v33  ;;  %v18082_v15 = vpop.f32.mrf.mxu0  ;;  %v18084_v33 = vrot.slane %v5451_v4, 5  ;;  %v5420_v55 = vsel %vm16892_vm11, %v5415_v26, %v5419_v2  ;;  %15274 = vmatprep.subr.bf16.mxu0 %v16208_v39  ;;  %v5456_v4 = vshrl.u32 %v5389_v13, 16  ;;  %v18129_v10 = vadd.f32 %v17767_v21, %v17814_v61  ;;  %v18136_v13 = vld [vmem:[#allocation2 + $0x98] sm:$0x1] }
 0x191   : > { %v18093_v27 = vpop.f32.mrf.mxu1  ;;  %v18112_v26 = vcombine.low %v5420_v55, %v5430_v53  ;;  %v18120_v36 = vrot.slane %v5448_v40, 4  ;;  %21965 = vst [vmem:[#allocation39_spill] sm:$0xff] %v18136_v13  ;;  %v5461_v21 = vrot.slane %v5459_v20, 5  ;;  %v5467_v61 = vrot.slane %v5465_v60, 5 }
 0x192   : > { %21961 = vst [vmem:[#allocation35_spill] sm:$0xff] %v18093_v27  ;;  %v18106_v32 = vpop.f32.mrf.mxu0  ;;  %15245 = vmatpush3.bf16.msra.mxu1 %v16187_v9  ;;  %15227 = vmatmul.mubr.bf16.vlgmr.msra.gmra.mxu0 %v16207_v56  ;;  %v5458_v55 = vrot.slane %v5456_v4, 4  ;;  %v5475_v9 = vshll.u32 %v18104_v34, 16  ;;  %v18134_v56 = vadd.f32 %v17784_v23, %v17838_v35  ;;  %v5471_v40 = vrot.slane %v5469_v52, 4  ;;  %v16214_v4 = vld [vmem:[#allocation7 + $0x168] sm:$0xff]   ;;  %v18150_v35 = vld [vmem:[#allocation7 + $0x118] sm:$0xff]  }
 0x193   : > { %v18118_v48 = vpop.f32.mrf.mxu1  ;;  %15246 = vmatprep.subr.bf16.mxu1 %v18068_v46  ;;  %15275 = vmatpush3.bf16.msra.mxu0 %v16208_v39  ;;  %v5444_v39 = vsel %vm16892_vm11, %v18114_v45, %v18078_v18  ;;  %v21967_v23 = vcombine.low %v17955_v58, %v17971_v30  ;;  %v5454_v18 = vsel %vm16892_vm11, %v18120_v36, %v18084_v33  ;;  %v5483_v20 = vshll.u32 %v5392_v41, 16  ;;  %v18164_v34 = vld [vmem:[#allocation7 + $0x160] sm:$0xff]  }
 0x194   : > { %21964 = vst [vmem:[#allocation38_spill] sm:$0xff] %v18118_v48  ;;  %v18124_v27 = vpop.f32.mrf.mxu0  ;;  %15276 = vmatprep.subr.bf16.mxu0 %v18080_v50  ;;  %15230 = vmatprep.mubr.bf16.mxu0 %v16212_v43  ;;  %v5477_v45 = vrot.slane %v5475_v9, 5  ;;  %v5480_v43 = vshrl.u32 %v5392_v41, 16  ;;  %v21969_v52 = vcombine.low %v17979_v31, %v17991_v57  ;;  %v5462_v58 = vor.u32 %v5461_v21, %v5458_v55 }
 0x195   : > { %v18138_v53 = vpop.f32.mrf.mxu1  ;;  %15199 = vmatmul.mubr.bf16.gmra.mxu1 %v21967_v23  ;;  %v5472_v30 = vor.u32 %v5471_v40, %v5467_v61  ;;  %v5489_v23 = vshll.u32 %v18116_v49, 16  ;;  %v5493_v48 = vshrl.u32 %v18116_v49, 16  ;;  %v5499_v36 = vshll.u32 %v18136_v13, 16  ;;  %v16219_v13 = vld [vmem:[#allocation2 + $0xa8] sm:$0xff]  }
 0x196   : > { %21966 = vst [vmem:[#allocation40_spill] sm:$0xff] %v18138_v53  ;;  %v18145_v2 = vpop.f32.mrf.mxu0  ;;  %v16213_v53 = vld [vmem:[#allocation2 + $0x90] sm:$0xff]   ;;  %15247 = vmatpush3.bf16.msra.mxu1 %v18068_v46  ;;  %15202 = vmatprep.mubr.bf16.mxu1 %v21969_v52  ;;  %v5482_v41 = vrot.slane %v5480_v43, 4  ;;  %v5485_v46 = vrot.slane %v5483_v20, 5  ;;  %v5463_v55 = vrot.slane %v5462_v58, 4  ;;  %v18186_v43 = vadd.f32 %v17832_v42, %v17872_v6  ;;  %v16218_v20 = vld [vmem:[#allocation2 + $0x9c] sm:$0xff]  }
 0x197   : > { %v18156_v60 = vpop.f32.mrf.mxu1  ;;  %15248 = vmatprep.subr.bf16.mxu1 %v18108_v51  ;;  %15277 = vmatpush3.bf16.msra.mxu0 %v18080_v50  ;;  %v5473_v9 = vrot.slane %v5472_v30, 4  ;;  %v18174_v21 = vrot.slane %v5489_v23, 5  ;;  %v5495_v40 = vrot.slane %v5493_v48, 4  ;;  %v18178_v49 = vrot.slane %v5499_v36, 5  ;;  %v5395_v58 = vld [vmem:[#allocation2 + $0x9c] sm:$0xf] }
 0x198   : > { %21968 = vst [vmem:[#allocation41_spill] sm:$0xff] %v18156_v60  ;;  %v18166_v33 = vpop.f32.mrf.mxu0  ;;  %15278 = vmatprep.subr.bf16.mxu0 %v16214_v4  ;;  %v5486_v60 = vor.u32 %v5485_v46, %v5482_v41  ;;  %v18182_v50 = vadd.f32 %v17812_v12, %v17854_v16  ;;  %v16199_v48 = vld [vmem:[#allocation7 + $0x110] sm:$0xff]   ;;  %v5468_v23 = vsel %vm16892_vm11, %v5463_v55, %v5467_v61  ;;  %v5504_v6 = vshrl.u32 %v5395_v58, 16 }
 0x199   : > { %v18172_v57 = vpop.f32.mrf.mxu1  ;;  %v5478_v41 = vsel %vm16892_vm11, %v5473_v9, %v5477_v45  ;;  %v5496_v12 = vor.u32 %v5495_v40, %v18174_v21  ;;  %v18196_v16 = vld [vmem:[#allocation2 + $0xa0] sm:$0xf]  ;;  %v18198_v42 = vld [vmem:[#allocation2 + $0xa4] sm:$0x1]  ;;  %v5507_v55 = vshll.u32 %v5395_v58, 16 }
 0x19a   : > { %21970 = vst [vmem:[#allocation42_spill] sm:$0xff] %v18172_v57  ;;  %v18176_v52 = vpop.f32.mrf.mxu0  ;;  %15249 = vmatpush3.bf16.msra.mxu1 %v18108_v51  ;;  %15231 = vmatmul.mubr.bf16.gmra.mxu0 %v16213_v53  ;;  %21972 = vst [vmem:[#allocation44_spill] sm:$0xff] %v18198_v42  ;;  %v18203_v51 = vcombine.low %v5444_v39, %v5454_v18  ;;  %v18205_v36 = vcombine.low %v5468_v23, %v5478_v41  ;;  %v5487_v61 = vrot.slane %v5486_v60, 4  ;;  %v18227_v41 = vld [vmem:[#allocation2 + $0xac] sm:$0xf] }
 0x19b   : > { %v18188_v30 = vpop.f32.mrf.mxu1  ;;  %15250 = vmatprep.subr.bf16.mxu1 %v18150_v35  ;;  %15279 = vmatpush3.bf16.msra.mxu0 %v16214_v4  ;;  %v5497_v53 = vrot.slane %v5496_v12, 4  ;;  %v5506_v9 = vrot.slane %v5504_v6, 4  ;;  %v5513_v40 = vshll.u32 %v18196_v16, 16  ;;  %v5517_v31 = vshrl.u32 %v18196_v16, 16  ;;  %v18217_v4 = vld [vmem:[#allocation7 + $0x108] sm:$0xff]   ;;  %21975 = vst [vmem:[#allocation46_spill] sm:$0xff] %v18227_v41 }
 0x19c   : > { %21971 = vst [vmem:[#allocation43_spill] sm:$0xff] %v18188_v30  ;;  %v18200_v46 = vpop.f32.mrf.mxu0  ;;  %15280 = vmatprep.subr.bf16.mxu0 %v18164_v34  ;;  %15234 = vmatprep.mubr.bf16.mxu0 %v16218_v20  ;;  %v5398_v30 = vld [vmem:[#allocation2 + $0xa8] sm:$0xf]  ;;  %v21974_v18 = vcombine.low %v17995_v62, %v18015_v8  ;;  %v5492_v60 = vsel %vm16892_vm11, %v5487_v61, %v18174_v21  ;;  %v5509_v20 = vrot.slane %v5507_v55, 5  ;;  %v5523_v58 = vshll.u32 %v18198_v42, 16 }
 0x19d   : > { %v18207_v45 = vpop.f32.mrf.mxu1  ;;  %v18225_v23 = vadd.f32 %v17864_v29, %v17916_v37  ;;  %v18229_v12 = vld [vmem:[#allocation2 + $0xb0] sm:$0x1]  ;;  %v21978_v62 = vcombine.low %v18019_v24, %v18032_v19  ;;  %v5502_v8 = vsel %vm16892_vm11, %v5497_v53, %v18178_v49  ;;  %v18240_v21 = vrot.slane %v5513_v40, 5  ;;  %v16220_v61 = vld [vmem:[#allocation7 + $0x158] sm:$0xff]  }
 0x19e   : > { %21973 = vst [vmem:[#allocation45_spill] sm:$0xff] %v18207_v45  ;;  %v18212_v39 = vpop.f32.mrf.mxu0  ;;  %15203 = vmatmul.mubr.bf16.gmra.mxu1 %v21974_v18  ;;  %21976 = vst [vmem:[#allocation47_spill] sm:$0xff] %v18229_v12  ;;  %v5519_v29 = vrot.slane %v5517_v31, 4  ;;  %v5528_v37 = vshrl.u32 %v5398_v30, 16  ;;  %v21979_v18 = vld [vmem:[#allocation24_spill] sm:$0xff]  ;;  %v5510_v24 = vor.u32 %v5509_v20, %v5506_v9  ;;  %v18249_v19 = vrot.slane %v5523_v58, 5 }
 0x19f   : > { %v18231_v6 = vpop.f32.mrf.mxu1  ;;  %15251 = vmatpush3.bf16.msra.mxu1 %v18150_v35  ;;  %15206 = vmatprep.mubr.bf16.mxu1 %v21978_v62  ;;  %v21980_v35 = vld [vmem:[#allocation22_spill] sm:$0xff]  ;;  %v5531_v62 = vshll.u32 %v5398_v30, 16  ;;  %v5537_v53 = vshll.u32 %v18227_v41, 16  ;;  %v5541_v40 = vshrl.u32 %v18227_v41, 16  ;;  %v5547_v20 = vshll.u32 %v18229_v12, 16 }
 0x1a0   : > { %21977 = vst [vmem:[#allocation48_spill] sm:$0xff] %v18231_v6  ;;  %v18242_v55 = vpop.f32.mrf.mxu0  ;;  %15252 = vmatprep.subr.bf16.mxu1 %v16199_v48  ;;  %15281 = vmatpush3.bf16.msra.mxu0 %v18164_v34  ;;  %v18247_v42 = vadd.f32 %v21980_v35, %v21979_v18  ;;  %v5520_v49 = vor.u32 %v5519_v29, %v18240_v21  ;;  %v5530_v31 = vrot.slane %v5528_v37, 4  ;;  %v18260_v18 = vrot.slane %v5510_v24, 4  ;;  %v21983_v35 = vld [vmem:[#allocation23_spill] sm:$0xff]  ;;  %v21984_v24 = vld [vmem:[#allocation25_spill] sm:$0xff] }
 0x1a1   : > { %v18251_v6 = vpop.f32.mrf.mxu1  ;;  %15282 = vmatprep.subr.bf16.mxu0 %v16220_v61  ;;  %v18258_v34 = vcombine.low %v5492_v60, %v5502_v8  ;;  %v5533_v9 = vrot.slane %v5531_v62, 5  ;;  %v5539_v29 = vrot.slane %v5537_v53, 5  ;;  %v5543_v37 = vrot.slane %v5541_v40, 4  ;;  %v16205_v60 = vld [vmem:[#allocation7 + $0x100] sm:$0xff]  }
 0x1a2   : > { %21981 = vst [vmem:[#allocation24_spill] sm:$0xff] %v18251_v6  ;;  %v18256_v45 = vpop.f32.mrf.mxu0  ;;  %v5521_v58 = vrot.slane %v5520_v49, 4  ;;  %15235 = vmatmul.mubr.bf16.gmra.mxu0 %v16219_v13  ;;  %v18267_v41 = vadd.f32 %v21983_v35, %v17943_v7  ;;  %v16222_v6 = vld [vmem:[#allocation7 + $0x150] sm:$0xff]   ;;  %v5516_v8 = vsel %vm16892_vm11, %v18260_v18, %v18240_v21  ;;  %v18279_v7 = vadd.f32 %v21984_v24, %v17963_v1  ;;  %v16224_v35 = vld [vmem:[#allocation2 + $0xb4] sm:$0xff]  }
 0x1a3   : > { %v18263_v30 = vpop.f32.mrf.mxu1  ;;  %15253 = vmatpush3.bf16.msra.mxu1 %v16199_v48  ;;  %v5534_v48 = vor.u32 %v5533_v9, %v5530_v31  ;;  %v5544_v53 = vor.u32 %v5543_v37, %v5539_v29  ;;  %v5549_v40 = vrot.slane %v5547_v20, 5  ;;  %v18288_v21 = vadd.f32 %v17958_v38, %v18038_v44  ;;  %v18295_v31 = vld [vmem:[#allocation7 + $0x1b8] sm:$0xff]   ;;  %v5401_v9 = vld [vmem:[#allocation2 + $0xb4] sm:$0xf]  ;;  %v18301_v20 = vld [vmem:[#allocation2 + $0xb8] sm:$0xf]  ;;  %15238 = vmatprep.mubr.bf16.mxu0 %v16224_v35 }
 0x1a4   : > { %21982 = vst [vmem:[#allocation22_spill] sm:$0xff] %v18263_v30  ;;  %v18269_v57 = vpop.f32.mrf.mxu0  ;;  %15254 = vmatprep.subr.bf16.mxu1 %v18217_v4  ;;  %15283 = vmatpush3.bf16.msra.mxu0 %v16220_v61  ;;  %v5526_v49 = vsel %vm16892_vm11, %v5521_v58, %v18249_v19  ;;  %v21986_v1 = vcombine.low %v18044_v54, %v18051_v17  ;;  %21987 = vst [vmem:[#allocation25_spill] sm:$0xff] %v18301_v20  ;;  %v13421_v58 = vld [vmem:[%s16820_s26 + $0xf0] sm:$0xff]  ;;  %v21990_v37 = vld [vmem:[#allocation27_spill] sm:$0xff]  ;;  %v5552_v17 = vshrl.u32 %v5401_v9, 16 }
 0x1a5   : > { %v18281_v62 = vpop.f32.mrf.mxu1  ;;  %15284 = vmatprep.subr.bf16.mxu0 %v16222_v6  ;;  %v5535_v18 = vrot.slane %v5534_v48, 4  ;;  %v18299_v19 = vadd.f32 %v17939_v25, %v18000_v3  ;;  %v21988_v38 = vld [vmem:[#allocation26_spill] sm:$0xff]  ;;  %v18310_v24 = vadd.f32 %v21990_v37, %v18063_v0  ;;  %v5545_v25 = vrot.slane %v5544_v53, 4  ;;  %v18316_v3 = vld [vmem:[#allocation2 + $0xbc] sm:$0x1] }
 0x1a6   : > { %21985 = vst [vmem:[#allocation23_spill] sm:$0xff] %v18281_v62  ;;  %v18290_v61 = vpop.f32.mrf.mxu0  ;;  %15207 = vmatmul.mubr.bf16.gmra.mxu1 %v21986_v1  ;;  %v18306_v44 = vadd.f32 %v21988_v38, %v18053_v63  ;;  %21993 = vst [vmem:[#allocation50_spill] sm:$0xff] %v18316_v3  ;;  %v5555_v48 = vshll.u32 %v5401_v9, 16  ;;  %v5561_v1 = vshll.u32 %v18301_v20, 16  ;;  %v5565_v38 = vshrl.u32 %v18301_v20, 16  ;;  %v16226_v13 = vld [vmem:[#allocation7 + $0x148] sm:$0xff]  }
 0x1a7   : > { %21991 = vst [vmem:[#allocation27_spill] sm:$0xff] %v18310_v24  ;;  %v18312_v54 = vpop.f32.mrf.mxu1  ;;  %15255 = vmatpush3.bf16.msra.mxu1 %v18217_v4  ;;  %15258 = vmatprep.mubr.bf16.mxu1 %v18112_v26  ;;  %v5540_v0 = vsel %vm16892_vm11, %v5535_v18, %v5539_v29  ;;  %v5571_v4 = vshll.u32 %v18316_v3, 16  ;;  %v321_v37 = vld [vmem:[#allocation2 + $0xc0] sm:$0x1]  ;;  %v13422_v26 = vld [vmem:[%s16820_s26 + $0xf8] sm:$0xff]  ;;  %v14215_v53 = vpack.c.bf16 %v13421_v58, %v13421_v58 }
 0x1a8   : > { %21989 = vst [vmem:[#allocation26_spill] sm:$0xff] %v18306_v44  ;;  %21992 = vst [vmem:[#allocation49_spill] sm:$0xff] %v18312_v54  ;;  %v18319_v63 = vpop.f32.mrf.mxu0  ;;  %15256 = vmatprep.subr.bf16.mxu1 %v16205_v60  ;;  %15285 = vmatpush3.bf16.msra.mxu0 %v16222_v6  ;;  %v5550_v9 = vsel %vm16892_vm11, %v5545_v25, %v5549_v40  ;;  %v5554_v54 = vrot.slane %v5552_v17, 4  ;;  %v5557_v62 = vrot.slane %v5555_v48, 5  ;;  %v5563_v30 = vrot.slane %v5561_v1, 5  ;;  %v18332_v6 = vld [vmem:[#allocation7 + $0x1b0] sm:$0xff]  }
 0x1a9   : > { %v18326_v12 = vpop.f32.mrf.mxu1  ;;  %v377_v24 = vld [vmem:[#allocation2 + $0xc8] sm:$0x1]  ;;  %v18334_v18 = vcombine.low %v5516_v8, %v5526_v49  ;;  %v18336_v3 = vcombine.low %v5540_v0, %v5550_v9  ;;  %v5567_v58 = vrot.slane %v5565_v38, 4  ;;  %15286 = vmatprep.subr.bf16.mxu0 %v16226_v13  ;;  %v16228_v44 = vld [vmem:[#allocation7 + $0x140] sm:$0xff]   ;;  %v14216_v25 = vpack.c.bf16 %v13422_v26, %v13422_v26 }
 0x1aa   : > { %21994 = vst [vmem:[#allocation51_spill] sm:$0xff] %v18326_v12  ;;  %v18330_v29 = vpop.f32.mrf.mxu0  ;;  %v322_v12 = vsel %vm16835_vm3, 0, %v321_v37  ;;  %v5558_v35 = vor.u32 %v5557_v62, %v5554_v54  ;;  %v853_v17 = vshrl.u32 %v14215_v53, 16  ;;  %v856_v48 = vshll.u32 %v14215_v53, 16  ;;  %v21999_v53 = vld [vmem:[#allocation30_spill] sm:$0xff] }
 0x1ab   : > { %v18340_v40 = vpop.f32.mrf.mxu1  ;;  %15257 = vmatpush3.bf16.msra.mxu1 %v16205_v60  ;;  %323 = vst [vmem:[#allocation2 + $0xc0] sm:$0x1] %v322_v12  ;;  %v5568_v8 = vor.u32 %v5567_v58, %v5563_v30  ;;  %v5573_v49 = vrot.slane %v5571_v4, 5  ;;  %v378_v38 = vsel %vm16840_vm4, 0, %v377_v24  ;;  %v1966_v37 = vadd.f32 %v18106_v32, %v18057_v59 }
 0x1ac   : > { %21996 = vst [vmem:[#allocation52_spill] sm:$0xff] %v18340_v40  ;;  %v18342_v1 = vpop.f32.mrf.mxu0  ;;  %15306 = vmatprep.subr.bf16.mxu1 %v18295_v31  ;;  %15287 = vmatpush3.bf16.msra.mxu0 %v16226_v13  ;;  %v5559_v60 = vrot.slane %v5558_v35, 4  ;;  %v855_v12 = vrot.slane %v853_v17, 7  ;;  %v861_v62 = vshrl.u32 %v14216_v25, 16  ;;  %v864_v54 = vshll.u32 %v14216_v25, 16  ;;  %v22000_v13 = vld [vmem:[#allocation28_spill] sm:$0xff] }
 0x1ad   : > { %v18349_v9 = vpop.f32.mrf.mxu1  ;;  %379 = vst [vmem:[#allocation2 + $0xc8] sm:$0x1] %v378_v38  ;;  %15288 = vmatprep.subr.bf16.mxu0 %v16228_v44  ;;  %v5569_v4 = vrot.slane %v5568_v8, 4  ;;  %v18356_v24 = vadd.f32 %v21999_v53, %v18082_v15  ;;  %v5842_v58 = vrot.slane %v22000_v13, 5  ;;  %v1964_v59 = vadd.f32 %v18124_v27, %v18089_v11  ;;  %v5808_v8 = vld [vmem:[#allocation2 + $0x6c] sm:$0xe] }
 0x1ae   : > { %21998 = vst [vmem:[#allocation53_spill] sm:$0xff] %v18349_v9  ;;  %v18351_v26 = vpop.f32.mrf.mxu0  ;;  %15259 = vmatmul.mubr.bf16.vlgmr.msra.gmra.mxu1 %v18203_v51  ;;  %v5564_v35 = vsel %vm16892_vm11, %v5559_v60, %v5563_v30  ;;  %v858_v51 = vor.u32 %v856_v48, %v855_v12  ;;  %v859_v25 = vrot.slane %v855_v12, 4  ;;  %v863_v17 = vrot.slane %v861_v62, 7  ;;  %v16215_v38 = vld [vmem:[#allocation7 + $0x1a8] sm:$0xff]   ;;  %v22003_v60 = vld [vmem:[#allocation31_spill] sm:$0xff]  ;;  %v16217_v40 = vld [vmem:[#allocation7 + $0x1a0] sm:$0xff]  }
 0x1af   : > { %v18361_v32 = vpop.f32.mrf.mxu1  ;;  %15307 = vmatpush3.bf16.msra.mxu1 %v18295_v31  ;;  %15262 = vmatprep.mubr.bf16.mxu1 %v18205_v36  ;;  %v5574_v11 = vsel %vm16892_vm11, %v5569_v4, %v5573_v49  ;;  %v13713_v27 = vrot.slane %v5808_v8, 9  ;;  %v5844_v31 = vrot.slane %v5842_v58, 4  ;;  %v22002_v53 = vld [vmem:[#allocation29_spill] sm:$0xff]  ;;  %v18376_v12 = vadd.f32 %v22003_v60, %v1966_v37 }
 0x1b0   : > { %22001 = vst [vmem:[#allocation30_spill] sm:$0xff] %v18361_v32  ;;  %v18367_v15 = vpop.f32.mrf.mxu0  ;;  %15308 = vmatprep.subr.bf16.mxu1 %v18332_v6  ;;  %15289 = vmatpush3.bf16.msra.mxu0 %v16228_v44  ;;  %v5845_v36 = vrot.slane %v22002_v53, 5  ;;  %v866_v30 = vor.u32 %v864_v54, %v863_v17  ;;  %v868_v48 = vrot.slane %v863_v17, 4  ;;  %v5809_v62 = vld [vmem:[#allocation2 + $0x78] sm:$0xe]  ;;  %v22004_v0 = vrot.slane %v18026_v47, 5 }
 0x1b1   : > { %v18373_v13 = vpop.f32.mrf.mxu1  ;;  %v18382_v49 = vcombine.low %v5564_v35, %v5574_v11  ;;  %v18386_v8 = vsel %vm17071_vm14, %v13713_v27, %v5842_v58  ;;  %v13714_v37 = vrot.slane %v5809_v62, 9  ;;  %v22008_v35 = vrot.slane %v18036_v22, 5  ;;  %v18403_v58 = vld [vmem:[#allocation7 + $0x1f8] sm:$0xff]   ;;  %v22009_v27 = vld [vmem:[#allocation32_spill] sm:$0xff] }
 0x1b2   : > { %v5851_v32 = vrot.slane %v22004_v0, 4  ;;  %v18380_v9 = vpop.f32.mrf.mxu0  ;;  %v943_v44 = vld [vmem:[#allocation2 + $0xc0] sm:$0xf]  ;;  %v18390_v54 = vsel %vm17071_vm14, %v5844_v31, %v5845_v36  ;;  %v867_v0 = vsel %vm16880_vm10, %v859_v25, %v866_v30  ;;  %v18406_v31 = vadd.f32 %v22009_v27, %v1964_v59  ;;  %15338 = vmatprep.subr.bf16.mxu0 %v18403_v58  ;;  %v16221_v27 = vld [vmem:[#allocation7 + $0x198] sm:$0xff]   ;;  %v22026_v17 = vld [vmem:[#allocation24_spill] sm:$0xff] }
 0x1b3   : > { %15309 = vmatpush3.bf16.msra.mxu1 %v18332_v6  ;;  %v944_v60 = vsel %vm16867_vm9, %v858_v51, %v943_v44  ;;  %v18410_v6 = vpop.f32.mrf.mxu1  ;;  %946 = vst [vmem:[#allocation2 + $0xc4] sm:$0xf] %v867_v0  ;;  %v22010_v51 = vrot.slane %v18026_v47, 5  ;;  %v1965_v59 = vadd.f32 %v18166_v33, %v18129_v10  ;;  %v1970_v30 = vadd.f32 %v18176_v52, %v18134_v56  ;;  %v22011_v10 = vld [vmem:[#allocation33_spill] sm:$0xff]  ;;  %v22012_v33 = vld [vmem:[#allocation34_spill] sm:$0xff] }
 0x1b4   : > { %v18401_v11 = vsel %vm17071_vm14, %v5851_v32, %v22008_v35  ;;  %v18408_v36 = vpop.f32.mrf.mxu0  ;;  %15310 = vmatprep.subr.bf16.mxu1 %v16215_v38  ;;  %945 = vst [vmem:[#allocation2 + $0xc0] sm:$0xf] %v944_v60  ;;  %v947_v25 = vld [vmem:[#allocation2 + $0xc8] sm:$0x1]  ;;  %v1967_v32 = vadd.f32 %v18145_v2, %v18102_v14  ;;  %v13721_v44 = vcombine.low %v18386_v8, %v18390_v54  ;;  %v5856_v47 = vrot.slane %v18091_v28, 5 }
 0x1b5   : > { %v18416_v22 = vsel %vm17071_vm14, %v13714_v37, %v22010_v51  ;;  %v948_v62 = vsel %vm16835_vm3, %v868_v48, %v947_v25  ;;  %v1968_v37 = vadd.f32 %v18200_v46, %v18182_v50  ;;  %v18441_v52 = vadd.f32 %v22012_v33, %v1965_v59  ;;  %v22013_v48 = vld [vmem:[#allocation36_spill] sm:$0xff]  ;;  %v5810_v28 = vld [vmem:[#allocation2 + $0x84] sm:$0xe]  ;;  %v22014_v46 = vld [vmem:[#allocation35_spill] sm:$0xff]  ;;  %v18454_v35 = vpop.f32.mrf.mxu1 }
 0x1b6   : > { %v18432_v14 = vpop.f32.mrf.mxu0  ;;  %15263 = vmatmul.mubr.bf16.gmra.mxu1 %v18258_v34  ;;  %949 = vst [vmem:[#allocation2 + $0xc8] sm:$0x1] %v948_v62  ;;  %v18438_v56 = vadd.f32 %v22011_v10, %v1967_v32  ;;  %v5859_v8 = vrot.slane %v22013_v48, 5  ;;  %v5858_v50 = vrot.slane %v5856_v47, 4  ;;  %v18446_v54 = vadd.f32 %v22014_v46, %v1970_v30  ;;  %v5811_v25 = vld [vmem:[#allocation2 + $0x90] sm:$0xe] }
 0x1b7   : > { %15311 = vmatpush3.bf16.msra.mxu1 %v16215_v38  ;;  %15266 = vmatprep.mubr.bf16.mxu1 %v18334_v18  ;;  %v1971_v34 = vadd.f32 %v18212_v39, %v18186_v43  ;;  %v1969_v0 = vadd.f32 %v18242_v55, %v18247_v42  ;;  %v13715_v38 = vrot.slane %v5810_v28, 9  ;;  %v1974_v18 = vadd.f32 %v18256_v45, %v18225_v23  ;;  %v22015_v55 = vld [vmem:[#allocation37_spill] sm:$0xff]  ;;  %v22016_v59 = vld [vmem:[#allocation38_spill] sm:$0xff]  ;;  %v22020_v28 = vld [vmem:[#allocation43_spill] sm:$0xff]  ;;  %v18493_v46 = vpop.f32.mrf.mxu1 }
 0x1b8   : > { %v18452_v60 = vpop.f32.mrf.mxu0  ;;  %15312 = vmatprep.subr.bf16.mxu1 %v16217_v40  ;;  %v1972_v51 = vadd.f32 %v18269_v57, %v18267_v41  ;;  %v1975_v43 = vadd.f32 %v18290_v61, %v18279_v7  ;;  %v18464_v42 = vsel %vm17071_vm14, %v5858_v50, %v5859_v8  ;;  %v13716_v39 = vrot.slane %v5811_v25, 9  ;;  %v22017_v57 = vld [vmem:[#allocation40_spill] sm:$0xff]  ;;  %v22018_v7 = vld [vmem:[#allocation42_spill] sm:$0xff]  ;;  %v22019_v48 = vld [vmem:[#allocation41_spill] sm:$0xff] }
 0x1b9   : > { %v5863_v32 = vrot.slane %v22015_v55, 5  ;;  %v18468_v30 = vadd.f32 %v22016_v59, %v1968_v37  ;;  %v18474_v45 = vsel %vm17071_vm14, %v13715_v38, %v5856_v47  ;;  %v18477_v23 = vadd.f32 %v22017_v57, %v1971_v34  ;;  %v16223_v34 = vld [vmem:[#allocation7 + $0x190] sm:$0xff]  }
 0x1ba   : > { %v18470_v62 = vpop.f32.mrf.mxu0  ;;  %v21897_v41 = vrot.slane %v18196_v16, 5  ;;  %v18481_v61 = vadd.f32 %v22018_v7, %v1974_v18  ;;  %v18486_v8 = vadd.f32 %v22019_v48, %v1969_v0  ;;  %v18489_v47 = vadd.f32 %v22020_v28, %v1972_v51  ;;  %v18495_v25 = vld [vmem:[#allocation2 + $0xc4] sm:$0xf]  ;;  %v22021_v18 = vld [vmem:[#allocation45_spill] sm:$0xff] }
 0x1bb   : > { %15313 = vmatpush3.bf16.msra.mxu1 %v16217_v40  ;;  %v16225_v10 = vld [vmem:[#allocation2 + $0xc0] sm:$0xff]   ;;  %v5865_v33 = vrot.slane %v5863_v32, 4  ;;  %v18500_v55 = vadd.f32 %v22021_v18, %v1975_v43  ;;  %v1973_v0 = vadd.f32 %v18319_v63, %v18299_v19  ;;  %v1978_v51 = vadd.f32 %v18330_v29, %v18288_v21  ;;  %v22022_v63 = vld [vmem:[#allocation39_spill] sm:$0xff]  ;;  %v22024_v19 = vld [vmem:[#allocation48_spill] sm:$0xff] }
 0x1bc   : > { %v18491_v50 = vpop.f32.mrf.mxu0  ;;  %15314 = vmatprep.subr.bf16.mxu1 %v16221_v27  ;;  %v5404_v38 = vld [vmem:[#allocation2 + $0xc0] sm:$0xf]  ;;  %v5872_v40 = vrot.slane %v21897_v41, 4  ;;  %15239 = vmatmul.mubr.bf16.gmra.mxu0 %v16225_v10  ;;  %v5585_v48 = vshll.u32 %v18495_v25, 16  ;;  %v5589_v28 = vshrl.u32 %v18495_v25, 16  ;;  %v18517_v21 = vsel %vm17071_vm14, %v13716_v39, %v5863_v32  ;;  %v16227_v32 = vld [vmem:[#allocation7 + $0x188] sm:$0xff]  }
 0x1bd   : > { %v18506_v59 = vld [vmem:[#allocation2 + $0xc8] sm:$0x1]  ;;  %v5576_v57 = vshrl.u32 %v5404_v38, 16  ;;  %v5579_v7 = vshll.u32 %v5404_v38, 16  ;;  %15290 = vmatprep.mubr.bf16.mxu0 %v13721_v44  ;;  %v22023_v29 = vrot.slane %v22022_v63, 5  ;;  %v18528_v44 = vpop.f32.mrf.mxu1  ;;  %v18531_v63 = vadd.f32 %v22024_v19, %v1973_v0  ;;  %v16229_v0 = vld [vmem:[#allocation7 + $0x180] sm:$0xff]  }
 0x1be   : > { %v18510_v37 = vpop.f32.mrf.mxu0  ;;  %15267 = vmatmul.mubr.bf16.gmra.mxu1 %v18336_v3  ;;  %v5595_v43 = vshll.u32 %v18506_v59, 16  ;;  %v5587_v18 = vrot.slane %v5585_v48, 5  ;;  %v5591_v2 = vrot.slane %v5589_v28, 4  ;;  %v5812_v48 = vld [vmem:[#allocation2 + $0x9c] sm:$0xe]  ;;  %v22029_v28 = vld [vmem:[#allocation27_spill] sm:$0xff]  ;;  %v1977_v53 = vadd.f32 %v18367_v15, %v18356_v24 }
 0x1bf   : > { %v18523_v10 = vsel %vm17071_vm14, %v5865_v33, %v22023_v29  ;;  %15315 = vmatpush3.bf16.msra.mxu1 %v16221_v27  ;;  %15270 = vmatprep.mubr.bf16.mxu1 %v18382_v49  ;;  %v5578_v38 = vrot.slane %v5576_v57, 4  ;;  %v5581_v3 = vrot.slane %v5579_v7, 5  ;;  %22025 = vst [vmem:[#allocation28_spill] sm:$0xff] %v18531_v63  ;;  %v18534_v33 = vadd.f32 %v22026_v17, %v1978_v51  ;;  %v22028_v27 = vld [vmem:[#allocation26_spill] sm:$0xff]  ;;  %v22030_v17 = vld [vmem:[#allocation44_spill] sm:$0xff]  ;;  %v18554_v15 = vpop.f32.mrf.mxu1 }
 0x1c0   : > { %v18526_v41 = vpop.f32.mrf.mxu0  ;;  %15316 = vmatprep.subr.bf16.mxu1 %v16223_v34  ;;  %v5597_v39 = vrot.slane %v5595_v43, 5  ;;  %v1976_v49 = vadd.f32 %v18342_v1, %v22028_v27  ;;  %v5592_v7 = vor.u32 %v5591_v2, %v5587_v18  ;;  %v1979_v29 = vadd.f32 %v18351_v26, %v22029_v28  ;;  %v22032_v26 = vld [vmem:[#allocation46_spill] sm:$0xff]  ;;  %v22033_v28 = vld [vmem:[#allocation23_spill] sm:$0xff] }
 0x1c1   : > { %22027 = vst [vmem:[#allocation29_spill] sm:$0xff] %v18534_v33  ;;  %v5582_v57 = vor.u32 %v5581_v3, %v5578_v38  ;;  %v13717_v19 = vrot.slane %v5812_v48, 9  ;;  %v5873_v51 = vrot.slane %v22030_v17, 5  ;;  %v22031_v33 = vld [vmem:[#allocation22_spill] sm:$0xff]  ;;  %v5813_v3 = vld [vmem:[#allocation2 + $0xa8] sm:$0xe] }
 0x1c2   : > { %v18542_v43 = vpop.f32.mrf.mxu0  ;;  %v18548_v63 = vadd.f32 %v22031_v33, %v1976_v49  ;;  %v5593_v2 = vrot.slane %v5592_v7, 4  ;;  %v16234_v38 = vld [vmem:[#allocation7 + $0x1f0] sm:$0xff]   ;;  %v5877_v27 = vrot.slane %v22032_v26, 5  ;;  %v18552_v24 = vadd.f32 %v22033_v28, %v1979_v29  ;;  %v16230_v17 = vld [vmem:[#allocation2 + $0x78] sm:$0xff]  }
 0x1c3   : > { %15317 = vmatpush3.bf16.msra.mxu1 %v16223_v34  ;;  %v5583_v1 = vrot.slane %v5582_v57, 4  ;;  %v22034_v48 = vrot.slane %v18196_v16, 5  ;;  %v18564_v34 = vsel %vm17071_vm14, %v5872_v40, %v5873_v51  ;;  %v13718_v49 = vrot.slane %v5813_v3, 9  ;;  %v22036_v26 = vld [vmem:[#allocation49_spill] sm:$0xff] }
 0x1c4   : > { %15318 = vmatprep.subr.bf16.mxu1 %v16227_v32  ;;  %v2634_v57 = vadd.f32 %v18380_v9, %v18376_v12  ;;  %v5598_v29 = vsel %vm16892_vm11, %v5593_v2, %v5597_v39  ;;  %v22035_v16 = vcombine.low %v18416_v22, %v18401_v11  ;;  %v18576_v28 = vadd.f32 %v22036_v26, %v1977_v53  ;;  %v2601_v40 = vpop.f32.mrf.mxu0  ;;  %v22038_v11 = vld [vmem:[#allocation25_spill] sm:$0xff]  ;;  %v22039_v39 = vld [vmem:[#allocation47_spill] sm:$0xff] }
 0x1c5   : > { %v18560_v33 = vsel %vm17071_vm14, %v13717_v19, %v22034_v48  ;;  %v5588_v7 = vsel %vm16892_vm11, %v5583_v1, %v5587_v18  ;;  %v5879_v19 = vrot.slane %v5877_v27, 4  ;;  %v22037_v9 = vcombine.low %v18474_v45, %v18464_v42  ;;  %v16238_v53 = vld [vmem:[#allocation7 + $0x1e8] sm:$0xff]   ;;  %v22041_v42 = vld [vmem:[#allocation50_spill] sm:$0xff] }
 0x1c6   : > { %15291 = vmatmul.mubr.bf16.vlgmr.msra.gmra.mxu0 %v22035_v16  ;;  %v13704_v51 = vcombine.low %v5588_v7, %v5598_v29  ;;  %v13725_v12 = vcombine.low %v18560_v33, %v18564_v34  ;;  %v18586_v18 = vsel %vm17071_vm14, %v13718_v49, %v5877_v27  ;;  %v5884_v22 = vrot.slane %v22038_v11, 5  ;;  %v18600_v27 = vpop.f32.mrf.mxu1  ;;  %v22042_v33 = vld [vmem:[#allocation51_spill] sm:$0xff]  ;;  %v14981_v16 = vpop.f32.mrf.mxu0 }
 0x1c7   : > { %15339 = vmatpush3.bf16.msra.mxu0 %v18403_v58  ;;  %15294 = vmatprep.mubr.bf16.mxu0 %v22037_v9  ;;  %v22040_v1 = vrot.slane %v22039_v39, 5  ;;  %v5887_v45 = vrot.slane %v22041_v42, 5  ;;  %v2632_v2 = vadd.f32 %v18408_v36, %v18406_v31  ;;  %v2635_v3 = vadd.f32 %v18432_v14, %v18438_v56  ;;  %v5814_v36 = vld [vmem:[#allocation2 + $0xb4] sm:$0xe] }
 0x1c8   : > { %15319 = vmatpush3.bf16.msra.mxu1 %v16227_v32  ;;  %15340 = vmatprep.subr.bf16.mxu0 %v16234_v38  ;;  %v18602_v32 = vld [vmem:[#allocation7 + $0x238] sm:$0xff]   ;;  %v5886_v48 = vrot.slane %v5884_v22, 4  ;;  %v18605_v34 = vadd.f32 %v22042_v33, %v2634_v57  ;;  %v2633_v49 = vadd.f32 %v18452_v60, %v18441_v52  ;;  %v2638_v7 = vadd.f32 %v18470_v62, %v18446_v54  ;;  %v22043_v14 = vld [vmem:[#allocation52_spill] sm:$0xff]  ;;  %v5815_v60 = vld [vmem:[#allocation2 + $0xc0] sm:$0xe]  ;;  %v18637_v39 = vpop.f32.mrf.mxu1 }
 0x1c9   : > { %v18593_v58 = vsel %vm17071_vm14, %v5879_v19, %v22040_v1  ;;  %15271 = vmatmul.mubr.bf16.gmra.mxu1 %v13704_v51  ;;  %15320 = vmatprep.subr.bf16.mxu1 %v16229_v0  ;;  %v18614_v56 = vadd.f32 %v22043_v14, %v2632_v2  ;;  %v2636_v29 = vadd.f32 %v18491_v50, %v18468_v30  ;;  %v16231_v19 = vld [vmem:[#allocation2 + $0x84] sm:$0xff]   ;;  %v13719_v52 = vrot.slane %v5814_v36, 9  ;;  %v16236_v51 = vld [vmem:[#allocation2 + $0x90] sm:$0xff]   ;;  %v6349_v33 = vld [vmem:[#allocation2 + $0x80] sm:$0x1] }
 0x1ca   : > { %15322 = vmatprep.mubr.bf16.mxu1 %v16230_v17  ;;  %v13726_v31 = vcombine.low %v18586_v18, %v18593_v58  ;;  %v2639_v57 = vadd.f32 %v18510_v37, %v18477_v23  ;;  %v18622_v54 = vsel %vm17071_vm14, %v5886_v48, %v5887_v45  ;;  %v5891_v62 = vrot.slane %v18495_v25, 5  ;;  %v22044_v17 = vld [vmem:[#allocation53_spill] sm:$0xff]  ;;  %v16240_v30 = vld [vmem:[#allocation7 + $0x1e0] sm:$0xff]   ;;  %v324_v23 = vld [vmem:[#allocation2 + $0xcc] sm:$0x1] }
 0x1cb   : > { %15341 = vmatpush3.bf16.msra.mxu0 %v16234_v38  ;;  %v18626_v26 = vadd.f32 %v22044_v17, %v2635_v3  ;;  %v13720_v50 = vrot.slane %v5815_v60, 9  ;;  %v22045_v37 = vld [vmem:[#allocation30_spill] sm:$0xff]  ;;  %v18632_v38 = vadd.f32 %v18373_v13, %v2638_v7  ;;  %v18635_v11 = vadd.f32 %v18410_v6, %v2636_v29  ;;  %v2604_v3 = vpop.f32.mrf.mxu0 }
 0x1cc   : > { %15321 = vmatpush3.bf16.msra.mxu1 %v16229_v0  ;;  %15342 = vmatprep.subr.bf16.mxu0 %v16238_v53  ;;  %v18629_v9 = vadd.f32 %v22045_v37, %v2633_v49  ;;  %v18642_v25 = vsel %vm17071_vm14, %v13719_v52, %v5884_v22  ;;  %v5893_v0 = vrot.slane %v5891_v62, 4  ;;  %v325_v1 = vsel %vm16835_vm3, 0, %v324_v23  ;;  %v16235_v48 = vld [vmem:[#allocation7 + $0x230] sm:$0xff]  }
 0x1cd   : > { %22046 = vst [vmem:[#allocation31_spill] sm:$0xff] %v18635_v11  ;;  %15370 = vmatprep.subr.bf16.mxu1 %v18602_v32  ;;  %v2637_v42 = vadd.f32 %v18526_v41, %v18486_v8  ;;  %v22047_v13 = vcombine.low %v18517_v21, %v18523_v10  ;;  %v18653_v6 = vsel %vm17071_vm14, %v13720_v50, %v5891_v62  ;;  %326 = vst [vmem:[#allocation2 + $0xcc] sm:$0x1] %v325_v1  ;;  %v16244_v10 = vld [vmem:[#allocation7 + $0x1d8] sm:$0xff]   ;;  %v6350_v23 = vld [vmem:[#allocation2 + $0x84] sm:$0xf] }
 0x1ce   : > { %v18656_v45 = vadd.f32 %v18454_v35, %v2639_v57  ;;  %v2642_v22 = vadd.f32 %v18542_v43, %v18481_v61  ;;  %v2640_v2 = vadd.f32 %v2601_v40, %v18489_v47  ;;  %v13727_v41 = vcombine.low %v18642_v25, %v18622_v54  ;;  %v6347_v47 = vld [vmem:[#allocation2 + $0x78] sm:$0xf]  ;;  %v6351_v1 = vld [vmem:[#allocation2 + $0x88] sm:$0xf]  ;;  %v18736_v54 = vld [vmem:[#allocation2 + $0x94] sm:$0xf] }
 0x1cf   : > { %15295 = vmatmul.mubr.bf16.gmra.mxu0 %v22047_v13  ;;  %v22049_v8 = vrot.slane %v18506_v59, 5  ;;  %v2643_v35 = vadd.f32 %v14981_v16, %v18500_v55  ;;  %v18673_v43 = vadd.f32 %v18493_v46, %v2637_v42  ;;  %v6348_v55 = vld [vmem:[#allocation2 + $0x7c] sm:$0xf]  ;;  %v6372_v49 = vshrl.u32 %v6347_v47, 16  ;;  %v22054_v46 = vld [vmem:[#allocation28_spill] sm:$0xff] }
 0x1d0   : > { %22048 = vst [vmem:[#allocation21_spill] sm:$0xff] %v18656_v45  ;;  %15343 = vmatpush3.bf16.msra.mxu0 %v16238_v53  ;;  %15298 = vmatprep.mubr.bf16.mxu0 %v13725_v12  ;;  %v18676_v40 = vadd.f32 %v18528_v44, %v2642_v22  ;;  %v18679_v59 = vadd.f32 %v18554_v15, %v2640_v2  ;;  %v18681_v12 = vpop.f32.mrf.mxu1  ;;  %v18683_v53 = vld [vmem:[#allocation7 + $0x228] sm:$0xff]   ;;  %v6375_v7 = vshll.u32 %v6347_v47, 16  ;;  %v18690_v44 = vld [vmem:[#allocation7 + $0x1d0] sm:$0xff]   ;;  %v6381_v15 = vshll.u32 %v6348_v55, 16  ;;  %v18692_v52 = vpop.f32.mrf.mxu0  ;;  %v16242_v47 = vld [vmem:[#allocation2 + $0xa8] sm:$0xff]  }
 0x1d1   : > { %v18667_v21 = vsel %vm17071_vm14, %v5893_v0, %v22049_v8  ;;  %15344 = vmatprep.subr.bf16.mxu0 %v16240_v30  ;;  %22050 = vst [vmem:[#allocation32_spill] sm:$0xff] %v18673_v43  ;;  %15323 = vmatmul.mubr.bf16.vlgmr.msra.gmra.mxu1 %v16231_v19  ;;  %v18686_v36 = vadd.f32 %v18600_v27, %v2643_v35  ;;  %v6385_v29 = vshrl.u32 %v6348_v55, 16  ;;  %v6391_v57 = vshll.u32 %v6349_v33, 16  ;;  %v6772_v16 = vld [vmem:[#allocation2 + $0x78] sm:$0xe]  ;;  %v16237_v22 = vld [vmem:[#allocation2 + $0x9c] sm:$0xff]  }
 0x1d2   : > { %v13728_v61 = vcombine.low %v18653_v6, %v18667_v21  ;;  %22051 = vst [vmem:[#allocation33_spill] sm:$0xff] %v18676_v40  ;;  %22052 = vst [vmem:[#allocation34_spill] sm:$0xff] %v18679_v59  ;;  %v2641_v14 = vadd.f32 %v2604_v3, %v22054_v46  ;;  %15371 = vmatpush3.bf16.msra.mxu1 %v18602_v32  ;;  %15326 = vmatprep.mubr.bf16.mxu1 %v16236_v51  ;;  %v6806_v19 = vrot.slane %v6348_v55, 5  ;;  %v18694_v60 = vpop.f32.mrf.mxu1  ;;  %v18696_v42 = vpop.f32.mrf.mxu0  ;;  %v18704_v3 = vld [vmem:[#allocation2 + $0x8c] sm:$0x1]  ;;  %v16247_v6 = vld [vmem:[#allocation7 + $0x210] sm:$0xff]  }
 0x1d3   : > { %22053 = vst [vmem:[#allocation36_spill] sm:$0xff] %v18686_v36  ;;  %15372 = vmatprep.subr.bf16.mxu1 %v16235_v48  ;;  %v6374_v27 = vrot.slane %v6372_v49, 4  ;;  %v6377_v62 = vrot.slane %v6375_v7, 5  ;;  %v13769_v17 = vrot.slane %v6772_v16, 9  ;;  %v6809_v50 = vrot.slane %v6349_v33, 5  ;;  %v16257_v59 = vld [vmem:[#allocation9 + $0x78] sm:$0xff]  }
 0x1d4   : > { %15345 = vmatpush3.bf16.msra.mxu0 %v16240_v30  ;;  %v6383_v32 = vrot.slane %v6381_v15, 5  ;;  %v6387_v51 = vrot.slane %v6385_v29, 4  ;;  %v6393_v37 = vrot.slane %v6391_v57, 5  ;;  %v6808_v0 = vrot.slane %v6806_v19, 4  ;;  %v18698_v13 = vpop.f32.mrf.mxu1  ;;  %v6773_v46 = vld [vmem:[#allocation2 + $0x84] sm:$0xe]  ;;  %v18716_v15 = vpop.f32.mrf.mxu0 }
 0x1d5   : > { %15346 = vmatprep.subr.bf16.mxu0 %v16244_v10  ;;  %v6378_v2 = vor.u32 %v6377_v62, %v6374_v27  ;;  %v18702_v30 = vsel %vm17071_vm14, %v13769_v17, %v6806_v19  ;;  %v6396_v8 = vshrl.u32 %v6350_v23, 16  ;;  %v18707_v35 = vadd.f32 %v18637_v39, %v2641_v14  ;;  %v16241_v39 = vld [vmem:[#allocation7 + $0x220] sm:$0xff]  }
 0x1d6   : > { %15373 = vmatpush3.bf16.msra.mxu1 %v16235_v48  ;;  %v6388_v55 = vor.u32 %v6387_v51, %v6383_v32  ;;  %v18714_v33 = vsel %vm17071_vm14, %v6808_v0, %v6809_v50  ;;  %v6399_v49 = vshll.u32 %v6350_v23, 16  ;;  %v6405_v7 = vshll.u32 %v6351_v1, 16  ;;  %v18718_v29 = vpop.f32.mrf.mxu1  ;;  %v16250_v48 = vld [vmem:[#allocation7 + $0x1c8] sm:$0xff]   ;;  %v18730_v62 = vpop.f32.mrf.mxu0 }
 0x1d7   : > { %22055 = vst [vmem:[#allocation35_spill] sm:$0xff] %v18707_v35  ;;  %15299 = vmatmul.mubr.bf16.gmra.mxu0 %v13726_v31  ;;  %15374 = vmatprep.subr.bf16.mxu1 %v18683_v53  ;;  %v6379_v14 = vrot.slane %v6378_v2, 4  ;;  %v6398_v58 = vrot.slane %v6396_v8, 4  ;;  %v6409_v31 = vshrl.u32 %v6351_v1, 16  ;;  %v6415_v27 = vshll.u32 %v18704_v3, 16 }
 0x1d8   : > { %15347 = vmatpush3.bf16.msra.mxu0 %v16244_v10  ;;  %15302 = vmatprep.mubr.bf16.mxu0 %v13727_v41  ;;  %v6389_v57 = vrot.slane %v6388_v55, 4  ;;  %v6401_v16 = vrot.slane %v6399_v49, 5  ;;  %v18727_v19 = vrot.slane %v6405_v7, 5  ;;  %v6353_v10 = vld [vmem:[#allocation2 + $0x90] sm:$0xf]  ;;  %v18732_v17 = vpop.f32.mrf.mxu1  ;;  %v13770_v51 = vrot.slane %v6773_v46, 9 }
 0x1d9   : > { %15348 = vmatprep.subr.bf16.mxu0 %v18690_v44  ;;  %15327 = vmatmul.mubr.bf16.gmra.mxu1 %v16237_v22  ;;  %v6384_v50 = vsel %vm16892_vm11, %v6379_v14, %v6383_v32  ;;  %v6411_v23 = vrot.slane %v6409_v31, 4  ;;  %v6813_v0 = vrot.slane %v6351_v1, 5  ;;  %v6417_v2 = vrot.slane %v6415_v27, 5  ;;  %v18742_v55 = vld [vmem:[#allocation2 + $0x98] sm:$0x1]  ;;  %v18744_v22 = vpop.f32.mrf.mxu0  ;;  %v16245_v1 = vld [vmem:[#allocation7 + $0x218] sm:$0xff]  }
 0x1da   : > { %15375 = vmatpush3.bf16.msra.mxu1 %v18683_v53  ;;  %15330 = vmatprep.mubr.bf16.mxu1 %v16242_v47  ;;  %v6394_v25 = vsel %vm16892_vm11, %v6389_v57, %v6393_v37  ;;  %v6402_v41 = vor.u32 %v6401_v16, %v6398_v58  ;;  %v6816_v8 = vrot.slane %v18704_v3, 5  ;;  %v18746_v32 = vpop.f32.mrf.mxu1  ;;  %v16243_v7 = vld [vmem:[#allocation2 + $0xb4] sm:$0xff]   ;;  %v6420_v14 = vshrl.u32 %v6353_v10, 16 }
 0x1db   : > { %15376 = vmatprep.subr.bf16.mxu1 %v16241_v39  ;;  %v13753_v49 = vcombine.low %v6384_v50, %v6394_v25  ;;  %v6412_v53 = vor.u32 %v6411_v23, %v18727_v19  ;;  %v18752_v37 = vsel %vm17071_vm14, %v13770_v51, %v6813_v0  ;;  %v6815_v47 = vrot.slane %v6813_v0, 4  ;;  %v16252_v3 = vld [vmem:[#allocation7 + $0x1c0] sm:$0xff]   ;;  %v18755_v57 = vpop.f32.mrf.mxu0  ;;  %v6356_v0 = vld [vmem:[#allocation2 + $0x9c] sm:$0xf] }
 0x1dc   : > { %15349 = vmatpush3.bf16.msra.mxu0 %v18690_v44  ;;  %v6403_v46 = vrot.slane %v6402_v41, 4  ;;  %v6423_v58 = vshll.u32 %v6353_v10, 16  ;;  %v6429_v31 = vshll.u32 %v18736_v54, 16  ;;  %v18757_v16 = vpop.f32.mrf.mxu1  ;;  %v16248_v44 = vld [vmem:[#allocation2 + $0xc0] sm:$0xff]   ;;  %v6433_v23 = vshrl.u32 %v18736_v54, 16 }
 0x1dd   : > { %15350 = vmatprep.subr.bf16.mxu0 %v16250_v48  ;;  %v6413_v27 = vrot.slane %v6412_v53, 4  ;;  %v18761_v50 = vsel %vm17071_vm14, %v6815_v47, %v6816_v8  ;;  %v6439_v51 = vshll.u32 %v18742_v55, 16  ;;  %v6422_v41 = vrot.slane %v6420_v14, 4  ;;  %v18773_v53 = vld [vmem:[#allocation2 + $0xa0] sm:$0xf]  ;;  %v18777_v18 = vpop.f32.mrf.mxu0 }
 0x1de   : > { %15377 = vmatpush3.bf16.msra.mxu1 %v16241_v39  ;;  %v6408_v10 = vsel %vm16892_vm11, %v6403_v46, %v18727_v19  ;;  %v6425_v8 = vrot.slane %v6423_v58, 5  ;;  %v18775_v47 = vld [vmem:[#allocation2 + $0xa4] sm:$0x1]  ;;  %v18779_v39 = vpop.f32.mrf.mxu1  ;;  %v6435_v19 = vrot.slane %v6433_v23, 4  ;;  %v6774_v25 = vld [vmem:[#allocation2 + $0x90] sm:$0xe] }
 0x1df   : > { %15303 = vmatmul.mubr.bf16.gmra.mxu0 %v13728_v61  ;;  %15378 = vmatprep.subr.bf16.mxu1 %v16245_v1  ;;  %v6418_v21 = vsel %vm16892_vm11, %v6413_v27, %v6417_v2  ;;  %v6431_v61 = vrot.slane %v6429_v31, 5  ;;  %v6441_v46 = vrot.slane %v6439_v51, 5  ;;  %v6444_v20 = vshrl.u32 %v6356_v0, 16  ;;  %v18783_v36 = vpop.f32.mrf.mxu0  ;;  %v6775_v51 = vld [vmem:[#allocation2 + $0x9c] sm:$0xe] }
 0x1e0   : > { %15351 = vmatpush3.bf16.msra.mxu0 %v16250_v48  ;;  %15354 = vmatprep.mubr.bf16.mxu0 %v13753_v49  ;;  %v13754_v14 = vcombine.low %v6408_v10, %v6418_v21  ;;  %v6426_v58 = vor.u32 %v6425_v8, %v6422_v41  ;;  %v6447_v35 = vshll.u32 %v6356_v0, 16  ;;  %v6453_v48 = vshll.u32 %v18773_v53, 16  ;;  %v18790_v0 = vpop.f32.mrf.mxu1 }
 0x1e1   : > { %15352 = vmatprep.subr.bf16.mxu0 %v16252_v3  ;;  %15331 = vmatmul.mubr.bf16.gmra.mxu1 %v16243_v7  ;;  %v6436_v40 = vor.u32 %v6435_v19, %v6431_v61  ;;  %v6457_v43 = vshrl.u32 %v18773_v53, 16  ;;  %v6463_v2 = vshll.u32 %v18775_v47, 16  ;;  %v6446_v27 = vrot.slane %v6444_v20, 4  ;;  %v18788_v10 = vpop.f32.mrf.mxu0  ;;  %22056 = vst [vmem:[#allocation37_spill] sm:$0xff] %v18790_v0  ;;  %v16251_v7 = vld [vmem:[#allocation7 + $0x208] sm:$0xff]   ;;  %v16249_v0 = vld [vmem:[#allocation2 + $0xcc] sm:$0xff]  }
 0x1e2   : > { %15379 = vmatpush3.bf16.msra.mxu1 %v16245_v1  ;;  %15334 = vmatprep.mubr.bf16.mxu1 %v16248_v44  ;;  %v6427_v31 = vrot.slane %v6426_v58, 4  ;;  %v6449_v49 = vrot.slane %v6447_v35, 5  ;;  %v13771_v23 = vrot.slane %v6774_v25, 9  ;;  %v6455_v8 = vrot.slane %v6453_v48, 5  ;;  %v16259_v58 = vld [vmem:[#allocation9 + $0x70] sm:$0xff]  }
 0x1e3   : > { %15380 = vmatprep.subr.bf16.mxu1 %v16247_v6  ;;  %v6437_v41 = vrot.slane %v6436_v40, 4  ;;  %v6459_v21 = vrot.slane %v6457_v43, 4  ;;  %v6465_v19 = vrot.slane %v6463_v2, 5  ;;  %v6820_v20 = vrot.slane %v18736_v54, 5  ;;  %v18796_v25 = vpop.f32.mrf.mxu0  ;;  %v6359_v2 = vld [vmem:[#allocation2 + $0xa8] sm:$0xf] }
 0x1e4   : > { %15353 = vmatpush3.bf16.msra.mxu0 %v16252_v3  ;;  %v6432_v1 = vsel %vm16892_vm11, %v6427_v31, %v6431_v61  ;;  %v6450_v44 = vor.u32 %v6449_v49, %v6446_v27  ;;  %v6823_v35 = vrot.slane %v18742_v55, 5  ;;  %22057 = vst [vmem:[#allocation38_spill] sm:$0xff] %v18796_v25  ;;  %v13772_v48 = vrot.slane %v6775_v51, 9  ;;  %v18805_v27 = vld [vmem:[#allocation2 + $0xac] sm:$0xf]  ;;  %v18807_v49 = vpop.f32.mrf.mxu1 }
 0x1e5   : > { %15402 = vmatprep.subr.bf16.mxu0 %v16257_v59  ;;  %v6442_v3 = vsel %vm16892_vm11, %v6437_v41, %v6441_v46  ;;  %v6460_v40 = vor.u32 %v6459_v21, %v6455_v8  ;;  %v6827_v43 = vrot.slane %v18773_v53, 5  ;;  %v18803_v54 = vsel %vm17071_vm14, %v13771_v23, %v6820_v20  ;;  %22058 = vst [vmem:[#allocation40_spill] sm:$0xff] %v18807_v49  ;;  %v18809_v45 = vpop.f32.mrf.mxu0  ;;  %v16253_v46 = vld [vmem:[#allocation7 + $0x200] sm:$0xff]  }
 0x1e6   : > { %15381 = vmatpush3.bf16.msra.mxu1 %v16247_v6  ;;  %v13755_v61 = vcombine.low %v6432_v1, %v6442_v3  ;;  %v6451_v31 = vrot.slane %v6450_v44, 4  ;;  %v6822_v55 = vrot.slane %v6820_v20, 4  ;;  %22059 = vst [vmem:[#allocation42_spill] sm:$0xff] %v18809_v45  ;;  %v18822_v21 = vld [vmem:[#allocation2 + $0xb0] sm:$0x1]  ;;  %v6468_v1 = vshrl.u32 %v6359_v2, 16 }
 0x1e7   : > { %15355 = vmatmul.mubr.bf16.vlgmr.msra.gmra.mxu0 %v13754_v14  ;;  %15382 = vmatprep.subr.bf16.mxu1 %v16251_v7  ;;  %v6461_v51 = vrot.slane %v6460_v40, 4  ;;  %v18813_v53 = vsel %vm17071_vm14, %v13772_v48, %v6827_v43  ;;  %v6829_v6 = vrot.slane %v6827_v43, 4  ;;  %v6830_v14 = vrot.slane %v18775_v47, 5  ;;  %v6362_v20 = vld [vmem:[#allocation2 + $0xb4] sm:$0xf]  ;;  %v18824_v3 = vpop.f32.mrf.mxu0  ;;  %v18837_v48 = vld [vmem:[#allocation9 + $0x38] sm:$0xff]  }
 0x1e8   : > { %15403 = vmatpush3.bf16.msra.mxu0 %v16257_v59  ;;  %15358 = vmatprep.mubr.bf16.mxu0 %v13755_v61  ;;  %v6456_v23 = vsel %vm16892_vm11, %v6451_v31, %v6455_v8  ;;  %v18820_v41 = vsel %vm17071_vm14, %v6822_v55, %v6823_v35  ;;  %v6471_v44 = vshll.u32 %v6359_v2, 16  ;;  %22060 = vst [vmem:[#allocation41_spill] sm:$0xff] %v18824_v3  ;;  %v6477_v35 = vshll.u32 %v18805_v27, 16  ;;  %v18835_v40 = vld [vmem:[#allocation2 + $0xb8] sm:$0xf] }
 0x1e9   : > { %15404 = vmatprep.subr.bf16.mxu0 %v16259_v58  ;;  %15335 = vmatmul.mubr.bf16.gmra.mxu1 %v16249_v0  ;;  %v6466_v59 = vsel %vm16892_vm11, %v6461_v51, %v6465_v19  ;;  %v18832_v8 = vsel %vm17071_vm14, %v6829_v6, %v6830_v14  ;;  %v16261_v43 = vld [vmem:[#allocation9 + $0x68] sm:$0xff]   ;;  %v22061_v0 = vcombine.low %v18702_v30, %v18714_v33  ;;  %v6470_v61 = vrot.slane %v6468_v1, 4  ;;  %v18846_v51 = vpop.f32.mrf.mxu1  ;;  %v18848_v6 = vpop.f32.mrf.mxu0 }
 0x1ea   : > { %15383 = vmatpush3.bf16.msra.mxu1 %v16251_v7  ;;  %v13756_v19 = vcombine.low %v6456_v23, %v6466_v59  ;;  %v6473_v31 = vrot.slane %v6471_v44, 5  ;;  %v18844_v55 = vld [vmem:[#allocation2 + $0xbc] sm:$0x1]  ;;  %22062 = vst [vmem:[#allocation43_spill] sm:$0xff] %v18846_v51  ;;  %22063 = vst [vmem:[#allocation45_spill] sm:$0xff] %v18848_v6  ;;  %v18850_v14 = vrot.slane %v6477_v35, 5 }
 0x1eb   : > { %15386 = vmatprep.mubr.bf16.mxu1 %v22061_v0  ;;  %15384 = vmatprep.subr.bf16.mxu1 %v16253_v46  ;;  %v6481_v7 = vshrl.u32 %v18805_v27, 16  ;;  %v6487_v30 = vshll.u32 %v18822_v21, 16  ;;  %v6492_v33 = vshrl.u32 %v6362_v20, 16  ;;  %v6776_v23 = vld [vmem:[#allocation2 + $0xa8] sm:$0xe]  ;;  %v6495_v0 = vshll.u32 %v6362_v20, 16  ;;  %v18856_v2 = vpop.f32.mrf.mxu0  ;;  %v18861_v45 = vpop.f32.mrf.mxu1 }
 0x1ec   : > { %15405 = vmatpush3.bf16.msra.mxu0 %v16259_v58  ;;  %v6474_v59 = vor.u32 %v6473_v31, %v6470_v61  ;;  %v6501_v1 = vshll.u32 %v18835_v40, 16  ;;  %v6505_v44 = vshrl.u32 %v18835_v40, 16  ;;  %22064 = vst [vmem:[#allocation39_spill] sm:$0xff] %v18856_v2  ;;  %v6511_v49 = vshll.u32 %v18844_v55, 16  ;;  %v18859_v6 = vld [vmem:[#allocation9 + $0x30] sm:$0xff]   ;;  %22065 = vst [vmem:[#allocation48_spill] sm:$0xff] %v18861_v45 }
 0x1ed   : > { %15406 = vmatprep.subr.bf16.mxu0 %v16261_v43  ;;  %v6483_v47 = vrot.slane %v6481_v7, 4  ;;  %v6489_v51 = vrot.slane %v6487_v30, 5  ;;  %v6494_v35 = vrot.slane %v6492_v33, 4  ;;  %v6497_v58 = vrot.slane %v6495_v0, 5  ;;  %v6777_v31 = vld [vmem:[#allocation2 + $0xb4] sm:$0xe] }
 0x1ee   : > { %15385 = vmatpush3.bf16.msra.mxu1 %v16253_v46  ;;  %v6475_v3 = vrot.slane %v6474_v59, 4  ;;  %v6503_v61 = vrot.slane %v6501_v1, 5  ;;  %v6507_v20 = vrot.slane %v6505_v44, 4  ;;  %v6513_v2 = vrot.slane %v6511_v49, 5  ;;  %v6365_v30 = vld [vmem:[#allocation2 + $0xc0] sm:$0xf]  ;;  %v18870_v1 = vpop.f32.mrf.mxu0 }
 0x1ef   : > { %15359 = vmatmul.mubr.bf16.gmra.mxu0 %v13756_v19  ;;  %v6484_v25 = vor.u32 %v6483_v47, %v18850_v14  ;;  %v13773_v11 = vrot.slane %v6776_v23, 9  ;;  %v6834_v7 = vrot.slane %v18805_v27, 5  ;;  %15434 = vmatprep.subr.bf16.mxu1 %v18837_v48  ;;  %v16263_v33 = vld [vmem:[#allocation9 + $0x60] sm:$0xff]   ;;  %v6498_v19 = vor.u32 %v6497_v58, %v6494_v35  ;;  %v18877_v44 = vld [vmem:[#allocation2 + $0xc4] sm:$0xf]  ;;  %v18888_v35 = vpop.f32.mrf.mxu1 }
 0x1f0   : > { %15407 = vmatpush3.bf16.msra.mxu0 %v16261_v43  ;;  %v6480_v46 = vsel %vm16892_vm11, %v6475_v3, %v18850_v14  ;;  %v6508_v59 = vor.u32 %v6507_v20, %v6503_v61  ;;  %v6837_v0 = vrot.slane %v18822_v21, 5  ;;  %v22066_v49 = vcombine.low %v18752_v37, %v18761_v50  ;;  %v18879_v45 = vld [vmem:[#allocation2 + $0xc8] sm:$0x1]  ;;  %v18881_v3 = vld [vmem:[#allocation9 + $0x28] sm:$0xff]  }
 0x1f1   : > { %v6485_v27 = vrot.slane %v6484_v25, 4  ;;  %v6835_v47 = vsel %vm17071_vm14, %v13773_v11, %v6834_v7  ;;  %v6836_v43 = vrot.slane %v6834_v7, 4  ;;  %v13774_v23 = vrot.slane %v6777_v31, 9  ;;  %15408 = vmatprep.subr.bf16.mxu0 %v16263_v33  ;;  %v16265_v21 = vld [vmem:[#allocation9 + $0x58] sm:$0xff]  }
 0x1f2   : > { %15387 = vmatmul.mubr.bf16.vlgmr.msra.gmra.mxu1 %v22066_v49  ;;  %v22067_v14 = vcombine.low %v18803_v54, %v18820_v41  ;;  %v6499_v37 = vrot.slane %v6498_v19, 4  ;;  %v6509_v50 = vrot.slane %v6508_v59, 4  ;;  %v6841_v25 = vrot.slane %v18835_v40, 5  ;;  %v380_v54 = vld [vmem:[#allocation2 + $0xd4] sm:$0x1]  ;;  %v18900_v59 = vpop.f32.mrf.mxu0 }
 0x1f3   : > { %v6844_v11 = vrot.slane %v18844_v55, 5  ;;  %15435 = vmatpush3.bf16.msra.mxu1 %v18837_v48  ;;  %v6490_v58 = vsel %vm16892_vm11, %v6485_v27, %v6489_v51  ;;  %v6838_v20 = vsel %vm17071_vm14, %v6836_v43, %v6837_v0  ;;  %v6516_v31 = vshrl.u32 %v6365_v30, 16  ;;  %v6368_v41 = vld [vmem:[#allocation2 + $0xcc] sm:$0xf]  ;;  %v18906_v27 = vld [vmem:[#allocation2 + $0xd0] sm:$0xf] }
 0x1f4   : > { %15390 = vmatprep.mubr.bf16.mxu1 %v22067_v14  ;;  %v6519_v7 = vshll.u32 %v6365_v30, 16  ;;  %15436 = vmatprep.subr.bf16.mxu1 %v18859_v6  ;;  %v13757_v40 = vcombine.low %v6480_v46, %v6490_v58  ;;  %v6504_v55 = vsel %vm16892_vm11, %v6499_v37, %v6503_v61  ;;  %v6514_v48 = vsel %vm16892_vm11, %v6509_v50, %v6513_v2  ;;  %v6778_v43 = vld [vmem:[#allocation2 + $0xc0] sm:$0xe]  ;;  %v18911_v14 = vpop.f32.mrf.mxu1  ;;  %v22068_v37 = vld [vmem:[#allocation29_spill] sm:$0xff] }
 0x1f5   : > { %15409 = vmatpush3.bf16.msra.mxu0 %v16263_v33  ;;  %v13781_v19 = vcombine.low %v6835_v47, %v6838_v20  ;;  %v13758_v51 = vcombine.low %v6504_v55, %v6514_v48  ;;  %v18904_v30 = vsel %vm17071_vm14, %v13774_v23, %v6841_v25  ;;  %v6843_v0 = vrot.slane %v6841_v25, 4  ;;  %v16258_v33 = vld [vmem:[#allocation9 + $0x20] sm:$0xff]   ;;  %v18925_v55 = vpop.f32.mrf.mxu0 }
 0x1f6   : > { %15410 = vmatprep.subr.bf16.mxu0 %v16265_v21  ;;  %v6518_v49 = vrot.slane %v6516_v31, 4  ;;  %15362 = vmatprep.mubr.bf16.mxu0 %v13757_v40  ;;  %v6521_v46 = vrot.slane %v6519_v7, 5  ;;  %v6525_v61 = vshll.u32 %v18877_v44, 16  ;;  %v6529_v2 = vshrl.u32 %v18877_v44, 16 }
 0x1f7   : > { %v6535_v47 = vshll.u32 %v18879_v45, 16  ;;  %15437 = vmatpush3.bf16.msra.mxu1 %v18859_v6  ;;  %15363 = vmatmul.mubr.bf16.gmra.mxu0 %v13758_v51  ;;  %v18916_v23 = vsel %vm17071_vm14, %v6843_v0, %v6844_v11  ;;  %v2646_v50 = vadd.f32 %v18692_v52, %v22068_v37  ;;  %v381_v58 = vsel %vm16840_vm4, 0, %v380_v54  ;;  %v6779_v0 = vld [vmem:[#allocation2 + $0xcc] sm:$0xe] }
 0x1f8   : > { %v6540_v20 = vshrl.u32 %v6368_v41, 16  ;;  %15438 = vmatprep.subr.bf16.mxu1 %v18881_v3  ;;  %v13782_v31 = vcombine.low %v18904_v30, %v18916_v23  ;;  %v6522_v7 = vor.u32 %v6521_v46, %v6518_v49  ;;  %v6527_v40 = vrot.slane %v6525_v61, 5  ;;  %382 = vst [vmem:[#allocation2 + $0xd4] sm:$0x1] %v381_v58 }
 0x1f9   : > { %v6531_v6 = vrot.slane %v6529_v2, 4  ;;  %15411 = vmatpush3.bf16.msra.mxu0 %v16265_v21  ;;  %v22070_v11 = vcombine.low %v18813_v53, %v18832_v8  ;;  %v6537_v52 = vrot.slane %v6535_v47, 5  ;;  %v18931_v54 = vadd.f32 %v18681_v12, %v2646_v50  ;;  %v18935_v2 = vpop.f32.mrf.mxu1  ;;  %v18937_v21 = vpop.f32.mrf.mxu0  ;;  %v16260_v53 = vld [vmem:[#allocation9 + $0x18] sm:$0xff]   ;;  %v16267_v8 = vld [vmem:[#allocation9 + $0x50] sm:$0xff]  }
 0x1fa   : > { %v6542_v48 = vrot.slane %v6540_v20, 4  ;;  %v6543_v51 = vshll.u32 %v6368_v41, 16  ;;  %v6523_v30 = vrot.slane %v6522_v7, 4  ;;  %v6549_v46 = vshll.u32 %v18906_v27, 16  ;;  %15412 = vmatprep.subr.bf16.mxu0 %v16267_v8 }
 0x1fb   : > { %15391 = vmatmul.mubr.bf16.gmra.mxu1 %v22070_v11  ;;  %v6532_v49 = vor.u32 %v6531_v6, %v6527_v40  ;;  %v6553_v61 = vshrl.u32 %v18906_v27, 16  ;;  %v13775_v47 = vrot.slane %v6778_v43, 9  ;;  %v6848_v41 = vrot.slane %v18877_v44, 5  ;;  %v18944_v20 = vpop.f32.mrf.mxu0 }
 0x1fc   : > { %15394 = vmatprep.mubr.bf16.mxu1 %v13781_v19  ;;  %15439 = vmatpush3.bf16.msra.mxu1 %v18881_v3  ;;  %v6545_v12 = vrot.slane %v6543_v51, 5  ;;  %v6851_v19 = vrot.slane %v18879_v45, 5  ;;  %v6528_v23 = vsel %vm16892_vm11, %v6523_v30, %v6527_v40  ;;  %v6551_v50 = vrot.slane %v6549_v46, 5  ;;  %v16271_v45 = vld [vmem:[#allocation9 + $0x48] sm:$0xff]   ;;  %v18953_v30 = vpop.f32.mrf.mxu1 }
 0x1fd   : > { %15440 = vmatprep.subr.bf16.mxu1 %v16258_v33  ;;  %v6533_v37 = vrot.slane %v6532_v49, 4  ;;  %v6555_v58 = vrot.slane %v6553_v61, 4  ;;  %v6849_v3 = vsel %vm17071_vm14, %v13775_v47, %v6848_v41  ;;  %v6850_v6 = vrot.slane %v6848_v41, 4  ;;  %15413 = vmatpush3.bf16.msra.mxu0 %v16267_v8  ;;  %v18955_v49 = vpop.f32.mrf.mxu0 }
 0x1fe   : > { %v6546_v7 = vor.u32 %v6545_v12, %v6542_v48  ;;  %v2644_v44 = vadd.f32 %v18696_v42, %v18548_v63  ;;  %v13776_v11 = vrot.slane %v6779_v0, 9  ;;  %v6855_v51 = vrot.slane %v18906_v27, 5  ;;  %15414 = vmatprep.subr.bf16.mxu0 %v16271_v45 }
 0x1ff   : > { %v6538_v43 = vsel %vm16892_vm11, %v6533_v37, %v6537_v52  ;;  %v6556_v40 = vor.u32 %v6555_v58, %v6551_v50  ;;  %v6370_v46 = vld [vmem:[#allocation2 + $0xd4] sm:$0x1]  ;;  %v6852_v63 = vsel %vm17071_vm14, %v6850_v6, %v6851_v19  ;;  %v16262_v52 = vld [vmem:[#allocation9 + $0x10] sm:$0xff]   ;;  %v18964_v47 = vpop.f32.mrf.mxu0  ;;  %v2645_v37 = vadd.f32 %v18730_v62, %v18576_v28 }
 0x200   : > { %15441 = vmatpush3.bf16.msra.mxu1 %v16258_v33  ;;  %v13759_v48 = vcombine.low %v6528_v23, %v6538_v43  ;;  %v6547_v61 = vrot.slane %v6546_v7, 4  ;;  %v18960_v42 = vadd.f32 %v18694_v60, %v2644_v44  ;;  %v6559_v8 = vshll.u32 %v6370_v46, 16  ;;  %v18976_v7 = vpop.f32.mrf.mxu1  ;;  %v16264_v44 = vld [vmem:[#allocation9 + $0x8] sm:$0xff]  }
 0x201   : > { %15442 = vmatprep.subr.bf16.mxu1 %v16260_v53  ;;  %v6557_v0 = vrot.slane %v6556_v40, 4  ;;  %v13783_v27 = vcombine.low %v6849_v3, %v6852_v63  ;;  %v6856_v12 = vsel %vm17071_vm14, %v13776_v11, %v6855_v51  ;;  %v6857_v41 = vrot.slane %v6855_v51, 4  ;;  %v18978_v3 = vpop.f32.mrf.mxu0  ;;  %15415 = vmatpush3.bf16.msra.mxu0 %v16271_v45  ;;  %v22073_v40 = vld [vmem:[#allocation21_spill] sm:$0xff]  ;;  %v22074_v11 = vld [vmem:[#allocation42_spill] sm:$0xff]  ;;  %v22075_v45 = vld [vmem:[#allocation32_spill] sm:$0xff] }
 0x202   : > { %15366 = vmatprep.mubr.bf16.mxu0 %v13759_v48  ;;  %v6552_v33 = vsel %vm16892_vm11, %v6547_v61, %v6551_v50  ;;  %v6858_v19 = vrot.slane %v6370_v46, 5  ;;  %v2647_v60 = vadd.f32 %v18716_v15, %v18552_v24  ;;  %v6561_v23 = vrot.slane %v6559_v8, 5  ;;  %v18980_v50 = vld [vmem:[#allocation9 + $0x40] sm:$0xff]   ;;  %v22076_v48 = vld [vmem:[#allocation41_spill] sm:$0xff]  ;;  %v960_v61 = vld [vmem:[#allocation3 + $0xc] sm:$0x1] }
 0x203   : > { %15395 = vmatmul.mubr.bf16.gmra.mxu1 %v13782_v31  ;;  %v3175_v58 = vadd.f32 %v18744_v22, %v18605_v34  ;;  %v3173_v31 = vadd.f32 %v18755_v57, %v18614_v56  ;;  %v3176_v28 = vadd.f32 %v18777_v18, %v18626_v26  ;;  %v3174_v34 = vadd.f32 %v18783_v36, %v18629_v9  ;;  %v18993_v6 = vpop.f32.mrf.mxu0  ;;  %v22078_v63 = vld [vmem:[#allocation45_spill] sm:$0xff]  ;;  %v22079_v8 = vld [vmem:[#allocation34_spill] sm:$0xff] }
 0x204   : > { %15398 = vmatprep.mubr.bf16.mxu1 %v13783_v27  ;;  %15443 = vmatpush3.bf16.msra.mxu1 %v16260_v53  ;;  %v6859_v24 = vsel %vm17071_vm14, %v6857_v41, %v6858_v19  ;;  %v2945_v15 = vadd.f32 %v18698_v13, %v2647_v60  ;;  %v6562_v56 = vsel %vm16892_vm11, %v6557_v0, %v6561_v23  ;;  %v3584_v53 = vpop.f32.mrf.mxu1  ;;  %v22080_v27 = vld [vmem:[#allocation39_spill] sm:$0xff]  ;;  %v16266_v60 = vld [vmem:[#allocation9] sm:$0xff]   ;;  %v22083_v23 = vld [vmem:[#allocation37_spill] sm:$0xff] }
 0x205   : > { %15444 = vmatprep.subr.bf16.mxu1 %v16262_v52  ;;  %v13784_v62 = vcombine.low %v6856_v12, %v6859_v24  ;;  %v2943_v22 = vadd.f32 %v18718_v29, %v2645_v37  ;;  %v3601_v57 = vadd.f32 %v18732_v17, %v3175_v58  ;;  %v13760_v13 = vcombine.low %v6552_v33, %v6562_v56  ;;  %v22071_v29 = vld [vmem:[#allocation31_spill] sm:$0xff]  ;;  %v22072_v17 = vld [vmem:[#allocation38_spill] sm:$0xff]  ;;  %v22084_v58 = vld [vmem:[#allocation40_spill] sm:$0xff] }
 0x206   : > { %v3599_v26 = vadd.f32 %v18746_v32, %v3173_v31  ;;  %v3602_v18 = vadd.f32 %v18757_v16, %v3176_v28  ;;  %v18998_v9 = vadd.f32 %v18779_v39, %v3174_v34  ;;  %15416 = vmatprep.subr.bf16.mxu0 %v18980_v50  ;;  %v3179_v36 = vadd.f32 %v18788_v10, %v18632_v38  ;;  %v963_v32 = vld [vmem:[#allocation3 + $0x18] sm:$0x1]  ;;  %v3837_v16 = vpop.f32.mrf.mxu0  ;;  %v22077_v39 = vld [vmem:[#allocation33_spill] sm:$0xff]  ;;  %v22082_v33 = vld [vmem:[#allocation35_spill] sm:$0xff]  ;;  %v15081_v19 = vpop.f32.mrf.mxu1 }
 0x207   : > { %v3177_v43 = vadd.f32 %v22072_v17, %v22071_v29  ;;  %v3180_v51 = vadd.f32 %v22074_v11, %v22073_v40  ;;  %v3178_v46 = vadd.f32 %v22076_v48, %v22075_v45  ;;  %15367 = vmatmul.mubr.bf16.gmra.mxu0 %v13760_v13  ;;  %v3183_v0 = vadd.f32 %v22078_v63, %v22077_v39  ;;  %v22081_v10 = vld [vmem:[#allocation36_spill] sm:$0xff]  ;;  %v1017_v13 = vld [vmem:[#allocation3 + $0x20] sm:$0x1]  ;;  %v1014_v17 = vld [vmem:[#allocation3 + $0x14] sm:$0x1] }
 0x208   : > { %15445 = vmatpush3.bf16.msra.mxu1 %v16262_v52  ;;  %v3181_v38 = vadd.f32 %v22080_v27, %v22079_v8  ;;  %v3184_v12 = vadd.f32 %v18870_v1, %v22081_v10  ;;  %v3182_v41 = vadd.f32 %v18900_v59, %v22082_v33  ;;  %v3605_v37 = vadd.f32 %v22083_v23, %v3179_v36  ;;  %v22085_v52 = vld [vmem:[#allocation43_spill] sm:$0xff]  ;;  %v22086_v28 = vld [vmem:[#allocation48_spill] sm:$0xff]  ;;  %v15104_v40 = vpop.f32.mrf.mxu0  ;;  %v1020_v63 = vld [vmem:[#allocation3 + $0x2c] sm:$0x1] }
 0x209   : > { %v3603_v31 = vadd.f32 %v22084_v58, %v3177_v43  ;;  %v19020_v24 = vadd.f32 %v22085_v52, %v3180_v51  ;;  %v19023_v34 = vadd.f32 %v22086_v28, %v3178_v46  ;;  %v19025_v56 = vld [vmem:[#allocation10] ss:$0 sm:$0xff]  ;;  %15446 = vmatprep.subr.bf16.mxu1 %v16264_v44  ;;  %v19028_v1 = vadd.f32 %v18888_v35, %v3183_v0  ;;  %v969_v43 = vld [vmem:[#allocation3 + $0x30] sm:$0x1]  ;;  %v19045_v45 = vld [vmem:[#allocation10 + $0x1] ss:$0 sm:$0xff] }
 0x20a   : > { %v19031_v59 = vadd.f32 %v18911_v14, %v3181_v38  ;;  %v19034_v36 = vadd.f32 %v18935_v2, %v3184_v12  ;;  %v19037_v29 = vadd.f32 %v18953_v30, %v3182_v41  ;;  %v16278_v11 = vld [vmem:[#allocation9 + $0xb8] sm:$0xff]   ;;  %v3187_v51 = vadd.f32 %v18925_v55, %v18931_v54  ;;  %v966_v2 = vld [vmem:[#allocation3 + $0x24] sm:$0x1]  ;;  %v3587_v30 = vpop.f32.mrf.mxu1  ;;  %15417 = vmatpush3.bf16.msra.mxu0 %v18980_v50 }
 0x20b   : > { %15399 = vmatmul.mubr.bf16.gmra.mxu1 %v13784_v62  ;;  %v3185_v35 = vadd.f32 %v18937_v21, %v18960_v42  ;;  %v3188_v62 = vadd.f32 %v18944_v20, %v2945_v15  ;;  %v3186_v14 = vadd.f32 %v18955_v49, %v2943_v22  ;;  %v964_v46 = vsel %vm16835_vm3, 0, %v963_v32  ;;  %v3850_v21 = vpop.f32.mrf.mxu0  ;;  %v1023_v42 = vld [vmem:[#allocation3 + $0x38] sm:$0x1]  ;;  %v19053_v20 = vld [vmem:[#allocation9 + $0xf8] sm:$0xff]   ;;  %15466 = vmatprep.subr.bf16.mxu0 %v16278_v11 }
 0x20c   : > { %15447 = vmatpush3.bf16.msra.mxu1 %v16264_v44  ;;  %v3899_v39 = vadd.f32 %v18964_v47, %v3601_v57  ;;  %v961_v55 = vsel %vm16835_vm3, 0, %v960_v61  ;;  %v3897_v54 = vadd.f32 %v18978_v3, %v3599_v26  ;;  %v19057_v49 = vadd.f32 %v18976_v7, %v3187_v51  ;;  %965 = vst [vmem:[#allocation3 + $0x18] sm:$0x1] %v964_v46 }
 0x20d   : > { %15448 = vmatprep.subr.bf16.mxu1 %v16266_v60  ;;  %v19059_v15 = vadd.f32 %v3584_v53, %v3185_v35  ;;  %v19061_v22 = vadd.f32 %v15081_v19, %v3188_v62  ;;  %v19063_v47 = vadd.f32 %v3587_v30, %v3186_v14  ;;  %962 = vst [vmem:[#allocation3 + $0xc] sm:$0x1] %v961_v55  ;;  %v1018_v44 = vsel %vm16840_vm4, 0, %v1017_v13  ;;  %v15105_v7 = vpop.f32.mrf.mxu0 }
 0x20e   : > { %v3919_v3 = vmul.f32 %v19025_v56, %v3899_v39  ;;  %v3917_v57 = vmul.f32 %v19025_v56, %v3897_v54  ;;  %v3900_v50 = vadd.f32 %v18993_v6, %v3602_v18  ;;  %1019 = vst [vmem:[#allocation3 + $0x20] sm:$0x1] %v1018_v44  ;;  %v1015_v53 = vsel %vm16840_vm4, 0, %v1014_v17  ;;  %v19095_v54 = vpop.f32.mrf.mxu1 }
 0x20f   : > { %v3898_v26 = vadd.f32 %v3837_v16, %v18998_v9  ;;  %v970_v32 = vsel %vm16835_vm3, 0, %v969_v43  ;;  %v3903_v61 = vadd.f32 %v15104_v40, %v3605_v37  ;;  %1016 = vst [vmem:[#allocation3 + $0x14] sm:$0x1] %v1015_v53  ;;  %v967_v6 = vsel %vm16835_vm3, 0, %v966_v2  ;;  %v3853_v19 = vpop.f32.mrf.mxu0 }
 0x210   : > { %15449 = vmatpush3.bf16.msra.mxu1 %v16266_v60  ;;  %v3939_v0 = vadd.f32 %v19045_v45, %v3919_v3  ;;  %v3937_v8 = vadd.f32 %v19045_v45, %v3917_v57  ;;  %v3920_v27 = vmul.f32 %v19025_v56, %v3900_v50  ;;  %971 = vst [vmem:[#allocation3 + $0x30] sm:$0x1] %v970_v32  ;;  %968 = vst [vmem:[#allocation3 + $0x24] sm:$0x1] %v967_v6 }
 0x211   : > { %15498 = vmatprep.subr.bf16.mxu1 %v19053_v20  ;;  %v3918_v18 = vmul.f32 %v19025_v56, %v3898_v26  ;;  %v3923_v9 = vmul.f32 %v19025_v56, %v3903_v61  ;;  %v3901_v16 = vadd.f32 %v3850_v21, %v3603_v31  ;;  %v1024_v38 = vsel %vm16840_vm4, 0, %v1023_v42 }
 0x212   : > { %v3955_v10 = vmax.f32 %v3939_v0, 0.0  ;;  %v3953_v12 = vmax.f32 %v3937_v8, 0.0  ;;  %v3940_v33 = vadd.f32 %v19045_v45, %v3920_v27  ;;  %1025 = vst [vmem:[#allocation3 + $0x38] sm:$0x1] %v1024_v38  ;;  %v3904_v41 = vadd.f32 %v15105_v7, %v19020_v24 }
 0x213   : > { %v3938_v60 = vadd.f32 %v19045_v45, %v3918_v18  ;;  %v3943_v23 = vadd.f32 %v19045_v45, %v3923_v9  ;;  %v3921_v37 = vmul.f32 %v19025_v56, %v3901_v16  ;;  %v1021_v58 = vsel %vm16840_vm4, 0, %v1020_v63  ;;  %v4185_v55 = vld [vmem:[#allocation3 + $0x18] sm:$0xf] }
 0x214   : > { %v14219_v31 = vpack.c.bf16 %v3955_v10, %v3955_v10  ;;  %v14217_v52 = vpack.c.bf16 %v3953_v12, %v3953_v12  ;;  %v3956_v28 = vmax.f32 %v3940_v33, 0.0  ;;  %v3924_v13 = vmul.f32 %v19025_v56, %v3904_v41  ;;  %1022 = vst [vmem:[#allocation3 + $0x2c] sm:$0x1] %v1021_v58  ;;  %v4178_v57 = vld [vmem:[#allocation3 + $0xc] sm:$0xf]  ;;  %v19103_v12 = vpop.f32.mrf.mxu1 }
 0x215   : > { %v3954_v17 = vmax.f32 %v3938_v60, 0.0  ;;  %v3959_v43 = vmax.f32 %v3943_v23, 0.0  ;;  %v3941_v24 = vadd.f32 %v19045_v45, %v3921_v37  ;;  %v3902_v40 = vadd.f32 %v3853_v19, %v19023_v34  ;;  %v4189_v63 = vld [vmem:[#allocation3 + $0x20] sm:$0x1]  ;;  %v15108_v9 = vpop.f32.mrf.mxu0  ;;  %v975_v19 = vld [vmem:[#allocation3 + $0x48] sm:$0x1] }
 0x216   : > { %v4035_v11 = vshrl.u32 %v14219_v31, 16  ;;  %v4038_v51 = vshll.u32 %v14219_v31, 16  ;;  %v4018_v35 = vshrl.u32 %v14217_v52, 16  ;;  %v4021_v62 = vshll.u32 %v14217_v52, 16  ;;  %v4182_v27 = vld [vmem:[#allocation3 + $0x14] sm:$0x1] }
 0x217   : > { %v14220_v14 = vpack.c.bf16 %v3956_v28, %v3956_v28  ;;  %v14218_v2 = vpack.c.bf16 %v3954_v17, %v3954_v17  ;;  %v14223_v30 = vpack.c.bf16 %v3959_v43, %v3959_v43  ;;  %v3957_v46 = vmax.f32 %v3941_v24, 0.0  ;;  %v4199_v31 = vld [vmem:[#allocation3 + $0x30] sm:$0xf]  ;;  %v3866_v52 = vpop.f32.mrf.mxu0  ;;  %v972_v24 = vld [vmem:[#allocation3 + $0x3c] sm:$0x1] }
 0x218   : > { %v4037_v39 = vrot.slane %v4035_v11, 7  ;;  %v4020_v21 = vrot.slane %v4018_v35, 7  ;;  %v3944_v42 = vadd.f32 %v19045_v45, %v3924_v13  ;;  %v3922_v3 = vmul.f32 %v19025_v56, %v3902_v40 }
 0x219   : > { %v4043_v44 = vshrl.u32 %v14220_v14, 16  ;;  %v4046_v34 = vshll.u32 %v14220_v14, 16  ;;  %v4026_v50 = vshrl.u32 %v14218_v2, 16  ;;  %v4029_v7 = vshll.u32 %v14218_v2, 16  ;;  %v4192_v14 = vld [vmem:[#allocation3 + $0x24] sm:$0xf] }
 0x21a   : > { %v4040_v53 = vor.u32 %v4038_v51, %v4037_v39  ;;  %v4041_v26 = vrot.slane %v4037_v39, 4  ;;  %v4023_v32 = vor.u32 %v4021_v62, %v4020_v21  ;;  %v4024_v61 = vrot.slane %v4020_v21, 4  ;;  %v1029_v2 = vld [vmem:[#allocation3 + $0x50] sm:$0x1] }
 0x21b   : > { %v4045_v0 = vrot.slane %v4043_v44, 7  ;;  %v4028_v8 = vrot.slane %v4026_v50, 7  ;;  %v4069_v6 = vshrl.u32 %v14223_v30, 16  ;;  %v4072_v18 = vshll.u32 %v14223_v30, 16  ;;  %v15109_v30 = vpop.f32.mrf.mxu0 }
 0x21c   : > { %v4186_v38 = vsel %vm16867_vm9, %v4040_v53, %v4185_v55  ;;  %v4179_v10 = vsel %vm16867_vm9, %v4023_v32, %v4178_v57  ;;  %v14221_v33 = vpack.c.bf16 %v3957_v46, %v3957_v46  ;;  %v3960_v41 = vmax.f32 %v3944_v42, 0.0  ;;  %v19113_v46 = vpop.f32.mrf.mxu1 }
 0x21d   : > { %4187 = vst [vmem:[#allocation3 + $0x18] sm:$0xf] %v4186_v38  ;;  %4180 = vst [vmem:[#allocation3 + $0xc] sm:$0xf] %v4179_v10  ;;  %v4048_v60 = vor.u32 %v4046_v34, %v4045_v0  ;;  %v4050_v23 = vrot.slane %v4045_v0, 4  ;;  %v4031_v37 = vor.u32 %v4029_v7, %v4028_v8  ;;  %v4033_v58 = vrot.slane %v4028_v8, 4 }
 0x21e   : > { %v4071_v28 = vrot.slane %v4069_v6, 7  ;;  %v4052_v13 = vshrl.u32 %v14221_v33, 16  ;;  %v4055_v17 = vshll.u32 %v14221_v33, 16  ;;  %v14224_v43 = vpack.c.bf16 %v3960_v41, %v3960_v41  ;;  %v1026_v7 = vld [vmem:[#allocation3 + $0x44] sm:$0x1]  ;;  %v19129_v6 = vpop.f32.mrf.mxu1 }
 0x21f   : > { %v4049_v11 = vsel %vm16880_vm10, %v4041_v26, %v4048_v60  ;;  %v4190_v51 = vsel %vm16835_vm3, %v4050_v23, %v4189_v63  ;;  %v4032_v35 = vsel %vm16880_vm10, %v4024_v61, %v4031_v37  ;;  %v4183_v62 = vsel %vm16835_vm3, %v4033_v58, %v4182_v27  ;;  %v4203_v63 = vld [vmem:[#allocation3 + $0x38] sm:$0x1]  ;;  %v3869_v27 = vpop.f32.mrf.mxu0  ;;  %v981_v33 = vld [vmem:[#allocation3 + $0x60] sm:$0x1]  ;;  %v978_v41 = vld [vmem:[#allocation3 + $0x54] sm:$0x1] }
 0x220   : > { %4188 = vst [vmem:[#allocation3 + $0x1c] sm:$0xf] %v4049_v11  ;;  %4191 = vst [vmem:[#allocation3 + $0x20] sm:$0x1] %v4190_v51  ;;  %v4074_v39 = vor.u32 %v4072_v18, %v4071_v28  ;;  %v4075_v55 = vrot.slane %v4071_v28, 4  ;;  %v19115_v21 = vrot.slane %v4052_v13, 7  ;;  %v3942_v44 = vadd.f32 %v19045_v45, %v3922_v3  ;;  %v19146_v51 = vpop.f32.mrf.mxu1 }
 0x221   : > { %4181 = vst [vmem:[#allocation3 + $0x10] sm:$0xf] %v4032_v35  ;;  %4184 = vst [vmem:[#allocation3 + $0x14] sm:$0x1] %v4183_v62  ;;  %v4077_v42 = vshrl.u32 %v14224_v43, 16  ;;  %v4080_v57 = vshll.u32 %v14224_v43, 16  ;;  %v3907_v50 = vadd.f32 %v15108_v9, %v19028_v1  ;;  %v3905_v1 = vadd.f32 %v3866_v52, %v19031_v59 }
 0x222   : > { %v976_v34 = vsel %vm16835_vm3, 0, %v975_v19  ;;  %v4200_v53 = vsel %vm16867_vm9, %v4074_v39, %v4199_v31  ;;  %v4057_v26 = vor.u32 %v4055_v17, %v19115_v21  ;;  %v4058_v32 = vrot.slane %v19115_v21, 4  ;;  %v1035_v37 = vld [vmem:[#allocation3 + $0x68] sm:$0x1]  ;;  %v1032_v13 = vld [vmem:[#allocation3 + $0x5c] sm:$0x1] }
 0x223   : > { %v4079_v61 = vrot.slane %v4077_v42, 7  ;;  %977 = vst [vmem:[#allocation3 + $0x48] sm:$0x1] %v976_v34  ;;  %4201 = vst [vmem:[#allocation3 + $0x30] sm:$0xf] %v4200_v53  ;;  %v3958_v0 = vmax.f32 %v3942_v44, 0.0  ;;  %v3927_v3 = vmul.f32 %v19025_v56, %v3907_v50  ;;  %v3925_v59 = vmul.f32 %v19025_v56, %v3905_v1 }
 0x224   : > { %v973_v8 = vsel %vm16835_vm3, 0, %v972_v24  ;;  %v4193_v18 = vsel %vm16867_vm9, %v4057_v26, %v4192_v14  ;;  %v1030_v10 = vsel %vm16840_vm4, 0, %v1029_v2  ;;  %v3908_v23 = vadd.f32 %v15109_v30, %v19034_v36  ;;  %v957_v11 = vld [vmem:[#allocation3] sm:$0x1]  ;;  %v19156_v42 = vld [vmem:[#allocation3 + $0x4] sm:$0xf] }
 0x225   : > { %v4082_v9 = vor.u32 %v4080_v57, %v4079_v61  ;;  %v4084_v38 = vrot.slane %v4079_v61, 4  ;;  %974 = vst [vmem:[#allocation3 + $0x3c] sm:$0x1] %v973_v8  ;;  %4194 = vst [vmem:[#allocation3 + $0x24] sm:$0xf] %v4193_v18  ;;  %v14222_v19 = vpack.c.bf16 %v3958_v0, %v3958_v0  ;;  %v3947_v60 = vadd.f32 %v19045_v45, %v3927_v3  ;;  %v19166_v3 = vpop.f32.mrf.mxu1 }
 0x226   : > { %1031 = vst [vmem:[#allocation3 + $0x50] sm:$0x1] %v1030_v10  ;;  %v1027_v52 = vsel %vm16840_vm4, 0, %v1026_v7  ;;  %v3906_v28 = vadd.f32 %v3869_v27, %v19037_v29  ;;  %v3945_v36 = vadd.f32 %v19045_v45, %v3925_v59  ;;  %v3928_v35 = vmul.f32 %v19025_v56, %v3908_v23  ;;  %v4196_v57 = vld [vmem:[#allocation3 + $0x2c] sm:$0x1] }
 0x227   : > { %v4083_v58 = vsel %vm16880_vm10, %v4075_v55, %v4082_v9  ;;  %v4204_v31 = vsel %vm16835_vm3, %v4084_v38, %v4203_v63  ;;  %v4060_v17 = vshrl.u32 %v14222_v19, 16  ;;  %v4063_v43 = vshll.u32 %v14222_v19, 16  ;;  %1028 = vst [vmem:[#allocation3 + $0x44] sm:$0x1] %v1027_v52  ;;  %v19164_v53 = vld [vmem:[#allocation3 + $0xc] sm:$0xf] }
 0x228   : > { %4202 = vst [vmem:[#allocation3 + $0x34] sm:$0xf] %v4083_v58  ;;  %4205 = vst [vmem:[#allocation3 + $0x38] sm:$0x1] %v4204_v31  ;;  %v3963_v24 = vmax.f32 %v3947_v60, 0.0  ;;  %v3926_v62 = vmul.f32 %v19025_v56, %v3906_v28  ;;  %v982_v14 = vsel %vm16835_vm3, 0, %v981_v33  ;;  %v3948_v44 = vadd.f32 %v19045_v45, %v3928_v35  ;;  %v19179_v28 = vpop.f32.mrf.mxu1 }
 0x229   : > { %v979_v29 = vsel %vm16835_vm3, 0, %v978_v41  ;;  %v4062_v2 = vrot.slane %v4060_v17, 7  ;;  %v3961_v39 = vmax.f32 %v3945_v36, 0.0  ;;  %983 = vst [vmem:[#allocation3 + $0x60] sm:$0x1] %v982_v14  ;;  %v1036_v55 = vsel %vm16840_vm4, 0, %v1035_v37  ;;  %v15112_v33 = vpop.f32.mrf.mxu0 }
 0x22a   : > { %v14227_v30 = vpack.c.bf16 %v3963_v24, %v3963_v24  ;;  %980 = vst [vmem:[#allocation3 + $0x54] sm:$0x1] %v979_v29  ;;  %v3946_v34 = vadd.f32 %v19045_v45, %v3926_v62  ;;  %1037 = vst [vmem:[#allocation3 + $0x68] sm:$0x1] %v1036_v55  ;;  %v1033_v50 = vsel %vm16840_vm4, 0, %v1032_v13  ;;  %v958_v7 = vsel %vm16835_vm3, 0, %v957_v11 }
 0x22b   : > { %v4065_v26 = vor.u32 %v4063_v43, %v4062_v2  ;;  %v4067_v61 = vrot.slane %v4062_v2, 4  ;;  %1034 = vst [vmem:[#allocation3 + $0x5c] sm:$0x1] %v1033_v50  ;;  %959 = vst [vmem:[#allocation3] sm:$0x1] %v958_v7  ;;  %v14225_v8 = vpack.c.bf16 %v3961_v39, %v3961_v39  ;;  %v3964_v1 = vmax.f32 %v3948_v44, 0.0  ;;  %v3882_v52 = vpop.f32.mrf.mxu0 }
 0x22c   : > { %v4103_v63 = vshrl.u32 %v14227_v30, 16  ;;  %v4106_v0 = vshll.u32 %v14227_v30, 16  ;;  %v3962_v27 = vmax.f32 %v3946_v34, 0.0  ;;  %v7436_v18 = vshrl.u32 %v19156_v42, 16  ;;  %v4213_v19 = vld [vmem:[#allocation3 + $0x48] sm:$0xf] }
 0x22d   : > { %v4066_v9 = vsel %vm16880_vm10, %v4058_v32, %v4065_v26  ;;  %v4197_v38 = vsel %vm16835_vm3, %v4067_v61, %v4196_v57  ;;  %v7447_v41 = vshrl.u32 %v19164_v53, 16  ;;  %v4086_v60 = vshrl.u32 %v14225_v8, 16  ;;  %v4206_v11 = vld [vmem:[#allocation3 + $0x3c] sm:$0xf]  ;;  %v15113_v29 = vpop.f32.mrf.mxu0  ;;  %v4217_v39 = vld [vmem:[#allocation3 + $0x50] sm:$0x1]  ;;  %v19189_v61 = vpop.f32.mrf.mxu1 }
 0x22e   : > { %v4105_v10 = vrot.slane %v4103_v63, 7  ;;  %4195 = vst [vmem:[#allocation3 + $0x28] sm:$0xf] %v4066_v9  ;;  %4198 = vst [vmem:[#allocation3 + $0x2c] sm:$0x1] %v4197_v38  ;;  %v4089_v59 = vshll.u32 %v14225_v8, 16  ;;  %v14228_v23 = vpack.c.bf16 %v3964_v1, %v3964_v1  ;;  %v14226_v37 = vpack.c.bf16 %v3962_v27, %v3962_v27 }
 0x22f   : > { %v3911_v21 = vadd.f32 %v15112_v33, %v19057_v49  ;;  %v19177_v32 = vrot.slane %v7447_v41, 4  ;;  %v4088_v13 = vrot.slane %v4086_v60, 7  ;;  %v3909_v14 = vadd.f32 %v3882_v52, %v19059_v15  ;;  %v4210_v57 = vld [vmem:[#allocation3 + $0x44] sm:$0x1]  ;;  %v3885_v7 = vpop.f32.mrf.mxu0 }
 0x230   : > { %v4108_v58 = vor.u32 %v4106_v0, %v4105_v10  ;;  %v4109_v31 = vrot.slane %v4105_v10, 4  ;;  %v4111_v17 = vshrl.u32 %v14228_v23, 16  ;;  %v4114_v43 = vshll.u32 %v14228_v23, 16 }
 0x231   : > { %v4094_v24 = vshrl.u32 %v14226_v37, 16  ;;  %v4097_v35 = vshll.u32 %v14226_v37, 16  ;;  %v3931_v62 = vmul.f32 %v19025_v56, %v3911_v21  ;;  %v4091_v49 = vor.u32 %v4089_v59, %v4088_v13  ;;  %v15164_v10 = vpop.f32.mrf.mxu0 }
 0x232   : > { %v4214_v36 = vsel %vm16867_vm9, %v4108_v58, %v4213_v19  ;;  %v4092_v2 = vrot.slane %v4088_v13, 4  ;;  %v4113_v30 = vrot.slane %v4111_v17, 7  ;;  %v3929_v34 = vmul.f32 %v19025_v56, %v3909_v14 }
 0x233   : > { %4215 = vst [vmem:[#allocation3 + $0x48] sm:$0xf] %v4214_v36  ;;  %v4096_v55 = vrot.slane %v4094_v24, 7  ;;  %v3951_v44 = vadd.f32 %v19045_v45, %v3931_v62  ;;  %v3912_v50 = vadd.f32 %v15113_v29, %v19061_v22  ;;  %v7450_v26 = vshll.u32 %v19164_v53, 16  ;;  %v7382_v22 = vld [vmem:[#allocation3] sm:$0xf]  ;;  %v4790_v21 = vpop.f32.mrf.mxu0 }
 0x234   : > { %v4207_v15 = vsel %vm16867_vm9, %v4091_v49, %v4206_v11  ;;  %v4116_v63 = vor.u32 %v4114_v43, %v4113_v30  ;;  %v4118_v0 = vrot.slane %v4113_v30, 4  ;;  %v3949_v9 = vadd.f32 %v19045_v45, %v3929_v34  ;;  %v4227_v34 = vld [vmem:[#allocation3 + $0x60] sm:$0xf] }
 0x235   : > { %v4099_v8 = vor.u32 %v4097_v35, %v4096_v55  ;;  %4208 = vst [vmem:[#allocation3 + $0x3c] sm:$0xf] %v4207_v15  ;;  %v4101_v1 = vrot.slane %v4096_v55, 4  ;;  %v3967_v27 = vmax.f32 %v3951_v44, 0.0  ;;  %v3932_v38 = vmul.f32 %v19025_v56, %v3912_v50  ;;  %v19211_v35 = vld [vmem:[#allocation3 + $0x10] sm:$0xf]  ;;  %v15165_v62 = vpop.f32.mrf.mxu0 }
 0x236   : > { %v4117_v33 = vsel %vm16880_vm10, %v4109_v31, %v4116_v63  ;;  %v4218_v41 = vsel %vm16835_vm3, %v4118_v0, %v4217_v39  ;;  %v3910_v60 = vadd.f32 %v3885_v7, %v19063_v47  ;;  %v3965_v37 = vmax.f32 %v3949_v9, 0.0  ;;  %v19205_v31 = vpop.f32.mrf.mxu1 }
 0x237   : > { %v4100_v19 = vsel %vm16880_vm10, %v4092_v2, %v4099_v8  ;;  %4216 = vst [vmem:[#allocation3 + $0x4c] sm:$0xf] %v4117_v33  ;;  %4219 = vst [vmem:[#allocation3 + $0x50] sm:$0x1] %v4218_v41  ;;  %v4211_v59 = vsel %vm16835_vm3, %v4101_v1, %v4210_v57  ;;  %v14231_v23 = vpack.c.bf16 %v3967_v27, %v3967_v27  ;;  %v7423_v47 = vshrl.u32 %v7382_v22, 16  ;;  %v4793_v57 = vpop.f32.mrf.mxu0  ;;  %v16273_v27 = vld [vmem:[#allocation9 + $0xf0] sm:$0xff]  }
 0x238   : > { %4209 = vst [vmem:[#allocation3 + $0x40] sm:$0xf] %v4100_v19  ;;  %v3952_v58 = vadd.f32 %v19045_v45, %v3932_v38  ;;  %4212 = vst [vmem:[#allocation3 + $0x44] sm:$0x1] %v4211_v59  ;;  %v3930_v52 = vmul.f32 %v19025_v56, %v3910_v60  ;;  %v19209_v13 = vadd.f32 %v15164_v10, %v19095_v54  ;;  %v7426_v17 = vshll.u32 %v7382_v22, 16  ;;  %v19221_v44 = vpop.f32.mrf.mxu1 }
 0x239   : > { %v4137_v43 = vshrl.u32 %v14231_v23, 16  ;;  %v4140_v24 = vshll.u32 %v14231_v23, 16  ;;  %v14229_v36 = vpack.c.bf16 %v3965_v37, %v3965_v37  ;;  %v19214_v29 = vrot.slane %v7423_v47, 4  ;;  %v19219_v2 = vld [vmem:[#allocation3 + $0x18] sm:$0xf]  ;;  %v15168_v9 = vpop.f32.mrf.mxu0 }
 0x23a   : > { %v3968_v11 = vmax.f32 %v3952_v58, 0.0  ;;  %v3950_v14 = vadd.f32 %v19045_v45, %v3930_v52  ;;  %v19216_v49 = vrot.slane %v7426_v17, 5  ;;  %v13825_v56 = vcombine.low %v7382_v22, %v19156_v42  ;;  %v4220_v38 = vld [vmem:[#allocation3 + $0x54] sm:$0xf]  ;;  %v19233_v41 = vld [vmem:[#allocation3 + $0x1c] sm:$0xf] }
 0x23b   : > { %v4139_v54 = vrot.slane %v4137_v43, 7  ;;  %v4120_v30 = vshrl.u32 %v14229_v36, 16  ;;  %v4123_v39 = vshll.u32 %v14229_v36, 16  ;;  %v19224_v45 = vadd.f32 %v4790_v21, %v19103_v12  ;;  %v4231_v23 = vld [vmem:[#allocation3 + $0x68] sm:$0x1]  ;;  %v4806_v37 = vpop.f32.mrf.mxu0  ;;  %v19240_v21 = vpop.f32.mrf.mxu1 }
 0x23c   : > { %v14232_v55 = vpack.c.bf16 %v3968_v11, %v3968_v11  ;;  %v3966_v50 = vmax.f32 %v3950_v14, 0.0  ;;  %15450 = vmatprep.mubr.bf16.mxu1 %v13825_v56  ;;  %v19226_v7 = vrot.slane %v7450_v26, 5  ;;  %v7460_v15 = vshrl.u32 %v19211_v35, 16  ;;  %v1011_v58 = vld [vmem:[#allocation3 + $0x8] sm:$0x1] }
 0x23d   : > { %v4142_v63 = vor.u32 %v4140_v24, %v4139_v54  ;;  %v4143_v0 = vrot.slane %v4139_v54, 4  ;;  %v19229_v8 = vrot.slane %v4120_v30, 7  ;;  %v13826_v33 = vcombine.low %v19164_v53, %v19211_v35  ;;  %v7388_v43 = vld [vmem:[#allocation3 + $0x24] sm:$0xf]  ;;  %v4224_v56 = vld [vmem:[#allocation3 + $0x5c] sm:$0x1] }
 0x23e   : > { %v4145_v1 = vshrl.u32 %v14232_v55, 16  ;;  %v4148_v10 = vshll.u32 %v14232_v55, 16  ;;  %v14230_v22 = vpack.c.bf16 %v3966_v50, %v3966_v50  ;;  %v7471_v12 = vshrl.u32 %v19219_v2, 16  ;;  %v19245_v24 = vld [vmem:[#allocation9 + $0xe8] sm:$0xff]   ;;  %v19251_v30 = vld [vmem:[#allocation3 + $0x28] sm:$0xf] }
 0x23f   : > { %v4228_v26 = vsel %vm16867_vm9, %v4142_v63, %v4227_v34  ;;  %v4125_v19 = vor.u32 %v4123_v39, %v19229_v8  ;;  %v4126_v60 = vrot.slane %v19229_v8, 4  ;;  %15451 = vmatmul.mubr.bf16.vlgmr.msra.gmra.mxu1 %v13826_v33  ;;  %v7474_v17 = vshll.u32 %v19219_v2, 16  ;;  %v19253_v39 = vpop.f32.mrf.mxu0 }
 0x240   : > { %v4147_v59 = vrot.slane %v4145_v1, 7  ;;  %4229 = vst [vmem:[#allocation3 + $0x60] sm:$0xf] %v4228_v26  ;;  %v4128_v52 = vshrl.u32 %v14230_v22, 16  ;;  %v4131_v53 = vshll.u32 %v14230_v22, 16  ;;  %v19242_v47 = vrot.slane %v7471_v12, 4  ;;  %15499 = vmatpush3.bf16.msra.mxu1 %v19053_v20  ;;  %v19274_v22 = vpop.f32.mrf.mxu1 }
 0x241   : > { %v4221_v36 = vsel %vm16867_vm9, %v4125_v19, %v4220_v38  ;;  %v7484_v54 = vshrl.u32 %v19233_v41, 16  ;;  %v19255_v34 = vrot.slane %v7474_v17, 5  ;;  %v13827_v50 = vcombine.low %v19219_v2, %v19233_v41  ;;  %15500 = vmatprep.subr.bf16.mxu1 %v16273_v27 }
 0x242   : > { %v4150_v11 = vor.u32 %v4148_v10, %v4147_v59  ;;  %v4152_v14 = vrot.slane %v4147_v59, 4  ;;  %4222 = vst [vmem:[#allocation3 + $0x54] sm:$0xf] %v4221_v36  ;;  %v4130_v55 = vrot.slane %v4128_v52, 7  ;;  %v19260_v63 = vadd.f32 %v15165_v62, %v19113_v46  ;;  %v19272_v10 = vpop.f32.mrf.mxu0  ;;  %v7390_v59 = vld [vmem:[#allocation3 + $0x30] sm:$0xf] }
 0x243   : > { %v19267_v1 = vadd.f32 %v4793_v57, %v19129_v6  ;;  %v19270_v38 = vadd.f32 %v15168_v9, %v19146_v51  ;;  %15454 = vmatprep.mubr.bf16.mxu1 %v13827_v50  ;;  %v19277_v2 = vadd.f32 %v4806_v37, %v19166_v3  ;;  %v19281_v6 = vld [vmem:[#allocation3 + $0x14] sm:$0x1]  ;;  %v7429_v51 = vor.u32 %v19216_v49, %v19214_v29  ;;  %v16279_v37 = vld [vmem:[#allocation9 + $0xe0] sm:$0xff]  }
 0x244   : > { %v4151_v8 = vsel %vm16880_vm10, %v4143_v0, %v4150_v11  ;;  %v4232_v20 = vsel %vm16835_vm3, %v4152_v14, %v4231_v23  ;;  %v4133_v46 = vor.u32 %v4131_v53, %v4130_v55  ;;  %v4135_v62 = vrot.slane %v4130_v55, 4  ;;  %15501 = vmatpush3.bf16.msra.mxu1 %v16273_v27  ;;  %v15172_v12 = vpop.f32.mrf.mxu0  ;;  %v19294_v29 = vld [vmem:[#allocation3 + $0x34] sm:$0xf]  ;;  %v19303_v52 = vpop.f32.mrf.mxu1 }
 0x245   : > { %4230 = vst [vmem:[#allocation3 + $0x64] sm:$0xf] %v4151_v8  ;;  %4233 = vst [vmem:[#allocation3 + $0x68] sm:$0x1] %v4232_v20  ;;  %v1012_v0 = vsel %vm16840_vm4, 0, %v1011_v58  ;;  %v7432_v57 = vshll.u32 %v19156_v42, 16  ;;  %15502 = vmatprep.subr.bf16.mxu1 %v19245_v24  ;;  %v7453_v17 = vor.u32 %v19226_v7, %v19177_v32 }
 0x246   : > { %1013 = vst [vmem:[#allocation3 + $0x8] sm:$0x1] %v1012_v0  ;;  %v7438_v9 = vrot.slane %v7436_v18, 4  ;;  %v7495_v33 = vshrl.u32 %v7388_v43, 16  ;;  %v4134_v3 = vsel %vm16880_vm10, %v4126_v60, %v4133_v46  ;;  %v4225_v26 = vsel %vm16835_vm3, %v4135_v62, %v4224_v56  ;;  %v4822_v58 = vpop.f32.mrf.mxu0  ;;  %v19320_v8 = vpop.f32.mrf.mxu1  ;;  %v19324_v46 = vld [vmem:[#allocation3 + $0x20] sm:$0x1] }
 0x247   : > { %v7498_v19 = vshll.u32 %v7388_v43, 16  ;;  %4223 = vst [vmem:[#allocation3 + $0x58] sm:$0xf] %v4134_v3  ;;  %4226 = vst [vmem:[#allocation3 + $0x5c] sm:$0x1] %v4225_v26  ;;  %v19296_v49 = vrot.slane %v7429_v51, 4  ;;  %v13828_v60 = vcombine.low %v7388_v43, %v19251_v30 }
 0x248   : > { %v19298_v18 = vrot.slane %v7432_v57, 5  ;;  %v19300_v23 = vrot.slane %v7495_v33, 4  ;;  %v7456_v36 = vshll.u32 %v19211_v35, 16  ;;  %v7462_v11 = vrot.slane %v7460_v15, 4  ;;  %v19318_v50 = vpop.f32.mrf.mxu0  ;;  %15503 = vmatpush3.bf16.msra.mxu1 %v19245_v24  ;;  %v16282_v33 = vld [vmem:[#allocation9 + $0xd8] sm:$0xff]   ;;  %v19333_v26 = vpop.f32.mrf.mxu1 }
 0x249   : > { %v19305_v53 = vrot.slane %v7498_v19, 5  ;;  %15455 = vmatmul.mubr.bf16.gmra.mxu1 %v13828_v60  ;;  %v7466_v56 = vshll.u32 %v19281_v6, 16  ;;  %v7519_v55 = vshrl.u32 %v7390_v59, 16  ;;  %v7454_v32 = vrot.slane %v7453_v17, 4  ;;  %15504 = vmatprep.subr.bf16.mxu1 %v16279_v37 }
 0x24a   : > { %v7435_v14 = vsel %vm16892_vm11, %v19296_v49, %v19298_v18  ;;  %v7439_v43 = vor.u32 %v7438_v9, %v19298_v18  ;;  %v7458_v7 = vrot.slane %v7456_v36, 5  ;;  %v7522_v20 = vshll.u32 %v7390_v59, 16  ;;  %v19329_v9 = vld [vmem:[#allocation3 + $0x3c] sm:$0xf]  ;;  %v19331_v3 = vpop.f32.mrf.mxu0 }
 0x24b   : > { %v7468_v0 = vrot.slane %v7466_v56, 5  ;;  %v19326_v51 = vrot.slane %v7519_v55, 4  ;;  %v13829_v57 = vcombine.low %v7390_v59, %v19294_v29  ;;  %v19343_v60 = vadd.f32 %v19253_v39, %v19179_v28 }
 0x24c   : > { %v7440_v62 = vrot.slane %v7439_v43, 4  ;;  %v7459_v24 = vsel %vm16892_vm11, %v7454_v32, %v7458_v7  ;;  %v7463_v49 = vor.u32 %v7462_v11, %v7458_v7  ;;  %v19339_v18 = vrot.slane %v7522_v20, 5  ;;  %v19351_v56 = vpop.f32.mrf.mxu0  ;;  %v19353_v11 = vpop.f32.mrf.mxu1  ;;  %15505 = vmatpush3.bf16.msra.mxu1 %v16279_v37 }
 0x24d   : > { %v19335_v19 = vld [vmem:[#allocation3 + $0x8] sm:$0x1]  ;;  %15458 = vmatprep.mubr.bf16.mxu1 %v13829_v57  ;;  %v7477_v17 = vor.u32 %v19255_v34, %v19242_v47  ;;  %v7480_v36 = vshll.u32 %v19233_v41, 16  ;;  %v7486_v43 = vrot.slane %v7484_v54, 4  ;;  %v7490_v32 = vshll.u32 %v19324_v46, 16  ;;  %15506 = vmatprep.subr.bf16.mxu1 %v16282_v33 }
 0x24e   : > { %v7442_v59 = vshll.u32 %v19335_v19, 16  ;;  %v7464_v55 = vrot.slane %v7463_v49, 4  ;;  %v19358_v28 = vadd.f32 %v19272_v10, %v19189_v61  ;;  %v19361_v39 = vadd.f32 %v15172_v12, %v19205_v31  ;;  %v19363_v47 = vld [vmem:[#allocation3 + $0x40] sm:$0xf]  ;;  %v16285_v57 = vld [vmem:[#allocation9 + $0xd0] sm:$0xff]   ;;  %v19368_v49 = vpop.f32.mrf.mxu0  ;;  %v15196_v15 = vpop.f32.mrf.mxu1 }
 0x24f   : > { %22090 = vst [vmem:[#allocation24_spill] sm:$0xff] %v19363_v47  ;;  %v7478_v7 = vrot.slane %v7477_v17, 4  ;;  %v7482_v54 = vrot.slane %v7480_v36, 5  ;;  %v19366_v20 = vadd.f32 %v4822_v58, %v19221_v44  ;;  %v7492_v10 = vrot.slane %v7490_v32, 5  ;;  %v16280_v17 = vld [vmem:[#allocation9 + $0xb0] sm:$0xff]  }
 0x250   : > { %v7444_v34 = vrot.slane %v7442_v59, 5  ;;  %v7469_v61 = vsel %vm16892_vm11, %v7464_v55, %v7468_v0  ;;  %v7543_v31 = vshrl.u32 %v19329_v9, 16  ;;  %v7546_v12 = vshll.u32 %v19329_v9, 16  ;;  %v19381_v36 = vld [vmem:[#allocation3 + $0x2c] sm:$0x1]  ;;  %v19383_v27 = vpop.f32.mrf.mxu0  ;;  %v5063_v0 = vpop.f32.mrf.mxu1  ;;  %15507 = vmatpush3.bf16.msra.mxu1 %v16282_v33 }
 0x251   : > { %v19375_v37 = vadd.f32 %v15196_v15, %v19209_v13  ;;  %v13810_v58 = vcombine.low %v7459_v24, %v7469_v61  ;;  %v7483_v59 = vsel %vm16892_vm11, %v7478_v7, %v7482_v54  ;;  %22091 = vst [vmem:[#allocation26_spill] sm:$0xff] %v19381_v36  ;;  %v7487_v32 = vor.u32 %v7486_v43, %v7482_v54  ;;  %v7394_v13 = vld [vmem:[#allocation3 + $0x48] sm:$0xf]  ;;  %v19397_v7 = vld [vmem:[#allocation3 + $0x4c] sm:$0xf] }
 0x252   : > { %v7445_v44 = vsel %vm16892_vm11, %v7440_v62, %v7444_v34  ;;  %v19385_v40 = vrot.slane %v7543_v31, 4  ;;  %v19387_v25 = vrot.slane %v7546_v12, 5  ;;  %v19390_v15 = vadd.f32 %v5063_v0, %v19224_v45  ;;  %15508 = vmatprep.subr.bf16.mxu1 %v16285_v57  ;;  %v19399_v43 = vpop.f32.mrf.mxu0  ;;  %v15197_v54 = vpop.f32.mrf.mxu1 }
 0x253   : > { %v13809_v55 = vcombine.low %v7435_v14, %v7445_v44  ;;  %v13830_v24 = vcombine.low %v19329_v9, %v19363_v47  ;;  %v7501_v34 = vor.u32 %v19305_v53, %v19300_v23  ;;  %v16288_v14 = vld [vmem:[#allocation9 + $0xc8] sm:$0xff]   ;;  %v7488_v33 = vrot.slane %v7487_v32, 4  ;;  %v16446_v32 = vld [vmem:[#allocation9 + $0xb8] sm:$0xff]  }
 0x254   : > { %v7504_v45 = vshll.u32 %v19251_v30, 16  ;;  %v22092_v61 = vshrl.u32 %v19251_v30, 16  ;;  %v7514_v12 = vshll.u32 %v19381_v36, 16  ;;  %v19406_v9 = vadd.f32 %v15197_v54, %v19260_v63  ;;  %v19408_v0 = vpop.f32.mrf.mxu0  ;;  %v5066_v62 = vpop.f32.mrf.mxu1  ;;  %15509 = vmatpush3.bf16.msra.mxu1 %v16285_v57  ;;  %v16284_v54 = vld [vmem:[#allocation9 + $0xa8] sm:$0xff]   ;;  %v19420_v36 = vld [vmem:[#allocation3 + $0x38] sm:$0x1] }
 0x255   : > { %15418 = vmatprep.mubr.bf16.mxu0 %v13809_v55  ;;  %15459 = vmatmul.mubr.bf16.gmra.mxu1 %v13830_v24  ;;  %v7502_v23 = vrot.slane %v7501_v34, 4  ;;  %v7567_v53 = vshrl.u32 %v7394_v13, 16  ;;  %v7570_v44 = vshll.u32 %v7394_v13, 16  ;;  %v7493_v55 = vsel %vm16892_vm11, %v7488_v33, %v7492_v10  ;;  %v19422_v10 = vld [vmem:[#allocation9 + $0xc0] sm:$0xff]  }
 0x256   : > { %v7510_v31 = vrot.slane %v22092_v61, 4  ;;  %15419 = vmatmul.mubr.bf16.vlgmr.msra.gmra.mxu0 %v13810_v58  ;;  %v7506_v16 = vrot.slane %v7504_v45, 5  ;;  %v7516_v61 = vrot.slane %v7514_v12, 5  ;;  %v19414_v63 = vadd.f32 %v5066_v62, %v19267_v1  ;;  %15510 = vmatprep.subr.bf16.mxu1 %v16288_v14  ;;  %v19424_v33 = vpop.f32.mrf.mxu0  ;;  %v15200_v45 = vpop.f32.mrf.mxu1  ;;  %v7396_v12 = vld [vmem:[#allocation3 + $0x54] sm:$0xf] }
 0x257   : > { %15467 = vmatpush3.bf16.msra.mxu0 %v16446_v32  ;;  %v13811_v58 = vcombine.low %v7483_v59, %v7493_v55  ;;  %v19416_v24 = vrot.slane %v7567_v53, 4  ;;  %v19418_v34 = vrot.slane %v7570_v44, 5  ;;  %v13831_v59 = vcombine.low %v7394_v13, %v19397_v7 }
 0x258   : > { %15468 = vmatprep.subr.bf16.mxu0 %v16280_v17  ;;  %v7507_v57 = vsel %vm16892_vm11, %v7502_v23, %v7506_v16  ;;  %v7511_v1 = vor.u32 %v7510_v31, %v7506_v16  ;;  %v19431_v62 = vadd.f32 %v19318_v50, %v19240_v21  ;;  %v19434_v53 = vadd.f32 %v15200_v45, %v19270_v38  ;;  %v19441_v16 = vpop.f32.mrf.mxu0  ;;  %v5079_v13 = vpop.f32.mrf.mxu1  ;;  %v16286_v50 = vld [vmem:[#allocation9 + $0xa0] sm:$0xff]  }
 0x259   : > { %15422 = vmatprep.mubr.bf16.mxu0 %v13811_v58  ;;  %v7525_v44 = vor.u32 %v19339_v18, %v19326_v51  ;;  %v7528_v55 = vshll.u32 %v19294_v29, 16  ;;  %v22093_v32 = vshrl.u32 %v19294_v29, 16  ;;  %15462 = vmatprep.mubr.bf16.mxu1 %v13831_v59  ;;  %v7538_v21 = vshll.u32 %v19420_v36, 16 }
 0x25a   : > { %v7512_v31 = vrot.slane %v7511_v1, 4  ;;  %v19446_v38 = vadd.f32 %v19331_v3, %v19274_v22  ;;  %v19450_v51 = vadd.f32 %v19351_v56, %v19303_v52  ;;  %v19453_v18 = vadd.f32 %v5079_v13, %v19277_v2  ;;  %v19459_v1 = vld [vmem:[#allocation3 + $0x58] sm:$0xf]  ;;  %15511 = vmatpush3.bf16.msra.mxu1 %v16288_v14  ;;  %v19461_v22 = vpop.f32.mrf.mxu0  ;;  %v15201_v3 = vpop.f32.mrf.mxu1  ;;  %v19471_v14 = vld [vmem:[#allocation3 + $0x44] sm:$0x1] }
 0x25b   : > { %v7534_v23 = vrot.slane %v22093_v32, 4  ;;  %15469 = vmatpush3.bf16.msra.mxu0 %v16280_v17  ;;  %v7526_v58 = vrot.slane %v7525_v44, 4  ;;  %v7530_v45 = vrot.slane %v7528_v55, 5  ;;  %v19457_v17 = vadd.f32 %v19368_v49, %v19320_v8  ;;  %15512 = vmatprep.subr.bf16.mxu1 %v19422_v10  ;;  %22094 = vst [vmem:[#allocation27_spill] sm:$0xff] %v19471_v14 }
 0x25c   : > { %15470 = vmatprep.subr.bf16.mxu0 %v16284_v54  ;;  %v7517_v52 = vsel %vm16892_vm11, %v7512_v31, %v7516_v61  ;;  %v7540_v56 = vrot.slane %v7538_v21, 5  ;;  %v7591_v59 = vshrl.u32 %v7396_v12, 16  ;;  %v7594_v2 = vshll.u32 %v7396_v12, 16  ;;  %v19473_v32 = vpop.f32.mrf.mxu0  ;;  %v5082_v13 = vpop.f32.mrf.mxu1 }
 0x25d   : > { %v19467_v44 = vadd.f32 %v15201_v3, %v19343_v60  ;;  %v13812_v55 = vcombine.low %v7507_v57, %v7517_v52  ;;  %v7531_v8 = vsel %vm16892_vm11, %v7526_v58, %v7530_v45  ;;  %v7535_v49 = vor.u32 %v7534_v23, %v7530_v45  ;;  %v16289_v3 = vld [vmem:[#allocation9 + $0x98] sm:$0xff]  }
 0x25e   : > { %v19475_v61 = vrot.slane %v7591_v59, 4  ;;  %v19477_v31 = vrot.slane %v7594_v2, 5  ;;  %v13832_v60 = vcombine.low %v7396_v12, %v19459_v1  ;;  %v16290_v57 = vld [vmem:[#allocation3 + $0xc] sm:$0xff]   ;;  %v19484_v23 = vadd.f32 %v5082_v13, %v19358_v28  ;;  %v19489_v59 = vpop.f32.mrf.mxu0  ;;  %v15204_v2 = vpop.f32.mrf.mxu1  ;;  %15513 = vmatpush3.bf16.msra.mxu1 %v19422_v10 }
 0x25f   : > { %15471 = vmatpush3.bf16.msra.mxu0 %v16284_v54  ;;  %v19481_v52 = vld [vmem:[#allocation9 + $0x178] sm:$0xff]   ;;  %v7536_v58 = vrot.slane %v7535_v49, 4  ;;  %v7549_v54 = vor.u32 %v19387_v25, %v19385_v40  ;;  %v7552_v45 = vshll.u32 %v19363_v47, 16  ;;  %v22095_v12 = vshrl.u32 %v19363_v47, 16 }
 0x260   : > { %15423 = vmatmul.mubr.bf16.gmra.mxu0 %v13812_v55  ;;  %15472 = vmatprep.subr.bf16.mxu0 %v16286_v50  ;;  %v7562_v48 = vshll.u32 %v19471_v14, 16  ;;  %v19496_v28 = vadd.f32 %v19383_v27, %v19333_v26  ;;  %v19498_v55 = vld [vmem:[#allocation3 + $0x50] sm:$0x1]  ;;  %v7573_v25 = vor.u32 %v19418_v34, %v19416_v24  ;;  %v19503_v40 = vadd.f32 %v15204_v2, %v19361_v39  ;;  %v5095_v27 = vpop.f32.mrf.mxu1 }
 0x261   : > { %15463 = vmatmul.mubr.bf16.gmra.mxu1 %v13832_v60  ;;  %v7558_v21 = vrot.slane %v22095_v12, 4  ;;  %v7541_v49 = vsel %vm16892_vm11, %v7536_v58, %v7540_v56  ;;  %v7550_v13 = vrot.slane %v7549_v54, 4  ;;  %v7554_v60 = vrot.slane %v7552_v45, 5  ;;  %v19508_v12 = vpop.f32.mrf.mxu0  ;;  %15562 = vmatprep.subr.bf16.mxu1 %v19481_v52  ;;  %v16292_v58 = vld [vmem:[#allocation9 + $0x90] sm:$0xff]  }
 0x262   : > { %15514 = vmatprep.mubr.bf16.mxu1 %v16290_v57  ;;  %v13813_v26 = vcombine.low %v7531_v8, %v7541_v49  ;;  %v7564_v14 = vrot.slane %v7562_v48, 5  ;;  %v7574_v47 = vrot.slane %v7573_v25, 4  ;;  %v7576_v24 = vshll.u32 %v19397_v7, 16  ;;  %v15205_v48 = vpop.f32.mrf.mxu1  ;;  %v19537_v49 = vld [vmem:[#allocation3 + $0x5c] sm:$0x1] }
 0x263   : > { %15473 = vmatpush3.bf16.msra.mxu0 %v16286_v50  ;;  %v19513_v39 = vadd.f32 %v5095_v27, %v19366_v20  ;;  %v7555_v34 = vsel %vm16892_vm11, %v7550_v13, %v7554_v60  ;;  %v7559_v56 = vor.u32 %v7558_v21, %v7554_v60  ;;  %v22096_v10 = vshrl.u32 %v19397_v7, 16  ;;  %v19519_v8 = vpop.f32.mrf.mxu0  ;;  %v16297_v27 = vld [vmem:[#allocation9 + $0x170] sm:$0xff]  }
 0x264   : > { %15474 = vmatprep.subr.bf16.mxu0 %v16289_v3  ;;  %15426 = vmatprep.mubr.bf16.mxu0 %v13813_v26  ;;  %v7578_v50 = vrot.slane %v7576_v24, 5  ;;  %v7586_v54 = vshll.u32 %v19498_v55, 16  ;;  %v19524_v20 = vadd.f32 %v19399_v43, %v19353_v11  ;;  %v19528_v45 = vadd.f32 %v19408_v0, %v19375_v37  ;;  %v5098_v60 = vpop.f32.mrf.mxu1  ;;  %v16293_v0 = vld [vmem:[#allocation3 + $0x18] sm:$0xff]   ;;  %v8001_v26 = vld [vmem:[#allocation3] sm:$0xe] }
 0x265   : > { %v7582_v57 = vrot.slane %v22096_v10, 4  ;;  %v19531_v21 = vadd.f32 %v15205_v48, %v19431_v62  ;;  %v7560_v2 = vrot.slane %v7559_v56, 4  ;;  %v19535_v25 = vadd.f32 %v19424_v33, %v19390_v15  ;;  %v19551_v56 = vpop.f32.mrf.mxu0 }
 0x266   : > { %v7597_v13 = vor.u32 %v19477_v31, %v19475_v61  ;;  %v7579_v11 = vsel %vm16892_vm11, %v7574_v47, %v7578_v50  ;;  %v7588_v37 = vrot.slane %v7586_v54, 5  ;;  %v7600_v62 = vshll.u32 %v19459_v1, 16  ;;  %v16296_v47 = vld [vmem:[#allocation3 + $0x24] sm:$0xff]  }
 0x267   : > { %v7583_v43 = vor.u32 %v7582_v57, %v7578_v50  ;;  %15475 = vmatpush3.bf16.msra.mxu0 %v16289_v3  ;;  %v19545_v15 = vadd.f32 %v5098_v60, %v19446_v38  ;;  %v7565_v33 = vsel %vm16892_vm11, %v7560_v2, %v7564_v14  ;;  %v22097_v31 = vshrl.u32 %v19459_v1, 16  ;;  %v15208_v3 = vpop.f32.mrf.mxu1  ;;  %v16295_v38 = vld [vmem:[#allocation9 + $0x88] sm:$0xff]  }
 0x268   : > { %15476 = vmatprep.subr.bf16.mxu0 %v16292_v58  ;;  %v7598_v61 = vrot.slane %v7597_v13, 4  ;;  %v13814_v10 = vcombine.low %v7555_v34, %v7565_v33  ;;  %v7602_v48 = vrot.slane %v7600_v62, 5  ;;  %v7610_v50 = vshll.u32 %v19537_v49, 16  ;;  %v8002_v13 = vld [vmem:[#allocation3 + $0xc] sm:$0xe]  ;;  %v16300_v62 = vld [vmem:[#allocation9 + $0x168] sm:$0xff]   ;;  %v5336_v33 = vpop.f32.mrf.mxu0 }
 0x269   : > { %v7606_v24 = vrot.slane %v22097_v31, 4  ;;  %v7584_v57 = vrot.slane %v7583_v43, 4  ;;  %15515 = vmatmul.mubr.bf16.vlgmr.msra.gmra.mxu1 %v16293_v0  ;;  %v19555_v54 = vadd.f32 %v15208_v3, %v19450_v51  ;;  %v19560_v14 = vadd.f32 %v19441_v16, %v19406_v9  ;;  %v5111_v60 = vpop.f32.mrf.mxu1 }
 0x26a   : > { %15518 = vmatprep.mubr.bf16.mxu1 %v16296_v47  ;;  %15563 = vmatpush3.bf16.msra.mxu1 %v19481_v52  ;;  %v19564_v2 = vadd.f32 %v19461_v22, %v19414_v63  ;;  %v13841_v34 = vrot.slane %v8001_v26, 9  ;;  %v7603_v51 = vsel %vm16892_vm11, %v7598_v61, %v7602_v48  ;;  %v7612_v52 = vrot.slane %v7610_v50, 5  ;;  %v16298_v63 = vld [vmem:[#allocation9 + $0x80] sm:$0xff]  }
 0x26b   : > { %15427 = vmatmul.mubr.bf16.gmra.mxu0 %v13814_v10  ;;  %v7589_v43 = vsel %vm16892_vm11, %v7584_v57, %v7588_v37  ;;  %v7607_v0 = vor.u32 %v7606_v24, %v7602_v48  ;;  %15564 = vmatprep.subr.bf16.mxu1 %v16297_v27  ;;  %v19571_v9 = vadd.f32 %v5111_v60, %v19457_v17  ;;  %v8003_v26 = vld [vmem:[#allocation3 + $0x18] sm:$0xe]  ;;  %v15209_v61 = vpop.f32.mrf.mxu1  ;;  %v8027_v24 = vrot.slane %v19156_v42, 5  ;;  %v8004_v57 = vld [vmem:[#allocation3 + $0x24] sm:$0xe]  ;;  %v15237_v48 = vpop.f32.mrf.mxu0 }
 0x26c   : > { %v13815_v16 = vcombine.low %v7579_v11, %v7589_v43  ;;  %15477 = vmatpush3.bf16.msra.mxu0 %v16292_v58  ;;  %v19575_v22 = vadd.f32 %v19473_v32, %v19434_v53  ;;  %v19579_v37 = vadd.f32 %v19489_v59, %v19453_v18  ;;  %v8030_v17 = vrot.slane %v19335_v19, 5  ;;  %v16299_v11 = vld [vmem:[#allocation3 + $0x30] sm:$0xff]   ;;  %v16303_v47 = vld [vmem:[#allocation9 + $0x160] sm:$0xff]  }
 0x26d   : > { %v7608_v31 = vrot.slane %v7607_v0, 4  ;;  %15478 = vmatprep.subr.bf16.mxu0 %v16295_v38  ;;  %v13842_v58 = vrot.slane %v8002_v13, 9  ;;  %v19584_v3 = vadd.f32 %v15209_v61, %v19496_v28  ;;  %v8034_v53 = vrot.slane %v19211_v35, 5  ;;  %v5114_v59 = vpop.f32.mrf.mxu1  ;;  %v19605_v13 = vld [vmem:[#allocation9 + $0x138] sm:$0xff]  }
 0x26e   : > { %15430 = vmatprep.mubr.bf16.mxu0 %v13815_v16  ;;  %15565 = vmatpush3.bf16.msra.mxu1 %v16297_v27  ;;  %v8037_v18 = vrot.slane %v19281_v6, 5  ;;  %v19590_v32 = vadd.f32 %v19508_v12, %v19467_v44  ;;  %v8028_v19 = vsel %vm17071_vm14, %v13841_v34, %v8027_v24  ;;  %v8029_v10 = vrot.slane %v8027_v24, 4  ;;  %v16301_v12 = vld [vmem:[#allocation3 + $0x3c] sm:$0xff]   ;;  %v8005_v16 = vld [vmem:[#allocation3 + $0x30] sm:$0xe]  ;;  %v22098_v24 = vld [vmem:[#allocation26_spill] sm:$0xff] }
 0x26f   : > { %v7613_v42 = vsel %vm16892_vm11, %v7608_v31, %v7612_v52  ;;  %15566 = vmatprep.subr.bf16.mxu1 %v16300_v62  ;;  %v13843_v28 = vrot.slane %v8003_v26, 9  ;;  %v19597_v27 = vadd.f32 %v5114_v59, %v19524_v20  ;;  %v19601_v6 = vsel %vm17071_vm14, %v13842_v58, %v8034_v53  ;;  %v15260_v50 = vpop.f32.mrf.mxu1 }
 0x270   : > { %v13816_v35 = vcombine.low %v7603_v51, %v7613_v42  ;;  %15479 = vmatpush3.bf16.msra.mxu0 %v16295_v38  ;;  %v8036_v44 = vrot.slane %v8034_v53, 4  ;;  %v8031_v34 = vsel %vm17071_vm14, %v8029_v10, %v8030_v17  ;;  %v8041_v20 = vrot.slane %v19233_v41, 5  ;;  %v19645_v53 = vld [vmem:[#allocation9 + $0x150] sm:$0xff]  }
 0x271   : > { %15480 = vmatprep.subr.bf16.mxu0 %v16298_v63  ;;  %15519 = vmatmul.mubr.bf16.gmra.mxu1 %v16299_v11  ;;  %v8044_v60 = vrot.slane %v19324_v46, 5  ;;  %v19611_v38 = vadd.f32 %v19519_v8, %v19484_v23  ;;  %v19614_v43 = vadd.f32 %v15260_v50, %v19528_v45  ;;  %v13849_v51 = vcombine.low %v8028_v19, %v8031_v34  ;;  %v5729_v26 = vpop.f32.mrf.mxu1  ;;  %v16306_v45 = vld [vmem:[#allocation9 + $0x158] sm:$0xff]   ;;  %v5339_v11 = vpop.f32.mrf.mxu0  ;;  %v22099_v34 = vld [vmem:[#allocation24_spill] sm:$0xff] }
 0x272   : > { %v19618_v0 = vsel %vm17071_vm14, %v8036_v44, %v8037_v18  ;;  %15522 = vmatprep.mubr.bf16.mxu1 %v16301_v12  ;;  %15567 = vmatpush3.bf16.msra.mxu1 %v16300_v62  ;;  %v13844_v52 = vrot.slane %v8004_v57, 9  ;;  %v19624_v46 = vsel %vm17071_vm14, %v13843_v28, %v8041_v20  ;;  %v8043_v23 = vrot.slane %v8041_v20, 4  ;;  %v16305_v18 = vld [vmem:[#allocation3 + $0x48] sm:$0xff]   ;;  %v19657_v19 = vld [vmem:[#allocation3 + $0x14] sm:$0x1] }
 0x273   : > { %15431 = vmatmul.mubr.bf16.gmra.mxu0 %v13816_v35  ;;  %v13850_v41 = vcombine.low %v19601_v6, %v19618_v0  ;;  %15568 = vmatprep.subr.bf16.mxu1 %v16303_v47  ;;  %v19628_v8 = vadd.f32 %v19551_v56, %v19503_v40  ;;  %v19631_v62 = vadd.f32 %v5729_v26, %v19535_v25  ;;  %v8048_v31 = vrot.slane %v19251_v30, 5  ;;  %v15261_v58 = vpop.f32.mrf.mxu1  ;;  %v8007_v35 = vld [vmem:[#allocation3 + $0x48] sm:$0xe] }
 0x274   : > { %15481 = vmatpush3.bf16.msra.mxu0 %v16298_v63  ;;  %15482 = vmatprep.mubr.bf16.mxu0 %v13849_v51  ;;  %v19634_v61 = vadd.f32 %v5336_v33, %v19513_v39  ;;  %v8051_v17 = vrot.slane %v22098_v24, 5  ;;  %v8045_v40 = vsel %vm17071_vm14, %v8043_v23, %v8044_v60  ;;  %v19642_v56 = vadd.f32 %v15237_v48, %v19531_v21  ;;  %v8006_v39 = vld [vmem:[#allocation3 + $0x3c] sm:$0xe]  ;;  %v19655_v21 = vld [vmem:[#allocation3 + $0x10] sm:$0xf]  ;;  %v16304_v44 = vld [vmem:[#allocation9 + $0x130] sm:$0xff]  }
 0x275   : > { %15530 = vmatprep.subr.bf16.mxu0 %v19605_v13  ;;  %v13845_v25 = vrot.slane %v8005_v16, 9  ;;  %v8055_v63 = vrot.slane %v19294_v29, 5  ;;  %v19648_v30 = vadd.f32 %v15261_v58, %v19560_v14  ;;  %v13851_v33 = vcombine.low %v19624_v46, %v8045_v40  ;;  %v8959_v29 = vld [vmem:[#allocation3 + $0xc] sm:$0xe]  ;;  %v5732_v10 = vpop.f32.mrf.mxu1  ;;  %v16307_v48 = vld [vmem:[#allocation3 + $0x54] sm:$0xff]   ;;  %v16312_v23 = vld [vmem:[#allocation9 + $0x148] sm:$0xff]  }
 0x276   : > { %15569 = vmatpush3.bf16.msra.mxu1 %v16303_v47  ;;  %v19653_v59 = vsel %vm17071_vm14, %v13844_v52, %v8048_v31  ;;  %v8050_v42 = vrot.slane %v8048_v31, 4  ;;  %v8058_v47 = vrot.slane %v19420_v36, 5  ;;  %v19665_v57 = vadd.f32 %v5339_v11, %v19545_v15  ;;  %v19682_v52 = vld [vmem:[#allocation3 + $0x1c] sm:$0xf]  ;;  %v8960_v16 = vld [vmem:[#allocation3 + $0x18] sm:$0xe] }
 0x277   : > { %15570 = vmatprep.subr.bf16.mxu1 %v16306_v45  ;;  %v19661_v14 = vsel %vm17071_vm14, %v13845_v25, %v8055_v63  ;;  %v8057_v28 = vrot.slane %v8055_v63, 4  ;;  %v19668_v6 = vadd.f32 %v5732_v10, %v19564_v2  ;;  %v13846_v50 = vrot.slane %v8006_v39, 9  ;;  %v15264_v60 = vpop.f32.mrf.mxu1  ;;  %v22100_v2 = vld [vmem:[#allocation27_spill] sm:$0xff]  ;;  %v19716_v10 = vld [vmem:[#allocation3 + $0x28] sm:$0xf] }
 0x278   : > { %v19672_v12 = vsel %vm17071_vm14, %v8050_v42, %v8051_v17  ;;  %v8062_v20 = vrot.slane %v22099_v34, 5  ;;  %v8065_v51 = vrot.slane %v22100_v2, 5  ;;  %v13897_v0 = vrot.slane %v8959_v29, 9  ;;  %v19693_v17 = vld [vmem:[#allocation3 + $0x20] sm:$0x1] }
 0x279   : > { %15523 = vmatmul.mubr.bf16.gmra.mxu1 %v16305_v18  ;;  %v13852_v36 = vcombine.low %v19653_v59, %v19672_v12  ;;  %v19679_v15 = vsel %vm17071_vm14, %v8057_v28, %v8058_v47  ;;  %v19685_v26 = vadd.f32 %v15264_v60, %v19575_v22  ;;  %v5745_v11 = vpop.f32.mrf.mxu1  ;;  %v8993_v22 = vrot.slane %v19655_v21, 5  ;;  %v8008_v18 = vld [vmem:[#allocation3 + $0x54] sm:$0xe]  ;;  %v16308_v29 = vld [vmem:[#allocation9 + $0x128] sm:$0xff]   ;;  %v16314_v47 = vld [vmem:[#allocation9 + $0x140] sm:$0xff]  }
 0x27a   : > { %15526 = vmatprep.mubr.bf16.mxu1 %v16307_v48  ;;  %15571 = vmatpush3.bf16.msra.mxu1 %v16306_v45  ;;  %v13853_v46 = vcombine.low %v19661_v14, %v19679_v15  ;;  %v19691_v31 = vsel %vm17071_vm14, %v13846_v50, %v8062_v20  ;;  %v8064_v24 = vrot.slane %v8062_v20, 4  ;;  %v8996_v58 = vrot.slane %v19657_v19, 5  ;;  %v19724_v50 = vld [vmem:[#allocation3 + $0x2c] sm:$0x1]  ;;  %v16311_v20 = vld [vmem:[#allocation3 + $0x60] sm:$0xff]   ;;  %v16313_v59 = vld [vmem:[#allocation9 + $0x118] sm:$0xff]  }
 0x27b   : > { %15483 = vmatmul.mubr.bf16.vlgmr.msra.gmra.mxu0 %v13850_v41  ;;  %15572 = vmatprep.subr.bf16.mxu1 %v19645_v53  ;;  %v13847_v45 = vrot.slane %v8007_v35, 9  ;;  %v8069_v40 = vrot.slane %v19397_v7, 5  ;;  %v19700_v25 = vadd.f32 %v5745_v11, %v19579_v37  ;;  %v8072_v41 = vrot.slane %v19498_v55, 5  ;;  %v15265_v42 = vpop.f32.mrf.mxu1 }
 0x27c   : > { %15486 = vmatprep.mubr.bf16.mxu0 %v13851_v33  ;;  %15531 = vmatpush3.bf16.msra.mxu0 %v19605_v13  ;;  %v19705_v63 = vsel %vm17071_vm14, %v8064_v24, %v8065_v51  ;;  %v13898_v39 = vrot.slane %v8960_v16, 9  ;;  %v8994_v37 = vsel %vm17071_vm14, %v13897_v0, %v8993_v22  ;;  %v8995_v33 = vrot.slane %v8993_v22, 4  ;;  %v15240_v16 = vpop.f32.mrf.mxu0 }
 0x27d   : > { %15532 = vmatprep.subr.bf16.mxu0 %v16304_v44  ;;  %v13854_v7 = vcombine.low %v19691_v31, %v19705_v63  ;;  %v19714_v13 = vsel %vm17071_vm14, %v13847_v45, %v8069_v40  ;;  %v19719_v55 = vadd.f32 %v15265_v42, %v19590_v32  ;;  %v8071_v28 = vrot.slane %v8069_v40, 4  ;;  %v5748_v34 = vpop.f32.mrf.mxu1  ;;  %v16317_v31 = vld [vmem:[#allocation9 + $0x108] sm:$0xff]  }
 0x27e   : > { %15573 = vmatpush3.bf16.msra.mxu1 %v19645_v53  ;;  %v9000_v35 = vrot.slane %v19682_v52, 5  ;;  %v9003_v48 = vrot.slane %v19693_v17, 5  ;;  %v8997_v60 = vsel %vm17071_vm14, %v8995_v33, %v8996_v58  ;;  %v13848_v2 = vrot.slane %v8008_v18, 9  ;;  %v8961_v53 = vld [vmem:[#allocation3 + $0x24] sm:$0xe] }
 0x27f   : > { %15574 = vmatprep.subr.bf16.mxu1 %v16312_v23  ;;  %v8076_v32 = vrot.slane %v19459_v1, 5  ;;  %v8079_v51 = vrot.slane %v19537_v49, 5  ;;  %v19731_v0 = vadd.f32 %v5748_v34, %v19611_v38  ;;  %v13905_v24 = vcombine.low %v8994_v37, %v8997_v60  ;;  %v8533_v58 = vld [vmem:[#allocation3 + $0xc] sm:$0xf]  ;;  %v15268_v45 = vpop.f32.mrf.mxu1  ;;  %v16310_v1 = vld [vmem:[#allocation9 + $0x120] sm:$0xff]  }
 0x280   : > { %15533 = vmatpush3.bf16.msra.mxu0 %v16304_v44  ;;  %v19735_v11 = vsel %vm17071_vm14, %v8071_v28, %v8072_v41  ;;  %v19739_v22 = vsel %vm17071_vm14, %v13898_v39, %v9000_v35  ;;  %v19742_v49 = vadd.f32 %v15240_v16, %v19555_v54  ;;  %v9002_v44 = vrot.slane %v9000_v35, 4  ;;  %v5352_v39 = vpop.f32.mrf.mxu0  ;;  %v16316_v28 = vld [vmem:[#allocation9 + $0x1f8] sm:$0xff]  }
 0x281   : > { %15534 = vmatprep.subr.bf16.mxu0 %v16308_v29  ;;  %15527 = vmatmul.mubr.bf16.gmra.mxu1 %v16311_v20  ;;  %v13855_v38 = vcombine.low %v19714_v13, %v19735_v11  ;;  %v19748_v40 = vsel %vm17071_vm14, %v13848_v2, %v8076_v32  ;;  %v19751_v41 = vadd.f32 %v15268_v45, %v19628_v8  ;;  %v8078_v18 = vrot.slane %v8076_v32, 4  ;;  %v5761_v37 = vpop.f32.mrf.mxu1  ;;  %v19774_v20 = vld [vmem:[#allocation3 + $0x34] sm:$0xf]  ;;  %v8962_v2 = vld [vmem:[#allocation3 + $0x30] sm:$0xe]  ;;  %v19831_v11 = vld [vmem:[#allocation9 + $0x1e0] sm:$0xff]  }
 0x282   : > { %15575 = vmatpush3.bf16.msra.mxu1 %v16312_v23  ;;  %15578 = vmatprep.mubr.bf16.mxu1 %v13905_v24  ;;  %v13899_v42 = vrot.slane %v8961_v53, 9  ;;  %v9007_v54 = vrot.slane %v19716_v10, 5  ;;  %v19758_v33 = vadd.f32 %v5352_v39, %v19571_v9  ;;  %v9004_v8 = vsel %vm17071_vm14, %v9002_v44, %v9003_v48  ;;  %v15241_v12 = vpop.f32.mrf.mxu0  ;;  %v19791_v24 = vld [vmem:[#allocation3 + $0x38] sm:$0x1]  ;;  %v19829_v13 = vld [vmem:[#allocation3 + $0x44] sm:$0x1] }
 0x283   : > { %15487 = vmatmul.mubr.bf16.gmra.mxu0 %v13852_v36  ;;  %15576 = vmatprep.subr.bf16.mxu1 %v16314_v47  ;;  %v9010_v23 = vrot.slane %v19724_v50, 5  ;;  %v8558_v35 = vshrl.u32 %v8533_v58, 16  ;;  %v19764_v34 = vadd.f32 %v5761_v37, %v19634_v61  ;;  %v13906_v9 = vcombine.low %v19739_v22, %v9004_v8  ;;  %v15269_v60 = vpop.f32.mrf.mxu1  ;;  %v16315_v8 = vld [vmem:[#allocation9 + $0x110] sm:$0xff]  }
 0x284   : > { %15490 = vmatprep.mubr.bf16.mxu0 %v13853_v46  ;;  %15535 = vmatpush3.bf16.msra.mxu0 %v16308_v29  ;;  %v19772_v36 = vsel %vm17071_vm14, %v8078_v18, %v8079_v51  ;;  %v9009_v48 = vrot.slane %v9007_v54, 4  ;;  %v19777_v61 = vadd.f32 %v15241_v12, %v19584_v3  ;;  %v9008_v15 = vsel %vm17071_vm14, %v13899_v42, %v9007_v54  ;;  %v19783_v29 = vld [vmem:[#allocation9 + $0x1f0] sm:$0xff]   ;;  %v5355_v51 = vpop.f32.mrf.mxu0  ;;  %v8536_v18 = vld [vmem:[#allocation3 + $0x18] sm:$0xf] }
 0x285   : > { %15536 = vmatprep.subr.bf16.mxu0 %v16310_v1  ;;  %v13856_v14 = vcombine.low %v19748_v40, %v19772_v36  ;;  %v8560_v46 = vrot.slane %v8558_v35, 4  ;;  %v19786_v32 = vadd.f32 %v15269_v60, %v19642_v56  ;;  %v8561_v3 = vshll.u32 %v8533_v58, 16  ;;  %v5764_v22 = vpop.f32.mrf.mxu1 }
 0x286   : > { %15577 = vmatpush3.bf16.msra.mxu1 %v16314_v47  ;;  %v9011_v53 = vsel %vm17071_vm14, %v9009_v48, %v9010_v23  ;;  %v8567_v16 = vshll.u32 %v19655_v21, 16  ;;  %v19794_v45 = vadd.f32 %v5355_v51, %v19597_v27  ;;  %v8571_v39 = vshrl.u32 %v19655_v21, 16  ;;  %v15292_v58 = vpop.f32.mrf.mxu0 }
 0x287   : > { %15626 = vmatprep.subr.bf16.mxu1 %v16316_v28  ;;  %v13907_v44 = vcombine.low %v9008_v15, %v9011_v53  ;;  %v8577_v56 = vshll.u32 %v19657_v19, 16  ;;  %v19799_v47 = vadd.f32 %v5764_v22, %v19665_v57  ;;  %v8563_v42 = vrot.slane %v8561_v3, 5 }
 0x288   : > { %15537 = vmatpush3.bf16.msra.mxu0 %v16310_v1  ;;  %v8569_v54 = vrot.slane %v8567_v16, 5  ;;  %v13900_v37 = vrot.slane %v8962_v2, 9  ;;  %v19802_v27 = vadd.f32 %v15292_v58, %v19614_v43  ;;  %v8573_v23 = vrot.slane %v8571_v39, 4  ;;  %v6026_v19 = vpop.f32.mrf.mxu0 }
 0x289   : > { %15538 = vmatprep.subr.bf16.mxu0 %v16313_v59  ;;  %15579 = vmatmul.mubr.bf16.vlgmr.msra.gmra.mxu1 %v13906_v9  ;;  %v8579_v35 = vrot.slane %v8577_v56, 5  ;;  %v9014_v21 = vrot.slane %v19774_v20, 5  ;;  %v8564_v57 = vor.u32 %v8563_v42, %v8560_v46  ;;  %v9017_v1 = vrot.slane %v19791_v24, 5  ;;  %v15272_v60 = vpop.f32.mrf.mxu1  ;;  %v16320_v46 = vld [vmem:[#allocation9 + $0x1e8] sm:$0xff]  }
 0x28a   : > { %15582 = vmatprep.mubr.bf16.mxu1 %v13907_v44  ;;  %15627 = vmatpush3.bf16.msra.mxu1 %v16316_v28  ;;  %v8582_v12 = vshrl.u32 %v8536_v18, 16  ;;  %v8585_v48 = vshll.u32 %v8536_v18, 16  ;;  %v19810_v43 = vadd.f32 %v6026_v19, %v19631_v62  ;;  %v8574_v9 = vor.u32 %v8573_v23, %v8569_v54  ;;  %v15293_v63 = vpop.f32.mrf.mxu0  ;;  %v19827_v44 = vld [vmem:[#allocation3 + $0x40] sm:$0xf]  ;;  %v8963_v18 = vld [vmem:[#allocation3 + $0x3c] sm:$0xe] }
 0x28b   : > { %15491 = vmatmul.mubr.bf16.gmra.mxu0 %v13854_v7  ;;  %15628 = vmatprep.subr.bf16.mxu1 %v19783_v29  ;;  %v9015_v15 = vsel %vm17071_vm14, %v13900_v37, %v9014_v21  ;;  %v9016_v28 = vrot.slane %v9014_v21, 4  ;;  %v19816_v2 = vadd.f32 %v15272_v60, %v19742_v49  ;;  %v8565_v62 = vrot.slane %v8564_v57, 4  ;;  %v5777_v53 = vpop.f32.mrf.mxu1  ;;  %v8539_v60 = vld [vmem:[#allocation3 + $0x24] sm:$0xf] }
 0x28c   : > { %15494 = vmatprep.mubr.bf16.mxu0 %v13855_v38  ;;  %15539 = vmatpush3.bf16.msra.mxu0 %v16313_v59  ;;  %v8584_v7 = vrot.slane %v8582_v12, 4  ;;  %v8587_v51 = vrot.slane %v8585_v48, 5  ;;  %v19822_v3 = vadd.f32 %v15293_v63, %v19648_v30  ;;  %v8575_v16 = vrot.slane %v8574_v9, 4  ;;  %v6029_v30 = vpop.f32.mrf.mxu0 }
 0x28d   : > { %15540 = vmatprep.subr.bf16.mxu0 %v16315_v8  ;;  %v9018_v49 = vsel %vm17071_vm14, %v9016_v28, %v9017_v1  ;;  %v8591_v22 = vshll.u32 %v19682_v52, 16  ;;  %v19834_v38 = vadd.f32 %v5777_v53, %v19758_v33  ;;  %v8570_v59 = vsel %vm16892_vm11, %v8565_v62, %v8569_v54  ;;  %v15273_v58 = vpop.f32.mrf.mxu1 }
 0x28e   : > { %15629 = vmatpush3.bf16.msra.mxu1 %v19783_v29  ;;  %v13908_v39 = vcombine.low %v9015_v15, %v9018_v49  ;;  %v8588_v56 = vor.u32 %v8587_v51, %v8584_v7  ;;  %v8580_v42 = vsel %vm16892_vm11, %v8575_v16, %v8579_v35  ;;  %v19842_v37 = vadd.f32 %v6029_v30, %v19668_v6  ;;  %v16319_v35 = vld [vmem:[#allocation9 + $0x100] sm:$0xff]   ;;  %v16324_v7 = vld [vmem:[#allocation9 + $0x1d8] sm:$0xff]   ;;  %v8964_v30 = vld [vmem:[#allocation3 + $0x48] sm:$0xe] }
 0x28f   : > { %15630 = vmatprep.subr.bf16.mxu1 %v16320_v46  ;;  %v19844_v23 = vrot.slane %v8591_v22, 5  ;;  %v8595_v33 = vshrl.u32 %v19682_v52, 16  ;;  %v19848_v54 = vadd.f32 %v15273_v58, %v19777_v61  ;;  %v13881_v29 = vcombine.low %v8570_v59, %v8580_v42  ;;  %v15296_v21 = vpop.f32.mrf.mxu0  ;;  %v5780_v1 = vpop.f32.mrf.mxu1  ;;  %v19882_v59 = vld [vmem:[#allocation3 + $0x4c] sm:$0xf] }
 0x290   : > { %15541 = vmatpush3.bf16.msra.mxu0 %v16315_v8  ;;  %v8589_v19 = vrot.slane %v8588_v56, 4  ;;  %v8601_v57 = vshll.u32 %v19693_v17, 16  ;;  %v19852_v6 = vadd.f32 %v15296_v21, %v19685_v26  ;;  %v13901_v48 = vrot.slane %v8963_v18, 9 }
 0x291   : > { %15542 = vmatprep.subr.bf16.mxu0 %v16317_v31  ;;  %15583 = vmatmul.mubr.bf16.gmra.mxu1 %v13908_v39  ;;  %v8597_v12 = vrot.slane %v8595_v33, 4  ;;  %v9021_v52 = vrot.slane %v19827_v44, 5  ;;  %v19856_v61 = vadd.f32 %v5780_v1, %v19794_v45  ;;  %v6042_v8 = vpop.f32.mrf.mxu0  ;;  %v9024_v15 = vrot.slane %v19829_v13, 5  ;;  %v15324_v26 = vpop.f32.mrf.mxu1 }
 0x292   : > { %v8594_v17 = vsel %vm16892_vm11, %v8589_v19, %v19844_v23  ;;  %v8603_v9 = vrot.slane %v8601_v57, 5  ;;  %15631 = vmatpush3.bf16.msra.mxu1 %v16320_v46  ;;  %v19866_v28 = vadd.f32 %v6042_v8, %v19700_v25  ;;  %v19873_v51 = vadd.f32 %v15324_v26, %v19802_v27  ;;  %v16321_v46 = vld [vmem:[#allocation9 + $0x1b8] sm:$0xff]   ;;  %v16326_v19 = vld [vmem:[#allocation9 + $0x1d0] sm:$0xff]  }
 0x293   : > { %15495 = vmatmul.mubr.bf16.gmra.mxu0 %v13856_v14  ;;  %v8598_v45 = vor.u32 %v8597_v12, %v19844_v23  ;;  %v9022_v63 = vsel %vm17071_vm14, %v13901_v48, %v9021_v52  ;;  %v9023_v62 = vrot.slane %v9021_v52, 4  ;;  %15632 = vmatprep.subr.bf16.mxu1 %v19831_v11  ;;  %v15297_v40 = vpop.f32.mrf.mxu0  ;;  %v8606_v36 = vshrl.u32 %v8539_v60, 16  ;;  %v6268_v53 = vpop.f32.mrf.mxu1  ;;  %v8542_v23 = vld [vmem:[#allocation3 + $0x30] sm:$0xf] }
 0x294   : > { %15543 = vmatpush3.bf16.msra.mxu0 %v16317_v31  ;;  %15546 = vmatprep.mubr.bf16.mxu0 %v13881_v29  ;;  %v8609_v14 = vshll.u32 %v8539_v60, 16  ;;  %v8615_v25 = vshll.u32 %v19716_v10, 16  ;;  %v19879_v22 = vadd.f32 %v15297_v40, %v19719_v55  ;;  %v8619_v27 = vshrl.u32 %v19716_v10, 16  ;;  %v19884_v31 = vld [vmem:[#allocation3 + $0x50] sm:$0x1] }
 0x295   : > { %15544 = vmatprep.subr.bf16.mxu0 %v16319_v35  ;;  %v8599_v16 = vrot.slane %v8598_v45, 4  ;;  %v9025_v49 = vsel %vm17071_vm14, %v9023_v62, %v9024_v15  ;;  %v19887_v39 = vadd.f32 %v6268_v53, %v19810_v43  ;;  %v8608_v18 = vrot.slane %v8606_v36, 4  ;;  %v6045_v42 = vpop.f32.mrf.mxu0  ;;  %v15325_v33 = vpop.f32.mrf.mxu1  ;;  %v19917_v53 = vld [vmem:[#allocation3 + $0x5c] sm:$0x1] }
 0x296   : > { %v13909_v56 = vcombine.low %v9022_v63, %v9025_v49  ;;  %v8611_v58 = vrot.slane %v8609_v14, 5  ;;  %15633 = vmatpush3.bf16.msra.mxu1 %v19831_v11  ;;  %v8617_v10 = vrot.slane %v8615_v25, 5  ;;  %v8621_v29 = vrot.slane %v8619_v27, 4 }
 0x297   : > { %v8604_v55 = vsel %vm16892_vm11, %v8599_v16, %v8603_v9  ;;  %v8625_v21 = vshll.u32 %v19724_v50, 16  ;;  %15634 = vmatprep.subr.bf16.mxu1 %v16324_v7  ;;  %v19894_v43 = vadd.f32 %v15325_v33, %v19822_v3  ;;  %v15300_v12 = vpop.f32.mrf.mxu0  ;;  %v13902_v11 = vrot.slane %v8964_v30, 9  ;;  %v6271_v48 = vpop.f32.mrf.mxu1  ;;  %v16323_v9 = vld [vmem:[#allocation9 + $0x1b0] sm:$0xff]  }
 0x298   : > { %15545 = vmatpush3.bf16.msra.mxu0 %v16319_v35  ;;  %v13882_v57 = vcombine.low %v8594_v17, %v8604_v55  ;;  %15586 = vmatprep.mubr.bf16.mxu1 %v13909_v56  ;;  %v8612_v1 = vor.u32 %v8611_v58, %v8608_v18  ;;  %v8622_v52 = vor.u32 %v8621_v29, %v8617_v10  ;;  %v9028_v17 = vrot.slane %v19882_v59, 5  ;;  %v16325_v18 = vld [vmem:[#allocation9 + $0x1a8] sm:$0xff]   ;;  %v16330_v55 = vld [vmem:[#allocation9 + $0x1c0] sm:$0xff]  }
 0x299   : > { %15594 = vmatprep.subr.bf16.mxu0 %v16321_v46  ;;  %v8627_v60 = vrot.slane %v8625_v21, 5  ;;  %v6094_v8 = vadd.f32 %v6045_v42, %v19731_v0  ;;  %v19898_v50 = vadd.f32 %v15300_v12, %v19751_v41  ;;  %v19901_v15 = vadd.f32 %v6271_v48, %v19842_v37  ;;  %v6058_v35 = vpop.f32.mrf.mxu0  ;;  %v15328_v45 = vpop.f32.mrf.mxu1  ;;  %v19908_v41 = vld [vmem:[#allocation3 + $0x58] sm:$0xf]  ;;  %v16328_v37 = vld [vmem:[#allocation9 + $0x1c8] sm:$0xff]  }
 0x29a   : > { %v8613_v3 = vrot.slane %v8612_v1, 4  ;;  %v9031_v26 = vrot.slane %v19884_v31, 5  ;;  %15635 = vmatpush3.bf16.msra.mxu1 %v16324_v7  ;;  %v8623_v63 = vrot.slane %v8622_v52, 4  ;;  %v19906_v62 = vadd.f32 %v6058_v35, %v19764_v34  ;;  %v8965_v34 = vld [vmem:[#allocation3 + $0x54] sm:$0xe]  ;;  %v16327_v35 = vld [vmem:[#allocation9 + $0x1a0] sm:$0xff]  }
 0x29b   : > { %15547 = vmatmul.mubr.bf16.vlgmr.msra.gmra.mxu0 %v13882_v57  ;;  %v8630_v0 = vshrl.u32 %v8542_v23, 16  ;;  %v8633_v40 = vshll.u32 %v8542_v23, 16  ;;  %15636 = vmatprep.subr.bf16.mxu1 %v16326_v19  ;;  %v19911_v36 = vadd.f32 %v15328_v45, %v19852_v6  ;;  %v9029_v7 = vsel %vm17071_vm14, %v13902_v11, %v9028_v17  ;;  %v15301_v16 = vpop.f32.mrf.mxu0  ;;  %v6284_v49 = vpop.f32.mrf.mxu1 }
 0x29c   : > { %v8618_v14 = vsel %vm16892_vm11, %v8613_v3, %v8617_v10  ;;  %15595 = vmatpush3.bf16.msra.mxu0 %v16321_v46  ;;  %v9030_v25 = vrot.slane %v9028_v17, 4  ;;  %v8628_v27 = vsel %vm16892_vm11, %v8623_v63, %v8627_v60  ;;  %v8639_v56 = vshll.u32 %v19774_v20, 16 }
 0x29d   : > { %15596 = vmatprep.subr.bf16.mxu0 %v16323_v9  ;;  %v8632_v30 = vrot.slane %v8630_v0, 4  ;;  %v8635_v6 = vrot.slane %v8633_v40, 5  ;;  %v19923_v46 = vadd.f32 %v6284_v49, %v19866_v28  ;;  %v13883_v58 = vcombine.low %v8618_v14, %v8628_v27  ;;  %v6061_v33 = vpop.f32.mrf.mxu0  ;;  %v15329_v10 = vpop.f32.mrf.mxu1  ;;  %v19952_v49 = vld [vmem:[#allocation3 + $0x68] sm:$0x1] }
 0x29e   : > { %v9032_v42 = vsel %vm17071_vm14, %v9030_v25, %v9031_v26  ;;  %v8643_v23 = vshrl.u32 %v19774_v20, 16  ;;  %15637 = vmatpush3.bf16.msra.mxu1 %v16326_v19  ;;  %v8641_v57 = vrot.slane %v8639_v56, 5  ;;  %v8649_v1 = vshll.u32 %v19791_v24, 16  ;;  %v8545_v20 = vld [vmem:[#allocation3 + $0x3c] sm:$0xf] }
 0x29f   : > { %v13910_v29 = vcombine.low %v9029_v7, %v9032_v42  ;;  %v8636_v21 = vor.u32 %v8635_v6, %v8632_v30  ;;  %15638 = vmatprep.subr.bf16.mxu1 %v16328_v37  ;;  %v19930_v12 = vadd.f32 %v15329_v10, %v19879_v22  ;;  %15550 = vmatprep.mubr.bf16.mxu0 %v13883_v58  ;;  %v13903_v11 = vrot.slane %v8965_v34, 9  ;;  %v6287_v52 = vpop.f32.mrf.mxu1  ;;  %v15304_v17 = vpop.f32.mrf.mxu0 }
 0x2a0   : > { %15597 = vmatpush3.bf16.msra.mxu0 %v16323_v9  ;;  %v8645_v28 = vrot.slane %v8643_v23, 4  ;;  %v9035_v48 = vrot.slane %v19908_v41, 5  ;;  %v8651_v60 = vrot.slane %v8649_v1, 5  ;;  %v9038_v3 = vrot.slane %v19917_v53, 5  ;;  %v16329_v23 = vld [vmem:[#allocation9 + $0x198] sm:$0xff]  }
 0x2a1   : > { %15587 = vmatmul.mubr.bf16.gmra.mxu1 %v13910_v29  ;;  %v8637_v19 = vrot.slane %v8636_v21, 4  ;;  %15598 = vmatprep.subr.bf16.mxu0 %v16325_v18  ;;  %v6100_v24 = vadd.f32 %v15301_v16, %v19786_v32  ;;  %v19935_v22 = vadd.f32 %v6287_v52, %v6094_v8  ;;  %v15332_v63 = vpop.f32.mrf.mxu1  ;;  %v8654_v40 = vshrl.u32 %v8545_v20, 16  ;;  %v19942_v32 = vld [vmem:[#allocation9 + $0x78] sm:$0xff]   ;;  %v19950_v16 = vld [vmem:[#allocation3 + $0x64] sm:$0xf]  ;;  %v6074_v42 = vpop.f32.mrf.mxu0 }
 0x2a2   : > { %v8646_v26 = vor.u32 %v8645_v28, %v8641_v57  ;;  %v9036_v9 = vsel %vm17071_vm14, %v13903_v11, %v9035_v48  ;;  %v9037_v45 = vrot.slane %v9035_v48, 4  ;;  %15639 = vmatpush3.bf16.msra.mxu1 %v16328_v37  ;;  %v8657_v14 = vshll.u32 %v8545_v20, 16  ;;  %v8548_v48 = vld [vmem:[#allocation3 + $0x48] sm:$0xf] }
 0x2a3   : > { %v8642_v0 = vsel %vm16892_vm11, %v8637_v19, %v8641_v57  ;;  %v8663_v7 = vshll.u32 %v19827_v44, 16  ;;  %15640 = vmatprep.subr.bf16.mxu1 %v16330_v55  ;;  %v19945_v8 = vadd.f32 %v15332_v63, %v19898_v50  ;;  %v8667_v37 = vshrl.u32 %v19827_v44, 16  ;;  %v6300_v27 = vpop.f32.mrf.mxu1  ;;  %v8966_v50 = vld [vmem:[#allocation3 + $0x60] sm:$0xe] }
 0x2a4   : > { %v8647_v25 = vrot.slane %v8646_v26, 4  ;;  %v9039_v34 = vsel %vm17071_vm14, %v9037_v45, %v9038_v3  ;;  %15599 = vmatpush3.bf16.msra.mxu0 %v16325_v18  ;;  %v8656_v6 = vrot.slane %v8654_v40, 4  ;;  %v8659_v56 = vrot.slane %v8657_v14, 5  ;;  %v15305_v14 = vpop.f32.mrf.mxu0 }
 0x2a5   : > { %v13911_v30 = vcombine.low %v9036_v9, %v9039_v34  ;;  %v8665_v58 = vrot.slane %v8663_v7, 5  ;;  %15600 = vmatprep.subr.bf16.mxu0 %v16327_v35  ;;  %v19955_v10 = vadd.f32 %v6300_v27, %v19906_v62  ;;  %v8669_v18 = vrot.slane %v8667_v37, 4  ;;  %v15333_v57 = vpop.f32.mrf.mxu1  ;;  %v9501_v9 = vld [vmem:[#allocation3 + $0x1c] sm:$0xf]  ;;  %v16332_v7 = vld [vmem:[#allocation9 + $0x188] sm:$0xff]  }
 0x2a6   : > { %v8652_v44 = vsel %vm16892_vm11, %v8647_v25, %v8651_v60  ;;  %v8673_v29 = vshll.u32 %v19829_v13, 16  ;;  %15641 = vmatpush3.bf16.msra.mxu1 %v16330_v55  ;;  %v8660_v1 = vor.u32 %v8659_v56, %v8656_v6  ;;  %v6098_v28 = vadd.f32 %v6061_v33, %v19799_v47 }
 0x2a7   : > { %v13884_v21 = vcombine.low %v8642_v0, %v8652_v44  ;;  %15590 = vmatprep.mubr.bf16.mxu1 %v13911_v30  ;;  %v6103_v11 = vadd.f32 %v15304_v17, %v19816_v2  ;;  %v19962_v20 = vadd.f32 %v15333_v57, %v6100_v24  ;;  %v8670_v62 = vor.u32 %v8669_v18, %v8665_v58  ;;  %v6303_v55 = vpop.f32.mrf.mxu1  ;;  %v16331_v2 = vld [vmem:[#allocation9 + $0x190] sm:$0xff]   ;;  %v9502_v30 = vld [vmem:[#allocation3 + $0x20] sm:$0x1]  ;;  %v8551_v57 = vld [vmem:[#allocation3 + $0x54] sm:$0xf] }
 0x2a8   : > { %v8675_v52 = vrot.slane %v8673_v29, 5  ;;  %15601 = vmatpush3.bf16.msra.mxu0 %v16327_v35  ;;  %v6101_v19 = vadd.f32 %v6074_v42, %v19834_v38  ;;  %15690 = vmatprep.subr.bf16.mxu1 %v19942_v32  ;;  %v8661_v13 = vrot.slane %v8660_v1, 4  ;;  %v13904_v60 = vrot.slane %v8966_v50, 9  ;;  %v9500_v35 = vld [vmem:[#allocation3 + $0x18] sm:$0xf] }
 0x2a9   : > { %15551 = vmatmul.mubr.bf16.gmra.mxu0 %v13884_v21  ;;  %v9042_v3 = vrot.slane %v19950_v16, 5  ;;  %v9045_v47 = vrot.slane %v19952_v49, 5  ;;  %15602 = vmatprep.subr.bf16.mxu0 %v16329_v23  ;;  %v8671_v33 = vrot.slane %v8670_v62, 4  ;;  %v19968_v24 = vadd.f32 %v6303_v55, %v6098_v28  ;;  %v15336_v45 = vpop.f32.mrf.mxu1  ;;  %v6077_v62 = vpop.f32.mrf.mxu0 }
 0x2aa   : > { %v8678_v17 = vshrl.u32 %v8548_v48, 16  ;;  %v8681_v26 = vshll.u32 %v8548_v48, 16  ;;  %v8666_v38 = vsel %vm16892_vm11, %v8661_v13, %v8665_v58  ;;  %v8687_v40 = vshll.u32 %v19882_v59, 16 }
 0x2ab   : > { %v9043_v63 = vsel %vm17071_vm14, %v13904_v60, %v9042_v3  ;;  %v9044_v0 = vrot.slane %v9042_v3, 4  ;;  %v8676_v25 = vsel %vm16892_vm11, %v8671_v33, %v8675_v52  ;;  %v19977_v34 = vadd.f32 %v15336_v45, %v6103_v11  ;;  %v6316_v56 = vpop.f32.mrf.mxu1 }
 0x2ac   : > { %v8680_v37 = vrot.slane %v8678_v17, 4  ;;  %v8683_v27 = vrot.slane %v8681_v26, 5  ;;  %15603 = vmatpush3.bf16.msra.mxu0 %v16329_v23  ;;  %v13885_v6 = vcombine.low %v8666_v38, %v8676_v25  ;;  %v8689_v42 = vrot.slane %v8687_v40, 5  ;;  %v15356_v40 = vpop.f32.mrf.mxu0 }
 0x2ad   : > { %v9046_v58 = vsel %vm17071_vm14, %v9044_v0, %v9045_v47  ;;  %v8691_v50 = vshrl.u32 %v19882_v59, 16  ;;  %15604 = vmatprep.subr.bf16.mxu0 %v16331_v2  ;;  %v19982_v44 = vadd.f32 %v6316_v56, %v6101_v19  ;;  %v8697_v21 = vshll.u32 %v19884_v31, 16  ;;  %v15337_v48 = vpop.f32.mrf.mxu1  ;;  %v16334_v31 = vld [vmem:[#allocation9 + $0x180] sm:$0xff]  }
 0x2ae   : > { %v13912_v18 = vcombine.low %v9043_v63, %v9046_v58  ;;  %v8684_v29 = vor.u32 %v8683_v27, %v8680_v37  ;;  %15554 = vmatprep.mubr.bf16.mxu0 %v13885_v6  ;;  %v9525_v28 = vshrl.u32 %v9500_v35, 16  ;;  %v9528_v23 = vshll.u32 %v9500_v35, 16  ;;  %v984_v58 = vld [vmem:[#allocation3 + $0x6c] sm:$0x1] }
 0x2af   : > { %v8693_v1 = vrot.slane %v8691_v50, 4  ;;  %v9534_v11 = vshll.u32 %v9501_v9, 16  ;;  %v8699_v13 = vrot.slane %v8697_v21, 5  ;;  %v9538_v55 = vshrl.u32 %v9501_v9, 16  ;;  %v6319_v9 = vpop.f32.mrf.mxu1  ;;  %v9503_v21 = vld [vmem:[#allocation3 + $0x24] sm:$0xf] }
 0x2b0   : > { %15591 = vmatmul.mubr.bf16.gmra.mxu1 %v13912_v18  ;;  %v8685_v52 = vrot.slane %v8684_v29, 4  ;;  %v9544_v59 = vshll.u32 %v9502_v30, 16  ;;  %15605 = vmatpush3.bf16.msra.mxu0 %v16331_v2  ;;  %v9527_v60 = vrot.slane %v9525_v28, 4  ;;  %v9530_v3 = vrot.slane %v9528_v23, 5  ;;  %v987_v2 = vld [vmem:[#allocation3 + $0x78] sm:$0x1] }
 0x2b1   : > { %v8694_v19 = vor.u32 %v8693_v1, %v8689_v42  ;;  %v9536_v47 = vrot.slane %v9534_v11, 5  ;;  %15606 = vmatprep.subr.bf16.mxu0 %v16332_v7  ;;  %v9540_v17 = vrot.slane %v9538_v55, 4  ;;  %v6104_v35 = vadd.f32 %v15305_v14, %v19848_v54  ;;  %v19994_v1 = vld [vmem:[#allocation9 + $0x238] sm:$0xff]  }
 0x2b2   : > { %v8690_v33 = vsel %vm16892_vm11, %v8685_v52, %v8689_v42  ;;  %v9546_v26 = vrot.slane %v9544_v59, 5  ;;  %v9531_v45 = vor.u32 %v9530_v3, %v9527_v60  ;;  %v8702_v63 = vshrl.u32 %v8551_v57, 16  ;;  %v15388_v11 = vpop.f32.mrf.mxu1 }
 0x2b3   : > { %v8695_v38 = vrot.slane %v8694_v19, 4  ;;  %v8705_v0 = vshll.u32 %v8551_v57, 16  ;;  %v9541_v25 = vor.u32 %v9540_v17, %v9536_v47  ;;  %v19988_v37 = vadd.f32 %v15337_v48, %v6104_v35  ;;  %v9504_v57 = vld [vmem:[#allocation3 + $0x28] sm:$0xf]  ;;  %v6693_v48 = vpop.f32.mrf.mxu0  ;;  %v8554_v35 = vld [vmem:[#allocation3 + $0x60] sm:$0xf] }
 0x2b4   : > { %v8711_v27 = vshll.u32 %v19908_v41, 16  ;;  %v8715_v30 = vshrl.u32 %v19908_v41, 16  ;;  %15607 = vmatpush3.bf16.msra.mxu0 %v16332_v7  ;;  %v9532_v56 = vrot.slane %v9531_v45, 4  ;;  %v8704_v54 = vrot.slane %v8702_v63, 4 }
 0x2b5   : > { %v8700_v6 = vsel %vm16892_vm11, %v8695_v38, %v8699_v13  ;;  %v8707_v14 = vrot.slane %v8705_v0, 5  ;;  %15608 = vmatprep.subr.bf16.mxu0 %v16334_v31  ;;  %v9542_v50 = vrot.slane %v9541_v25, 4  ;;  %v8721_v28 = vshll.u32 %v19917_v53, 16  ;;  %v9505_v53 = vld [vmem:[#allocation3 + $0x2c] sm:$0x1]  ;;  %v6990_v38 = vpop.f32.mrf.mxu1 }
 0x2b6   : > { %v13886_v42 = vcombine.low %v8690_v33, %v8700_v6  ;;  %v8713_v18 = vrot.slane %v8711_v27, 5  ;;  %v8717_v29 = vrot.slane %v8715_v30, 4  ;;  %v9537_v41 = vsel %vm16892_vm11, %v9532_v56, %v9536_v47  ;;  %v20018_v56 = vld [vmem:[#allocation10 + $0x1] ss:$0 sm:$0xff] }
 0x2b7   : > { %v8708_v7 = vor.u32 %v8707_v14, %v8704_v54  ;;  %v6102_v23 = vadd.f32 %v6077_v62, %v19856_v61  ;;  %v9547_v52 = vsel %vm16892_vm11, %v9542_v50, %v9546_v26  ;;  %v6758_v55 = vadd.f32 %v15356_v40, %v19873_v51 }
 0x2b8   : > { %15555 = vmatmul.mubr.bf16.gmra.mxu0 %v13886_v42  ;;  %v8718_v13 = vor.u32 %v8717_v29, %v8713_v18  ;;  %v988_v19 = vsel %vm16835_vm3, 0, %v987_v2  ;;  %v13937_v60 = vcombine.low %v9537_v41, %v9547_v52  ;;  %v8723_v47 = vrot.slane %v8721_v28, 5  ;;  %v20023_v41 = vpop.f32.mrf.mxu0 }
 0x2b9   : > { %v8709_v3 = vrot.slane %v8708_v7, 4  ;;  %v20005_v33 = vadd.f32 %v6319_v9, %v6102_v23  ;;  %989 = vst [vmem:[#allocation3 + $0x78] sm:$0x1] %v988_v19  ;;  %15609 = vmatpush3.bf16.msra.mxu0 %v16334_v31  ;;  %v7055_v62 = vadd.f32 %v15388_v11, %v6758_v55  ;;  %v6756_v17 = vadd.f32 %v6693_v48, %v19887_v39  ;;  %v20015_v9 = vld [vmem:[#allocation10] ss:$0 sm:$0xff] }
 0x2ba   : > { %v8719_v61 = vrot.slane %v8718_v13, 4  ;;  %v985_v26 = vsel %vm16835_vm3, 0, %v984_v58  ;;  %15658 = vmatprep.subr.bf16.mxu0 %v19994_v1  ;;  %15642 = vmatprep.mubr.bf16.mxu1 %v13937_v60  ;;  %v9549_v45 = vshrl.u32 %v9503_v21, 16  ;;  %v9552_v63 = vshll.u32 %v9503_v21, 16  ;;  %v9506_v11 = vld [vmem:[#allocation3 + $0x30] sm:$0xf] }
 0x2bb   : > { %v8714_v51 = vsel %vm16892_vm11, %v8709_v3, %v8713_v18  ;;  %986 = vst [vmem:[#allocation3 + $0x6c] sm:$0x1] %v985_v26  ;;  %v9558_v0 = vshll.u32 %v9504_v57, 16  ;;  %v7071_v39 = vmul.f32 %v20015_v9, %v7055_v62  ;;  %v7053_v40 = vadd.f32 %v6990_v38, %v6756_v17  ;;  %v20032_v26 = vpop.f32.mrf.mxu0 }
 0x2bc   : > { %v8724_v31 = vsel %vm16892_vm11, %v8719_v61, %v8723_v47  ;;  %v9562_v2 = vshrl.u32 %v9504_v57, 16  ;;  %v9551_v27 = vrot.slane %v9549_v45, 4  ;;  %v9554_v30 = vrot.slane %v9552_v63, 5  ;;  %v9507_v63 = vld [vmem:[#allocation3 + $0x34] sm:$0xf] }
 0x2bd   : > { %v13887_v25 = vcombine.low %v8714_v51, %v8724_v31  ;;  %v9560_v6 = vrot.slane %v9558_v0, 5  ;;  %v7087_v54 = vadd.f32 %v20018_v56, %v7071_v39  ;;  %v7069_v14 = vmul.f32 %v20015_v9, %v7053_v40  ;;  %v9508_v0 = vld [vmem:[#allocation3 + $0x38] sm:$0x1] }
 0x2be   : > { %v9564_v58 = vrot.slane %v9562_v2, 4  ;;  %v9568_v42 = vshll.u32 %v9505_v53, 16  ;;  %v9555_v50 = vor.u32 %v9554_v30, %v9551_v27  ;;  %v8726_v18 = vshrl.u32 %v8554_v35, 16 }
 0x2bf   : > { %15558 = vmatprep.mubr.bf16.mxu0 %v13887_v25  ;;  %v8729_v29 = vshll.u32 %v8554_v35, 16  ;;  %v8735_v21 = vshll.u32 %v19950_v16, 16  ;;  %v7103_v57 = vmax.f32 %v7087_v54, 0.0  ;;  %v7085_v7 = vadd.f32 %v20018_v56, %v7069_v14  ;;  %v16344_v25 = vld [vmem:[#allocation9 + $0x70] sm:$0xff]  }
 0x2c0   : > { %v9565_v28 = vor.u32 %v9564_v58, %v9560_v6  ;;  %v9570_v23 = vrot.slane %v9568_v42, 5  ;;  %v9556_v48 = vrot.slane %v9555_v50, 4  ;;  %v8728_v52 = vrot.slane %v8726_v18, 4  ;;  %v7333_v31 = vld [vmem:[#allocation3 + $0x78] sm:$0xf]  ;;  %v15389_v18 = vpop.f32.mrf.mxu1 }
 0x2c1   : > { %v8731_v13 = vrot.slane %v8729_v29, 5  ;;  %v20026_v55 = vrot.slane %v8735_v21, 5  ;;  %v14235_v19 = vpack.c.bf16 %v7103_v57, %v7103_v57  ;;  %v7101_v60 = vmax.f32 %v7085_v7, 0.0  ;;  %v1041_v50 = vld [vmem:[#allocation3 + $0x80] sm:$0x1]  ;;  %v15360_v29 = vpop.f32.mrf.mxu0 }
 0x2c2   : > { %v9566_v3 = vrot.slane %v9565_v28, 4  ;;  %v8739_v47 = vshrl.u32 %v19950_v16, 16  ;;  %v9561_v53 = vsel %vm16892_vm11, %v9556_v48, %v9560_v6  ;;  %v8745_v62 = vshll.u32 %v19952_v49, 16  ;;  %v16348_v48 = vld [vmem:[#allocation9 + $0x68] sm:$0xff]  }
 0x2c3   : > { %v8732_v61 = vor.u32 %v8731_v13, %v8728_v52  ;;  %v9573_v17 = vshrl.u32 %v9506_v11, 16  ;;  %v7183_v35 = vshrl.u32 %v14235_v19, 16  ;;  %v7186_v51 = vshll.u32 %v14235_v19, 16  ;;  %v7326_v52 = vld [vmem:[#allocation3 + $0x6c] sm:$0xf] }
 0x2c4   : > { %v14233_v38 = vpack.c.bf16 %v7101_v60, %v7101_v60  ;;  %v9571_v45 = vsel %vm16892_vm11, %v9566_v3, %v9570_v23  ;;  %v8741_v40 = vrot.slane %v8739_v47, 4  ;;  %v8747_v2 = vrot.slane %v8745_v62, 5  ;;  %v1038_v23 = vld [vmem:[#allocation3 + $0x74] sm:$0x1]  ;;  %v993_v60 = vld [vmem:[#allocation3 + $0x90] sm:$0x1] }
 0x2c5   : > { %v13938_v39 = vcombine.low %v9561_v53, %v9571_v45  ;;  %v8733_v16 = vrot.slane %v8732_v61, 4  ;;  %v20036_v27 = vrot.slane %v7183_v35, 7  ;;  %v9575_v6 = vrot.slane %v9573_v17, 4  ;;  %v9509_v17 = vld [vmem:[#allocation3 + $0x3c] sm:$0xf] }
 0x2c6   : > { %v7166_v49 = vshrl.u32 %v14233_v38, 16  ;;  %v7169_v30 = vshll.u32 %v14233_v38, 16  ;;  %v8742_v14 = vor.u32 %v8741_v40, %v20026_v55  ;;  %v9576_v58 = vshll.u32 %v9506_v11, 16  ;;  %v16333_v45 = vld [vmem:[#allocation3 + $0x18] sm:$0xff]  }
 0x2c7   : > { %15643 = vmatmul.mubr.bf16.vlgmr.msra.gmra.mxu1 %v13938_v39  ;;  %v8738_v54 = vsel %vm16892_vm11, %v8733_v16, %v20026_v55  ;;  %v9582_v42 = vshll.u32 %v9507_v63, 16  ;;  %v7188_v21 = vor.u32 %v7186_v51, %v20036_v27  ;;  %v7189_v57 = vrot.slane %v20036_v27, 4  ;;  %v9510_v39 = vld [vmem:[#allocation3 + $0x40] sm:$0xf] }
 0x2c8   : > { %v20044_v7 = vrot.slane %v7166_v49, 7  ;;  %v9586_v28 = vshrl.u32 %v9507_v63, 16  ;;  %15691 = vmatpush3.bf16.msra.mxu1 %v19942_v32  ;;  %v8743_v13 = vrot.slane %v8742_v14, 4  ;;  %v9578_v19 = vrot.slane %v9576_v58, 5  ;;  %v6993_v63 = vpop.f32.mrf.mxu1  ;;  %v16350_v14 = vld [vmem:[#allocation9 + $0x60] sm:$0xff]  }
 0x2c9   : > { %v9584_v55 = vrot.slane %v9582_v42, 5  ;;  %v9592_v11 = vshll.u32 %v9508_v0, 16  ;;  %15692 = vmatprep.subr.bf16.mxu1 %v16344_v25  ;;  %v7334_v47 = vsel %vm16867_vm9, %v7188_v21, %v7333_v31  ;;  %v6759_v38 = vadd.f32 %v20023_v41, %v19894_v43  ;;  %v6709_v0 = vpop.f32.mrf.mxu0  ;;  %v9512_v21 = vld [vmem:[#allocation3 + $0x48] sm:$0xf] }
 0x2ca   : > { %v7171_v53 = vor.u32 %v7169_v30, %v20044_v7  ;;  %v7172_v61 = vrot.slane %v20044_v7, 4  ;;  %v9588_v62 = vrot.slane %v9586_v28, 4  ;;  %7335 = vst [vmem:[#allocation3 + $0x78] sm:$0xf] %v7334_v47  ;;  %v8748_v32 = vsel %vm16892_vm11, %v8743_v13, %v8747_v2  ;;  %v15392_v58 = vpop.f32.mrf.mxu1 }
 0x2cb   : > { %v9579_v35 = vor.u32 %v9578_v19, %v9575_v6  ;;  %v9594_v51 = vrot.slane %v9592_v11, 5  ;;  %v13888_v16 = vcombine.low %v8738_v54, %v8748_v32  ;;  %v1042_v30 = vsel %vm16840_vm4, 0, %v1041_v50 }
 0x2cc   : > { %v7327_v31 = vsel %vm16867_vm9, %v7171_v53, %v7326_v52  ;;  %v9589_v40 = vor.u32 %v9588_v62, %v9584_v55  ;;  %15693 = vmatpush3.bf16.msra.mxu1 %v16344_v25  ;;  %1043 = vst [vmem:[#allocation3 + $0x80] sm:$0x1] %v1042_v30  ;;  %v7056_v6 = vadd.f32 %v15389_v18, %v6759_v38  ;;  %v1039_v41 = vsel %vm16840_vm4, 0, %v1038_v23  ;;  %v9511_v18 = vld [vmem:[#allocation3 + $0x44] sm:$0x1] }
 0x2cd   : > { %7328 = vst [vmem:[#allocation3 + $0x6c] sm:$0xf] %v7327_v31  ;;  %v9580_v2 = vrot.slane %v9579_v35, 4  ;;  %v6757_v43 = vadd.f32 %v20032_v26, %v19901_v15  ;;  %15694 = vmatprep.subr.bf16.mxu1 %v16348_v48  ;;  %15559 = vmatmul.mubr.bf16.gmra.mxu0 %v13888_v16  ;;  %1040 = vst [vmem:[#allocation3 + $0x74] sm:$0x1] %v1039_v41  ;;  %v6762_v42 = vadd.f32 %v15360_v29, %v19911_v36 }
 0x2ce   : > { %v9590_v54 = vrot.slane %v9589_v40, 4  ;;  %v20065_v25 = vadd.f32 %v6709_v0, %v19923_v46  ;;  %v994_v50 = vsel %vm16835_vm3, 0, %v993_v60  ;;  %v7072_v26 = vmul.f32 %v20015_v9, %v7056_v6  ;;  %15610 = vmatprep.mubr.bf16.mxu0 %v16333_v45  ;;  %v20080_v45 = vpop.f32.mrf.mxu0  ;;  %v20083_v40 = vld [vmem:[#allocation3 + $0x4c] sm:$0xf] }
 0x2cf   : > { %v9585_v15 = vsel %vm16892_vm11, %v9580_v2, %v9584_v55  ;;  %v7054_v28 = vadd.f32 %v6993_v63, %v6757_v43  ;;  %995 = vst [vmem:[#allocation3 + $0x90] sm:$0x1] %v994_v50  ;;  %v9597_v23 = vshrl.u32 %v9509_v17, 16  ;;  %v7059_v29 = vadd.f32 %v15392_v58, %v6762_v42  ;;  %v16353_v55 = vld [vmem:[#allocation9 + $0x58] sm:$0xff]   ;;  %v16338_v63 = vld [vmem:[#allocation9 + $0x230] sm:$0xff]   ;;  %v20085_v2 = vpop.f32.mrf.mxu1 }
 0x2d0   : > { %v9595_v36 = vsel %vm16892_vm11, %v9590_v54, %v9594_v51  ;;  %v9600_v46 = vshll.u32 %v9509_v17, 16  ;;  %v9606_v52 = vshll.u32 %v9510_v39, 16  ;;  %15695 = vmatpush3.bf16.msra.mxu1 %v16348_v48  ;;  %v7088_v19 = vadd.f32 %v20018_v56, %v7072_v26  ;;  %v16335_v48 = vld [vmem:[#allocation3 + $0x24] sm:$0xff]   ;;  %v16336_v58 = vld [vmem:[#allocation3 + $0x30] sm:$0xff]  }
 0x2d1   : > { %v13939_v13 = vcombine.low %v9585_v15, %v9595_v36  ;;  %v7070_v11 = vmul.f32 %v20015_v9, %v7054_v28  ;;  %v9599_v60 = vrot.slane %v9597_v23, 4  ;;  %15696 = vmatprep.subr.bf16.mxu1 %v16350_v14  ;;  %v7075_v47 = vmul.f32 %v20015_v9, %v7059_v29  ;;  %v16355_v54 = vld [vmem:[#allocation9 + $0x50] sm:$0xff]  }
 0x2d2   : > { %v9602_v53 = vrot.slane %v9600_v46, 5  ;;  %v20077_v62 = vrot.slane %v9606_v52, 5  ;;  %v9610_v32 = vshrl.u32 %v9510_v39, 16  ;;  %v7104_v35 = vmax.f32 %v7088_v19, 0.0  ;;  %v20095_v52 = vld [vmem:[#allocation3 + $0x50] sm:$0x1]  ;;  %v20097_v19 = vpop.f32.mrf.mxu1 }
 0x2d3   : > { %15646 = vmatprep.mubr.bf16.mxu1 %v13939_v13  ;;  %v7086_v17 = vadd.f32 %v20018_v56, %v7070_v11  ;;  %v9616_v51 = vshll.u32 %v9511_v18, 16  ;;  %v9621_v38 = vshrl.u32 %v9512_v21, 16  ;;  %v7091_v0 = vadd.f32 %v20018_v56, %v7075_v47  ;;  %v16341_v11 = vld [vmem:[#allocation9 + $0x228] sm:$0xff]  }
 0x2d4   : > { %v9603_v31 = vor.u32 %v9602_v53, %v9599_v60  ;;  %v9612_v16 = vrot.slane %v9610_v32, 4  ;;  %v9624_v30 = vshll.u32 %v9512_v21, 16  ;;  %15697 = vmatpush3.bf16.msra.mxu1 %v16350_v14  ;;  %v14236_v39 = vpack.c.bf16 %v7104_v35, %v7104_v35  ;;  %v20090_v14 = vpop.f32.mrf.mxu0  ;;  %v20099_v60 = vld [vmem:[#allocation9 + $0x48] sm:$0xff]  }
 0x2d5   : > { %v7102_v6 = vmax.f32 %v7086_v17, 0.0  ;;  %v9618_v43 = vrot.slane %v9616_v51, 5  ;;  %v9623_v41 = vrot.slane %v9621_v38, 4  ;;  %15698 = vmatprep.subr.bf16.mxu1 %v16353_v55  ;;  %v7107_v42 = vmax.f32 %v7091_v0, 0.0  ;;  %15611 = vmatmul.mubr.bf16.vlgmr.msra.gmra.mxu0 %v16335_v48  ;;  %v7330_v17 = vld [vmem:[#allocation3 + $0x74] sm:$0x1] }
 0x2d6   : > { %v9604_v50 = vrot.slane %v9603_v31, 4  ;;  %v9613_v18 = vor.u32 %v9612_v16, %v20077_v62  ;;  %v9626_v15 = vrot.slane %v9624_v30, 5  ;;  %v7191_v26 = vshrl.u32 %v14236_v39, 16  ;;  %15614 = vmatprep.mubr.bf16.mxu0 %v16336_v58  ;;  %15659 = vmatpush3.bf16.msra.mxu0 %v19994_v1  ;;  %v7337_v1 = vld [vmem:[#allocation3 + $0x80] sm:$0x1] }
 0x2d7   : > { %v7194_v28 = vshll.u32 %v14236_v39, 16  ;;  %v14234_v23 = vpack.c.bf16 %v7102_v6, %v7102_v6  ;;  %v9630_v21 = vshll.u32 %v20083_v40, 16  ;;  %v14239_v36 = vpack.c.bf16 %v7107_v42, %v7107_v42  ;;  %15660 = vmatprep.subr.bf16.mxu0 %v16338_v63  ;;  %v990_v0 = vld [vmem:[#allocation3 + $0x84] sm:$0x1]  ;;  %v16339_v31 = vld [vmem:[#allocation3 + $0x3c] sm:$0xff]  }
 0x2d8   : > { %v9609_v29 = vsel %vm16892_vm11, %v9604_v50, %v20077_v62  ;;  %v9614_v46 = vrot.slane %v9613_v18, 4  ;;  %v9627_v13 = vor.u32 %v9626_v15, %v9623_v41  ;;  %15699 = vmatpush3.bf16.msra.mxu1 %v16353_v55  ;;  %v7193_v47 = vrot.slane %v7191_v26, 7  ;;  %v7347_v39 = vld [vmem:[#allocation3 + $0x90] sm:$0xf]  ;;  %v15364_v41 = vpop.f32.mrf.mxu0  ;;  %v1047_v18 = vld [vmem:[#allocation3 + $0x98] sm:$0x1]  ;;  %v7009_v26 = vpop.f32.mrf.mxu1 }
 0x2d9   : > { %v7174_v53 = vshrl.u32 %v14234_v23, 16  ;;  %v7177_v32 = vshll.u32 %v14234_v23, 16  ;;  %v20101_v35 = vrot.slane %v9630_v21, 5  ;;  %15700 = vmatprep.subr.bf16.mxu1 %v16355_v54  ;;  %v7217_v62 = vshrl.u32 %v14239_v36, 16  ;;  %v1044_v15 = vld [vmem:[#allocation3 + $0x8c] sm:$0x1] }
 0x2da   : > { %v7220_v51 = vshll.u32 %v14239_v36, 16  ;;  %v9619_v48 = vsel %vm16892_vm11, %v9614_v46, %v9618_v43  ;;  %v20105_v38 = vrot.slane %v9627_v13, 4  ;;  %v7196_v55 = vor.u32 %v7194_v28, %v7193_v47  ;;  %15661 = vmatpush3.bf16.msra.mxu0 %v16338_v63  ;;  %v16343_v28 = vld [vmem:[#allocation9 + $0x220] sm:$0xff]  }
 0x2db   : > { %v7198_v16 = vrot.slane %v7193_v47, 4  ;;  %v7176_v30 = vrot.slane %v7174_v53, 7  ;;  %v13940_v6 = vcombine.low %v9609_v29, %v9619_v48  ;;  %v20107_v58 = vrot.slane %v7217_v62, 7  ;;  %15662 = vmatprep.subr.bf16.mxu0 %v16341_v11  ;;  %v999_v47 = vld [vmem:[#allocation3 + $0xa8] sm:$0x1]  ;;  %v6725_v48 = vpop.f32.mrf.mxu0 }
 0x2dc   : > { %v9633_v42 = vsel %vm16892_vm11, %v20105_v38, %v20101_v35  ;;  %v9634_v43 = vshrl.u32 %v20083_v40, 16  ;;  %v9640_v50 = vshll.u32 %v20095_v52, 16  ;;  %15701 = vmatpush3.bf16.msra.mxu1 %v16355_v54  ;;  %v7197_v23 = vsel %vm16880_vm10, %v7189_v57, %v7196_v55  ;;  %v16340_v40 = vld [vmem:[#allocation3 + $0x48] sm:$0xff]   ;;  %v9515_v53 = vld [vmem:[#allocation3 + $0x54] sm:$0xf]  ;;  %v16359_v57 = vld [vmem:[#allocation9 + $0x40] sm:$0xff]  }
 0x2dd   : > { %v7338_v21 = vsel %vm16835_vm3, %v7198_v16, %v7337_v1  ;;  %v7179_v36 = vor.u32 %v7177_v32, %v7176_v30  ;;  %v7181_v29 = vrot.slane %v7176_v30, 4  ;;  %15647 = vmatmul.mubr.bf16.gmra.mxu1 %v13940_v6  ;;  %15702 = vmatprep.subr.bf16.mxu1 %v20099_v60  ;;  %7336 = vst [vmem:[#allocation3 + $0x7c] sm:$0xf] %v7197_v23  ;;  %v7223_v54 = vrot.slane %v20107_v58, 4  ;;  %v16347_v55 = vld [vmem:[#allocation9 + $0x218] sm:$0xff]  }
 0x2de   : > { %7339 = vst [vmem:[#allocation3 + $0x80] sm:$0x1] %v7338_v21  ;;  %v7222_v46 = vor.u32 %v7220_v51, %v20107_v58  ;;  %v9636_v13 = vrot.slane %v9634_v43, 4  ;;  %v9642_v27 = vrot.slane %v9640_v50, 5  ;;  %15615 = vmatmul.mubr.bf16.gmra.mxu0 %v16339_v31  ;;  %v6763_v62 = vadd.f32 %v20080_v45, %v19930_v12  ;;  %v15396_v45 = vpop.f32.mrf.mxu1  ;;  %v20147_v30 = vld [vmem:[#allocation3 + $0x58] sm:$0xf] }
 0x2df   : > { %v7180_v1 = vsel %vm16880_vm10, %v7172_v61, %v7179_v36  ;;  %v7331_v32 = vsel %vm16835_vm3, %v7181_v29, %v7330_v17  ;;  %v991_v51 = vsel %vm16835_vm3, 0, %v990_v0  ;;  %15618 = vmatprep.mubr.bf16.mxu0 %v16340_v40  ;;  %15663 = vmatpush3.bf16.msra.mxu0 %v16341_v11  ;;  %v7057_v17 = vadd.f32 %v20085_v2, %v20065_v25  ;;  %v16346_v36 = vld [vmem:[#allocation3 + $0x60] sm:$0xff]   ;;  %v16349_v29 = vld [vmem:[#allocation9 + $0x210] sm:$0xff]  }
 0x2e0   : > { %7329 = vst [vmem:[#allocation3 + $0x70] sm:$0xf] %v7180_v1  ;;  %7332 = vst [vmem:[#allocation3 + $0x74] sm:$0x1] %v7331_v32  ;;  %v7348_v7 = vsel %vm16867_vm9, %v7222_v46, %v7347_v39  ;;  %v9637_v61 = vor.u32 %v9636_v13, %v20101_v35  ;;  %v6761_v12 = vadd.f32 %v20090_v14, %v19935_v22  ;;  %15664 = vmatprep.subr.bf16.mxu0 %v16343_v28  ;;  %v20154_v39 = vld [vmem:[#allocation3 + $0x5c] sm:$0x1]  ;;  %v20178_v1 = vpop.f32.mrf.mxu1 }
 0x2e1   : > { %992 = vst [vmem:[#allocation3 + $0x84] sm:$0x1] %v991_v51  ;;  %7349 = vst [vmem:[#allocation3 + $0x90] sm:$0xf] %v7348_v7  ;;  %v1048_v11 = vsel %vm16840_vm4, 0, %v1047_v18  ;;  %v7060_v0 = vadd.f32 %v20097_v19, %v6763_v62  ;;  %v6766_v31 = vadd.f32 %v15364_v41, %v19945_v8  ;;  %v1045_v16 = vsel %vm16840_vm4, 0, %v1044_v15  ;;  %15703 = vmatpush3.bf16.msra.mxu1 %v20099_v60 }
 0x2e2   : > { %v9638_v25 = vrot.slane %v9637_v61, 4  ;;  %v7073_v22 = vmul.f32 %v20015_v9, %v7057_v17  ;;  %1049 = vst [vmem:[#allocation3 + $0x98] sm:$0x1] %v1048_v11  ;;  %1046 = vst [vmem:[#allocation3 + $0x8c] sm:$0x1] %v1045_v16  ;;  %v7058_v2 = vadd.f32 %v7009_v26, %v6761_v12  ;;  %v20152_v14 = vadd.f32 %v6725_v48, %v19955_v10  ;;  %v20156_v8 = vld [vmem:[#allocation9 + $0xb8] sm:$0xff]  }
 0x2e3   : > { %15704 = vmatprep.subr.bf16.mxu1 %v16359_v57  ;;  %v7076_v19 = vmul.f32 %v20015_v9, %v7060_v0  ;;  %v1000_v6 = vsel %vm16835_vm3, 0, %v999_v47  ;;  %v7063_v60 = vadd.f32 %v15396_v45, %v6766_v31  ;;  %v9645_v41 = vshrl.u32 %v9515_v53, 16  ;;  %15665 = vmatpush3.bf16.msra.mxu0 %v16343_v28  ;;  %v16345_v15 = vld [vmem:[#allocation3 + $0x54] sm:$0xff]   ;;  %v15365_v47 = vpop.f32.mrf.mxu0  ;;  %v16352_v12 = vld [vmem:[#allocation9 + $0x208] sm:$0xff]  }
 0x2e4   : > { %v9643_v43 = vsel %vm16892_vm11, %v9638_v25, %v9642_v27  ;;  %v7089_v50 = vadd.f32 %v20018_v56, %v7073_v22  ;;  %v7074_v10 = vmul.f32 %v20015_v9, %v7058_v2  ;;  %1001 = vst [vmem:[#allocation3 + $0xa8] sm:$0x1] %v1000_v6  ;;  %v9648_v18 = vshll.u32 %v9515_v53, 16  ;;  %15666 = vmatprep.subr.bf16.mxu0 %v16347_v55  ;;  %v20188_v6 = vld [vmem:[#allocation3 + $0x60] sm:$0xf] }
 0x2e5   : > { %v13941_v26 = vcombine.low %v9633_v42, %v9643_v43  ;;  %v7092_v23 = vadd.f32 %v20018_v56, %v7076_v19  ;;  %v7079_v28 = vmul.f32 %v20015_v9, %v7063_v60  ;;  %v9647_v21 = vrot.slane %v9645_v41, 4  ;;  %15705 = vmatpush3.bf16.msra.mxu1 %v16359_v57  ;;  %v20185_v16 = vpop.f32.mrf.mxu0  ;;  %v20190_v60 = vpop.f32.mrf.mxu1 }
 0x2e6   : > { %v7105_v40 = vmax.f32 %v7089_v50, 0.0  ;;  %v7090_v46 = vadd.f32 %v20018_v56, %v7074_v10  ;;  %v9650_v13 = vrot.slane %v9648_v18, 5  ;;  %v9654_v27 = vshll.u32 %v20147_v30, 16  ;;  %15619 = vmatmul.mubr.bf16.gmra.mxu0 %v16345_v15  ;;  %15754 = vmatprep.subr.bf16.mxu1 %v20156_v8  ;;  %v16354_v18 = vld [vmem:[#allocation9 + $0x200] sm:$0xff]  }
 0x2e7   : > { %15650 = vmatprep.mubr.bf16.mxu1 %v13941_v26  ;;  %v7108_v35 = vmax.f32 %v7092_v23, 0.0  ;;  %v7095_v38 = vadd.f32 %v20018_v56, %v7079_v28  ;;  %v9658_v42 = vshrl.u32 %v20147_v30, 16  ;;  %v9664_v53 = vshll.u32 %v20154_v39, 16  ;;  %15622 = vmatprep.mubr.bf16.mxu0 %v16346_v36  ;;  %v16351_v25 = vld [vmem:[#allocation3 + $0x6c] sm:$0xff]  }
 0x2e8   : > { %v14237_v57 = vpack.c.bf16 %v7105_v40, %v7105_v40  ;;  %v7106_v32 = vmax.f32 %v7090_v46, 0.0  ;;  %v9651_v62 = vor.u32 %v9650_v13, %v9647_v21  ;;  %v20180_v51 = vrot.slane %v9654_v27, 5  ;;  %15667 = vmatpush3.bf16.msra.mxu0 %v16347_v55  ;;  %v7340_v41 = vld [vmem:[#allocation3 + $0x84] sm:$0xf] }
 0x2e9   : > { %v14240_v48 = vpack.c.bf16 %v7108_v35, %v7108_v35  ;;  %v7111_v7 = vmax.f32 %v7095_v38, 0.0  ;;  %v9660_v61 = vrot.slane %v9658_v42, 4  ;;  %v20183_v17 = vadd.f32 %v15365_v47, %v19962_v20  ;;  %15668 = vmatprep.subr.bf16.mxu0 %v16349_v29  ;;  %v7351_v26 = vld [vmem:[#allocation3 + $0x98] sm:$0x1]  ;;  %v7344_v13 = vld [vmem:[#allocation3 + $0x8c] sm:$0x1]  ;;  %v15368_v35 = vpop.f32.mrf.mxu0 }
 0x2ea   : > { %v7200_v45 = vshrl.u32 %v14237_v57, 16  ;;  %v7203_v11 = vshll.u32 %v14237_v57, 16  ;;  %v14238_v0 = vpack.c.bf16 %v7106_v32, %v7106_v32  ;;  %v9652_v31 = vrot.slane %v9651_v62, 4  ;;  %v20195_v47 = vld [vmem:[#allocation3 + $0x64] sm:$0xf]  ;;  %v7025_v62 = vpop.f32.mrf.mxu1 }
 0x2eb   : > { %v7225_v22 = vshrl.u32 %v14240_v48, 16  ;;  %v7228_v2 = vshll.u32 %v14240_v48, 16  ;;  %v14243_v19 = vpack.c.bf16 %v7111_v7, %v7111_v7  ;;  %v9661_v55 = vor.u32 %v9660_v61, %v20180_v51  ;;  %v7361_v61 = vld [vmem:[#allocation3 + $0xa8] sm:$0xf] }
 0x2ec   : > { %v7202_v20 = vrot.slane %v7200_v45, 7  ;;  %v7208_v43 = vshrl.u32 %v14238_v0, 16  ;;  %v7211_v50 = vshll.u32 %v14238_v0, 16  ;;  %v9657_v10 = vsel %vm16892_vm11, %v9652_v31, %v20180_v51  ;;  %15669 = vmatpush3.bf16.msra.mxu0 %v16349_v29  ;;  %v20199_v29 = vld [vmem:[#allocation3 + $0x68] sm:$0x1] }
 0x2ed   : > { %v7227_v15 = vrot.slane %v7225_v22, 7  ;;  %v7251_v23 = vshrl.u32 %v14243_v19, 16  ;;  %v7254_v28 = vshll.u32 %v14243_v19, 16  ;;  %v9662_v21 = vrot.slane %v9661_v55, 4  ;;  %15670 = vmatprep.subr.bf16.mxu0 %v16352_v12  ;;  %v996_v45 = vld [vmem:[#allocation3 + $0x9c] sm:$0x1]  ;;  %v6741_v55 = vpop.f32.mrf.mxu0 }
 0x2ee   : > { %v7205_v36 = vor.u32 %v7203_v11, %v7202_v20  ;;  %v7206_v40 = vrot.slane %v7202_v20, 4  ;;  %v7210_v46 = vrot.slane %v7208_v43, 7  ;;  %v9666_v27 = vrot.slane %v9664_v53, 5  ;;  %15623 = vmatmul.mubr.bf16.gmra.mxu0 %v16351_v25  ;;  %v1053_v22 = vld [vmem:[#allocation3 + $0xb0] sm:$0x1] }
 0x2ef   : > { %v7230_v38 = vor.u32 %v7228_v2, %v7227_v15  ;;  %v7232_v42 = vrot.slane %v7227_v15, 4  ;;  %v20197_v57 = vrot.slane %v7251_v23, 7  ;;  %v9669_v32 = vshrl.u32 %v20188_v6, 16  ;;  %v20214_v2 = vld [vmem:[#allocation9 + $0x38] sm:$0xff]   ;;  %v15400_v15 = vpop.f32.mrf.mxu1 }
 0x2f0   : > { %v7341_v51 = vsel %vm16867_vm9, %v7205_v36, %v7340_v41  ;;  %v7213_v48 = vor.u32 %v7211_v50, %v7210_v46  ;;  %v7215_v7 = vrot.slane %v7210_v46, 4  ;;  %v9667_v53 = vsel %vm16892_vm11, %v9662_v21, %v9666_v27  ;;  %15671 = vmatpush3.bf16.msra.mxu0 %v16352_v12  ;;  %v1050_v21 = vld [vmem:[#allocation3 + $0xa4] sm:$0x1] }
 0x2f1   : > { %7342 = vst [vmem:[#allocation3 + $0x84] sm:$0xf] %v7341_v51  ;;  %v7231_v11 = vsel %vm16880_vm10, %v7223_v54, %v7230_v38  ;;  %v7352_v0 = vsel %vm16835_vm3, %v7232_v42, %v7351_v26  ;;  %v7256_v31 = vor.u32 %v7254_v28, %v20197_v57  ;;  %v7257_v25 = vrot.slane %v20197_v57, 4  ;;  %15672 = vmatprep.subr.bf16.mxu0 %v16354_v18 }
 0x2f2   : > { %7350 = vst [vmem:[#allocation3 + $0x94] sm:$0xf] %v7231_v11  ;;  %7353 = vst [vmem:[#allocation3 + $0x98] sm:$0x1] %v7352_v0  ;;  %v7214_v12 = vsel %vm16880_vm10, %v7206_v40, %v7213_v48  ;;  %v7345_v58 = vsel %vm16835_vm3, %v7215_v7, %v7344_v13  ;;  %v13942_v54 = vcombine.low %v9657_v10, %v9667_v53  ;;  %v9671_v19 = vrot.slane %v9669_v32, 4  ;;  %v7038_v48 = vpop.f32.mrf.mxu1 }
 0x2f3   : > { %7343 = vst [vmem:[#allocation3 + $0x88] sm:$0xf] %v7214_v12  ;;  %7346 = vst [vmem:[#allocation3 + $0x8c] sm:$0x1] %v7345_v58  ;;  %v7362_v20 = vsel %vm16867_vm9, %v7256_v31, %v7361_v61  ;;  %v9672_v41 = vshll.u32 %v20188_v6, 16  ;;  %v9678_v43 = vshll.u32 %v20195_v47, 16  ;;  %v7061_v23 = vadd.f32 %v20178_v1, %v20152_v14  ;;  %v15369_v1 = vpop.f32.mrf.mxu0 }
 0x2f4   : > { %v9682_v50 = vshrl.u32 %v20195_v47, 16  ;;  %7363 = vst [vmem:[#allocation3 + $0xa8] sm:$0xf] %v7362_v20  ;;  %15651 = vmatmul.mubr.bf16.gmra.mxu1 %v13942_v54  ;;  %v9688_v26 = vshll.u32 %v20199_v29, 16  ;;  %v997_v10 = vsel %vm16835_vm3, 0, %v996_v45  ;;  %v6765_v28 = vadd.f32 %v20185_v16, %v19968_v24  ;;  %15673 = vmatpush3.bf16.msra.mxu0 %v16354_v18 }
 0x2f5   : > { %v9674_v6 = vrot.slane %v9672_v41, 5  ;;  %v9680_v36 = vrot.slane %v9678_v43, 5  ;;  %998 = vst [vmem:[#allocation3 + $0x9c] sm:$0x1] %v997_v10  ;;  %v1054_v46 = vsel %vm16840_vm4, 0, %v1053_v22  ;;  %15722 = vmatprep.subr.bf16.mxu0 %v20214_v2  ;;  %v7077_v38 = vmul.f32 %v20015_v9, %v7061_v23  ;;  %v6744_v22 = vpop.f32.mrf.mxu0 }
 0x2f6   : > { %v9684_v40 = vrot.slane %v9682_v50, 4  ;;  %v1005_v13 = vld [vmem:[#allocation3 + $0xc0] sm:$0x1]  ;;  %v9690_v27 = vrot.slane %v9688_v26, 5  ;;  %1055 = vst [vmem:[#allocation3 + $0xb0] sm:$0x1] %v1054_v46  ;;  %v7064_v14 = vadd.f32 %v20190_v60, %v20183_v17  ;;  %v6770_v24 = vadd.f32 %v15368_v35, %v19977_v34 }
 0x2f7   : > { %v1002_v16 = vld [vmem:[#allocation3 + $0xb4] sm:$0x1]  ;;  %v9675_v18 = vor.u32 %v9674_v6, %v9671_v19  ;;  %v1051_v32 = vsel %vm16840_vm4, 0, %v1050_v21  ;;  %v7062_v51 = vadd.f32 %v7025_v62, %v6765_v28  ;;  %v7093_v7 = vadd.f32 %v20018_v56, %v7077_v38  ;;  %v1059_v12 = vld [vmem:[#allocation3 + $0xc8] sm:$0x1] }
 0x2f8   : > { %v9685_v42 = vor.u32 %v9684_v40, %v9680_v36  ;;  %v7080_v61 = vmul.f32 %v20015_v9, %v7064_v14  ;;  %1052 = vst [vmem:[#allocation3 + $0xa4] sm:$0x1] %v1051_v32  ;;  %v6768_v53 = vadd.f32 %v6741_v55, %v19982_v44  ;;  %v1006_v17 = vsel %vm16835_vm3, 0, %v1005_v13  ;;  %v15401_v55 = vpop.f32.mrf.mxu1  ;;  %v1056_v50 = vld [vmem:[#allocation3 + $0xbc] sm:$0x1] }
 0x2f9   : > { %v9676_v34 = vrot.slane %v9675_v18, 4  ;;  %v7078_v35 = vmul.f32 %v20015_v9, %v7062_v51  ;;  %1007 = vst [vmem:[#allocation3 + $0xc0] sm:$0x1] %v1006_v17  ;;  %v7067_v45 = vadd.f32 %v15400_v15, %v6770_v24  ;;  %v7109_v11 = vmax.f32 %v7093_v7, 0.0 }
 0x2fa   : > { %v9686_v60 = vrot.slane %v9685_v42, 4  ;;  %v7096_v62 = vadd.f32 %v20018_v56, %v7080_v61  ;;  %v6771_v0 = vadd.f32 %v15369_v1, %v19988_v37  ;;  %v1003_v31 = vsel %vm16835_vm3, 0, %v1002_v16  ;;  %v7041_v38 = vpop.f32.mrf.mxu1 }
 0x2fb   : > { %v9681_v44 = vsel %vm16892_vm11, %v9676_v34, %v9680_v36  ;;  %v7094_v54 = vadd.f32 %v20018_v56, %v7078_v35  ;;  %v7083_v19 = vmul.f32 %v20015_v9, %v7067_v45  ;;  %1004 = vst [vmem:[#allocation3 + $0xb4] sm:$0x1] %v1003_v31  ;;  %v14241_v41 = vpack.c.bf16 %v7109_v11, %v7109_v11 }
 0x2fc   : > { %v9691_v58 = vsel %vm16892_vm11, %v9686_v60, %v9690_v27  ;;  %v7112_v37 = vmax.f32 %v7096_v62, 0.0  ;;  %v7065_v43 = vadd.f32 %v7038_v48, %v6768_v53  ;;  %v20259_v10 = vadd.f32 %v6744_v22, %v20005_v33  ;;  %v7354_v33 = vld [vmem:[#allocation3 + $0x9c] sm:$0xf] }
 0x2fd   : > { %v13943_v20 = vcombine.low %v9681_v44, %v9691_v58  ;;  %v7110_v15 = vmax.f32 %v7094_v54, 0.0  ;;  %v7099_v26 = vadd.f32 %v20018_v56, %v7083_v19  ;;  %v1060_v23 = vsel %vm16840_vm4, 0, %v1059_v12  ;;  %v7365_v18 = vld [vmem:[#allocation3 + $0xb0] sm:$0x1]  ;;  %v9927_v58 = vld [vmem:[#allocation3 + $0x24] sm:$0xe] }
 0x2fe   : > { %v7234_v28 = vshrl.u32 %v14241_v41, 16  ;;  %v7237_v21 = vshll.u32 %v14241_v41, 16  ;;  %v14244_v6 = vpack.c.bf16 %v7112_v37, %v7112_v37  ;;  %v7081_v36 = vmul.f32 %v20015_v9, %v7065_v43  ;;  %1061 = vst [vmem:[#allocation3 + $0xc8] sm:$0x1] %v1060_v23 }
 0x2ff   : > { %15654 = vmatprep.mubr.bf16.mxu1 %v13943_v20  ;;  %v14242_v40 = vpack.c.bf16 %v7110_v15, %v7110_v15  ;;  %v7115_v46 = vmax.f32 %v7099_v26, 0.0  ;;  %v7068_v13 = vadd.f32 %v15401_v55, %v6771_v0  ;;  %v1057_v27 = vsel %vm16840_vm4, 0, %v1056_v50  ;;  %v20268_v7 = vpop.f32.mrf.mxu1  ;;  %v7358_v34 = vld [vmem:[#allocation3 + $0xa4] sm:$0x1]  ;;  %v9926_v0 = vld [vmem:[#allocation3 + $0x18] sm:$0xe] }
 0x300   : > { %v7236_v14 = vrot.slane %v7234_v28, 7  ;;  %v7259_v24 = vshrl.u32 %v14244_v6, 16  ;;  %v7262_v1 = vshll.u32 %v14244_v6, 16  ;;  %v7097_v16 = vadd.f32 %v20018_v56, %v7081_v36  ;;  %1058 = vst [vmem:[#allocation3 + $0xbc] sm:$0x1] %v1057_v27 }
 0x301   : > { %v7242_v42 = vshrl.u32 %v14242_v40, 16  ;;  %v7245_v32 = vshll.u32 %v14242_v40, 16  ;;  %v14247_v51 = vpack.c.bf16 %v7115_v46, %v7115_v46  ;;  %v7084_v48 = vmul.f32 %v20015_v9, %v7068_v13  ;;  %v20271_v31 = vpop.f32.mrf.mxu1  ;;  %v7375_v20 = vld [vmem:[#allocation3 + $0xc0] sm:$0xf]  ;;  %v9521_v13 = vld [vmem:[#allocation3 + $0x6c] sm:$0xf] }
 0x302   : > { %v7239_v61 = vor.u32 %v7237_v21, %v7236_v14  ;;  %v7240_v53 = vrot.slane %v7236_v14, 4  ;;  %v7261_v17 = vrot.slane %v7259_v24, 7  ;;  %v7113_v60 = vmax.f32 %v7097_v16, 0.0  ;;  %v7368_v6 = vld [vmem:[#allocation3 + $0xb4] sm:$0xf] }
 0x303   : > { %v7244_v35 = vrot.slane %v7242_v42, 7  ;;  %v7285_v45 = vshrl.u32 %v14247_v51, 16  ;;  %v7288_v11 = vshll.u32 %v14247_v51, 16  ;;  %v7100_v62 = vadd.f32 %v20018_v56, %v7084_v48  ;;  %v20277_v37 = vpop.f32.mrf.mxu1  ;;  %v16449_v14 = vld [vmem:[#allocation3 + $0x1c] sm:$0xf] }
 0x304   : > { %v7355_v22 = vsel %vm16867_vm9, %v7239_v61, %v7354_v33  ;;  %v7264_v12 = vor.u32 %v7262_v1, %v7261_v17  ;;  %v7266_v9 = vrot.slane %v7261_v17, 4  ;;  %v14245_v44 = vpack.c.bf16 %v7113_v60, %v7113_v60  ;;  %v16450_v24 = vld [vmem:[#allocation3 + $0x20] sm:$0x1]  ;;  %v16452_v17 = vld [vmem:[#allocation3 + $0x28] sm:$0xf] }
 0x305   : > { %7356 = vst [vmem:[#allocation3 + $0x9c] sm:$0xf] %v7355_v22  ;;  %v7247_v54 = vor.u32 %v7245_v32, %v7244_v35  ;;  %v7249_v19 = vrot.slane %v7244_v35, 4  ;;  %v20275_v55 = vrot.slane %v7285_v45, 7  ;;  %v7116_v41 = vmax.f32 %v7100_v62, 0.0  ;;  %v20291_v21 = vpop.f32.mrf.mxu1 }
 0x306   : > { %v7265_v56 = vsel %vm16880_vm10, %v7257_v25, %v7264_v12  ;;  %v7366_v43 = vsel %vm16835_vm3, %v7266_v9, %v7365_v18  ;;  %v7268_v50 = vshrl.u32 %v14245_v44, 16  ;;  %v7271_v15 = vshll.u32 %v14245_v44, 16  ;;  %22105 = vst [vmem:[#allocation44_spill] sm:$0xff] %v20291_v21  ;;  %v16453_v45 = vld [vmem:[#allocation3 + $0x2c] sm:$0x1] }
 0x307   : > { %7364 = vst [vmem:[#allocation3 + $0xac] sm:$0xf] %v7265_v56  ;;  %7367 = vst [vmem:[#allocation3 + $0xb0] sm:$0x1] %v7366_v43  ;;  %v7248_v26 = vsel %vm16880_vm10, %v7240_v53, %v7247_v54  ;;  %v7359_v23 = vsel %vm16835_vm3, %v7249_v19, %v7358_v34  ;;  %v7290_v28 = vor.u32 %v7288_v11, %v20275_v55  ;;  %v7291_v57 = vrot.slane %v20275_v55, 4 }
 0x308   : > { %7357 = vst [vmem:[#allocation3 + $0xa0] sm:$0xf] %v7248_v26  ;;  %7360 = vst [vmem:[#allocation3 + $0xa4] sm:$0x1] %v7359_v23  ;;  %v20293_v25 = vrot.slane %v7268_v50, 7  ;;  %v14248_v36 = vpack.c.bf16 %v7116_v41, %v7116_v41  ;;  %v7066_v40 = vadd.f32 %v7041_v38, %v20259_v10  ;;  %v13953_v46 = vrot.slane %v9926_v0, 9 }
 0x309   : > { %v7376_v27 = vsel %vm16867_vm9, %v7290_v28, %v7375_v20  ;;  %v9960_v33 = vrot.slane %v16449_v14, 5  ;;  %v9963_v1 = vrot.slane %v16450_v24, 5  ;;  %v13954_v16 = vrot.slane %v9927_v58, 9  ;;  %v20300_v48 = vpop.f32.mrf.mxu1  ;;  %v16451_v10 = vld [vmem:[#allocation10] ss:$0 sm:$0xff]  ;;  %v16358_v14 = vld [vmem:[#allocation9 + $0x30] sm:$0xff]  }
 0x30a   : > { %7377 = vst [vmem:[#allocation3 + $0xc0] sm:$0xf] %v7376_v27  ;;  %v7273_v18 = vor.u32 %v7271_v15, %v20293_v25  ;;  %v7274_v42 = vrot.slane %v20293_v25, 4  ;;  %v7293_v32 = vshrl.u32 %v14248_v36, 16  ;;  %v7296_v51 = vshll.u32 %v14248_v36, 16 }
 0x30b   : > { %v7082_v38 = vmul.f32 %v16451_v10, %v7066_v40  ;;  %v9961_v61 = vsel %vm17071_vm14, %v13953_v46, %v9960_v33  ;;  %v9962_v53 = vrot.slane %v9960_v33, 4  ;;  %v9967_v34 = vrot.slane %v16452_v17, 5  ;;  %v20306_v62 = vld [vmem:[#allocation3 + $0x70] sm:$0xf]  ;;  %v20308_v22 = vpop.f32.mrf.mxu1  ;;  %v7379_v12 = vld [vmem:[#allocation3 + $0xc8] sm:$0x1] }
 0x30c   : > { %v7369_v60 = vsel %vm16867_vm9, %v7273_v18, %v7368_v6  ;;  %v7295_v35 = vrot.slane %v7293_v32, 7  ;;  %v9970_v11 = vrot.slane %v16453_v45, 5  ;;  %v9693_v0 = vshrl.u32 %v9521_v13, 16  ;;  %v16454_v9 = vld [vmem:[#allocation10 + $0x1] ss:$0 sm:$0xff] }
 0x30d   : > { %7370 = vst [vmem:[#allocation3 + $0xb4] sm:$0xf] %v7369_v60  ;;  %v7098_v44 = vadd.f32 %v16454_v9, %v7082_v38  ;;  %v9964_v58 = vsel %vm17071_vm14, %v9962_v53, %v9963_v1  ;;  %v9968_v54 = vsel %vm17071_vm14, %v13954_v16, %v9967_v34  ;;  %v9969_v3 = vrot.slane %v9967_v34, 4  ;;  %v20314_v41 = vld [vmem:[#allocation3 + $0x74] sm:$0x1]  ;;  %v20316_v43 = vpop.f32.mrf.mxu1  ;;  %v16360_v9 = vld [vmem:[#allocation9 + $0x28] sm:$0xff]  }
 0x30e   : > { %v7298_v19 = vor.u32 %v7296_v51, %v7295_v35  ;;  %v7300_v55 = vrot.slane %v7295_v35, 4  ;;  %v13961_v20 = vcombine.low %v9961_v61, %v9964_v58  ;;  %v9695_v56 = vrot.slane %v9693_v0, 4  ;;  %v9928_v28 = vld [vmem:[#allocation3 + $0x30] sm:$0xe]  ;;  %v20326_v27 = vld [vmem:[#allocation3 + $0x60] sm:$0xf] }
 0x30f   : > { %v7114_v50 = vmax.f32 %v7098_v44, 0.0  ;;  %v9971_v15 = vsel %vm17071_vm14, %v9969_v3, %v9970_v11  ;;  %v9696_v26 = vshll.u32 %v9521_v13, 16  ;;  %v9702_v23 = vshll.u32 %v20306_v62, 16  ;;  %v16455_v18 = vld [vmem:[#allocation3 + $0x34] sm:$0xf]  ;;  %v20331_v61 = vpop.f32.mrf.mxu1 }
 0x310   : > { %v7299_v6 = vsel %vm16880_vm10, %v7291_v57, %v7298_v19  ;;  %v7380_v36 = vsel %vm16835_vm3, %v7300_v55, %v7379_v12  ;;  %15674 = vmatprep.mubr.bf16.mxu0 %v13961_v20  ;;  %v13962_v40 = vcombine.low %v9968_v54, %v9971_v15  ;;  %v9706_v46 = vshrl.u32 %v20306_v62, 16  ;;  %v16456_v51 = vld [vmem:[#allocation3 + $0x38] sm:$0x1]  ;;  %v20329_v38 = vld [vmem:[#allocation3 + $0x64] sm:$0xf]  ;;  %22106 = vst [vmem:[#allocation22_spill] sm:$0xff] %v20331_v61 }
 0x311   : > { %7378 = vst [vmem:[#allocation3 + $0xc4] sm:$0xf] %v7299_v6  ;;  %7381 = vst [vmem:[#allocation3 + $0xc8] sm:$0x1] %v7380_v36  ;;  %v14246_v33 = vpack.c.bf16 %v7114_v50, %v7114_v50  ;;  %v9698_v13 = vrot.slane %v9696_v26, 5  ;;  %v9704_v24 = vrot.slane %v9702_v23, 5 }
 0x312   : > { %v9712_v1 = vshll.u32 %v20314_v41, 16  ;;  %15675 = vmatmul.mubr.bf16.vlgmr.msra.gmra.mxu0 %v13962_v40  ;;  %v9708_v16 = vrot.slane %v9706_v46, 4  ;;  %v13955_v57 = vrot.slane %v9928_v28, 9  ;;  %v9974_v32 = vrot.slane %v16455_v18, 5  ;;  %v20336_v0 = vld [vmem:[#allocation3 + $0x68] sm:$0x1] }
 0x313   : > { %v9977_v10 = vrot.slane %v16456_v51, 5  ;;  %v7276_v53 = vshrl.u32 %v14246_v33, 16  ;;  %v7279_v17 = vshll.u32 %v14246_v33, 16  ;;  %v9699_v34 = vor.u32 %v9698_v13, %v9695_v56  ;;  %15723 = vmatpush3.bf16.msra.mxu0 %v20214_v2  ;;  %v9929_v19 = vld [vmem:[#allocation3 + $0x3c] sm:$0xe] }
 0x314   : > { %v9714_v60 = vrot.slane %v9712_v1, 5  ;;  %v9709_v35 = vor.u32 %v9708_v16, %v9704_v24  ;;  %v9975_v45 = vsel %vm17071_vm14, %v13955_v57, %v9974_v32  ;;  %v9976_v11 = vrot.slane %v9974_v32, 4  ;;  %15724 = vmatprep.subr.bf16.mxu0 %v16358_v14  ;;  %v7372_v55 = vld [vmem:[#allocation3 + $0xbc] sm:$0x1]  ;;  %v9930_v15 = vld [vmem:[#allocation3 + $0x48] sm:$0xe] }
 0x315   : > { %v10370_v12 = vshrl.u32 %v20326_v27, 16  ;;  %v7278_v44 = vrot.slane %v7276_v53, 7  ;;  %v9700_v58 = vrot.slane %v9699_v34, 4  ;;  %v10373_v54 = vshll.u32 %v20326_v27, 16  ;;  %v20346_v23 = vpop.f32.mrf.mxu1  ;;  %v16362_v16 = vld [vmem:[#allocation9 + $0x20] sm:$0xff]  }
 0x316   : > { %v10379_v3 = vshll.u32 %v20329_v38, 16  ;;  %v9710_v2 = vrot.slane %v9709_v35, 4  ;;  %v9978_v20 = vsel %vm17071_vm14, %v9976_v11, %v9977_v10  ;;  %v10383_v50 = vshrl.u32 %v20329_v38, 16  ;;  %v20344_v26 = vpop.f32.mrf.mxu0  ;;  %22107 = vst [vmem:[#allocation46_spill] sm:$0xff] %v20346_v23  ;;  %v16457_v34 = vld [vmem:[#allocation3 + $0x40] sm:$0xf] }
 0x317   : > { %v10372_v56 = vrot.slane %v10370_v12, 4  ;;  %v7281_v28 = vor.u32 %v7279_v17, %v7278_v44  ;;  %v7283_v6 = vrot.slane %v7278_v44, 4  ;;  %v9705_v36 = vsel %vm16892_vm11, %v9700_v58, %v9704_v24  ;;  %15725 = vmatpush3.bf16.msra.mxu0 %v16358_v14  ;;  %v20354_v18 = vpop.f32.mrf.mxu1  ;;  %v20363_v35 = vld [vmem:[#allocation3 + $0x6c] sm:$0xf]  ;;  %v20471_v49 = vld [vmem:[#allocation3 + $0x9c] sm:$0xf] }
 0x318   : > { %v13963_v40 = vcombine.low %v9975_v45, %v9978_v20  ;;  %v9715_v46 = vsel %vm16892_vm11, %v9710_v2, %v9714_v60  ;;  %v10375_v33 = vrot.slane %v10373_v54, 5  ;;  %v10381_v13 = vrot.slane %v10379_v3, 5  ;;  %15726 = vmatprep.subr.bf16.mxu0 %v16360_v9  ;;  %v20352_v57 = vpop.f32.mrf.mxu0  ;;  %22108 = vst [vmem:[#allocation23_spill] sm:$0xff] %v20354_v18  ;;  %v16458_v45 = vld [vmem:[#allocation3 + $0x44] sm:$0x1] }
 0x319   : > { %v10385_v1 = vrot.slane %v10383_v50, 4  ;;  %v7282_v32 = vsel %vm16880_vm10, %v7274_v42, %v7281_v28  ;;  %v7373_v14 = vsel %vm16835_vm3, %v7283_v6, %v7372_v55  ;;  %v13944_v24 = vcombine.low %v9705_v36, %v9715_v46  ;;  %v20367_v63 = vpop.f32.mrf.mxu1  ;;  %v16459_v44 = vld [vmem:[#allocation3 + $0x4c] sm:$0xf]  ;;  %v20371_v2 = vld [vmem:[#allocation3 + $0x70] sm:$0xf] }
 0x31a   : > { %15678 = vmatprep.mubr.bf16.mxu0 %v13963_v40  ;;  %v10389_v51 = vshll.u32 %v20336_v0, 16  ;;  %7371 = vst [vmem:[#allocation3 + $0xb8] sm:$0xf] %v7282_v32  ;;  %7374 = vst [vmem:[#allocation3 + $0xbc] sm:$0x1] %v7373_v14  ;;  %v10376_v10 = vor.u32 %v10375_v33, %v10372_v56  ;;  %v13956_v17 = vrot.slane %v9929_v19, 9  ;;  %v20365_v25 = vpop.f32.mrf.mxu0 }
 0x31b   : > { %v10386_v53 = vor.u32 %v10385_v1, %v10381_v13  ;;  %v9981_v60 = vrot.slane %v16457_v34, 5  ;;  %22109 = vst [vmem:[#allocation49_spill] sm:$0xff] %v20367_v63  ;;  %15655 = vmatmul.mubr.bf16.gmra.mxu1 %v13944_v24  ;;  %v9984_v11 = vrot.slane %v16458_v45, 5  ;;  %v13957_v12 = vrot.slane %v9930_v15, 9  ;;  %15727 = vmatpush3.bf16.msra.mxu0 %v16360_v9  ;;  %v20373_v20 = vld [vmem:[#allocation3 + $0x78] sm:$0xf]  ;;  %v20385_v46 = vpop.f32.mrf.mxu1 }
 0x31c   : > { %v10391_v42 = vrot.slane %v10389_v51, 5  ;;  %v9988_v58 = vrot.slane %v16459_v44, 5  ;;  %v10377_v54 = vrot.slane %v10376_v10, 4  ;;  %v20375_v56 = vld [vmem:[#allocation3 + $0x7c] sm:$0xf]  ;;  %15728 = vmatprep.subr.bf16.mxu0 %v16362_v16  ;;  %v16364_v50 = vld [vmem:[#allocation9 + $0x18] sm:$0xff]   ;;  %v20377_v28 = vpop.f32.mrf.mxu0 }
 0x31d   : > { %v10387_v3 = vrot.slane %v10386_v53, 4  ;;  %v9982_v19 = vsel %vm17071_vm14, %v13956_v17, %v9981_v60  ;;  %v9983_v55 = vrot.slane %v9981_v60, 4  ;;  %22110 = vst [vmem:[#allocation25_spill] sm:$0xff] %v20377_v28  ;;  %v9991_v6 = vrot.slane %v20095_v52, 5  ;;  %v20382_v36 = vld [vmem:[#allocation3 + $0x74] sm:$0x1] }
 0x31e   : > { %v9989_v15 = vsel %vm17071_vm14, %v13957_v12, %v9988_v58  ;;  %v9990_v9 = vrot.slane %v9988_v58, 4  ;;  %v10394_v40 = vshrl.u32 %v20363_v35, 16  ;;  %22111 = vst [vmem:[#allocation47_spill] sm:$0xff] %v20385_v46  ;;  %v10382_v33 = vsel %vm16892_vm11, %v10377_v54, %v10381_v13  ;;  %v16366_v60 = vld [vmem:[#allocation9 + $0x10] sm:$0xff]  }
 0x31f   : > { %v10392_v1 = vsel %vm16892_vm11, %v10387_v3, %v10391_v42  ;;  %v9985_v32 = vsel %vm17071_vm14, %v9983_v55, %v9984_v11  ;;  %v10397_v14 = vshll.u32 %v20363_v35, 16  ;;  %15729 = vmatpush3.bf16.msra.mxu0 %v16362_v16  ;;  %v10403_v34 = vshll.u32 %v20371_v2, 16  ;;  %v20401_v11 = vld [vmem:[#allocation3 + $0x80] sm:$0x1] }
 0x320   : > { %v13979_v24 = vcombine.low %v10382_v33, %v10392_v1  ;;  %v13964_v51 = vcombine.low %v9982_v19, %v9985_v32  ;;  %v9992_v52 = vsel %vm17071_vm14, %v9990_v9, %v9991_v6  ;;  %v10396_v10 = vrot.slane %v10394_v40, 4  ;;  %15730 = vmatprep.subr.bf16.mxu0 %v16364_v50  ;;  %v20398_v42 = vpop.f32.mrf.mxu0 }
 0x321   : > { %v13965_v53 = vcombine.low %v9989_v15, %v9992_v52  ;;  %v10399_v17 = vrot.slane %v10397_v14, 5  ;;  %v10407_v13 = vshrl.u32 %v20371_v2, 16  ;;  %v10413_v45 = vshll.u32 %v20382_v36, 16  ;;  %v20406_v58 = vpop.f32.mrf.mxu1  ;;  %v9931_v15 = vld [vmem:[#allocation3 + $0x54] sm:$0xe] }
 0x322   : > { %15706 = vmatprep.mubr.bf16.mxu1 %v13979_v24  ;;  %15679 = vmatmul.mubr.bf16.gmra.mxu0 %v13964_v51  ;;  %v10418_v12 = vshrl.u32 %v20373_v20, 16  ;;  %v10421_v16 = vshll.u32 %v20373_v20, 16  ;;  %v10427_v44 = vshll.u32 %v20375_v56, 16  ;;  %22112 = vst [vmem:[#allocation50_spill] sm:$0xff] %v20406_v58  ;;  %v10405_v3 = vrot.slane %v10403_v34, 5  ;;  %v20409_v9 = vpop.f32.mrf.mxu0 }
 0x323   : > { %15682 = vmatprep.mubr.bf16.mxu0 %v13965_v53  ;;  %v10400_v54 = vor.u32 %v10399_v17, %v10396_v10  ;;  %v10409_v19 = vrot.slane %v10407_v13, 4  ;;  %v10431_v55 = vshrl.u32 %v20375_v56, 16  ;;  %v10415_v6 = vrot.slane %v10413_v45, 5  ;;  %15731 = vmatpush3.bf16.msra.mxu0 %v16364_v50  ;;  %v20411_v32 = vpop.f32.mrf.mxu1  ;;  %v9932_v10 = vld [vmem:[#allocation3 + $0x60] sm:$0xe] }
 0x324   : > { %v10420_v40 = vrot.slane %v10418_v12, 4  ;;  %v10423_v33 = vrot.slane %v10421_v16, 5  ;;  %v10429_v1 = vrot.slane %v10427_v44, 5  ;;  %22113 = vst [vmem:[#allocation51_spill] sm:$0xff] %v20411_v32  ;;  %v10437_v52 = vshll.u32 %v20401_v11, 16  ;;  %15732 = vmatprep.subr.bf16.mxu0 %v16366_v60  ;;  %v16368_v53 = vld [vmem:[#allocation9 + $0x8] sm:$0xff]   ;;  %v20414_v17 = vpop.f32.mrf.mxu0 }
 0x325   : > { %v10401_v14 = vrot.slane %v10400_v54, 4  ;;  %v10410_v24 = vor.u32 %v10409_v19, %v10405_v3  ;;  %v10433_v51 = vrot.slane %v10431_v55, 4  ;;  %v13958_v13 = vrot.slane %v9931_v15, 9  ;;  %v20418_v16 = vld [vmem:[#allocation3 + $0x84] sm:$0xf]  ;;  %v20420_v50 = vpop.f32.mrf.mxu1 }
 0x326   : > { %v10424_v34 = vor.u32 %v10423_v33, %v10420_v40  ;;  %v9995_v45 = vrot.slane %v20147_v30, 5  ;;  %v9998_v12 = vrot.slane %v20154_v39, 5  ;;  %22114 = vst [vmem:[#allocation52_spill] sm:$0xff] %v20420_v50  ;;  %v10439_v55 = vrot.slane %v10437_v52, 5  ;;  %v20426_v33 = vld [vmem:[#allocation3 + $0x88] sm:$0xf]  ;;  %v20430_v39 = vpop.f32.mrf.mxu0 }
 0x327   : > { %v10406_v44 = vsel %vm16892_vm11, %v10401_v14, %v10405_v3  ;;  %v10411_v54 = vrot.slane %v10410_v24, 4  ;;  %v10434_v19 = vor.u32 %v10433_v51, %v10429_v1  ;;  %v13959_v15 = vrot.slane %v9932_v10, 9  ;;  %v20428_v30 = vld [vmem:[#allocation3 + $0x90] sm:$0xf]  ;;  %15733 = vmatpush3.bf16.msra.mxu0 %v16366_v60  ;;  %22115 = vst [vmem:[#allocation53_spill] sm:$0xff] %v20430_v39  ;;  %v16363_v10 = vld [vmem:[#allocation9 + $0xb0] sm:$0xff]  }
 0x328   : > { %v10425_v46 = vrot.slane %v10424_v34, 4  ;;  %v9996_v61 = vsel %vm17071_vm14, %v13958_v13, %v9995_v45  ;;  %v9997_v40 = vrot.slane %v9995_v45, 4  ;;  %v10002_v14 = vrot.slane %v20195_v47, 5  ;;  %15734 = vmatprep.subr.bf16.mxu0 %v16368_v53  ;;  %v20440_v60 = vld [vmem:[#allocation3 + $0x8c] sm:$0x1]  ;;  %v20443_v45 = vpop.f32.mrf.mxu1  ;;  %v16367_v50 = vld [vmem:[#allocation9 + $0xa0] sm:$0xff]  }
 0x329   : > { %v10416_v21 = vsel %vm16892_vm11, %v10411_v54, %v10415_v6  ;;  %v10435_v3 = vrot.slane %v10434_v19, 4  ;;  %v10005_v24 = vrot.slane %v20199_v29, 5  ;;  %v10442_v13 = vshrl.u32 %v20418_v16, 16  ;;  %22116 = vst [vmem:[#allocation30_spill] sm:$0xff] %v20443_v45  ;;  %v9933_v45 = vld [vmem:[#allocation3 + $0x6c] sm:$0xe] }
 0x32a   : > { %v13980_v51 = vcombine.low %v10406_v44, %v10416_v21  ;;  %v10430_v52 = vsel %vm16892_vm11, %v10425_v46, %v10429_v1  ;;  %v9999_v34 = vsel %vm17071_vm14, %v9997_v40, %v9998_v12  ;;  %v10003_v29 = vsel %vm17071_vm14, %v13959_v15, %v10002_v14  ;;  %v20449_v44 = vld [vmem:[#allocation3 + $0x94] sm:$0xf]  ;;  %v16371_v46 = vld [vmem:[#allocation9] sm:$0xff]  }
 0x32b   : > { %v10440_v47 = vsel %vm16892_vm11, %v10435_v3, %v10439_v55  ;;  %v13966_v6 = vcombine.low %v9996_v61, %v9999_v34  ;;  %v10004_v21 = vrot.slane %v10002_v14, 4  ;;  %v10444_v12 = vrot.slane %v10442_v13, 4  ;;  %v20453_v40 = vld [vmem:[#allocation3 + $0x98] sm:$0x1]  ;;  %15735 = vmatpush3.bf16.msra.mxu0 %v16368_v53  ;;  %v20455_v55 = vpop.f32.mrf.mxu0  ;;  %v16365_v13 = vld [vmem:[#allocation9 + $0xa8] sm:$0xff]  }
 0x32c   : > { %15707 = vmatmul.mubr.bf16.vlgmr.msra.gmra.mxu1 %v13980_v51  ;;  %v13981_v1 = vcombine.low %v10430_v52, %v10440_v47  ;;  %v10445_v54 = vshll.u32 %v20418_v16, 16  ;;  %v10451_v19 = vshll.u32 %v20426_v33, 16  ;;  %v10455_v15 = vshrl.u32 %v20426_v33, 16  ;;  %v20463_v51 = vld [vmem:[#allocation9 + $0xf8] sm:$0xff]   ;;  %15736 = vmatprep.subr.bf16.mxu0 %v16371_v46 }
 0x32d   : > { %15755 = vmatpush3.bf16.msra.mxu1 %v20156_v8  ;;  %15683 = vmatmul.mubr.bf16.gmra.mxu0 %v13966_v6  ;;  %v10006_v61 = vsel %vm17071_vm14, %v10004_v21, %v10005_v24  ;;  %v10461_v3 = vshll.u32 %v20440_v60, 16  ;;  %v10466_v14 = vshrl.u32 %v20428_v30, 16  ;;  %v10469_v8 = vshll.u32 %v20428_v30, 16  ;;  %v20466_v47 = vpop.f32.mrf.mxu0  ;;  %v20468_v6 = vpop.f32.mrf.mxu1 }
 0x32e   : > { %15710 = vmatprep.mubr.bf16.mxu1 %v13981_v1  ;;  %15756 = vmatprep.subr.bf16.mxu1 %v16363_v10  ;;  %v13967_v52 = vcombine.low %v10003_v29, %v10006_v61  ;;  %v10447_v53 = vrot.slane %v10445_v54, 5  ;;  %v10453_v34 = vrot.slane %v10451_v19, 5  ;;  %22117 = vst [vmem:[#allocation28_spill] sm:$0xff] %v20466_v47  ;;  %22118 = vst [vmem:[#allocation29_spill] sm:$0xff] %v20468_v6  ;;  %v10457_v24 = vrot.slane %v10455_v15, 4 }
 0x32f   : > { %v10463_v21 = vrot.slane %v10461_v3, 5  ;;  %v10468_v39 = vrot.slane %v10466_v14, 4  ;;  %v10475_v28 = vshll.u32 %v20449_v44, 16  ;;  %v10471_v29 = vrot.slane %v10469_v8, 5  ;;  %v20475_v61 = vld [vmem:[#allocation3 + $0xa0] sm:$0xf]  ;;  %15737 = vmatpush3.bf16.msra.mxu0 %v16371_v46  ;;  %v20477_v59 = vpop.f32.mrf.mxu0  ;;  %v20483_v58 = vpop.f32.mrf.mxu1 }
 0x330   : > { %15686 = vmatprep.mubr.bf16.mxu0 %v13967_v52  ;;  %v10448_v1 = vor.u32 %v10447_v53, %v10444_v12  ;;  %v10479_v54 = vshrl.u32 %v20449_v44, 16  ;;  %v10485_v19 = vshll.u32 %v20453_v40, 16  ;;  %22119 = vst [vmem:[#allocation31_spill] sm:$0xff] %v20477_v59  ;;  %v10458_v15 = vor.u32 %v10457_v24, %v10453_v34  ;;  %15786 = vmatprep.subr.bf16.mxu0 %v20463_v51  ;;  %v20514_v59 = vld [vmem:[#allocation3 + $0xb4] sm:$0xf] }
 0x331   : > { %15757 = vmatpush3.bf16.msra.mxu1 %v16363_v10  ;;  %v10477_v3 = vrot.slane %v10475_v28, 5  ;;  %v13960_v14 = vrot.slane %v9933_v45, 9  ;;  %v10009_v6 = vrot.slane %v20306_v62, 5  ;;  %v10472_v12 = vor.u32 %v10471_v29, %v10468_v39  ;;  %v20481_v32 = vpop.f32.mrf.mxu0  ;;  %22121 = vst [vmem:[#allocation21_spill] sm:$0xff] %v20483_v58  ;;  %v20488_v62 = vld [vmem:[#allocation3 + $0xa8] sm:$0xf] }
 0x332   : > { %v10449_v52 = vrot.slane %v10448_v1, 4  ;;  %15758 = vmatprep.subr.bf16.mxu1 %v16365_v13  ;;  %v10481_v53 = vrot.slane %v10479_v54, 4  ;;  %v10487_v8 = vrot.slane %v10485_v19, 5  ;;  %22120 = vst [vmem:[#allocation38_spill] sm:$0xff] %v20481_v32  ;;  %v10459_v46 = vrot.slane %v10458_v15, 4  ;;  %v16370_v58 = vld [vmem:[#allocation9 + $0x98] sm:$0xff]  }
 0x333   : > { %v10010_v10 = vsel %vm17071_vm14, %v13960_v14, %v10009_v6  ;;  %v10011_v28 = vrot.slane %v10009_v6, 4  ;;  %v10012_v45 = vrot.slane %v20314_v41, 5  ;;  %v10473_v39 = vrot.slane %v10472_v12, 4  ;;  %v20492_v29 = vld [vmem:[#allocation3 + $0xa4] sm:$0x1]  ;;  %v20495_v19 = vpop.f32.mrf.mxu0 }
 0x334   : > { %v10454_v24 = vsel %vm16892_vm11, %v10449_v52, %v10453_v34  ;;  %v10482_v1 = vor.u32 %v10481_v53, %v10477_v3  ;;  %v10490_v54 = vshrl.u32 %v20471_v49, 16  ;;  %22122 = vst [vmem:[#allocation42_spill] sm:$0xff] %v20495_v19  ;;  %v10464_v15 = vsel %vm16892_vm11, %v10459_v46, %v10463_v21  ;;  %v20503_v34 = vld [vmem:[#allocation3 + $0xac] sm:$0xf]  ;;  %v20507_v19 = vld [vmem:[#allocation3 + $0xb0] sm:$0x1]  ;;  %v20511_v21 = vpop.f32.mrf.mxu1 }
 0x335   : > { %15759 = vmatpush3.bf16.msra.mxu1 %v16365_v13  ;;  %v10013_v41 = vsel %vm17071_vm14, %v10011_v28, %v10012_v45  ;;  %v10493_v6 = vshll.u32 %v20471_v49, 16  ;;  %v10499_v14 = vshll.u32 %v20475_v61, 16  ;;  %v13982_v52 = vcombine.low %v10454_v24, %v10464_v15  ;;  %v20509_v13 = vpop.f32.mrf.mxu0  ;;  %22124 = vst [vmem:[#allocation41_spill] sm:$0xff] %v20511_v21 }
 0x336   : > { %v10478_v12 = vsel %vm16892_vm11, %v10473_v39, %v10477_v3  ;;  %v10483_v53 = vrot.slane %v10482_v1, 4  ;;  %15760 = vmatprep.subr.bf16.mxu1 %v16367_v50  ;;  %v13968_v32 = vcombine.low %v10010_v10, %v10013_v41  ;;  %22123 = vst [vmem:[#allocation32_spill] sm:$0xff] %v20509_v13  ;;  %v10492_v46 = vrot.slane %v10490_v54, 4 }
 0x337   : > { %v10495_v28 = vrot.slane %v10493_v6, 5  ;;  %v10501_v45 = vrot.slane %v10499_v14, 5  ;;  %v10503_v63 = vshrl.u32 %v20475_v61, 16  ;;  %15711 = vmatmul.mubr.bf16.gmra.mxu1 %v13982_v52  ;;  %v10509_v10 = vshll.u32 %v20492_v29, 16  ;;  %v20522_v1 = vpop.f32.mrf.mxu0  ;;  %v20525_v14 = vld [vmem:[#allocation3 + $0xb8] sm:$0xf] }
 0x338   : > { %v10488_v3 = vsel %vm16892_vm11, %v10483_v53, %v10487_v8  ;;  %15687 = vmatmul.mubr.bf16.gmra.mxu0 %v13968_v32  ;;  %v13995_v24 = vcombine.low %v20326_v27, %v20329_v38  ;;  %v10514_v39 = vshrl.u32 %v20488_v62, 16  ;;  %22125 = vst [vmem:[#allocation33_spill] sm:$0xff] %v20522_v1  ;;  %v10517_v6 = vshll.u32 %v20488_v62, 16  ;;  %v16372_v27 = vld [vmem:[#allocation9 + $0x90] sm:$0xff]   ;;  %v20529_v53 = vpop.f32.mrf.mxu1 }
 0x339   : > { %v13983_v54 = vcombine.low %v10478_v12, %v10488_v3  ;;  %15761 = vmatpush3.bf16.msra.mxu1 %v16367_v50  ;;  %v10496_v15 = vor.u32 %v10495_v28, %v10492_v46  ;;  %v10505_v41 = vrot.slane %v10503_v63, 4  ;;  %v10523_v8 = vshll.u32 %v20503_v34, 16  ;;  %22126 = vst [vmem:[#allocation45_spill] sm:$0xff] %v20529_v53  ;;  %v20531_v21 = vpop.f32.mrf.mxu0 }
 0x33a   : > { %15738 = vmatprep.mubr.bf16.mxu0 %v13995_v24  ;;  %15762 = vmatprep.subr.bf16.mxu1 %v16370_v58  ;;  %v10516_v32 = vrot.slane %v10514_v39, 4  ;;  %v10527_v52 = vshrl.u32 %v20503_v34, 16  ;;  %22127 = vst [vmem:[#allocation34_spill] sm:$0xff] %v20531_v21  ;;  %v10519_v63 = vrot.slane %v10517_v6, 5  ;;  %v10533_v46 = vshll.u32 %v20507_v19, 16  ;;  %v20545_v21 = vpop.f32.mrf.mxu1 }
 0x33b   : > { %15714 = vmatprep.mubr.bf16.mxu1 %v13983_v54  ;;  %v10497_v50 = vrot.slane %v10496_v15, 4  ;;  %v10506_v12 = vor.u32 %v10505_v41, %v10501_v45  ;;  %v10511_v28 = vrot.slane %v10509_v10, 5  ;;  %v10525_v3 = vrot.slane %v10523_v8, 5  ;;  %v20535_v1 = vpop.f32.mrf.mxu0  ;;  %v20541_v15 = vld [vmem:[#allocation3 + $0xbc] sm:$0x1]  ;;  %22129 = vst [vmem:[#allocation36_spill] sm:$0xff] %v20545_v21 }
 0x33c   : > { %v10529_v24 = vrot.slane %v10527_v52, 4  ;;  %v10538_v39 = vshrl.u32 %v20514_v59, 16  ;;  %22128 = vst [vmem:[#allocation39_spill] sm:$0xff] %v20535_v1  ;;  %v10520_v53 = vor.u32 %v10519_v63, %v10516_v32  ;;  %v13996_v54 = vcombine.low %v20363_v35, %v20371_v2  ;;  %v16376_v52 = vld [vmem:[#allocation9 + $0x88] sm:$0xff]  }
 0x33d   : > { %v10502_v13 = vsel %vm16892_vm11, %v10497_v50, %v10501_v45  ;;  %v10507_v18 = vrot.slane %v10506_v12, 4  ;;  %15763 = vmatpush3.bf16.msra.mxu1 %v16370_v58  ;;  %v10541_v6 = vshll.u32 %v20514_v59, 16  ;;  %v10547_v8 = vshll.u32 %v20525_v14, 16  ;;  %v20547_v47 = vpop.f32.mrf.mxu0  ;;  %v16377_v50 = vld [vmem:[#allocation9 + $0xf0] sm:$0xff]  }
 0x33e   : > { %v10530_v41 = vor.u32 %v10529_v24, %v10525_v3  ;;  %15764 = vmatprep.subr.bf16.mxu1 %v16372_v27  ;;  %v10540_v10 = vrot.slane %v10538_v39, 4  ;;  %22130 = vst [vmem:[#allocation35_spill] sm:$0xff] %v20547_v47  ;;  %v10521_v45 = vrot.slane %v10520_v53, 4  ;;  %v10535_v32 = vrot.slane %v10533_v46, 5 }
 0x33f   : > { %v10512_v58 = vsel %vm16892_vm11, %v10507_v18, %v10511_v28  ;;  %v10551_v35 = vshrl.u32 %v20525_v14, 16  ;;  %v10543_v24 = vrot.slane %v10541_v6, 5  ;;  %v10549_v39 = vrot.slane %v10547_v8, 5  ;;  %v20552_v1 = vpop.f32.mrf.mxu0  ;;  %v10947_v18 = vld [vmem:[#allocation3 + $0x60] sm:$0xe]  ;;  %v16378_v28 = vld [vmem:[#allocation9 + $0x80] sm:$0xff]  }
 0x340   : > { %v13984_v12 = vcombine.low %v10502_v13, %v10512_v58  ;;  %v10531_v63 = vrot.slane %v10530_v41, 4  ;;  %15739 = vmatmul.mubr.bf16.vlgmr.msra.gmra.mxu0 %v13996_v54  ;;  %v10557_v21 = vshll.u32 %v20541_v15, 16  ;;  %v13997_v47 = vcombine.low %v20373_v20, %v20375_v56  ;;  %v20563_v54 = vpop.f32.mrf.mxu1  ;;  %v16380_v8 = vld [vmem:[#allocation9 + $0xe8] sm:$0xff]  }
 0x341   : > { %15765 = vmatpush3.bf16.msra.mxu1 %v16372_v27  ;;  %v10553_v23 = vrot.slane %v10551_v35, 4  ;;  %15787 = vmatpush3.bf16.msra.mxu0 %v20463_v51  ;;  %v10526_v13 = vsel %vm16892_vm11, %v10521_v45, %v10525_v3  ;;  %v10544_v46 = vor.u32 %v10543_v24, %v10540_v10  ;;  %v10973_v27 = vrot.slane %v20329_v38, 5  ;;  %22131 = vst [vmem:[#allocation37_spill] sm:$0xff] %v20563_v54  ;;  %v20565_v41 = vpop.f32.mrf.mxu0  ;;  %v20737_v54 = vld [vmem:[#allocation3 + $0x94] sm:$0xf] }
 0x342   : > { %15715 = vmatmul.mubr.bf16.gmra.mxu1 %v13984_v12  ;;  %v10536_v53 = vsel %vm16892_vm11, %v10531_v63, %v10535_v32  ;;  %15766 = vmatprep.subr.bf16.mxu1 %v16376_v52  ;;  %22132 = vst [vmem:[#allocation40_spill] sm:$0xff] %v20565_v41  ;;  %v10976_v51 = vrot.slane %v20336_v0, 5  ;;  %v10559_v32 = vrot.slane %v10557_v21, 5  ;;  %v10980_v38 = vrot.slane %v20371_v2, 5 }
 0x343   : > { %v13985_v20 = vcombine.low %v10526_v13, %v10536_v53  ;;  %v10554_v6 = vor.u32 %v10553_v23, %v10549_v39  ;;  %15742 = vmatprep.mubr.bf16.mxu0 %v13997_v47  ;;  %15788 = vmatprep.subr.bf16.mxu0 %v16377_v50  ;;  %v10545_v3 = vrot.slane %v10544_v46, 4  ;;  %v10975_v58 = vrot.slane %v10973_v27, 4  ;;  %v20568_v45 = vpop.f32.mrf.mxu0  ;;  %v20576_v47 = vpop.f32.mrf.mxu1  ;;  %v10949_v53 = vld [vmem:[#allocation3 + $0x78] sm:$0xe]  ;;  %v10948_v46 = vld [vmem:[#allocation3 + $0x6c] sm:$0xe] }
 0x344   : > { %v14011_v35 = vrot.slane %v10947_v18, 9  ;;  %v13998_v0 = vcombine.low %v20418_v16, %v20426_v33  ;;  %v10987_v23 = vrot.slane %v20375_v56, 5  ;;  %22133 = vst [vmem:[#allocation43_spill] sm:$0xff] %v20576_v47  ;;  %v16383_v16 = vld [vmem:[#allocation9 + $0xe0] sm:$0xff]  }
 0x345   : > { %15718 = vmatprep.mubr.bf16.mxu1 %v13985_v20  ;;  %v10555_v10 = vrot.slane %v10554_v6, 4  ;;  %15767 = vmatpush3.bf16.msra.mxu1 %v16376_v52  ;;  %v10977_v12 = vsel %vm17071_vm14, %v10975_v58, %v10976_v51  ;;  %v20578_v63 = vpop.f32.mrf.mxu0  ;;  %v10550_v21 = vsel %vm16892_vm11, %v10545_v3, %v10549_v39  ;;  %v13999_v52 = vcombine.low %v20428_v30, %v20449_v44  ;;  %v20592_v30 = vpop.f32.mrf.mxu1  ;;  %v16386_v51 = vld [vmem:[#allocation9 + $0xd8] sm:$0xff]  }
 0x346   : > { %15768 = vmatprep.subr.bf16.mxu1 %v16378_v28  ;;  %15789 = vmatpush3.bf16.msra.mxu0 %v16377_v50  ;;  %v20586_v50 = vld [vmem:[#allocation9 + $0x138] sm:$0xff]   ;;  %v10974_v56 = vsel %vm17071_vm14, %v14011_v35, %v10973_v27  ;;  %v10982_v39 = vrot.slane %v10980_v38, 4  ;;  %v10989_v20 = vrot.slane %v10987_v23, 4  ;;  %22134 = vst [vmem:[#allocation48_spill] sm:$0xff] %v20592_v30  ;;  %v10983_v27 = vrot.slane %v20382_v36, 5 }
 0x347   : > { %v10560_v2 = vsel %vm16892_vm11, %v10555_v10, %v10559_v32  ;;  %15790 = vmatprep.subr.bf16.mxu0 %v16380_v8  ;;  %v20590_v18 = vpop.f32.mrf.mxu0  ;;  %v14019_v13 = vcombine.low %v10974_v56, %v10977_v12  ;;  %v10994_v3 = vrot.slane %v20426_v33, 5  ;;  %v11001_v58 = vrot.slane %v20449_v44, 5  ;;  %v10950_v12 = vld [vmem:[#allocation3 + $0x84] sm:$0xe]  ;;  %v20656_v30 = vld [vmem:[#allocation3 + $0x7c] sm:$0xf] }
 0x348   : > { %v13986_v24 = vcombine.low %v10550_v21, %v10560_v2  ;;  %15743 = vmatmul.mubr.bf16.gmra.mxu0 %v13998_v0  ;;  %v10984_v32 = vsel %vm17071_vm14, %v10982_v39, %v10983_v27  ;;  %v14013_v35 = vrot.slane %v10949_v53, 9  ;;  %v14000_v33 = vcombine.low %v20471_v49, %v20475_v61  ;;  %v10951_v0 = vld [vmem:[#allocation3 + $0x90] sm:$0xe]  ;;  %v20609_v21 = vpop.f32.mrf.mxu1  ;;  %v16389_v53 = vld [vmem:[#allocation9 + $0xd0] sm:$0xff]  }
 0x349   : > { %15769 = vmatpush3.bf16.msra.mxu1 %v16378_v28  ;;  %15746 = vmatprep.mubr.bf16.mxu0 %v13999_v52  ;;  %v20594_v6 = vpop.f32.mrf.mxu0  ;;  %v10990_v28 = vrot.slane %v20401_v11, 5  ;;  %v11477_v11 = vld [vmem:[#allocation3 + $0x6c] sm:$0xf]  ;;  %22136 = vst [vmem:[#allocation24_spill] sm:$0xff] %v20609_v21  ;;  %v14001_v56 = vcombine.low %v20488_v62, %v20503_v34  ;;  %v14014_v49 = vrot.slane %v10950_v12, 9  ;;  %v11003_v39 = vrot.slane %v11001_v58, 4 }
 0x34a   : > { %15719 = vmatmul.mubr.bf16.gmra.mxu1 %v13986_v24  ;;  %15791 = vmatpush3.bf16.msra.mxu0 %v16380_v8  ;;  %22135 = vst [vmem:[#allocation26_spill] sm:$0xff] %v20594_v6  ;;  %v14012_v8 = vrot.slane %v10948_v46, 9  ;;  %v10988_v52 = vsel %vm17071_vm14, %v14013_v35, %v10987_v23  ;;  %v16384_v24 = vld [vmem:[#allocation9 + $0x130] sm:$0xff]   ;;  %v10952_v46 = vld [vmem:[#allocation3 + $0x9c] sm:$0xe]  ;;  %v10997_v23 = vrot.slane %v20440_v60, 5 }
 0x34b   : > { %15770 = vmatprep.mubr.bf16.mxu1 %v14019_v13  ;;  %15818 = vmatprep.subr.bf16.mxu1 %v20586_v50  ;;  %v20601_v10 = vpop.f32.mrf.mxu0  ;;  %v10991_v36 = vsel %vm17071_vm14, %v10989_v20, %v10990_v28  ;;  %v11008_v20 = vrot.slane %v20475_v61, 5  ;;  %v14015_v28 = vrot.slane %v10951_v0, 9  ;;  %v20624_v35 = vld [vmem:[#allocation3 + $0x70] sm:$0xf]  ;;  %v10995_v62 = vsel %vm17071_vm14, %v14014_v49, %v10994_v3  ;;  %v10953_v12 = vld [vmem:[#allocation3 + $0xa8] sm:$0xe] }
 0x34c   : > { %15792 = vmatprep.subr.bf16.mxu0 %v16383_v16  ;;  %v10981_v2 = vsel %vm17071_vm14, %v14012_v8, %v10980_v38  ;;  %v14021_v38 = vcombine.low %v10988_v52, %v10991_v36  ;;  %v11015_v8 = vrot.slane %v20503_v34, 5  ;;  %v14002_v61 = vcombine.low %v20514_v59, %v20525_v14  ;;  %v16388_v59 = vld [vmem:[#allocation9 + $0x128] sm:$0xff]   ;;  %v11489_v6 = vld [vmem:[#allocation3 + $0x9c] sm:$0xf]  ;;  %v11492_v21 = vld [vmem:[#allocation3 + $0xa8] sm:$0xf] }
 0x34d   : > { %v20611_v44 = vpop.f32.mrf.mxu0  ;;  %v14020_v13 = vcombine.low %v10981_v2, %v10984_v32  ;;  %v11004_v32 = vrot.slane %v20453_v40, 5  ;;  %v11502_v36 = vshrl.u32 %v11477_v11, 16  ;;  %v14016_v40 = vrot.slane %v10952_v46, 9 }
 0x34e   : > { %15793 = vmatpush3.bf16.msra.mxu0 %v16383_v16  ;;  %v10996_v16 = vrot.slane %v10994_v3, 4  ;;  %v16392_v3 = vld [vmem:[#allocation9 + $0xc8] sm:$0xff]   ;;  %v11505_v0 = vshll.u32 %v11477_v11, 16  ;;  %v11010_v52 = vrot.slane %v11008_v20, 4  ;;  %v14017_v49 = vrot.slane %v10953_v12, 9 }
 0x34f   : > { %15794 = vmatprep.subr.bf16.mxu0 %v16386_v51  ;;  %v20620_v27 = vpop.f32.mrf.mxu0  ;;  %v11005_v2 = vsel %vm17071_vm14, %v11003_v39, %v11004_v32  ;;  %v11017_v46 = vrot.slane %v11015_v8, 4  ;;  %v21908_v11 = vrot.slane %v20525_v14, 5  ;;  %v20654_v39 = vsel %vm17071_vm14, %v14016_v40, %v11008_v20 }
 0x350   : > { %15747 = vmatmul.mubr.bf16.gmra.mxu0 %v14000_v33  ;;  %22137 = vst [vmem:[#allocation27_spill] sm:$0xff] %v20620_v27  ;;  %v20631_v33 = vpop.f32.mrf.mxu1  ;;  %v10998_v34 = vsel %vm17071_vm14, %v10996_v16, %v10997_v23  ;;  %v20650_v23 = vld [vmem:[#allocation9 + $0x120] sm:$0xff]   ;;  %v11504_v32 = vrot.slane %v11502_v36, 4  ;;  %v11018_v20 = vrot.slane %v20507_v19, 5  ;;  %v20669_v36 = vadd.f32 %v20268_v7, %v20344_v26  ;;  %v20805_v27 = vld [vmem:[#allocation3 + $0xac] sm:$0xf] }
 0x351   : > { %15750 = vmatprep.mubr.bf16.mxu0 %v14001_v56  ;;  %22138 = vst [vmem:[#allocation19_spill] sm:$0xff] %v20631_v33  ;;  %v20633_v60 = vpop.f32.mrf.mxu0  ;;  %v11511_v56 = vshll.u32 %v20624_v35, 16  ;;  %v11024_v26 = vrot.slane %v21908_v11, 4  ;;  %v16397_v11 = vld [vmem:[#allocation3 + $0x78] sm:$0xff]   ;;  %v11601_v41 = vshll.u32 %v11489_v6, 16 }
 0x352   : > { %15771 = vmatmul.mubr.bf16.vlgmr.msra.gmra.mxu1 %v14020_v13  ;;  %15795 = vmatpush3.bf16.msra.mxu0 %v16386_v51  ;;  %22139 = vst [vmem:[#allocation20_spill] sm:$0xff] %v20633_v60  ;;  %v11002_v51 = vsel %vm17071_vm14, %v14015_v28, %v11001_v58  ;;  %v20644_v13 = vld [vmem:[#allocation3 + $0x78] sm:$0xf]  ;;  %v11011_v58 = vrot.slane %v20492_v29, 5  ;;  %v11507_v60 = vrot.slane %v11505_v0, 5  ;;  %v20658_v47 = vpop.f32.mrf.mxu1  ;;  %v20687_v7 = vsel %vm17071_vm14, %v11017_v46, %v11018_v20 }
 0x353   : > { %15774 = vmatprep.mubr.bf16.mxu1 %v14021_v38  ;;  %15819 = vmatpush3.bf16.msra.mxu1 %v20586_v50  ;;  %v11515_v50 = vshrl.u32 %v20624_v35, 16  ;;  %v20646_v16 = vpop.f32.mrf.mxu0  ;;  %v14022_v38 = vcombine.low %v10995_v62, %v10998_v34  ;;  %v16395_v28 = vld [vmem:[#allocation9 + $0xc0] sm:$0xff]   ;;  %22141 = vst [vmem:[#allocation55_spill] sm:$0xff] %v20658_v47  ;;  %v14023_v12 = vcombine.low %v11002_v51, %v11005_v2  ;;  %v16393_v62 = vld [vmem:[#allocation3 + $0x6c] sm:$0xff]   ;;  %v10954_v34 = vld [vmem:[#allocation3 + $0xb4] sm:$0xe] }
 0x354   : > { %15820 = vmatprep.subr.bf16.mxu1 %v16384_v24  ;;  %15796 = vmatprep.subr.bf16.mxu0 %v16389_v53  ;;  %22140 = vst [vmem:[#allocation54_spill] sm:$0xff] %v20646_v16  ;;  %v20673_v40 = vsel %vm17071_vm14, %v11010_v52, %v11011_v58  ;;  %v20679_v51 = vld [vmem:[#allocation3 + $0x74] sm:$0x1]  ;;  %v11483_v0 = vld [vmem:[#allocation3 + $0x84] sm:$0xf]  ;;  %v14018_v52 = vrot.slane %v10954_v34, 9 }
 0x355   : > { %v20660_v29 = vpop.f32.mrf.mxu0  ;;  %v11517_v19 = vrot.slane %v11515_v50, 4  ;;  %v11535_v50 = vshll.u32 %v20656_v30, 16  ;;  %v11539_v58 = vshrl.u32 %v20656_v30, 16  ;;  %v14024_v46 = vcombine.low %v20654_v39, %v20673_v40 }
 0x356   : > { %15797 = vmatpush3.bf16.msra.mxu0 %v16389_v53  ;;  %22142 = vst [vmem:[#allocation56_spill] sm:$0xff] %v20660_v29  ;;  %v20664_v53 = vsel %vm17071_vm14, %v14017_v49, %v11015_v8  ;;  %v20681_v8 = vrot.slane %v11511_v56, 5  ;;  %v11508_v56 = vor.u32 %v11507_v60, %v11504_v32  ;;  %v20697_v49 = vpop.f32.mrf.mxu1  ;;  %v11550_v20 = vshrl.u32 %v11483_v0, 16  ;;  %v16394_v60 = vld [vmem:[#allocation9 + $0x118] sm:$0xff]  }
 0x357   : > { %15821 = vmatpush3.bf16.msra.mxu1 %v16384_v24  ;;  %15798 = vmatprep.subr.bf16.mxu0 %v16392_v3  ;;  %v20677_v24 = vadd.f32 %v20271_v31, %v20352_v57  ;;  %v20683_v2 = vpop.f32.mrf.mxu0  ;;  %v11529_v31 = vshll.u32 %v20644_v13, 16  ;;  %v20693_v57 = vld [vmem:[#allocation3 + $0x88] sm:$0xf]  ;;  %22144 = vst [vmem:[#allocation58_spill] sm:$0xff] %v20697_v49  ;;  %v14025_v32 = vcombine.low %v20664_v53, %v20687_v7  ;;  %v22146_v53 = vrot.slane %v20525_v14, 5 }
 0x358   : > { %15822 = vmatprep.subr.bf16.mxu1 %v16388_v59  ;;  %15751 = vmatmul.mubr.bf16.gmra.mxu0 %v14002_v61  ;;  %22143 = vst [vmem:[#allocation57_spill] sm:$0xff] %v20683_v2  ;;  %v11526_v61 = vshrl.u32 %v20644_v13, 16  ;;  %v11025_v13 = vrot.slane %v20541_v15, 5  ;;  %v11559_v39 = vshll.u32 %v20693_v57, 16  ;;  %v20727_v7 = vrot.slane %v11508_v56, 4  ;;  %v16396_v56 = vld [vmem:[#allocation9 + $0x110] sm:$0xff]  }
 0x359   : > { %15802 = vmatprep.mubr.bf16.mxu0 %v16393_v62  ;;  %v20701_v62 = vld [vmem:[#allocation9 + $0x178] sm:$0xff]   ;;  %v20718_v40 = vrot.slane %v11529_v31, 5  ;;  %v11603_v2 = vrot.slane %v11601_v41, 5 }
 0x35a   : > { %15775 = vmatmul.mubr.bf16.gmra.mxu1 %v14022_v38  ;;  %15799 = vmatpush3.bf16.msra.mxu0 %v16392_v3  ;;  %v11553_v38 = vshll.u32 %v11483_v0, 16  ;;  %v20704_v3 = vpop.f32.mrf.mxu0  ;;  %v20714_v15 = vsel %vm17071_vm14, %v11024_v26, %v11025_v13  ;;  %v20716_v34 = vrot.slane %v11526_v61, 4  ;;  %v11563_v0 = vshrl.u32 %v20693_v57, 16  ;;  %v11486_v13 = vld [vmem:[#allocation3 + $0x90] sm:$0xf]  ;;  %v20731_v61 = vpop.f32.mrf.mxu1 }
 0x35b   : > { %15778 = vmatprep.mubr.bf16.mxu1 %v14023_v12  ;;  %15823 = vmatpush3.bf16.msra.mxu1 %v16388_v59  ;;  %22145 = vst [vmem:[#allocation59_spill] sm:$0xff] %v20704_v3  ;;  %v11518_v59 = vor.u32 %v11517_v19, %v20681_v8  ;;  %v11521_v12 = vshll.u32 %v20679_v51, 16  ;;  %v20725_v19 = vsel %vm17071_vm14, %v14018_v52, %v22146_v53  ;;  %v20729_v3 = vrot.slane %v11535_v50, 5 }
 0x35c   : > { %15824 = vmatprep.subr.bf16.mxu1 %v20650_v23  ;;  %15800 = vmatprep.subr.bf16.mxu0 %v16395_v28  ;;  %v11541_v26 = vrot.slane %v11539_v58, 4  ;;  %22147 = vst [vmem:[#allocation60_spill] sm:$0xff] %v20731_v61  ;;  %v11555_v31 = vrot.slane %v11553_v38, 5  ;;  %v20735_v49 = vrot.slane %v11559_v39, 5  ;;  %v11565_v14 = vrot.slane %v11563_v0, 4  ;;  %v20739_v52 = vpop.f32.mrf.mxu0  ;;  %v16399_v58 = vld [vmem:[#allocation3 + $0x84] sm:$0xff]  }
 0x35d   : > { %22148 = vst [vmem:[#allocation61_spill] sm:$0xff] %v20739_v52  ;;  %v20743_v53 = vrot.slane %v11518_v59, 4  ;;  %v20751_v38 = vld [vmem:[#allocation3 + $0x80] sm:$0x1]  ;;  %v16401_v39 = vld [vmem:[#allocation9 + $0x170] sm:$0xff]   ;;  %v20755_v0 = vadd.f32 %v20300_v48, %v20398_v42  ;;  %v20759_v50 = vadd.f32 %v20308_v22, %v20409_v9  ;;  %v11532_v59 = vor.u32 %v20718_v40, %v20716_v34  ;;  %v20768_v42 = vpop.f32.mrf.mxu1 }
 0x35e   : > { %15801 = vmatpush3.bf16.msra.mxu0 %v16395_v28  ;;  %v11552_v28 = vrot.slane %v11550_v20, 4  ;;  %v20749_v20 = vadd.f32 %v20277_v37, %v20365_v25  ;;  %v11542_v37 = vor.u32 %v11541_v26, %v20729_v3  ;;  %v11577_v25 = vshll.u32 %v11486_v13, 16  ;;  %v20766_v48 = vld [vmem:[#allocation3 + $0xa0] sm:$0xf]  ;;  %22149 = vst [vmem:[#allocation62_spill] sm:$0xff] %v20768_v42  ;;  %v20778_v26 = vpop.f32.mrf.mxu0  ;;  %v20788_v42 = vld [vmem:[#allocation9 + $0x100] sm:$0xff]  }
 0x35f   : > { %15825 = vmatpush3.bf16.msra.mxu1 %v20650_v23  ;;  %15850 = vmatprep.subr.bf16.mxu0 %v20701_v62  ;;  %v20745_v23 = vrot.slane %v11521_v12, 5  ;;  %v11574_v12 = vshrl.u32 %v11486_v13, 16  ;;  %v11587_v52 = vshrl.u32 %v20737_v54, 16  ;;  %v11514_v22 = vsel %vm16892_vm11, %v20727_v7, %v20681_v8  ;;  %22150 = vst [vmem:[#allocation63_spill] sm:$0xff] %v20778_v26  ;;  %v16400_v13 = vld [vmem:[#allocation9 + $0x108] sm:$0xff]  }
 0x360   : > { %15826 = vmatprep.subr.bf16.mxu1 %v16394_v60  ;;  %v11545_v9 = vshll.u32 %v20751_v38, 16  ;;  %v11556_v34 = vor.u32 %v11555_v31, %v11552_v28  ;;  %v11566_v40 = vor.u32 %v11565_v14, %v20735_v49  ;;  %v11598_v7 = vshrl.u32 %v11489_v6, 16  ;;  %v16404_v28 = vld [vmem:[#allocation9 + $0x168] sm:$0xff]  }
 0x361   : > { %15803 = vmatmul.mubr.bf16.vlgmr.msra.gmra.mxu0 %v16397_v11  ;;  %v11583_v11 = vshll.u32 %v20737_v54, 16  ;;  %v11589_v8 = vrot.slane %v11587_v52, 4  ;;  %v11576_v31 = vrot.slane %v11574_v12, 4  ;;  %v11579_v14 = vrot.slane %v11577_v25, 5  ;;  %v16405_v12 = vld [vmem:[#allocation3 + $0x9c] sm:$0xff]  }
 0x362   : > { %15779 = vmatmul.mubr.bf16.gmra.mxu1 %v14024_v46  ;;  %15806 = vmatprep.mubr.bf16.mxu0 %v16399_v58  ;;  %v20775_v46 = vld [vmem:[#allocation3 + $0x8c] sm:$0x1]  ;;  %v16403_v58 = vld [vmem:[#allocation3 + $0x90] sm:$0xff]   ;;  %v11607_v26 = vshll.u32 %v20766_v48, 16  ;;  %v20792_v61 = vrot.slane %v11542_v37, 4  ;;  %v11611_v52 = vshrl.u32 %v20766_v48, 16 }
 0x363   : > { %15782 = vmatprep.mubr.bf16.mxu1 %v14025_v32  ;;  %15827 = vmatpush3.bf16.msra.mxu1 %v16394_v60  ;;  %v11524_v60 = vsel %vm16892_vm11, %v20743_v53, %v20745_v23  ;;  %v20785_v32 = vrot.slane %v11583_v11, 5  ;;  %v11569_v53 = vshll.u32 %v20775_v46, 16  ;;  %v20795_v23 = vld [vmem:[#allocation3 + $0x98] sm:$0x1]  ;;  %v20798_v11 = vpop.f32.mrf.mxu1  ;;  %v11547_v25 = vrot.slane %v11545_v9, 5 }
 0x364   : > { %15828 = vmatprep.subr.bf16.mxu1 %v16396_v56  ;;  %15851 = vmatpush3.bf16.msra.mxu0 %v20701_v62  ;;  %v20790_v62 = vrot.slane %v11532_v59, 4  ;;  %22151 = vst [vmem:[#allocation64_spill] sm:$0xff] %v20798_v11  ;;  %v11557_v6 = vrot.slane %v11556_v34, 4  ;;  %v11567_v47 = vrot.slane %v11566_v40, 4  ;;  %v20801_v59 = vpop.f32.mrf.mxu0  ;;  %v11600_v37 = vrot.slane %v11598_v7, 4  ;;  %v16407_v9 = vld [vmem:[#allocation9 + $0x160] sm:$0xff]  }
 0x365   : > { %15852 = vmatprep.subr.bf16.mxu0 %v16401_v39  ;;  %v11590_v33 = vor.u32 %v11589_v8, %v20785_v32  ;;  %v20803_v29 = vrot.slane %v11607_v26, 5  ;;  %v11613_v16 = vrot.slane %v11611_v52, 4  ;;  %v14051_v11 = vcombine.low %v11514_v22, %v11524_v60  ;;  %v20824_v60 = vpop.f32.mrf.mxu1 }
 0x366   : > { %v11580_v34 = vor.u32 %v11579_v14, %v11576_v31  ;;  %v11593_v40 = vshll.u32 %v20795_v23, 16  ;;  %v11538_v41 = vsel %vm16892_vm11, %v20790_v62, %v20729_v3  ;;  %v11548_v22 = vsel %vm16892_vm11, %v20792_v61, %v11547_v25  ;;  %22153 = vst [vmem:[#allocation65_spill] sm:$0xff] %v20824_v60  ;;  %v20830_v7 = vpop.f32.mrf.mxu0  ;;  %v16406_v61 = vld [vmem:[#allocation9 + $0x1b8] sm:$0xff]  }
 0x367   : > { %15829 = vmatpush3.bf16.msra.mxu1 %v16396_v56  ;;  %v20809_v56 = vadd.f32 %v20316_v43, %v20414_v17  ;;  %v11571_v43 = vrot.slane %v11569_v53, 5  ;;  %v20822_v17 = vld [vmem:[#allocation3 + $0xa4] sm:$0x1]  ;;  %v11622_v26 = vshrl.u32 %v11492_v21, 16  ;;  %v11625_v8 = vshll.u32 %v11492_v21, 16  ;;  %22154 = vst [vmem:[#allocation66_spill] sm:$0xff] %v20830_v7 }
 0x368   : > { %15830 = vmatprep.subr.bf16.mxu1 %v16400_v13  ;;  %15853 = vmatpush3.bf16.msra.mxu0 %v16401_v39  ;;  %v22152_v39 = vcombine.low %v20725_v19, %v20714_v15  ;;  %v11562_v15 = vsel %vm16892_vm11, %v11557_v6, %v20735_v49  ;;  %v11591_v19 = vrot.slane %v11590_v33, 4  ;;  %v11631_v3 = vshll.u32 %v20805_v27, 16  ;;  %v16410_v31 = vld [vmem:[#allocation9 + $0x158] sm:$0xff]  }
 0x369   : > { %15807 = vmatmul.mubr.bf16.gmra.mxu0 %v16403_v58  ;;  %15854 = vmatprep.subr.bf16.mxu0 %v16404_v28  ;;  %v11572_v58 = vsel %vm16892_vm11, %v11567_v47, %v11571_v43  ;;  %v11614_v14 = vor.u32 %v11613_v16, %v20803_v29  ;;  %v20836_v62 = vld [vmem:[#allocation3 + $0xb0] sm:$0x1]  ;;  %v11635_v33 = vshrl.u32 %v20805_v27, 16  ;;  %v11581_v21 = vrot.slane %v11580_v34, 4  ;;  %v20845_v16 = vpop.f32.mrf.mxu1  ;;  %v16408_v34 = vld [vmem:[#allocation9 + $0x1b0] sm:$0xff]  }
 0x36a   : > { %15783 = vmatmul.mubr.bf16.gmra.mxu1 %v22152_v39  ;;  %15810 = vmatprep.mubr.bf16.mxu0 %v16405_v12  ;;  %v11595_v49 = vrot.slane %v11593_v40, 5  ;;  %v11617_v53 = vshll.u32 %v20822_v17, 16  ;;  %v11624_v52 = vrot.slane %v11622_v26, 4  ;;  %v20840_v12 = vrot.slane %v11631_v3, 5  ;;  %v22155_v40 = vld [vmem:[#allocation46_spill] sm:$0xff] }
 0x36b   : > { %15831 = vmatpush3.bf16.msra.mxu1 %v16400_v13  ;;  %15834 = vmatprep.mubr.bf16.mxu1 %v14051_v11  ;;  %v11604_v13 = vor.u32 %v11603_v2, %v11600_v37  ;;  %v11495_v11 = vld [vmem:[#allocation3 + $0xb4] sm:$0xf]  ;;  %v11637_v25 = vrot.slane %v11635_v33, 4  ;;  %v11936_v47 = vrot.slane %v20624_v35, 5  ;;  %v20843_v2 = vld [vmem:[#allocation3 + $0xb8] sm:$0xf]  ;;  %v14052_v6 = vcombine.low %v11538_v41, %v11548_v22 }
 0x36c   : > { %15832 = vmatprep.subr.bf16.mxu1 %v20788_v42  ;;  %15855 = vmatpush3.bf16.msra.mxu0 %v16404_v28  ;;  %v11627_v28 = vrot.slane %v11625_v8, 5  ;;  %v14053_v37 = vcombine.low %v11562_v15, %v11572_v58  ;;  %v20850_v39 = vadd.f32 %v22155_v40, %v20455_v55  ;;  %v16409_v43 = vld [vmem:[#allocation3 + $0xa8] sm:$0xff]   ;;  %v11596_v26 = vsel %vm16892_vm11, %v11591_v19, %v11595_v49  ;;  %v20854_v8 = vpop.f32.mrf.mxu0  ;;  %v16411_v35 = vld [vmem:[#allocation3 + $0xb4] sm:$0xff]  }
 0x36d   : > { %15856 = vmatprep.subr.bf16.mxu0 %v16407_v9  ;;  %22156 = vst [vmem:[#allocation46_spill] sm:$0xff] %v20854_v8  ;;  %v20856_v3 = vrot.slane %v11604_v13, 4  ;;  %v11615_v33 = vrot.slane %v11614_v14, 4  ;;  %v11646_v41 = vshrl.u32 %v11495_v11, 16  ;;  %v11649_v22 = vshll.u32 %v11495_v11, 16  ;;  %v20865_v11 = vpop.f32.mrf.mxu1 }
 0x36e   : > { %v11641_v55 = vshll.u32 %v20836_v62, 16  ;;  %v11902_v15 = vld [vmem:[#allocation3 + $0x6c] sm:$0xe]  ;;  %v11938_v58 = vrot.slane %v11936_v47, 4  ;;  %v11655_v40 = vshll.u32 %v20843_v2, 16  ;;  %v11659_v19 = vshrl.u32 %v20843_v2, 16 }
 0x36f   : > { %15833 = vmatpush3.bf16.msra.mxu1 %v20788_v42  ;;  %v16413_v42 = vld [vmem:[#allocation9 + $0x150] sm:$0xff]   ;;  %v11619_v13 = vrot.slane %v11617_v53, 5  ;;  %v11628_v14 = vor.u32 %v11627_v28, %v11624_v52  ;;  %v11638_v49 = vor.u32 %v11637_v25, %v20840_v12  ;;  %v11939_v60 = vrot.slane %v20679_v51, 5  ;;  %v16416_v28 = vld [vmem:[#allocation9 + $0x148] sm:$0xff]  }
 0x370   : > { %15882 = vmatprep.subr.bf16.mxu1 %v16406_v61  ;;  %15857 = vmatpush3.bf16.msra.mxu0 %v16407_v9  ;;  %v11586_v9 = vsel %vm16892_vm11, %v11581_v21, %v20785_v32  ;;  %v20868_v8 = vrot.slane %v11655_v40, 5  ;;  %v11661_v7 = vrot.slane %v11659_v19, 4  ;;  %v11610_v32 = vsel %vm16892_vm11, %v20856_v3, %v20803_v29  ;;  %v20888_v29 = vld [vmem:[#allocation3 + $0xc4] sm:$0xf] }
 0x371   : > { %15811 = vmatmul.mubr.bf16.gmra.mxu0 %v16409_v43  ;;  %15858 = vmatprep.subr.bf16.mxu0 %v16410_v31  ;;  %v14054_v43 = vcombine.low %v11586_v9, %v11596_v26  ;;  %v14067_v21 = vrot.slane %v11902_v15, 9  ;;  %v11648_v53 = vrot.slane %v11646_v41, 4  ;;  %v11651_v52 = vrot.slane %v11649_v22, 5  ;;  %v22158_v26 = vld [vmem:[#allocation39_spill] sm:$0xff] }
 0x372   : > { %15835 = vmatmul.mubr.bf16.vlgmr.msra.gmra.mxu1 %v14052_v6  ;;  %15814 = vmatprep.mubr.bf16.mxu0 %v16411_v35  ;;  %v20870_v6 = vpop.f32.mrf.mxu0  ;;  %v16412_v35 = vld [vmem:[#allocation9 + $0x1a8] sm:$0xff]   ;;  %v11620_v51 = vsel %vm16892_vm11, %v11615_v33, %v11619_v13  ;;  %v20878_v25 = vrot.slane %v11641_v55, 5  ;;  %v20886_v40 = vadd.f32 %v22158_v26, %v20669_v36  ;;  %v20890_v3 = vrot.slane %v11628_v14, 4  ;;  %v20897_v55 = vpop.f32.mrf.mxu1  ;;  %v22160_v36 = vld [vmem:[#allocation35_spill] sm:$0xff]  ;;  %v16414_v14 = vld [vmem:[#allocation9 + $0x1a0] sm:$0xff]  }
 0x373   : > { %15838 = vmatprep.mubr.bf16.mxu1 %v14053_v37  ;;  %15883 = vmatpush3.bf16.msra.mxu1 %v16406_v61  ;;  %22157 = vst [vmem:[#allocation67_spill] sm:$0xff] %v20870_v6  ;;  %v11498_v61 = vld [vmem:[#allocation3 + $0xc0] sm:$0xf]  ;;  %v20882_v37 = vld [vmem:[#allocation3 + $0xbc] sm:$0x1]  ;;  %v20892_v41 = vrot.slane %v11638_v49, 4  ;;  %v11937_v33 = vsel %vm17071_vm14, %v14067_v21, %v11936_v47  ;;  %v11662_v22 = vor.u32 %v11661_v7, %v20868_v8 }
 0x374   : > { %15884 = vmatprep.subr.bf16.mxu1 %v16408_v34  ;;  %15859 = vmatpush3.bf16.msra.mxu0 %v16410_v31  ;;  %v11940_v31 = vsel %vm17071_vm14, %v11938_v58, %v11939_v60  ;;  %22159 = vst [vmem:[#allocation39_spill] sm:$0xff] %v20897_v55  ;;  %v16415_v60 = vld [vmem:[#allocation3 + $0xc0] sm:$0xff]   ;;  %v20902_v58 = vadd.f32 %v22160_v36, %v20677_v24  ;;  %v11670_v19 = vshrl.u32 %v11498_v61, 16  ;;  %v11673_v9 = vshll.u32 %v11498_v61, 16  ;;  %v20904_v13 = vpop.f32.mrf.mxu0  ;;  %v22162_v21 = vld [vmem:[#allocation28_spill] sm:$0xff]  ;;  %v22163_v26 = vld [vmem:[#allocation23_spill] sm:$0xff] }
 0x375   : > { %15860 = vmatprep.subr.bf16.mxu0 %v16413_v42  ;;  %22161 = vst [vmem:[#allocation35_spill] sm:$0xff] %v20904_v13  ;;  %v14075_v47 = vcombine.low %v11937_v33, %v11940_v31  ;;  %v11652_v49 = vor.u32 %v11651_v52, %v11648_v53  ;;  %v11665_v7 = vshll.u32 %v20882_v37, 16  ;;  %v20910_v15 = vadd.f32 %v22163_v26, %v22162_v21  ;;  %v22164_v24 = vld [vmem:[#allocation31_spill] sm:$0xff]  ;;  %v22165_v36 = vld [vmem:[#allocation49_spill] sm:$0xff]  ;;  %v16418_v61 = vld [vmem:[#allocation9 + $0x140] sm:$0xff]   ;;  %v20927_v33 = vpop.f32.mrf.mxu1 }
 0x376   : > { %v14055_v6 = vcombine.low %v11610_v32, %v11620_v51  ;;  %v20914_v55 = vadd.f32 %v22165_v36, %v22164_v24  ;;  %v11634_v53 = vsel %vm16892_vm11, %v20890_v3, %v20840_v12  ;;  %v11644_v32 = vsel %vm16892_vm11, %v20892_v41, %v20878_v25  ;;  %v11903_v51 = vld [vmem:[#allocation3 + $0x78] sm:$0xe]  ;;  %v20931_v3 = vpop.f32.mrf.mxu0  ;;  %v16417_v25 = vld [vmem:[#allocation9 + $0x198] sm:$0xff]   ;;  %v11904_v36 = vld [vmem:[#allocation3 + $0x84] sm:$0xe] }
 0x377   : > { %15885 = vmatpush3.bf16.msra.mxu1 %v16408_v34  ;;  %v11679_v34 = vshll.u32 %v20888_v29, 16  ;;  %v11663_v52 = vrot.slane %v11662_v22, 4  ;;  %v11672_v21 = vrot.slane %v11670_v19, 4  ;;  %v11675_v26 = vrot.slane %v11673_v9, 5  ;;  %22167 = vst [vmem:[#allocation28_spill] sm:$0xff] %v20931_v3  ;;  %v16420_v9 = vld [vmem:[#allocation9 + $0x1f8] sm:$0xff]  }
 0x378   : > { %15886 = vmatprep.subr.bf16.mxu1 %v16412_v35  ;;  %15861 = vmatpush3.bf16.msra.mxu0 %v16413_v42  ;;  %v11683_v42 = vshrl.u32 %v20888_v29, 16  ;;  %v11653_v41 = vrot.slane %v11652_v49, 4  ;;  %v11667_v22 = vrot.slane %v11665_v7, 5  ;;  %v11946_v19 = vrot.slane %v20751_v38, 5  ;;  %v16432_v3 = vld [vmem:[#allocation3 + $0x9c] sm:$0xff]   ;;  %v16442_v13 = vld [vmem:[#allocation9 + $0x210] sm:$0xff]  }
 0x379   : > { %15815 = vmatmul.mubr.bf16.gmra.mxu0 %v16415_v60  ;;  %15862 = vmatprep.subr.bf16.mxu0 %v16416_v28  ;;  %v20925_v31 = vrot.slane %v11679_v34, 5  ;;  %v11950_v34 = vrot.slane %v20693_v57, 5  ;;  %v11953_v7 = vrot.slane %v20775_v46, 5  ;;  %v16419_v46 = vld [vmem:[#allocation9 + $0x190] sm:$0xff]  }
 0x37a   : > { %15839 = vmatmul.mubr.bf16.gmra.mxu1 %v14054_v43  ;;  %15866 = vmatprep.mubr.bf16.mxu0 %v14075_v47  ;;  %v22166_v43 = vrot.slane %v20656_v30, 5  ;;  %v11685_v12 = vrot.slane %v11683_v42, 4  ;;  %v20933_v47 = vld [vmem:[#allocation3 + $0xc8] sm:$0x1]  ;;  %v11668_v49 = vsel %vm16892_vm11, %v11663_v52, %v11667_v22  ;;  %v11676_v42 = vor.u32 %v11675_v26, %v11672_v21  ;;  %v11905_v26 = vld [vmem:[#allocation3 + $0x90] sm:$0xe] }
 0x37b   : > { %15842 = vmatprep.mubr.bf16.mxu1 %v14055_v6  ;;  %15887 = vmatpush3.bf16.msra.mxu1 %v16412_v35  ;;  %v20938_v6 = vadd.f32 %v20552_v1, %v20749_v20  ;;  %v14068_v35 = vrot.slane %v11903_v51, 9  ;;  %v11952_v57 = vrot.slane %v11950_v34, 4  ;;  %v11957_v1 = vrot.slane %v20737_v54, 5  ;;  %v20950_v20 = vpop.f32.mrf.mxu1 }
 0x37c   : > { %v11945_v60 = vrot.slane %v22166_v43, 4  ;;  %15888 = vmatprep.subr.bf16.mxu1 %v16414_v14  ;;  %15863 = vmatpush3.bf16.msra.mxu0 %v16416_v28  ;;  %v11686_v24 = vor.u32 %v11685_v12, %v20925_v31  ;;  %v20944_v28 = vadd.f32 %v20568_v45, %v20755_v0  ;;  %22168 = vst [vmem:[#allocation23_spill] sm:$0xff] %v20950_v20  ;;  %v11689_v51 = vshll.u32 %v20933_v47, 16  ;;  %v20959_v0 = vpop.f32.mrf.mxu0  ;;  %v16438_v20 = vld [vmem:[#allocation3 + $0xb4] sm:$0xff]  }
 0x37d   : > { %15864 = vmatprep.subr.bf16.mxu0 %v16418_v61  ;;  %v20957_v45 = vadd.f32 %v20578_v63, %v20759_v50  ;;  %v14056_v52 = vcombine.low %v11634_v53, %v11644_v32  ;;  %v11658_v54 = vsel %vm16892_vm11, %v11653_v41, %v20868_v8  ;;  %v11954_v43 = vsel %vm17071_vm14, %v11952_v57, %v11953_v7  ;;  %v22174_v57 = vld [vmem:[#allocation50_spill] sm:$0xff] }
 0x37e   : > { %v11947_v38 = vsel %vm17071_vm14, %v11945_v60, %v11946_v19  ;;  %v14057_v60 = vcombine.low %v11658_v54, %v11668_v49  ;;  %v22170_v21 = vrot.slane %v20656_v30, 5  ;;  %v11687_v50 = vrot.slane %v11686_v24, 4  ;;  %v20977_v30 = vpop.f32.mrf.mxu1  ;;  %v20983_v24 = vpop.f32.mrf.mxu0  ;;  %v22173_v49 = vld [vmem:[#allocation42_spill] sm:$0xff] }
 0x37f   : > { %15889 = vmatpush3.bf16.msra.mxu1 %v16414_v14  ;;  %22169 = vst [vmem:[#allocation31_spill] sm:$0xff] %v20957_v45  ;;  %v14069_v14 = vrot.slane %v11904_v36, 9  ;;  %v11964_v53 = vrot.slane %v20766_v48, 5  ;;  %v11959_v12 = vrot.slane %v11957_v1, 4  ;;  %v20975_v41 = vadd.f32 %v20590_v18, %v20809_v56  ;;  %22172 = vst [vmem:[#allocation68_spill] sm:$0xff] %v20977_v30 }
 0x380   : > { %15890 = vmatprep.subr.bf16.mxu1 %v16417_v25  ;;  %15865 = vmatpush3.bf16.msra.mxu0 %v16418_v61  ;;  %v11944_v63 = vsel %vm17071_vm14, %v14068_v35, %v22170_v21  ;;  %v16423_v61 = vld [vmem:[#allocation9 + $0x1f0] sm:$0xff]   ;;  %v11677_v22 = vrot.slane %v11676_v42, 4  ;;  %v11691_v35 = vrot.slane %v11689_v51, 5  ;;  %v20981_v48 = vadd.f32 %v20601_v10, %v20850_v39  ;;  %v16425_v51 = vld [vmem:[#allocation9 + $0x1e8] sm:$0xff]   ;;  %v21003_v54 = vpop.f32.mrf.mxu1 }
 0x381   : > { %15914 = vmatprep.subr.bf16.mxu0 %v16420_v9  ;;  %v14076_v32 = vcombine.low %v11944_v63, %v11947_v38  ;;  %v11951_v8 = vsel %vm17071_vm14, %v14069_v14, %v11950_v34  ;;  %22171 = vst [vmem:[#allocation49_spill] sm:$0xff] %v20975_v41  ;;  %v16421_v34 = vld [vmem:[#allocation9 + $0x188] sm:$0xff]   ;;  %v11960_v36 = vrot.slane %v20795_v23, 5  ;;  %v11966_v18 = vrot.slane %v11964_v53, 4  ;;  %v11906_v38 = vld [vmem:[#allocation3 + $0x9c] sm:$0xe] }
 0x382   : > { %15843 = vmatmul.mubr.bf16.gmra.mxu1 %v14056_v52  ;;  %v14077_v19 = vcombine.low %v11951_v8, %v11954_v43  ;;  %v11971_v56 = vrot.slane %v20805_v27, 5  ;;  %v7995_v7 = vadd.f32 %v22174_v57, %v22173_v49  ;;  %v11692_v10 = vsel %vm16892_vm11, %v11687_v50, %v11691_v35  ;;  %22176 = vst [vmem:[#allocation42_spill] sm:$0xff] %v21003_v54  ;;  %v22177_v14 = vld [vmem:[#allocation32_spill] sm:$0xff]  ;;  %v22178_v43 = vld [vmem:[#allocation51_spill] sm:$0xff]  ;;  %v22179_v63 = vld [vmem:[#allocation54_spill] sm:$0xff] }
 0x383   : > { %15846 = vmatprep.mubr.bf16.mxu1 %v14057_v60  ;;  %15891 = vmatpush3.bf16.msra.mxu1 %v16417_v25  ;;  %v20989_v25 = vadd.f32 %v20611_v44, %v20910_v15  ;;  %v14070_v39 = vrot.slane %v11905_v26, 9  ;;  %v11978_v42 = vrot.slane %v20843_v2, 5  ;;  %v11961_v23 = vsel %vm17071_vm14, %v11959_v12, %v11960_v36  ;;  %v22175_v15 = vld [vmem:[#allocation27_spill] sm:$0xff]  ;;  %v16424_v8 = vld [vmem:[#allocation9 + $0x180] sm:$0xff]   ;;  %v11907_v49 = vld [vmem:[#allocation3 + $0xa8] sm:$0xe] }
 0x384   : > { %15892 = vmatprep.subr.bf16.mxu1 %v16419_v46  ;;  %15867 = vmatmul.mubr.bf16.vlgmr.msra.gmra.mxu0 %v14076_v32  ;;  %v11967_v44 = vrot.slane %v20822_v17, 5  ;;  %v21001_v52 = vadd.f32 %v22175_v15, %v20914_v55  ;;  %v11682_v60 = vsel %vm16892_vm11, %v11677_v22, %v20925_v31  ;;  %v21013_v50 = vadd.f32 %v22179_v63, %v7995_v7  ;;  %v12441_v17 = vld [vmem:[#allocation3 + $0x78] sm:$0xf]  ;;  %v21015_v32 = vpop.f32.mrf.mxu0  ;;  %v21021_v31 = vld [vmem:[#allocation3 + $0x7c] sm:$0xf]  ;;  %v22180_v22 = vld [vmem:[#allocation33_spill] sm:$0xff] }
 0x385   : > { %15870 = vmatprep.mubr.bf16.mxu0 %v14077_v19  ;;  %15915 = vmatpush3.bf16.msra.mxu0 %v16420_v9  ;;  %v7987_v9 = vadd.f32 %v22178_v43, %v22177_v14  ;;  %v11958_v21 = vsel %vm17071_vm14, %v14070_v39, %v11957_v1  ;;  %v14058_v55 = vcombine.low %v11682_v60, %v11692_v10  ;;  %v14071_v26 = vrot.slane %v11906_v38, 9  ;;  %v22181_v1 = vld [vmem:[#allocation52_spill] sm:$0xff]  ;;  %v11908_v57 = vld [vmem:[#allocation3 + $0xb4] sm:$0xe]  ;;  %v21072_v27 = vld [vmem:[#allocation3 + $0xc0] sm:$0xe] }
 0x386   : > { %15916 = vmatprep.subr.bf16.mxu0 %v16423_v61  ;;  %v11973_v12 = vrot.slane %v11971_v56, 4  ;;  %v7998_v35 = vadd.f32 %v22181_v1, %v22180_v22  ;;  %v16422_v19 = vld [vmem:[#allocation3 + $0x78] sm:$0xff]   ;;  %v14078_v36 = vcombine.low %v11958_v21, %v11961_v23  ;;  %v11980_v7 = vrot.slane %v11978_v42, 4  ;;  %v12444_v21 = vld [vmem:[#allocation3 + $0x84] sm:$0xf]  ;;  %v21038_v63 = vpop.f32.mrf.mxu0 }
 0x387   : > { %15893 = vmatpush3.bf16.msra.mxu1 %v16419_v46  ;;  %v11968_v46 = vsel %vm17071_vm14, %v11966_v18, %v11967_v44  ;;  %v22182_v10 = vld [vmem:[#allocation56_spill] sm:$0xff]  ;;  %v11965_v18 = vsel %vm17071_vm14, %v14071_v26, %v11964_v53  ;;  %v11974_v44 = vrot.slane %v20836_v62, 5  ;;  %v12466_v15 = vshrl.u32 %v12441_v17, 16  ;;  %22184 = vst [vmem:[#allocation27_spill] sm:$0xff] %v21038_v63  ;;  %v16427_v53 = vld [vmem:[#allocation9 + $0x238] sm:$0xff]  }
 0x388   : > { %15894 = vmatprep.subr.bf16.mxu1 %v16421_v34  ;;  %v21028_v39 = vadd.f32 %v22182_v10, %v7987_v9  ;;  %v16429_v38 = vld [vmem:[#allocation9 + $0x1e0] sm:$0xff]   ;;  %v12469_v14 = vshll.u32 %v12441_v17, 16  ;;  %v14079_v23 = vcombine.low %v11965_v18, %v11968_v46  ;;  %v11981_v43 = vrot.slane %v20882_v37, 5  ;;  %v21045_v46 = vld [vmem:[#allocation3 + $0x88] sm:$0xf]  ;;  %v16431_v37 = vld [vmem:[#allocation9 + $0x1d8] sm:$0xff]  }
 0x389   : > { %15917 = vmatpush3.bf16.msra.mxu0 %v16423_v61  ;;  %v21033_v61 = vpop.f32.mrf.mxu1  ;;  %v12475_v9 = vshll.u32 %v21021_v31, 16  ;;  %v12479_v60 = vshrl.u32 %v21021_v31, 16  ;;  %v14072_v62 = vrot.slane %v11907_v49, 9  ;;  %v11975_v17 = vsel %vm17071_vm14, %v11973_v12, %v11974_v44  ;;  %v16426_v49 = vld [vmem:[#allocation3 + $0x84] sm:$0xff]  }
 0x38a   : > { %15847 = vmatmul.mubr.bf16.gmra.mxu1 %v14058_v55  ;;  %15918 = vmatprep.subr.bf16.mxu0 %v16425_v51  ;;  %22183 = vst [vmem:[#allocation50_spill] sm:$0xff] %v21033_v61  ;;  %v14073_v55 = vrot.slane %v11908_v57, 9  ;;  %v11982_v22 = vsel %vm17071_vm14, %v11980_v7, %v11981_v43  ;;  %v21909_v1 = vrot.slane %v20888_v29, 5  ;;  %v21052_v12 = vld [vmem:[#allocation9 + $0x230] sm:$0xff]   ;;  %v21054_v57 = vld [vmem:[#allocation3 + $0x80] sm:$0x1] }
 0x38b   : > { %15895 = vmatpush3.bf16.msra.mxu1 %v16421_v34  ;;  %15898 = vmatprep.mubr.bf16.mxu1 %v16422_v19  ;;  %v22185_v34 = vld [vmem:[#allocation57_spill] sm:$0xff]  ;;  %v21050_v19 = vrot.slane %v12475_v9, 5  ;;  %v12471_v10 = vrot.slane %v12469_v14, 5  ;;  %v12490_v18 = vshrl.u32 %v12444_v21, 16  ;;  %v12493_v44 = vshll.u32 %v12444_v21, 16 }
 0x38c   : > { %15896 = vmatprep.subr.bf16.mxu1 %v16424_v8  ;;  %15871 = vmatmul.mubr.bf16.gmra.mxu0 %v14078_v36  ;;  %v21043_v26 = vadd.f32 %v22185_v34, %v7998_v35  ;;  %v12481_v36 = vrot.slane %v12479_v60, 4  ;;  %v12468_v35 = vrot.slane %v12466_v15, 4  ;;  %v11972_v7 = vsel %vm17071_vm14, %v14072_v62, %v11971_v56  ;;  %v21066_v43 = vld [vmem:[#allocation3 + $0x8c] sm:$0x1]  ;;  %v12447_v62 = vld [vmem:[#allocation3 + $0x90] sm:$0xf] }
 0x38d   : > { %15874 = vmatprep.mubr.bf16.mxu0 %v14079_v23  ;;  %15919 = vmatpush3.bf16.msra.mxu0 %v16425_v51  ;;  %v21056_v51 = vpop.f32.mrf.mxu1  ;;  %v11979_v23 = vsel %vm17071_vm14, %v14073_v55, %v11978_v42  ;;  %v12499_v15 = vshll.u32 %v21045_v46, 16  ;;  %v12503_v14 = vshrl.u32 %v21045_v46, 16  ;;  %v1008_v9 = vld [vmem:[#allocation3 + $0xcc] sm:$0x1]  ;;  %v21070_v60 = vpop.f32.mrf.mxu0  ;;  %v12492_v21 = vrot.slane %v12490_v18, 4  ;;  %v16428_v34 = vld [vmem:[#allocation3 + $0x90] sm:$0xff]  }
 0x38e   : > { %15920 = vmatprep.subr.bf16.mxu0 %v16429_v38  ;;  %22186 = vst [vmem:[#allocation32_spill] sm:$0xff] %v21056_v51  ;;  %v12482_v56 = vor.u32 %v12481_v36, %v21050_v19  ;;  %v12495_v2 = vrot.slane %v12493_v44, 5  ;;  %v14081_v42 = vcombine.low %v11979_v23, %v11982_v22  ;;  %v11987_v55 = vrot.slane %v21909_v1, 4  ;;  %v21079_v61 = vld [vmem:[#allocation3 + $0x94] sm:$0xf] }
 0x38f   : > { %15897 = vmatpush3.bf16.msra.mxu1 %v16424_v8  ;;  %v14080_v8 = vcombine.low %v11972_v7, %v11975_v17  ;;  %v21077_v63 = vrot.slane %v12499_v15, 5  ;;  %v12505_v51 = vrot.slane %v12503_v14, 4  ;;  %v21081_v54 = vpop.f32.mrf.mxu0  ;;  %v16435_v17 = vld [vmem:[#allocation9 + $0x1d0] sm:$0xff]   ;;  %v12472_v36 = vor.u32 %v12471_v10, %v12468_v35  ;;  %v21087_v7 = vpop.f32.mrf.mxu1  ;;  %v16433_v35 = vld [vmem:[#allocation9 + $0x228] sm:$0xff]  }
 0x390   : > { %15946 = vmatprep.subr.bf16.mxu1 %v16427_v53  ;;  %v12485_v18 = vshll.u32 %v21054_v57, 16  ;;  %v12509_v44 = vshll.u32 %v21066_v43, 16  ;;  %v1009_v22 = vsel %vm16835_vm3, 0, %v1008_v9  ;;  %22188 = vst [vmem:[#allocation51_spill] sm:$0xff] %v21087_v7  ;;  %v12496_v23 = vor.u32 %v12495_v2, %v12492_v21 }
 0x391   : > { %15921 = vmatpush3.bf16.msra.mxu0 %v16429_v38  ;;  %v12506_v15 = vor.u32 %v12505_v51, %v21077_v63  ;;  %1010 = vst [vmem:[#allocation3 + $0xcc] sm:$0x1] %v1009_v22  ;;  %v12514_v14 = vshrl.u32 %v12447_v62, 16  ;;  %v21090_v1 = vpop.f32.mrf.mxu0  ;;  %v14074_v10 = vrot.slane %v21072_v27, 9  ;;  %v11988_v9 = vrot.slane %v20933_v47, 5  ;;  %v16437_v22 = vld [vmem:[#allocation9 + $0x1c8] sm:$0xff]  }
 0x392   : > { %15899 = vmatmul.mubr.bf16.vlgmr.msra.gmra.mxu1 %v16426_v49  ;;  %15922 = vmatprep.subr.bf16.mxu0 %v16431_v37  ;;  %v12517_v49 = vshll.u32 %v12447_v62, 16  ;;  %v12483_v38 = vrot.slane %v12482_v56, 4  ;;  %v12527_v2 = vshrl.u32 %v21079_v61, 16  ;;  %v12473_v27 = vrot.slane %v12472_v36, 4  ;;  %v21101_v47 = vld [vmem:[#allocation3 + $0x98] sm:$0x1] }
 0x393   : > { %15902 = vmatprep.mubr.bf16.mxu1 %v16428_v34  ;;  %15947 = vmatpush3.bf16.msra.mxu1 %v16427_v53  ;;  %v12523_v34 = vshll.u32 %v21079_v61, 16  ;;  %v12507_v53 = vrot.slane %v12506_v15, 4  ;;  %v12516_v51 = vrot.slane %v12514_v14, 4  ;;  %v21097_v62 = vpop.f32.mrf.mxu0  ;;  %v12487_v7 = vrot.slane %v12485_v18, 5 }
 0x394   : > { %15948 = vmatprep.subr.bf16.mxu1 %v21052_v12  ;;  %15875 = vmatmul.mubr.bf16.gmra.mxu0 %v14080_v8  ;;  %v12519_v21 = vrot.slane %v12517_v49, 5  ;;  %22189 = vst [vmem:[#allocation54_spill] sm:$0xff] %v21097_v62  ;;  %v11989_v8 = vsel %vm17071_vm14, %v11987_v55, %v11988_v9  ;;  %v12511_v15 = vrot.slane %v12509_v44, 5  ;;  %v12529_v49 = vrot.slane %v12527_v2, 4  ;;  %v12450_v62 = vld [vmem:[#allocation3 + $0x9c] sm:$0xf] }
 0x395   : > { %15878 = vmatprep.mubr.bf16.mxu0 %v14081_v42  ;;  %15923 = vmatpush3.bf16.msra.mxu0 %v16431_v37  ;;  %v21103_v56 = vrot.slane %v12523_v34, 5  ;;  %v21105_v42 = vpop.f32.mrf.mxu1  ;;  %v12497_v37 = vrot.slane %v12496_v23, 4  ;;  %v21108_v30 = vpop.f32.mrf.mxu0  ;;  %v16436_v55 = vld [vmem:[#allocation9 + $0x220] sm:$0xff]   ;;  %v22191_v36 = vrot.slane %v20888_v29, 5  ;;  %v12488_v9 = vsel %vm16892_vm11, %v12483_v38, %v12487_v7  ;;  %v16434_v34 = vld [vmem:[#allocation3 + $0xa8] sm:$0xff]  }
 0x396   : > { %15924 = vmatprep.subr.bf16.mxu0 %v16435_v17  ;;  %22190 = vst [vmem:[#allocation33_spill] sm:$0xff] %v21105_v42  ;;  %v12520_v14 = vor.u32 %v12519_v21, %v12516_v51  ;;  %v12512_v44 = vsel %vm16892_vm11, %v12507_v53, %v12511_v15  ;;  %v21119_v51 = vld [vmem:[#allocation3 + $0x78] sm:$0xe]  ;;  %v21122_v2 = vld [vmem:[#allocation3 + $0xa0] sm:$0xf]  ;;  %v12533_v38 = vshll.u32 %v21101_v47, 16 }
 0x397   : > { %15949 = vmatpush3.bf16.msra.mxu1 %v21052_v12  ;;  %v11986_v18 = vsel %vm17071_vm14, %v14074_v10, %v22191_v36  ;;  %v12530_v23 = vor.u32 %v12529_v49, %v21103_v56  ;;  %v21124_v29 = vpop.f32.mrf.mxu0  ;;  %v16441_v7 = vld [vmem:[#allocation9 + $0x1c0] sm:$0xff]   ;;  %v12538_v53 = vshrl.u32 %v12450_v62, 16  ;;  %v12502_v49 = vsel %vm16892_vm11, %v12497_v37, %v21077_v63  ;;  %v12453_v36 = vld [vmem:[#allocation3 + $0xa8] sm:$0xf]  ;;  %v21138_v42 = vld [vmem:[#allocation3 + $0xa4] sm:$0x1] }
 0x398   : > { %15950 = vmatprep.subr.bf16.mxu1 %v16433_v35  ;;  %v14082_v12 = vcombine.low %v11986_v18, %v11989_v8  ;;  %v12521_v10 = vrot.slane %v12520_v14, 4  ;;  %v21130_v8 = vpop.f32.mrf.mxu1  ;;  %v14123_v21 = vrot.slane %v21119_v51, 9  ;;  %v12551_v37 = vshrl.u32 %v21122_v2, 16 }
 0x399   : > { %15925 = vmatpush3.bf16.msra.mxu0 %v16435_v17  ;;  %v12478_v17 = vsel %vm16892_vm11, %v12473_v27, %v21050_v19  ;;  %22192 = vst [vmem:[#allocation52_spill] sm:$0xff] %v21130_v8  ;;  %v21135_v18 = vpop.f32.mrf.mxu0  ;;  %v16439_v19 = vld [vmem:[#allocation9 + $0x218] sm:$0xff]   ;;  %v14108_v27 = vcombine.low %v12502_v49, %v12512_v44  ;;  %v12531_v14 = vrot.slane %v12530_v23, 4  ;;  %v12535_v44 = vrot.slane %v12533_v38, 5  ;;  %v16440_v38 = vld [vmem:[#allocation3 + $0xc0] sm:$0xff]  }
 0x39a   : > { %15903 = vmatmul.mubr.bf16.gmra.mxu1 %v16432_v3  ;;  %15926 = vmatprep.subr.bf16.mxu0 %v16437_v22  ;;  %v14107_v15 = vcombine.low %v12478_v17, %v12488_v9  ;;  %v12541_v3 = vshll.u32 %v12450_v62, 16  ;;  %v12547_v62 = vshll.u32 %v21122_v2, 16  ;;  %v21144_v17 = vld [vmem:[#allocation3 + $0xac] sm:$0xf]  ;;  %v12903_v23 = vrot.slane %v21054_v57, 5  ;;  %v21150_v51 = vpop.f32.mrf.mxu1 }
 0x39b   : > { %15906 = vmatprep.mubr.bf16.mxu1 %v16434_v34  ;;  %15951 = vmatpush3.bf16.msra.mxu1 %v16433_v35  ;;  %v12540_v34 = vrot.slane %v12538_v53, 4  ;;  %v22193_v35 = vrot.slane %v21021_v31, 5  ;;  %22194 = vst [vmem:[#allocation56_spill] sm:$0xff] %v21150_v51  ;;  %v12553_v49 = vrot.slane %v12551_v37, 4  ;;  %v21156_v8 = vpop.f32.mrf.mxu0  ;;  %v12557_v57 = vshll.u32 %v21138_v42, 16 }
 0x39c   : > { %15952 = vmatprep.subr.bf16.mxu1 %v16436_v55  ;;  %15879 = vmatmul.mubr.bf16.gmra.mxu0 %v14082_v12  ;;  %v12543_v63 = vrot.slane %v12541_v3, 5  ;;  %v12526_v12 = vsel %vm16892_vm11, %v12521_v10, %v21103_v56  ;;  %v21154_v3 = vld [vmem:[#allocation3 + $0xb0] sm:$0x1]  ;;  %v12536_v56 = vsel %vm16892_vm11, %v12531_v14, %v12535_v44  ;;  %v12867_v44 = vld [vmem:[#allocation3 + $0x84] sm:$0xe]  ;;  %v21170_v41 = vpop.f32.mrf.mxu1 }
 0x39d   : > { %15927 = vmatpush3.bf16.msra.mxu0 %v16437_v22  ;;  %15930 = vmatprep.mubr.bf16.mxu0 %v14107_v15  ;;  %v12902_v9 = vrot.slane %v22193_v35, 4  ;;  %v12562_v22 = vshrl.u32 %v12453_v36, 16  ;;  %v21152_v15 = vrot.slane %v12547_v62, 5  ;;  %v12565_v35 = vshll.u32 %v12453_v36, 16  ;;  %22195 = vst [vmem:[#allocation57_spill] sm:$0xff] %v21170_v41 }
 0x39e   : > { %15928 = vmatprep.subr.bf16.mxu0 %v16441_v7  ;;  %v12544_v53 = vor.u32 %v12543_v63, %v12540_v34  ;;  %v12575_v62 = vshrl.u32 %v21144_v17, 16  ;;  %v12581_v14 = vshll.u32 %v21154_v3, 16 }
 0x39f   : > { %15953 = vmatpush3.bf16.msra.mxu1 %v16436_v55  ;;  %v12564_v10 = vrot.slane %v12562_v22, 4  ;;  %v12571_v55 = vshll.u32 %v21144_v17, 16  ;;  %v21164_v34 = vsel %vm17071_vm14, %v12902_v9, %v12903_v23  ;;  %v12554_v36 = vor.u32 %v12553_v49, %v21152_v15  ;;  %v21172_v49 = vpop.f32.mrf.mxu0 }
 0x3a0   : > { %15954 = vmatprep.subr.bf16.mxu1 %v16439_v19  ;;  %v12567_v63 = vrot.slane %v12565_v35, 5  ;;  %v12545_v37 = vrot.slane %v12544_v53, 4  ;;  %v12907_v22 = vrot.slane %v21045_v46, 5  ;;  %v12577_v45 = vrot.slane %v12575_v62, 4 }
 0x3a1   : > { %15929 = vmatpush3.bf16.msra.mxu0 %v16441_v7  ;;  %v12573_v51 = vrot.slane %v12571_v55, 5  ;;  %v14109_v7 = vcombine.low %v12526_v12, %v12536_v56  ;;  %v12555_v9 = vrot.slane %v12554_v36, 4  ;;  %v22196_v53 = vrot.slane %v21021_v31, 5  ;;  %v12868_v56 = vld [vmem:[#allocation3 + $0x90] sm:$0xe] }
 0x3a2   : > { %15907 = vmatmul.mubr.bf16.gmra.mxu1 %v16438_v20  ;;  %v12568_v23 = vor.u32 %v12567_v63, %v12564_v10  ;;  %v16444_v20 = vld [vmem:[#allocation9 + $0x208] sm:$0xff]   ;;  %v12559_v55 = vrot.slane %v12557_v57, 5  ;;  %v12909_v46 = vrot.slane %v12907_v22, 4  ;;  %v12910_v12 = vrot.slane %v21066_v43, 5  ;;  %v16443_v10 = vld [vmem:[#allocation3 + $0xcc] sm:$0xff]   ;;  %v21184_v57 = vpop.f32.mrf.mxu1 }
 0x3a3   : > { %15910 = vmatprep.mubr.bf16.mxu1 %v16440_v38  ;;  %15955 = vmatpush3.bf16.msra.mxu1 %v16439_v19  ;;  %v12901_v35 = vsel %vm17071_vm14, %v14123_v21, %v22196_v53  ;;  %v12578_v38 = vor.u32 %v12577_v45, %v12573_v51  ;;  %v14124_v19 = vrot.slane %v12867_v44, 9  ;;  %v12583_v31 = vrot.slane %v12581_v14, 5  ;;  %v12456_v21 = vld [vmem:[#allocation3 + $0xb4] sm:$0xf]  ;;  %v21192_v44 = vpop.f32.mrf.mxu0  ;;  %v21203_v53 = vld [vmem:[#allocation3 + $0xbc] sm:$0x1] }
 0x3a4   : > { %15956 = vmatprep.subr.bf16.mxu1 %v16442_v13  ;;  %15931 = vmatmul.mubr.bf16.vlgmr.msra.gmra.mxu0 %v14108_v27  ;;  %v12569_v41 = vrot.slane %v12568_v23, 4  ;;  %v14131_v36 = vcombine.low %v12901_v35, %v21164_v34  ;;  %v12550_v27 = vsel %vm16892_vm11, %v12545_v37, %v21152_v15  ;;  %v12914_v63 = vrot.slane %v21079_v61, 5  ;;  %v16445_v15 = vld [vmem:[#allocation9 + $0x200] sm:$0xff]  }
 0x3a5   : > { %15934 = vmatprep.mubr.bf16.mxu0 %v14109_v7  ;;  %v12560_v45 = vsel %vm16892_vm11, %v12555_v9, %v12559_v55  ;;  %v12579_v62 = vrot.slane %v12578_v38, 4  ;;  %v12908_v43 = vsel %vm17071_vm14, %v14124_v19, %v12907_v22  ;;  %v12911_v34 = vsel %vm17071_vm14, %v12909_v46, %v12910_v12  ;;  %v21197_v23 = vld [vmem:[#allocation3 + $0xb8] sm:$0xf]  ;;  %v12459_v46 = vld [vmem:[#allocation3 + $0xc0] sm:$0xf] }
 0x3a6   : > { %v14125_v37 = vrot.slane %v12868_v56, 9  ;;  %v12916_v61 = vrot.slane %v12914_v63, 4  ;;  %v12917_v14 = vrot.slane %v21101_v47, 5  ;;  %v12574_v9 = vsel %vm16892_vm11, %v12569_v41, %v12573_v51  ;;  %v21210_v56 = vpop.f32.mrf.mxu1 }
 0x3a7   : > { %15957 = vmatpush3.bf16.msra.mxu1 %v16442_v13  ;;  %v22197_v13 = vld [vmem:[#allocation24_spill] sm:$0xff]  ;;  %v12584_v22 = vsel %vm16892_vm11, %v12579_v62, %v12583_v31  ;;  %v12586_v35 = vshrl.u32 %v12456_v21, 16  ;;  %v12589_v55 = vshll.u32 %v12456_v21, 16  ;;  %v14110_v38 = vcombine.low %v12550_v27, %v12560_v45  ;;  %22198 = vst [vmem:[#allocation17_spill] sm:$0xff] %v21210_v56  ;;  %v22199_v45 = vld [vmem:[#allocation19_spill] sm:$0xff] }
 0x3a8   : > { %15958 = vmatprep.subr.bf16.mxu1 %v16444_v20  ;;  %v8527_v7 = vadd.f32 %v22197_v13, %v20981_v48  ;;  %v14111_v19 = vcombine.low %v12574_v9, %v12584_v22  ;;  %v14132_v47 = vcombine.low %v12908_v43, %v12911_v34  ;;  %v21208_v48 = vld [vmem:[#allocation3 + $0xc4] sm:$0xf]  ;;  %v12918_v41 = vsel %vm17071_vm14, %v12916_v61, %v12917_v14  ;;  %v21221_v34 = vld [vmem:[#allocation3 + $0xc8] sm:$0x1] }
 0x3a9   : > { %v12588_v51 = vrot.slane %v12586_v35, 4  ;;  %v12591_v31 = vrot.slane %v12589_v55, 5  ;;  %v12595_v21 = vshll.u32 %v21197_v23, 16  ;;  %v12605_v27 = vshll.u32 %v21203_v53, 16  ;;  %v12869_v35 = vld [vmem:[#allocation3 + $0x9c] sm:$0xe]  ;;  %v21229_v55 = vpop.f32.mrf.mxu1 }
 0x3aa   : > { %15911 = vmatmul.mubr.bf16.gmra.mxu1 %v16443_v10  ;;  %v21206_v12 = vadd.f32 %v20959_v0, %v8527_v7  ;;  %v21215_v10 = vpop.f32.mrf.mxu0  ;;  %v12599_v0 = vshrl.u32 %v21197_v23, 16  ;;  %v8525_v62 = vadd.f32 %v22199_v45, %v20989_v25  ;;  %v12613_v61 = vshll.u32 %v12459_v46, 16 }
 0x3ab   : > { %15959 = vmatpush3.bf16.msra.mxu1 %v16444_v20  ;;  %15962 = vmatprep.mubr.bf16.mxu1 %v14131_v36  ;;  %v12610_v20 = vshrl.u32 %v12459_v46, 16  ;;  %v12592_v36 = vor.u32 %v12591_v31, %v12588_v51  ;;  %v12597_v43 = vrot.slane %v12595_v21, 5  ;;  %v12619_v14 = vshll.u32 %v21208_v48, 16  ;;  %v21239_v56 = vpop.f32.mrf.mxu1 }
 0x3ac   : > { %15960 = vmatprep.subr.bf16.mxu1 %v16445_v15  ;;  %15935 = vmatmul.mubr.bf16.gmra.mxu0 %v14110_v38  ;;  %v12915_v13 = vsel %vm17071_vm14, %v14125_v37, %v12914_v63  ;;  %v12601_v7 = vrot.slane %v12599_v0, 4  ;;  %v21227_v9 = vadd.f32 %v20983_v24, %v8525_v62  ;;  %v12615_v38 = vrot.slane %v12613_v61, 5  ;;  %v21232_v46 = vpop.f32.mrf.mxu0 }
 0x3ad   : > { %15938 = vmatprep.mubr.bf16.mxu0 %v14111_v19  ;;  %v12612_v22 = vrot.slane %v12610_v20, 4  ;;  %v12593_v25 = vrot.slane %v12592_v36, 4  ;;  %v12621_v19 = vrot.slane %v12619_v14, 5  ;;  %v12623_v51 = vshrl.u32 %v21208_v48, 16  ;;  %v12870_v14 = vld [vmem:[#allocation3 + $0xa8] sm:$0xe] }
 0x3ae   : > { %v14133_v31 = vcombine.low %v12915_v13, %v12918_v41  ;;  %v12602_v21 = vor.u32 %v12601_v7, %v12597_v43  ;;  %v12629_v63 = vshll.u32 %v21221_v34, 16  ;;  %v12921_v37 = vrot.slane %v21122_v2, 5 }
 0x3af   : > { %15961 = vmatpush3.bf16.msra.mxu1 %v16445_v15  ;;  %v12607_v24 = vrot.slane %v12605_v27, 5  ;;  %v12616_v0 = vor.u32 %v12615_v38, %v12612_v22  ;;  %v12625_v45 = vrot.slane %v12623_v51, 4  ;;  %v14126_v62 = vrot.slane %v12869_v35, 9  ;;  %v21242_v27 = vpop.f32.mrf.mxu0  ;;  %v22200_v22 = vld [vmem:[#allocation55_spill] sm:$0xff]  ;;  %v12462_v38 = vld [vmem:[#allocation3 + $0xcc] sm:$0xf] }
 0x3b0   : > { %v12598_v15 = vsel %vm16892_vm11, %v12593_v25, %v12597_v43  ;;  %v12603_v20 = vrot.slane %v12602_v21, 4  ;;  %v12923_v36 = vrot.slane %v12921_v37, 4  ;;  %v12924_v61 = vrot.slane %v21138_v42, 5  ;;  %v1062_v25 = vld [vmem:[#allocation3 + $0xd4] sm:$0x1] }
 0x3b1   : > { %v12617_v41 = vrot.slane %v12616_v0, 4  ;;  %v12626_v13 = vor.u32 %v12625_v45, %v12621_v19  ;;  %v12631_v7 = vrot.slane %v12629_v63, 5  ;;  %v12928_v2 = vrot.slane %v21144_v17, 5  ;;  %v21258_v45 = vld [vmem:[#allocation3 + $0xd0] sm:$0xf] }
 0x3b2   : > { %15963 = vmatmul.mubr.bf16.vlgmr.msra.gmra.mxu1 %v14132_v47  ;;  %v12608_v47 = vsel %vm16892_vm11, %v12603_v20, %v12607_v24  ;;  %v12922_v43 = vsel %vm17071_vm14, %v14126_v62, %v12921_v37  ;;  %v12925_v42 = vsel %vm17071_vm14, %v12923_v36, %v12924_v61  ;;  %v8528_v35 = vadd.f32 %v22200_v22, %v21001_v52  ;;  %v21260_v62 = vpop.f32.mrf.mxu1  ;;  %v21268_v61 = vpop.f32.mrf.mxu0 }
 0x3b3   : > { %15966 = vmatprep.mubr.bf16.mxu1 %v14133_v31  ;;  %v14112_v51 = vcombine.low %v12598_v15, %v12608_v47  ;;  %v12627_v31 = vrot.slane %v12626_v13, 4  ;;  %v14127_v21 = vrot.slane %v12870_v14, 9  ;;  %v12931_v17 = vrot.slane %v21154_v3, 5  ;;  %v22201_v15 = vld [vmem:[#allocation60_spill] sm:$0xff] }
 0x3b4   : > { %v12622_v63 = vsel %vm16892_vm11, %v12617_v41, %v12621_v19  ;;  %v14134_v24 = vcombine.low %v12922_v43, %v12925_v42  ;;  %v12930_v0 = vrot.slane %v12928_v2, 4  ;;  %v21256_v37 = vadd.f32 %v21015_v32, %v8528_v35  ;;  %v22203_v35 = vld [vmem:[#allocation62_spill] sm:$0xff] }
 0x3b5   : > { %15939 = vmatmul.mubr.bf16.gmra.mxu0 %v14112_v51  ;;  %v12632_v52 = vsel %vm16892_vm11, %v12627_v31, %v12631_v7  ;;  %v8531_v20 = vadd.f32 %v22201_v15, %v21013_v50  ;;  %v1063_v36 = vsel %vm16840_vm4, 0, %v1062_v25  ;;  %v12634_v19 = vshrl.u32 %v12462_v38, 16  ;;  %v12871_v25 = vld [vmem:[#allocation3 + $0xb4] sm:$0xe]  ;;  %v21281_v51 = vpop.f32.mrf.mxu1 }
 0x3b6   : > { %v14113_v14 = vcombine.low %v12622_v63, %v12632_v52  ;;  %v12929_v32 = vsel %vm17071_vm14, %v14127_v21, %v12928_v2  ;;  %v12932_v41 = vsel %vm17071_vm14, %v12930_v0, %v12931_v17  ;;  %1064 = vst [vmem:[#allocation3 + $0xd4] sm:$0x1] %v1063_v36  ;;  %v12637_v13 = vshll.u32 %v12462_v38, 16  ;;  %v21284_v21 = vpop.f32.mrf.mxu0 }
 0x3b7   : > { %v14135_v47 = vcombine.low %v12929_v32, %v12932_v41  ;;  %v21275_v7 = vadd.f32 %v21070_v60, %v8531_v20  ;;  %v12636_v50 = vrot.slane %v12634_v19, 4  ;;  %v12643_v43 = vshll.u32 %v21258_v45, 16  ;;  %v12872_v60 = vld [vmem:[#allocation3 + $0xc0] sm:$0xe]  ;;  %v22204_v20 = vld [vmem:[#allocation64_spill] sm:$0xff]  ;;  %v21293_v32 = vpop.f32.mrf.mxu1 }
 0x3b8   : > { %15942 = vmatprep.mubr.bf16.mxu0 %v14113_v14  ;;  %v12639_v42 = vrot.slane %v12637_v13, 5  ;;  %v12647_v22 = vshrl.u32 %v21258_v45, 16  ;;  %v8529_v2 = vadd.f32 %v22203_v35, %v21028_v39  ;;  %v12935_v31 = vrot.slane %v21197_v23, 5 }
 0x3b9   : > { %v12645_v38 = vrot.slane %v12643_v43, 5  ;;  %v12942_v0 = vrot.slane %v21208_v48, 5  ;;  %v14128_v52 = vrot.slane %v12871_v25, 9  ;;  %v12938_v39 = vrot.slane %v21203_v53, 5 }
 0x3ba   : > { %15967 = vmatmul.mubr.bf16.gmra.mxu1 %v14134_v24  ;;  %v12640_v17 = vor.u32 %v12639_v42, %v12636_v50  ;;  %v12649_v63 = vrot.slane %v12647_v22, 4  ;;  %v21287_v24 = vadd.f32 %v21081_v54, %v8529_v2  ;;  %v12937_v15 = vrot.slane %v12935_v31, 4 }
 0x3bb   : > { %15970 = vmatprep.mubr.bf16.mxu1 %v14135_v47  ;;  %v8532_v3 = vadd.f32 %v22204_v20, %v21043_v26  ;;  %v14129_v23 = vrot.slane %v12872_v60, 9  ;;  %v12944_v14 = vrot.slane %v12942_v0, 4  ;;  %v12936_v54 = vsel %vm17071_vm14, %v14128_v52, %v12935_v31  ;;  %v12873_v47 = vld [vmem:[#allocation3 + $0xcc] sm:$0xe]  ;;  %v21303_v26 = vpop.f32.mrf.mxu0  ;;  %v22206_v20 = vld [vmem:[#allocation44_spill] sm:$0xff] }
 0x3bc   : > { %v12641_v36 = vrot.slane %v12640_v17, 4  ;;  %v12650_v19 = vor.u32 %v12649_v63, %v12645_v38  ;;  %v12939_v48 = vsel %vm17071_vm14, %v12937_v15, %v12938_v39  ;;  %v12945_v13 = vrot.slane %v21221_v34, 5  ;;  %v22205_v39 = vld [vmem:[#allocation25_spill] sm:$0xff] }
 0x3bd   : > { %v12464_v41 = vld [vmem:[#allocation3 + $0xd4] sm:$0x1]  ;;  %v21301_v53 = vadd.f32 %v21090_v1, %v8532_v3  ;;  %v14136_v42 = vcombine.low %v12936_v54, %v12939_v48  ;;  %v12943_v35 = vsel %vm17071_vm14, %v14129_v23, %v12942_v0  ;;  %v21311_v1 = vpop.f32.mrf.mxu1  ;;  %v14130_v31 = vrot.slane %v12873_v47, 9  ;;  %v21314_v63 = vpop.f32.mrf.mxu0  ;;  %v22209_v48 = vld [vmem:[#allocation61_spill] sm:$0xff] }
 0x3be   : > { %v12651_v50 = vrot.slane %v12650_v19, 4  ;;  %v12653_v43 = vshll.u32 %v12464_v41, 16  ;;  %v12646_v22 = vsel %vm16892_vm11, %v12641_v36, %v12645_v38  ;;  %v12946_v2 = vsel %vm17071_vm14, %v12944_v14, %v12945_v13  ;;  %v22207_v36 = vld [vmem:[#allocation29_spill] sm:$0xff] }
 0x3bf   : > { %v14137_v34 = vcombine.low %v12943_v35, %v12946_v2  ;;  %v12949_v60 = vrot.slane %v21258_v45, 5  ;;  %v12952_v17 = vrot.slane %v12464_v41, 5  ;;  %v7942_v3 = vadd.f32 %v22206_v20, %v22205_v39  ;;  %v21326_v23 = vpop.f32.mrf.mxu1  ;;  %v21328_v14 = vpop.f32.mrf.mxu0  ;;  %v22208_v41 = vld [vmem:[#allocation40_spill] sm:$0xff]  ;;  %v22210_v47 = vld [vmem:[#allocation21_spill] sm:$0xff] }
 0x3c0   : > { %v12655_v25 = vrot.slane %v12653_v43, 5  ;;  %v8519_v19 = vadd.f32 %v22207_v36, %v20886_v40  ;;  %v22211_v43 = vld [vmem:[#allocation63_spill] sm:$0xff]  ;;  %v22212_v40 = vld [vmem:[#allocation41_spill] sm:$0xff]  ;;  %v21358_v36 = vld [vmem:[#allocation10 + $0x2] ss:$0 sm:$0xff] }
 0x3c1   : > { %v12950_v0 = vsel %vm17071_vm14, %v14130_v31, %v12949_v60  ;;  %v12951_v52 = vrot.slane %v12949_v60, 4  ;;  %v8276_v54 = vadd.f32 %v22208_v41, %v7942_v3  ;;  %v21337_v4 = vpop.f32.mrf.mxu1  ;;  %v21339_v35 = vpop.f32.mrf.mxu0  ;;  %v22214_v60 = vld [vmem:[#allocation66_spill] sm:$0xff]  ;;  %22216 = vst [vmem:[#allocation24_spill] sm:$0xff] %v21358_v36 }
 0x3c2   : > { %15971 = vmatmul.mubr.bf16.gmra.mxu1 %v14136_v42  ;;  %v12656_v38 = vsel %vm16892_vm11, %v12651_v50, %v12655_v25  ;;  %v8945_v13 = vadd.f32 %v22209_v48, %v8519_v19  ;;  %v8517_v50 = vadd.f32 %v22210_v47, %v20902_v58  ;;  %v22213_v25 = vld [vmem:[#allocation45_spill] sm:$0xff] }
 0x3c3   : > { %15974 = vmatprep.mubr.bf16.mxu1 %v14137_v34  ;;  %v14114_v15 = vcombine.low %v12646_v22, %v12656_v38  ;;  %v12953_v45 = vsel %vm17071_vm14, %v12951_v52, %v12952_v17  ;;  %v8520_v22 = vadd.f32 %v22212_v40, %v20938_v6  ;;  %v8518_v34 = vadd.f32 %v22213_v25, %v8276_v54  ;;  %v21349_v6 = vpop.f32.mrf.mxu0  ;;  %v22223_v40 = vld [vmem:[#allocation31_spill] sm:$0xff]  ;;  %v10226_v25 = vld [vmem:[%s16820_s26 + $0x10] sm:$0xff] }
 0x3c4   : > { %v14138_v5 = vcombine.low %v12950_v0, %v12953_v45  ;;  %v8943_v42 = vadd.f32 %v22211_v43, %v8517_v50  ;;  %v9243_v31 = vadd.f32 %v20845_v16, %v8945_v13  ;;  %v21347_v0 = vpop.f32.mrf.mxu1  ;;  %v22221_v50 = vld [vmem:[#allocation26_spill] sm:$0xff] }
 0x3c5   : > { %15943 = vmatmul.mubr.bf16.gmra.mxu0 %v14114_v15  ;;  %v8946_v2 = vadd.f32 %v20801_v59, %v8520_v22  ;;  %v8944_v17 = vadd.f32 %v22214_v60, %v8518_v34  ;;  %v22215_v15 = vld [vmem:[#allocation39_spill] sm:$0xff]  ;;  %v22224_v22 = vld [vmem:[#allocation37_spill] sm:$0xff] }
 0x3c6   : > { %v9486_v58 = vadd.f32 %v21108_v30, %v9243_v31  ;;  %v9241_v38 = vadd.f32 %v20865_v11, %v8943_v42  ;;  %v21355_v3 = vpop.f32.mrf.mxu1 }
 0x3c7   : > { %v9244_v39 = vadd.f32 %v22215_v15, %v8946_v2  ;;  %v9242_v20 = vadd.f32 %v20927_v33, %v8944_v17  ;;  %v21366_v33 = vld [vmem:[#allocation10 + $0x3] ss:$0 sm:$0xff]  ;;  %v8521_v2 = vadd.f32 %v22224_v22, %v22223_v40 }
 0x3c8   : > { %v9484_v52 = vadd.f32 %v21124_v29, %v9241_v38  ;;  %v9912_v16 = vadd.f32 %v21229_v55, %v9486_v58  ;;  %v22217_v29 = vld [vmem:[#allocation53_spill] sm:$0xff]  ;;  %22220 = vst [vmem:[#allocation19_spill] sm:$0xff] %v21366_v33  ;;  %v21368_v55 = vpop.f32.mrf.mxu1  ;;  %v22225_v58 = vld [vmem:[#allocation67_spill] sm:$0xff] }
 0x3c9   : > { %v9487_v59 = vadd.f32 %v21135_v18, %v9244_v39  ;;  %v9485_v30 = vadd.f32 %v21156_v8, %v9242_v20  ;;  %v22219_v18 = vld [vmem:[#allocation36_spill] sm:$0xff]  ;;  %v8947_v38 = vadd.f32 %v22225_v58, %v8521_v2  ;;  %v22234_v58 = vld [vmem:[#allocation38_spill] sm:$0xff] }
 0x3ca   : > { %15975 = vmatmul.mubr.bf16.gmra.mxu1 %v14138_v5  ;;  %v9910_v45 = vadd.f32 %v21239_v56, %v9484_v52  ;;  %v22218_v5 = vld [vmem:[#allocation22_spill] sm:$0xff]  ;;  %v8523_v54 = vadd.f32 %v22219_v18, %v20944_v28  ;;  %v22227_v52 = vld [vmem:[#allocation43_spill] sm:$0xff]  ;;  %v10224_v39 = vld [vmem:[%s16820_s26] sm:$0xff]  ;;  %v21384_v20 = vpop.f32.mrf.mxu1 }
 0x3cb   : > { %v7958_v41 = vadd.f32 %v22218_v5, %v22217_v29  ;;  %v9913_v8 = vadd.f32 %v21260_v62, %v9487_v59  ;;  %v22222_v56 = vld [vmem:[#allocation46_spill] sm:$0xff]  ;;  %v9911_v17 = vadd.f32 %v21281_v51, %v9485_v30  ;;  %v22226_v62 = vld [vmem:[#allocation49_spill] sm:$0xff]  ;;  %v22228_v29 = vld [vmem:[#allocation35_spill] sm:$0xff] }
 0x3cc   : > { %v8949_v42 = vadd.f32 %v22222_v56, %v8523_v54  ;;  %v8524_v15 = vadd.f32 %v22227_v52, %v22226_v62  ;;  %v22229_v51 = vld [vmem:[#allocation48_spill] sm:$0xff]  ;;  %v10227_v54 = vld [vmem:[%s16820_s26 + $0x18] sm:$0xff] }
 0x3cd   : > { %v8280_v43 = vadd.f32 %v22221_v50, %v7958_v41  ;;  %v22230_v41 = vld [vmem:[#allocation23_spill] sm:$0xff]  ;;  %v22231_v56 = vld [vmem:[#allocation28_spill] sm:$0xff] }
 0x3ce   : > { %v8950_v5 = vadd.f32 %v22228_v29, %v8524_v15  ;;  %v9247_v18 = vadd.f32 %v22230_v41, %v8949_v42  ;;  %v22232_v2 = vld [vmem:[#allocation68_spill] sm:$0xff] }
 0x3cf   : > { %v8522_v30 = vadd.f32 %v22229_v51, %v8280_v43 }
 0x3d0   : > { %v9490_v22 = vadd.f32 %v21172_v49, %v9247_v18  ;;  %v22235_v49 = vld [vmem:[#allocation47_spill] sm:$0xff] }
 0x3d1   : > { %v8948_v40 = vadd.f32 %v22231_v56, %v8522_v30  ;;  %v7974_v62 = vadd.f32 %v22235_v49, %v22234_v58  ;;  %v10230_v56 = vld [vmem:[%s16820_s26 + $0x30] sm:$0xff] }
 0x3d2   : > { %v15676_v11 = vpop.f32.mrf.mxu0 }
 0x3d3   : > { %v10210_v19 = vadd.f32 %v15676_v11, %v9912_v16 }
 0x3d4   : > { %v10145_v48 = vpop.f32.mrf.mxu0 }
 0x3d5   : > { %v10246_v13 = vmul.f32 %v21358_v36, %v10210_v19  ;;  %v10208_v47 = vadd.f32 %v10145_v48, %v9910_v45 }
 0x3d6   : > { %v15677_v28 = vpop.f32.mrf.mxu0 }
 0x3d7   : > { %v10266_v34 = vadd.f32 %v21366_v33, %v10246_v13  ;;  %v10244_v31 = vmul.f32 %v21358_v36, %v10208_v47  ;;  %v10211_v60 = vadd.f32 %v15677_v28, %v9913_v8  ;;  %v10225_v28 = vld [vmem:[%s16820_s26 + $0x8] sm:$0xff] }
 0x3d8   : > { %v10148_v59 = vpop.f32.mrf.mxu0 }
 0x3d9   : > { %v10282_v16 = vadd.f32 %v10266_v34, %v10226_v25  ;;  %v10264_v11 = vadd.f32 %v21366_v33, %v10244_v31  ;;  %v10247_v19 = vmul.f32 %v21358_v36, %v10211_v60  ;;  %v10209_v45 = vadd.f32 %v10148_v59, %v9911_v17  ;;  %v22233_v60 = vld [vmem:[#allocation42_spill] sm:$0xff] }
 0x3da   : > { %v9245_v25 = vadd.f32 %v22232_v2, %v8947_v38  ;;  %v9248_v17 = vadd.f32 %v22233_v60, %v8950_v5  ;;  %v22236_v59 = vld [vmem:[#allocation50_spill] sm:$0xff] }
 0x3db   : > { %v10298_v48 = vmax.f32 %v10282_v16, 0.0  ;;  %v21392_v13 = vpop.f32.mrf.mxu1  ;;  %v10280_v47 = vadd.f32 %v10264_v11, %v10224_v39  ;;  %v10267_v8 = vadd.f32 %v21366_v33, %v10247_v19  ;;  %v10245_v50 = vmul.f32 %v21358_v36, %v10209_v45  ;;  %v22237_v19 = vld [vmem:[#allocation20_spill] sm:$0xff] }
 0x3dc   : > { %v9488_v31 = vadd.f32 %v21192_v44, %v9245_v25  ;;  %v9491_v39 = vadd.f32 %v21215_v10, %v9248_v17  ;;  %v9246_v16 = vadd.f32 %v22236_v59, %v8948_v40  ;;  %v9916_v11 = vadd.f32 %v21293_v32, %v9490_v22  ;;  %v22240_v25 = vld [vmem:[#allocation27_spill] sm:$0xff] }
 0x3dd   : > { %10314 = vst [vmem:[%s21402_s21 + $0x10] sm:$0xff] %v10298_v48  ;;  %v10296_v43 = vmax.f32 %v10280_v47, 0.0  ;;  %v10283_v42 = vadd.f32 %v10267_v8, %v10227_v54  ;;  %v10265_v34 = vadd.f32 %v21366_v33, %v10245_v50  ;;  %v21411_v38 = vpop.f32.mrf.mxu1  ;;  %v8284_v44 = vadd.f32 %v22237_v19, %v7974_v62  ;;  %v22238_v48 = vld [vmem:[#allocation58_spill] sm:$0xff]  ;;  %v22239_v8 = vld [vmem:[#allocation32_spill] sm:$0xff]  ;;  %v22242_v62 = vld [vmem:[#allocation33_spill] sm:$0xff] }
 0x3de   : > { %v9489_v5 = vadd.f32 %v21232_v46, %v9246_v16  ;;  %v9914_v30 = vadd.f32 %v21311_v1, %v9488_v31  ;;  %v9917_v32 = vadd.f32 %v21326_v23, %v9491_v39  ;;  %v9251_v50 = vadd.f32 %v22239_v8, %v21206_v12  ;;  %v22241_v23 = vld [vmem:[#allocation51_spill] sm:$0xff]  ;;  %v10228_v12 = vld [vmem:[%s16820_s26 + $0x20] sm:$0xff] }
 0x3df   : > { %10312 = vst [vmem:[%s21402_s21] sm:$0xff] %v10296_v43  ;;  %v10299_v52 = vmax.f32 %v10283_v42, 0.0  ;;  %v10281_v15 = vadd.f32 %v10265_v34, %v10225_v28  ;;  %v21420_v41 = vpop.f32.mrf.mxu1  ;;  %v8526_v47 = vadd.f32 %v22238_v48, %v8284_v44  ;;  %v9249_v42 = vadd.f32 %v22241_v23, %v21227_v9 }
 0x3e0   : > { %v9915_v2 = vadd.f32 %v21337_v4, %v9489_v5  ;;  %v9494_v43 = vadd.f32 %v21242_v27, %v9251_v50  ;;  %v9252_v27 = vadd.f32 %v22242_v62, %v21256_v37  ;;  %v22245_v5 = vld [vmem:[#allocation30_spill] sm:$0xff] }
 0x3e1   : > { %10315 = vst [vmem:[%s21402_s21 + $0x18] sm:$0xff] %v10299_v52  ;;  %v10297_v45 = vmax.f32 %v10281_v15, 0.0  ;;  %v8952_v28 = vadd.f32 %v22240_v25, %v8526_v47  ;;  %v21436_v34 = vpop.f32.mrf.mxu1  ;;  %v9492_v4 = vadd.f32 %v21268_v61, %v9249_v42  ;;  %v10231_v52 = vld [vmem:[%s16820_s26 + $0x38] sm:$0xff]  ;;  %v22247_v42 = vld [vmem:[#allocation65_spill] sm:$0xff] }
 0x3e2   : > { %v15680_v29 = vpop.f32.mrf.mxu0  ;;  %v9495_v16 = vadd.f32 %v21284_v21, %v9252_v27  ;;  %v9920_v61 = vadd.f32 %v21347_v0, %v9494_v43  ;;  %v22246_v47 = vld [vmem:[#allocation59_spill] sm:$0xff] }
 0x3e3   : > { %v10214_v51 = vadd.f32 %v15680_v29, %v9916_v11  ;;  %10313 = vst [vmem:[%s21402_s21 + $0x8] sm:$0xff] %v10297_v45  ;;  %v22243_v11 = vld [vmem:[#allocation52_spill] sm:$0xff]  ;;  %v10229_v45 = vld [vmem:[%s16820_s26 + $0x28] sm:$0xff]  ;;  %v22244_v29 = vld [vmem:[#allocation34_spill] sm:$0xff]  ;;  %v9918_v48 = vadd.f32 %v21355_v3, %v9492_v4 }
 0x3e4   : > { %v10161_v18 = vpop.f32.mrf.mxu0  ;;  %v9250_v19 = vadd.f32 %v22243_v11, %v8952_v28  ;;  %v7990_v37 = vadd.f32 %v22245_v5, %v22244_v29  ;;  %v10233_v5 = vld [vmem:[%s16820_s26 + $0x48] sm:$0xff] }
 0x3e5   : > { %v10250_v10 = vmul.f32 %v21358_v36, %v10214_v51  ;;  %v10212_v54 = vadd.f32 %v10161_v18, %v9914_v30 }
 0x3e6   : > { %v15681_v46 = vpop.f32.mrf.mxu0  ;;  %v9493_v21 = vadd.f32 %v21303_v26, %v9250_v19  ;;  %v8288_v0 = vadd.f32 %v22246_v47, %v7990_v37  ;;  %v9921_v26 = vadd.f32 %v21368_v55, %v9495_v16 }
 0x3e7   : > { %v10270_v40 = vadd.f32 %v21366_v33, %v10250_v10  ;;  %v10248_v1 = vmul.f32 %v21358_v36, %v10212_v54  ;;  %v10215_v22 = vadd.f32 %v15681_v46, %v9917_v32 }
 0x3e8   : > { %v10164_v31 = vpop.f32.mrf.mxu0  ;;  %v9919_v23 = vadd.f32 %v21384_v20, %v9493_v21 }
 0x3e9   : > { %v10286_v60 = vadd.f32 %v10270_v40, %v10230_v56  ;;  %v10268_v17 = vadd.f32 %v21366_v33, %v10248_v1  ;;  %v10251_v58 = vmul.f32 %v21358_v36, %v10215_v22  ;;  %v10213_v49 = vadd.f32 %v10164_v31, %v9915_v2  ;;  %v10234_v2 = vld [vmem:[%s16820_s26 + $0x50] sm:$0xff]  ;;  %v22248_v31 = vld [vmem:[#allocation56_spill] sm:$0xff] }
 0x3eb   : > { %v10302_v15 = vmax.f32 %v10286_v60, 0.0  ;;  %v10284_v9 = vadd.f32 %v10268_v17, %v10228_v12  ;;  %v10271_v39 = vadd.f32 %v21366_v33, %v10251_v58  ;;  %v10249_v59 = vmul.f32 %v21358_v36, %v10213_v49  ;;  %v10232_v17 = vld [vmem:[%s16820_s26 + $0x40] sm:$0xff] }
 0x3ec   : > { %v21449_v44 = vpop.f32.mrf.mxu1  ;;  %v8530_v12 = vadd.f32 %v22247_v42, %v8288_v0  ;;  %v9255_v60 = vadd.f32 %v22248_v31, %v21275_v7  ;;  %v10239_v42 = vld [vmem:[%s16820_s26 + $0x78] sm:$0xff] }
 0x3ed   : > { %10318 = vst [vmem:[%s21402_s21 + $0x30] sm:$0xff] %v10302_v15  ;;  %v10300_v51 = vmax.f32 %v10284_v9, 0.0  ;;  %v10287_v30 = vadd.f32 %v10271_v39, %v10231_v52  ;;  %v10269_v18 = vadd.f32 %v21366_v33, %v10249_v59  ;;  %v15684_v10 = vpop.f32.mrf.mxu0  ;;  %v22249_v52 = vld [vmem:[#allocation54_spill] sm:$0xff]  ;;  %v22250_v9 = vld [vmem:[#allocation57_spill] sm:$0xff]  ;;  %v10235_v39 = vld [vmem:[%s16820_s26 + $0x58] sm:$0xff] }
 0x3ee   : > { %v21458_v54 = vpop.f32.mrf.mxu1  ;;  %v10218_v32 = vadd.f32 %v15684_v10, %v9920_v61  ;;  %v8956_v20 = vadd.f32 %v22249_v52, %v8530_v12  ;;  %v9498_v15 = vadd.f32 %v21314_v63, %v9255_v60  ;;  %v9253_v7 = vadd.f32 %v22250_v9, %v21287_v24  ;;  %v22251_v10 = vld [vmem:[#allocation17_spill] sm:$0xff] }
 0x3ef   : > { %10316 = vst [vmem:[%s21402_s21 + $0x20] sm:$0xff] %v10300_v51  ;;  %v10303_v8 = vmax.f32 %v10287_v30, 0.0  ;;  %v10285_v50 = vadd.f32 %v10269_v18, %v10229_v45  ;;  %v10177_v56 = vpop.f32.mrf.mxu0  ;;  %v9256_v61 = vadd.f32 %v21184_v57, %v21301_v53 }
 0x3f0   : > { %v21463_v46 = vpop.f32.mrf.mxu1  ;;  %v10254_v40 = vmul.f32 %v21358_v36, %v10218_v32  ;;  %v10216_v1 = vadd.f32 %v10177_v56, %v9918_v48  ;;  %v9496_v45 = vadd.f32 %v21328_v14, %v9253_v7  ;;  %v9924_v29 = vadd.f32 %v21392_v13, %v9498_v15 }
 0x3f1   : > { %10319 = vst [vmem:[%s21402_s21 + $0x38] sm:$0xff] %v10303_v8  ;;  %v10301_v22 = vmax.f32 %v10285_v50, 0.0  ;;  %v15685_v25 = vpop.f32.mrf.mxu0  ;;  %v9499_v18 = vadd.f32 %v21339_v35, %v9256_v61  ;;  %v9254_v14 = vadd.f32 %v22251_v10, %v8956_v20 }
 0x3f2   : > { %v10274_v3 = vadd.f32 %v21366_v33, %v10254_v40  ;;  %v10252_v28 = vmul.f32 %v21358_v36, %v10216_v1  ;;  %v10219_v43 = vadd.f32 %v15685_v25, %v9921_v26  ;;  %v21477_v58 = vpop.f32.mrf.mxu1  ;;  %v9922_v21 = vadd.f32 %v21411_v38, %v9496_v45  ;;  %v10238_v38 = vld [vmem:[%s16820_s26 + $0x70] sm:$0xff] }
 0x3f3   : > { %10317 = vst [vmem:[%s21402_s21 + $0x28] sm:$0xff] %v10301_v22  ;;  %v10180_v55 = vpop.f32.mrf.mxu0  ;;  %v9497_v47 = vadd.f32 %v21349_v6, %v9254_v14  ;;  %v9925_v0 = vadd.f32 %v21420_v41, %v9499_v18  ;;  %v10236_v41 = vld [vmem:[%s16820_s26 + $0x60] sm:$0xff] }
 0x3f4   : > { %v10290_v49 = vadd.f32 %v10274_v3, %v10234_v2  ;;  %v10272_v4 = vadd.f32 %v21366_v33, %v10252_v28  ;;  %v10255_v62 = vmul.f32 %v21358_v36, %v10219_v43  ;;  %v10217_v27 = vadd.f32 %v10180_v55, %v9919_v23 }
 0x3f5   : > { %v9923_v1 = vadd.f32 %v21436_v34, %v9497_v47 }
 0x3f6   : > { %v10306_v59 = vmax.f32 %v10290_v49, 0.0  ;;  %v10288_v16 = vadd.f32 %v10272_v4, %v10232_v17  ;;  %v10275_v11 = vadd.f32 %v21366_v33, %v10255_v62  ;;  %v10253_v19 = vmul.f32 %v21358_v36, %v10217_v27  ;;  %v10237_v49 = vld [vmem:[%s16820_s26 + $0x68] sm:$0xff] }
 0x3f7   : > { %v21494_v63 = vpop.f32.mrf.mxu1 }
 0x3f8   : > { %10322 = vst [vmem:[%s21402_s21 + $0x50] sm:$0xff] %v10306_v59  ;;  %v10304_v24 = vmax.f32 %v10288_v16, 0.0  ;;  %v10291_v37 = vadd.f32 %v10275_v11, %v10235_v39  ;;  %v10273_v51 = vadd.f32 %v21366_v33, %v10253_v19  ;;  %v15688_v30 = vpop.f32.mrf.mxu0 }
 0x3f9   : > { %v10222_v57 = vadd.f32 %v15688_v30, %v9924_v29  ;;  %v10707_v53 = vpop.f32.mrf.mxu1 }
 0x3fa   : > { %10320 = vst [vmem:[%s21402_s21 + $0x40] sm:$0xff] %v10304_v24  ;;  %v10307_v13 = vmax.f32 %v10291_v37, 0.0  ;;  %v10289_v32 = vadd.f32 %v10273_v51, %v10233_v5  ;;  %v10193_v48 = vpop.f32.mrf.mxu0 }
 0x3fb   : > { %v10258_v8 = vmul.f32 %v21358_v36, %v10222_v57  ;;  %v10220_v35 = vadd.f32 %v10193_v48, %v9922_v21  ;;  %v15713_v50 = vpop.f32.mrf.mxu1 }
 0x3fc   : > { %10323 = vst [vmem:[%s21402_s21 + $0x58] sm:$0xff] %v10307_v13  ;;  %v10305_v56 = vmax.f32 %v10289_v32, 0.0  ;;  %v15689_v40 = vpop.f32.mrf.mxu0 }
 0x3fd   : > { %v10278_v26 = vadd.f32 %v21366_v33, %v10258_v8  ;;  %v10256_v22 = vmul.f32 %v21358_v36, %v10220_v35  ;;  %v10223_v2 = vadd.f32 %v15689_v40, %v9925_v0  ;;  %v10710_v6 = vpop.f32.mrf.mxu1 }
 0x3fe   : > { %10321 = vst [vmem:[%s21402_s21 + $0x48] sm:$0xff] %v10305_v56  ;;  %v10196_v25 = vpop.f32.mrf.mxu0 }
 0x3ff   : > { %v10294_v3 = vadd.f32 %v10278_v26, %v10238_v38  ;;  %v10276_v28 = vadd.f32 %v21366_v33, %v10256_v22  ;;  %v10259_v43 = vmul.f32 %v21358_v36, %v10223_v2  ;;  %v10221_v23 = vadd.f32 %v10196_v25, %v9923_v1 }
 0x400   : > { %v15740_v12 = vpop.f32.mrf.mxu0 }
 0x401   : > { %v10310_v34 = vmax.f32 %v10294_v3, 0.0  ;;  %v10292_v31 = vadd.f32 %v10276_v28, %v10236_v41  ;;  %v10279_v60 = vadd.f32 %v21366_v33, %v10259_v43  ;;  %v10257_v17 = vmul.f32 %v21358_v36, %v10221_v23 }
 0x402   : > { %v15716_v55 = vpop.f32.mrf.mxu1  ;;  %v10893_v4 = vadd.f32 %v15740_v12, %v21449_v44  ;;  %v10884_v62 = vpop.f32.mrf.mxu0 }
 0x403   : > { %10326 = vst [vmem:[%s21402_s21 + $0x70] sm:$0xff] %v10310_v34  ;;  %v10308_v27 = vmax.f32 %v10292_v31, 0.0  ;;  %v10295_v52 = vadd.f32 %v10279_v60, %v10239_v42  ;;  %v10277_v20 = vadd.f32 %v21366_v33, %v10257_v17  ;;  %v10885_v15 = vadd.f32 %v10884_v62, %v21458_v54 }
 0x404   : > { %v10723_v9 = vpop.f32.mrf.mxu1  ;;  %v15741_v7 = vpop.f32.mrf.mxu0 }
 0x405   : > { %10324 = vst [vmem:[%s21402_s21 + $0x60] sm:$0xff] %v10308_v27  ;;  %v10311_v39 = vmax.f32 %v10295_v52, 0.0  ;;  %v10293_v59 = vadd.f32 %v10277_v20, %v10237_v49  ;;  %v10896_v16 = vadd.f32 %v15741_v7, %v21463_v46 }
 0x406   : > { %v15717_v11 = vpop.f32.mrf.mxu1  ;;  %v10887_v19 = vpop.f32.mrf.mxu0 }
 0x407   : > { %10327 = vst [vmem:[%s21402_s21 + $0x78] sm:$0xff] %v10311_v39  ;;  %v10309_v44 = vmax.f32 %v10293_v59, 0.0  ;;  %v10888_v45 = vadd.f32 %v10887_v19, %v21477_v58 }
 0x408   : > { %v10726_v61 = vpop.f32.mrf.mxu1  ;;  %v15744_v29 = vpop.f32.mrf.mxu0 }
 0x409   : > { %10325 = vst [vmem:[%s21402_s21 + $0x68] sm:$0xff] %v10309_v44  ;;  %v10909_v5 = vadd.f32 %v15744_v29, %v21494_v63 }
 0x40a   : > { %v15720_v24 = vpop.f32.mrf.mxu1  ;;  %v10900_v54 = vpop.f32.mrf.mxu0 }
 0x40b   : > { %v10901_v37 = vadd.f32 %v10900_v54, %v10707_v53 }
 0x40c   : > { %v10739_v51 = vpop.f32.mrf.mxu1  ;;  %v15745_v30 = vpop.f32.mrf.mxu0 }
 0x40d   : > { %v10912_v18 = vadd.f32 %v15745_v30, %v15713_v50 }
 0x40e   : > { %v15721_v10 = vpop.f32.mrf.mxu1  ;;  %v10903_v14 = vpop.f32.mrf.mxu0 }
 0x40f   : > { %v10904_v46 = vadd.f32 %v10903_v14, %v10710_v6 }
 0x410   : > { %v10742_v21 = vpop.f32.mrf.mxu1  ;;  %v15748_v57 = vpop.f32.mrf.mxu0 }
 0x411   : > { %v10925_v13 = vadd.f32 %v15748_v57, %v15716_v55 }
 0x412   : > { %v15772_v32 = vpop.f32.mrf.mxu1  ;;  %v10916_v48 = vpop.f32.mrf.mxu0 }
 0x413   : > { %v21527_v58 = vadd.f32 %v15772_v32, %v10893_v4  ;;  %v10917_v47 = vadd.f32 %v10916_v48, %v10723_v9 }
 0x414   : > { %v11157_v0 = vpop.f32.mrf.mxu1  ;;  %v15749_v8 = vpop.f32.mrf.mxu0 }
 0x415   : > { %v21529_v63 = vadd.f32 %v11157_v0, %v10885_v15  ;;  %v10928_v35 = vadd.f32 %v15749_v8, %v15717_v11 }
 0x416   : > { %v15773_v53 = vpop.f32.mrf.mxu1  ;;  %v10919_v56 = vpop.f32.mrf.mxu0 }
 0x417   : > { %v21531_v38 = vadd.f32 %v15773_v53, %v10896_v16  ;;  %v10920_v50 = vadd.f32 %v10919_v56, %v10726_v61 }
 0x418   : > { %v11160_v40 = vpop.f32.mrf.mxu1  ;;  %v15752_v1 = vpop.f32.mrf.mxu0 }
 0x419   : > { %v21533_v26 = vadd.f32 %v11160_v40, %v10888_v45  ;;  %v10941_v22 = vadd.f32 %v15752_v1, %v15720_v24 }
 0x41a   : > { %v15776_v2 = vpop.f32.mrf.mxu1  ;;  %v10932_v6 = vpop.f32.mrf.mxu0 }
 0x41b   : > { %v21535_v41 = vadd.f32 %v15776_v2, %v10909_v5  ;;  %v10933_v25 = vadd.f32 %v10932_v6, %v10739_v51 }
 0x41c   : > { %v11173_v3 = vpop.f32.mrf.mxu1  ;;  %v15753_v28 = vpop.f32.mrf.mxu0 }
 0x41d   : > { %v21537_v43 = vadd.f32 %v11173_v3, %v10901_v37  ;;  %v10944_v23 = vadd.f32 %v15753_v28, %v15721_v10 }
 0x41e   : > { %v15777_v42 = vpop.f32.mrf.mxu1  ;;  %v10935_v12 = vpop.f32.mrf.mxu0 }
 0x41f   : > { %v21539_v34 = vadd.f32 %v15777_v42, %v10912_v18  ;;  %v10936_v31 = vadd.f32 %v10935_v12, %v10742_v21 }
 0x420   : > { %v11176_v60 = vpop.f32.mrf.mxu1 }
 0x421   : > { %v21541_v17 = vadd.f32 %v11176_v60, %v10904_v46  ;;  %v21543_v55 = vpop.f32.mrf.mxu0 }
 0x422   : > { %v15780_v49 = vpop.f32.mrf.mxu1 }
 0x423   : > { %v21545_v4 = vadd.f32 %v15780_v49, %v10925_v13  ;;  %v21547_v62 = vpop.f32.mrf.mxu0 }
 0x424   : > { %v11189_v27 = vpop.f32.mrf.mxu1 }
 0x425   : > { %v21549_v52 = vadd.f32 %v11189_v27, %v10917_v47  ;;  %v21551_v20 = vpop.f32.mrf.mxu0 }
 0x426   : > { %v15781_v15 = vpop.f32.mrf.mxu1 }
 0x427   : > { %v21553_v9 = vadd.f32 %v15781_v15, %v10928_v35  ;;  %v21555_v7 = vpop.f32.mrf.mxu0 }
 0x428   : > { %v11192_v39 = vpop.f32.mrf.mxu1 }
 0x429   : > { %v21557_v59 = vadd.f32 %v11192_v39, %v10920_v50  ;;  %v21559_v16 = vpop.f32.mrf.mxu0 }
 0x42a   : > { %v15784_v11 = vpop.f32.mrf.mxu1 }
 0x42b   : > { %v21561_v19 = vadd.f32 %v15784_v11, %v10941_v22  ;;  %v21563_v44 = vpop.f32.mrf.mxu0 }
 0x42c   : > { %v11205_v45 = vpop.f32.mrf.mxu1 }
 0x42d   : > { %v21565_v61 = vadd.f32 %v11205_v45, %v10933_v25  ;;  %v21567_v29 = vpop.f32.mrf.mxu0 }
 0x42e   : > { %v15785_v5 = vpop.f32.mrf.mxu1 }
 0x42f   : > { %v21569_v24 = vadd.f32 %v15785_v5, %v10944_v23  ;;  %v21571_v54 = vpop.f32.mrf.mxu0 }
 0x430   : > { %v11208_v37 = vpop.f32.mrf.mxu1 }
 0x431   : > { %v21573_v51 = vadd.f32 %v11208_v37, %v10936_v31  ;;  %v21575_v30 = vpop.f32.mrf.mxu0 }
 0x432   : > { %v15836_v18 = vpop.f32.mrf.mxu1 }
 0x433   : > { %v21577_v10 = vpop.f32.mrf.mxu0 }
 0x434   : > { %v21579_v14 = vpop.f32.mrf.mxu1 }
 0x435   : > { %v21581_v46 = vpop.f32.mrf.mxu0 }
 0x436   : > { %v21583_v21 = vpop.f32.mrf.mxu1 }
 0x437   : > { %v21585_v57 = vpop.f32.mrf.mxu0 }
 0x438   : > { %v21587_v13 = vpop.f32.mrf.mxu1 }
 0x439   : > { %v21589_v32 = vpop.f32.mrf.mxu0 }
 0x43a   : > { %v21591_v48 = vpop.f32.mrf.mxu1 }
 0x43b   : > { %v21593_v47 = vpop.f32.mrf.mxu0 }
 0x43c   : > { %v21595_v0 = vpop.f32.mrf.mxu1 }
 0x43d   : > { %v21597_v8 = vpop.f32.mrf.mxu0 }
 0x43e   : > { %v21599_v35 = vpop.f32.mrf.mxu1 }
 0x43f   : > { %v21603_v56 = vpop.f32.mrf.mxu0 }
 0x440   : > { %v21601_v53 = vpop.f32.mrf.mxu1 }
 0x442   : > { %v21605_v50 = vpop.f32.mrf.mxu1 }
 0x444   : > { %v21607_v40 = vpop.f32.mrf.mxu1  ;;  %v15868_v1 = vpop.f32.mrf.mxu0 }
 0x446   : > { %v21609_v22 = vpop.f32.mrf.mxu1  ;;  %v12120_v2 = vpop.f32.mrf.mxu0 }
 0x448   : > { %v21611_v6 = vpop.f32.mrf.mxu1  ;;  %v21613_v25 = vpop.f32.mrf.mxu0 }
 0x44a   : > { %v21615_v3 = vpop.f32.mrf.mxu1  ;;  %v21617_v28 = vpop.f32.mrf.mxu0 }
 0x44b   : > { %22252 = vst [vmem:[#allocation55_spill] sm:$0xff] %v21615_v3 }
 0x44c   : > { %v21619_v23 = vpop.f32.mrf.mxu1  ;;  %v21621_v42 = vpop.f32.mrf.mxu0 }
 0x44d   : > { %22253 = vst [vmem:[#allocation60_spill] sm:$0xff] %v21619_v23  ;;  %22254 = vst [vmem:[#allocation18_spill] sm:$0xff] %v21621_v42 }
 0x44e   : > { %v21623_v12 = vpop.f32.mrf.mxu1  ;;  %v21625_v31 = vpop.f32.mrf.mxu0 }
 0x44f   : > { %22255 = vst [vmem:[#allocation62_spill] sm:$0xff] %v21623_v12  ;;  %22256 = vst [vmem:[#allocation64_spill] sm:$0xff] %v21625_v31 }
 0x450   : > { %v21627_v60 = vpop.f32.mrf.mxu1  ;;  %v21629_v49 = vpop.f32.mrf.mxu0 }
 0x451   : > { %22257 = vst [vmem:[#allocation25_spill] sm:$0xff] %v21627_v60  ;;  %22258 = vst [vmem:[#allocation44_spill] sm:$0xff] %v21629_v49 }
 0x452   : > { %v15900_v27 = vpop.f32.mrf.mxu1  ;;  %v21631_v15 = vpop.f32.mrf.mxu0 }
 0x453   : > { %22259 = vst [vmem:[#allocation29_spill] sm:$0xff] %v21631_v15 }
 0x454   : > { %v12362_v39 = vpop.f32.mrf.mxu1  ;;  %v21633_v11 = vpop.f32.mrf.mxu0 }
 0x455   : > { %22260 = vst [vmem:[#allocation40_spill] sm:$0xff] %v21633_v11 }
 0x456   : > { %v15901_v45 = vpop.f32.mrf.mxu1  ;;  %v21635_v5 = vpop.f32.mrf.mxu0 }
 0x457   : > { %22261 = vst [vmem:[#allocation61_spill] sm:$0xff] %v21635_v5 }
 0x458   : > { %v21637_v37 = vpop.f32.mrf.mxu1  ;;  %v21639_v33 = vpop.f32.mrf.mxu0 }
 0x459   : > { %22262 = vst [vmem:[#allocation21_spill] sm:$0xff] %v21637_v37  ;;  %22263 = vst [vmem:[#allocation63_spill] sm:$0xff] %v21639_v33 }
 0x45a   : > { %v21641_v12 = vpop.f32.mrf.mxu1  ;;  %v21643_v31 = vpop.f32.mrf.mxu0 }
 0x45b   : > { %22264 = vst [vmem:[#allocation41_spill] sm:$0xff] %v21641_v12  ;;  %22265 = vst [vmem:[#allocation45_spill] sm:$0xff] %v21643_v31 }
 0x45c   : > { %v21645_v60 = vpop.f32.mrf.mxu1  ;;  %v21647_v49 = vpop.f32.mrf.mxu0 }
 0x45d   : > { %22266 = vst [vmem:[#allocation66_spill] sm:$0xff] %v21645_v60  ;;  %22267 = vst [vmem:[#allocation39_spill] sm:$0xff] %v21647_v49 }
 0x45e   : > { %v21649_v42 = vpop.f32.mrf.mxu1  ;;  %v21651_v15 = vpop.f32.mrf.mxu0 }
 0x45f   : > { %22268 = vst [vmem:[#allocation53_spill] sm:$0xff] %v21649_v42  ;;  %22269 = vst [vmem:[#allocation22_spill] sm:$0xff] %v21651_v15  ;;  %v11463_v15 = vadd.f32 %v21543_v55, %v21527_v58  ;;  %v11465_v58 = vadd.f32 %v21563_v44, %v21537_v43 }
 0x460   : > { %v21653_v11 = vpop.f32.mrf.mxu1  ;;  %v21655_v23 = vpop.f32.mrf.mxu0 }
 0x461   : > { %22270 = vst [vmem:[#allocation36_spill] sm:$0xff] %v21653_v11  ;;  %22271 = vst [vmem:[#allocation26_spill] sm:$0xff] %v21655_v23  ;;  %v11461_v23 = vadd.f32 %v21547_v62, %v21529_v63  ;;  %v11468_v63 = vadd.f32 %v21567_v29, %v21539_v34  ;;  %v11470_v34 = vadd.f32 %v21585_v57, %v21557_v59 }
 0x462   : > { %v21657_v5 = vpop.f32.mrf.mxu1  ;;  %v21659_v3 = vpop.f32.mrf.mxu0 }
 0x463   : > { %22272 = vst [vmem:[#allocation46_spill] sm:$0xff] %v21657_v5  ;;  %22273 = vst [vmem:[#allocation31_spill] sm:$0xff] %v21659_v3  ;;  %v11888_v5 = vadd.f32 %v15836_v18, %v11463_v15  ;;  %v11464_v3 = vadd.f32 %v21551_v20, %v21531_v38  ;;  %v11886_v55 = vadd.f32 %v21579_v14, %v11461_v23 }
 0x464   : > { %v21661_v33 = vpop.f32.mrf.mxu1  ;;  %v15932_v12 = vpop.f32.mrf.mxu0  ;;  %v11466_v38 = vadd.f32 %v21571_v54, %v21541_v17  ;;  %v11472_v20 = vadd.f32 %v21581_v46, %v21553_v9  ;;  %v11473_v9 = vadd.f32 %v21593_v47, %v21565_v61  ;;  %v11890_v18 = vadd.f32 %v21595_v0, %v11465_v58 }
 0x465   : > { %22274 = vst [vmem:[#allocation37_spill] sm:$0xff] %v21661_v33  ;;  %v12185_v62 = vadd.f32 %v15868_v1, %v11888_v5  ;;  %v12183_v44 = vadd.f32 %v12120_v2, %v11886_v55  ;;  %v11893_v46 = vadd.f32 %v21599_v35, %v11468_v63  ;;  %v22277_v1 = vld [vmem:[#allocation21_spill] sm:$0xff]  ;;  %v22278_v2 = vld [vmem:[#allocation24_spill] sm:$0xff]  ;;  %v22284_v55 = vld [vmem:[#allocation62_spill] sm:$0xff] }
 0x466   : > { %v21663_v31 = vpop.f32.mrf.mxu1  ;;  %v12787_v60 = vpop.f32.mrf.mxu0 }
 0x467   : > { %22275 = vst [vmem:[#allocation67_spill] sm:$0xff] %v21663_v31  ;;  %v11462_v31 = vadd.f32 %v21555_v7, %v21533_v26  ;;  %v11471_v26 = vadd.f32 %v21575_v30, %v21545_v4  ;;  %v12427_v29 = vadd.f32 %v15900_v27, %v12185_v62  ;;  %v12425_v59 = vadd.f32 %v12362_v39, %v12183_v44  ;;  %v14149_v27 = vld [vmem:[%s16820_s26 + $0x90] sm:$0xff]  ;;  %v22283_v39 = vld [vmem:[#allocation19_spill] sm:$0xff]  ;;  %v22285_v62 = vld [vmem:[#allocation44_spill] sm:$0xff] }
 0x468   : > { %v21665_v36 = vpop.f32.mrf.mxu1  ;;  %v15933_v49 = vpop.f32.mrf.mxu0 }
 0x469   : > { %22276 = vst [vmem:[#allocation49_spill] sm:$0xff] %v21665_v36  ;;  %v11467_v36 = vadd.f32 %v21559_v16, %v21535_v41  ;;  %v11469_v41 = vadd.f32 %v21577_v10, %v21549_v52  ;;  %v11889_v16 = vadd.f32 %v21583_v21, %v11464_v3  ;;  %v11887_v17 = vadd.f32 %v21587_v13, %v11462_v31 }
 0x46a   : > { %v21669_v42 = vpop.f32.mrf.mxu1  ;;  %v12790_v11 = vpop.f32.mrf.mxu0  ;;  %v11475_v52 = vadd.f32 %v21589_v32, %v21561_v19  ;;  %v12852_v14 = vadd.f32 %v15932_v12, %v12427_v29  ;;  %v11891_v21 = vadd.f32 %v21601_v53, %v11466_v38  ;;  %v21717_v19 = vadd.f32 %v21603_v56, %v21573_v51  ;;  %v22280_v12 = vld [vmem:[#allocation60_spill] sm:$0xff] }
 0x46b   : > { %v11892_v4 = vadd.f32 %v21591_v48, %v11467_v36  ;;  %v12186_v10 = vadd.f32 %v21613_v25, %v11889_v16  ;;  %v11476_v36 = vadd.f32 %v21597_v8, %v21569_v24  ;;  %v12184_v57 = vadd.f32 %v21617_v28, %v11887_v17  ;;  %v22279_v28 = vld [vmem:[#allocation55_spill] sm:$0xff] }
 0x46c   : > { %v21679_v33 = vpop.f32.mrf.mxu1  ;;  %v21681_v37 = vpop.f32.mrf.mxu0  ;;  %v12850_v32 = vadd.f32 %v12787_v60, %v12425_v59  ;;  %v11896_v0 = vadd.f32 %v21605_v50, %v11471_v26  ;;  %v11894_v35 = vadd.f32 %v21607_v40, %v11469_v41  ;;  %v11897_v53 = vadd.f32 %v21609_v22, %v11472_v20  ;;  %v22281_v50 = vld [vmem:[#allocation18_spill] sm:$0xff]  ;;  %v22282_v60 = vld [vmem:[#allocation64_spill] sm:$0xff]  ;;  %v22286_v26 = vld [vmem:[#allocation41_spill] sm:$0xff] }
 0x46d   : > { %v12428_v13 = vadd.f32 %v15901_v45, %v12186_v10  ;;  %v11895_v24 = vadd.f32 %v21611_v6, %v11470_v34  ;;  %v12426_v51 = vadd.f32 %v22277_v1, %v12184_v57  ;;  %v21727_v23 = vadd.f32 %v22279_v28, %v11475_v52  ;;  %v22287_v20 = vld [vmem:[#allocation66_spill] sm:$0xff]  ;;  %v14147_v34 = vld [vmem:[%s16820_s26 + $0x80] sm:$0xff]  ;;  %v22288_v52 = vld [vmem:[#allocation29_spill] sm:$0xff] }
 0x46e   : > { %v21696_v7 = vpop.f32.mrf.mxu1  ;;  %v12803_v43 = vpop.f32.mrf.mxu0  ;;  %v21730_v31 = vadd.f32 %v22280_v12, %v11473_v9  ;;  %v12189_v40 = vadd.f32 %v22281_v50, %v11892_v4  ;;  %v12187_v22 = vadd.f32 %v22282_v60, %v11890_v18  ;;  %v21738_v63 = vadd.f32 %v22284_v55, %v11476_v36  ;;  %v22289_v18 = vld [vmem:[#allocation53_spill] sm:$0xff] }
 0x46f   : > { %v12853_v56 = vadd.f32 %v15933_v49, %v12428_v13  ;;  %v12851_v15 = vadd.f32 %v12790_v11, %v12426_v51  ;;  %v12190_v38 = vadd.f32 %v22285_v62, %v11893_v46  ;;  %v12188_v9 = vadd.f32 %v22288_v52, %v11891_v21  ;;  %v14150_v46 = vld [vmem:[%s16820_s26 + $0x98] sm:$0xff]  ;;  %v22291_v51 = vld [vmem:[#allocation36_spill] sm:$0xff] }
 0x470   : > { %v21707_v54 = vpop.f32.mrf.mxu1  ;;  %v15937_v30 = vpop.f32.mrf.mxu0  ;;  %v12431_v41 = vadd.f32 %v22286_v26, %v12189_v40  ;;  %v12429_v16 = vadd.f32 %v22287_v20, %v12187_v22  ;;  %v22292_v40 = vld [vmem:[#allocation61_spill] sm:$0xff]  ;;  %v22293_v22 = vld [vmem:[#allocation46_spill] sm:$0xff] }
 0x471   : > { %v12432_v10 = vadd.f32 %v22289_v18, %v12190_v38  ;;  %v12430_v21 = vadd.f32 %v22291_v51, %v12188_v9  ;;  %v12191_v60 = vadd.f32 %v22292_v40, %v11894_v35  ;;  %v22294_v38 = vld [vmem:[#allocation63_spill] sm:$0xff]  ;;  %v22295_v35 = vld [vmem:[#allocation45_spill] sm:$0xff]  ;;  %v14157_v40 = vld [vmem:[%s16820_s26 + $0xd0] sm:$0xff] }
 0x472   : > { %v15964_v61 = vpop.f32.mrf.mxu1  ;;  %v12806_v47 = vpop.f32.mrf.mxu0  ;;  %v12856_v59 = vadd.f32 %v21681_v37, %v12431_v41  ;;  %v12194_v26 = vadd.f32 %v22294_v38, %v11897_v53  ;;  %v12192_v41 = vadd.f32 %v22295_v35, %v11895_v24  ;;  %v22297_v9 = vld [vmem:[#allocation37_spill] sm:$0xff]  ;;  %v22298_v24 = vld [vmem:[#allocation67_spill] sm:$0xff] }
 0x473   : > { %v13149_v48 = vadd.f32 %v15964_v61, %v12852_v14  ;;  %v12854_v14 = vadd.f32 %v12803_v43, %v12429_v16  ;;  %v14151_v16 = vld [vmem:[%s16820_s26 + $0xa0] sm:$0xff]  ;;  %v12433_v53 = vadd.f32 %v22297_v9, %v12191_v60  ;;  %v14152_v51 = vld [vmem:[%s16820_s26 + $0xa8] sm:$0xff] }
 0x474   : > { %v13084_v8 = vpop.f32.mrf.mxu1  ;;  %v12436_v18 = vadd.f32 %v22298_v24, %v12194_v26  ;;  %v14155_v26 = vld [vmem:[%s16820_s26 + $0xc0] sm:$0xff] }
 0x475   : > { %v13181_v25 = vmul.f32 %v22278_v2, %v13149_v48  ;;  %v13147_v3 = vadd.f32 %v13084_v8, %v12850_v32  ;;  %v15940_v58 = vpop.f32.mrf.mxu0  ;;  %v22290_v8 = vld [vmem:[#allocation40_spill] sm:$0xff] }
 0x476   : > { %v15965_v6 = vpop.f32.mrf.mxu1  ;;  %v12193_v1 = vadd.f32 %v22290_v8, %v11896_v0  ;;  %v12855_v0 = vadd.f32 %v12806_v47, %v12430_v21 }
 0x477   : > { %v13197_v45 = vadd.f32 %v22283_v39, %v13181_v25  ;;  %v13179_v49 = vmul.f32 %v22278_v2, %v13147_v3  ;;  %v13150_v5 = vadd.f32 %v15965_v6, %v12853_v56  ;;  %v12819_v48 = vpop.f32.mrf.mxu0  ;;  %v12857_v56 = vadd.f32 %v15937_v30, %v12432_v10  ;;  %v14148_v25 = vld [vmem:[%s16820_s26 + $0x88] sm:$0xff]  ;;  %v14154_v10 = vld [vmem:[%s16820_s26 + $0xb8] sm:$0xff] }
 0x478   : > { %v13087_v44 = vpop.f32.mrf.mxu1  ;;  %v12858_v8 = vadd.f32 %v12819_v48, %v12433_v53 }
 0x479   : > { %v13213_v29 = vadd.f32 %v14149_v27, %v13197_v45  ;;  %v13195_v11 = vadd.f32 %v22283_v39, %v13179_v49  ;;  %v13182_v17 = vmul.f32 %v22278_v2, %v13150_v5  ;;  %v13148_v4 = vadd.f32 %v13087_v44, %v12851_v15  ;;  %v14153_v49 = vld [vmem:[%s16820_s26 + $0xb0] sm:$0xff]  ;;  %v15941_v55 = vpop.f32.mrf.mxu0 }
 0x47a   : > { %v15968_v36 = vpop.f32.mrf.mxu1  ;;  %v12435_v27 = vadd.f32 %v22293_v22, %v12193_v1  ;;  %v12861_v1 = vadd.f32 %v15941_v55, %v12436_v18  ;;  %v14156_v18 = vld [vmem:[%s16820_s26 + $0xc8] sm:$0xff] }
 0x47b   : > { %v13229_v61 = vmax.f32 %v13213_v29, 0.0  ;;  %v13211_v57 = vadd.f32 %v14147_v34, %v13195_v11  ;;  %v13198_v13 = vadd.f32 %v22283_v39, %v13182_v17  ;;  %v13180_v32 = vmul.f32 %v22278_v2, %v13148_v4  ;;  %v22296_v4 = vld [vmem:[#allocation39_spill] sm:$0xff] }
 0x47c   : > { %v13153_v3 = vadd.f32 %v15968_v36, %v12856_v59  ;;  %v13100_v37 = vpop.f32.mrf.mxu1  ;;  %v12860_v20 = vadd.f32 %v15940_v58, %v12435_v27  ;;  %v12197_v52 = vadd.f32 %v22296_v4, %v21727_v23  ;;  %v12822_v36 = vpop.f32.mrf.mxu0 }
 0x47d   : > { %14165 = vst [vmem:[%s21402_s21 + $0x90] sm:$0xff] %v13229_v61  ;;  %v13227_v43 = vmax.f32 %v13211_v57, 0.0  ;;  %v13214_v28 = vadd.f32 %v14150_v46, %v13198_v13  ;;  %v13196_v12 = vadd.f32 %v22283_v39, %v13180_v32  ;;  %v13151_v50 = vadd.f32 %v13100_v37, %v12854_v14  ;;  %v22299_v13 = vld [vmem:[#allocation49_spill] sm:$0xff] }
 0x47e   : > { %v13185_v6 = vmul.f32 %v22278_v2, %v13153_v3  ;;  %v15969_v30 = vpop.f32.mrf.mxu1  ;;  %v12434_v23 = vadd.f32 %v22299_v13, %v12192_v41 }
 0x47f   : > { %14163 = vst [vmem:[%s21402_s21 + $0x80] sm:$0xff] %v13227_v43  ;;  %v13230_v15 = vmax.f32 %v13214_v28, 0.0  ;;  %v13212_v45 = vadd.f32 %v14148_v25, %v13196_v12  ;;  %v13183_v5 = vmul.f32 %v22278_v2, %v13151_v50  ;;  %v13154_v62 = vadd.f32 %v15969_v30, %v12857_v56  ;;  %v22300_v43 = vld [vmem:[#allocation22_spill] sm:$0xff] }
 0x480   : > { %v13201_v47 = vadd.f32 %v22283_v39, %v13185_v6  ;;  %v13103_v34 = vpop.f32.mrf.mxu1  ;;  %v12195_v28 = vadd.f32 %v22300_v43, %v21730_v31  ;;  %v12439_v12 = vadd.f32 %v21669_v42, %v12197_v52  ;;  %v12859_v50 = vadd.f32 %v12822_v36, %v12434_v23  ;;  %v16460_v52 = vld [vmem:[#allocation10 + $0x2] ss:$0 sm:$0xff]  ;;  %v14161_v23 = vld [vmem:[%s16820_s26 + $0xf0] sm:$0xff] }
 0x481   : > { %14166 = vst [vmem:[%s21402_s21 + $0x98] sm:$0xff] %v13230_v15  ;;  %v13228_v44 = vmax.f32 %v13212_v45, 0.0  ;;  %v13199_v29 = vadd.f32 %v22283_v39, %v13183_v5  ;;  %v13186_v11 = vmul.f32 %v22278_v2, %v13154_v62  ;;  %v13152_v17 = vadd.f32 %v13103_v34, %v12855_v0  ;;  %v22301_v15 = vld [vmem:[#allocation25_spill] sm:$0xff] }
 0x482   : > { %v13217_v58 = vadd.f32 %v14153_v49, %v13201_v47  ;;  %v15972_v59 = vpop.f32.mrf.mxu1  ;;  %v11899_v45 = vadd.f32 %v22301_v15, %v21717_v19  ;;  %v12437_v42 = vadd.f32 %v21679_v33, %v12195_v28  ;;  %v22303_v19 = vld [vmem:[#allocation31_spill] sm:$0xff] }
 0x483   : > { %14164 = vst [vmem:[%s21402_s21 + $0x88] sm:$0xff] %v13228_v44  ;;  %v13215_v14 = vadd.f32 %v14151_v16, %v13199_v29  ;;  %v13202_v46 = vadd.f32 %v22283_v39, %v13186_v11  ;;  %v13184_v61 = vmul.f32 %v22278_v2, %v13152_v17  ;;  %v13157_v57 = vadd.f32 %v15972_v59, %v12860_v20  ;;  %v22302_v20 = vld [vmem:[#allocation26_spill] sm:$0xff]  ;;  %v14158_v44 = vld [vmem:[%s16820_s26 + $0xd8] sm:$0xff] }
 0x484   : > { %v13233_v32 = vmax.f32 %v13217_v58, 0.0  ;;  %v13116_v21 = vpop.f32.mrf.mxu1  ;;  %v12198_v47 = vadd.f32 %v22302_v20, %v21738_v63  ;;  %v12196_v16 = vadd.f32 %v22303_v19, %v11899_v45 }
 0x485   : > { %v13231_v56 = vmax.f32 %v13215_v14, 0.0  ;;  %v13218_v25 = vadd.f32 %v14154_v10, %v13202_v46  ;;  %v13200_v3 = vadd.f32 %v22283_v39, %v13184_v61  ;;  %v13189_v37 = vmul.f32 %v22278_v2, %v13157_v57  ;;  %v15944_v0 = vpop.f32.mrf.mxu0  ;;  %v16461_v14 = vld [vmem:[#allocation10 + $0x3] ss:$0 sm:$0xff] }
 0x486   : > { %14169 = vst [vmem:[%s21402_s21 + $0xb0] sm:$0xff] %v13233_v32  ;;  %v13155_v60 = vadd.f32 %v13116_v21, %v12858_v8  ;;  %v15973_v48 = vpop.f32.mrf.mxu1  ;;  %v12864_v31 = vadd.f32 %v15944_v0, %v12439_v12  ;;  %v12440_v63 = vadd.f32 %v21696_v7, %v12198_v47  ;;  %v12438_v53 = vadd.f32 %v21707_v54, %v12196_v16 }
 0x487   : > { %14167 = vst [vmem:[%s21402_s21 + $0xa0] sm:$0xff] %v13231_v56  ;;  %v13234_v22 = vmax.f32 %v13218_v25, 0.0  ;;  %v13216_v27 = vadd.f32 %v14152_v51, %v13200_v3  ;;  %v13205_v6 = vadd.f32 %v22283_v39, %v13189_v37  ;;  %v13158_v30 = vadd.f32 %v15973_v48, %v12861_v1  ;;  %v12835_v38 = vpop.f32.mrf.mxu0  ;;  %v14159_v51 = vld [vmem:[%s16820_s26 + $0xe0] sm:$0xff] }
 0x488   : > { %v13187_v49 = vmul.f32 %v22278_v2, %v13155_v60  ;;  %v13119_v5 = vpop.f32.mrf.mxu1  ;;  %v12862_v33 = vadd.f32 %v12835_v38, %v12437_v42 }
 0x489   : > { %14170 = vst [vmem:[%s21402_s21 + $0xb8] sm:$0xff] %v13234_v22  ;;  %v13232_v55 = vmax.f32 %v13216_v27, 0.0  ;;  %v13221_v62 = vadd.f32 %v14157_v40, %v13205_v6  ;;  %v13190_v35 = vmul.f32 %v22278_v2, %v13158_v30  ;;  %v13156_v41 = vadd.f32 %v13119_v5, %v12859_v50  ;;  %v15945_v17 = vpop.f32.mrf.mxu0  ;;  %v14162_v40 = vld [vmem:[%s16820_s26 + $0xf8] sm:$0xff]  ;;  %v14160_v22 = vld [vmem:[%s16820_s26 + $0xe8] sm:$0xff] }
 0x48a   : > { %v13203_v34 = vadd.f32 %v22283_v39, %v13187_v49  ;;  %v15976_v29 = vpop.f32.mrf.mxu1  ;;  %v12865_v57 = vadd.f32 %v15945_v17, %v12440_v63 }
 0x48b   : > { %14168 = vst [vmem:[%s21402_s21 + $0xa8] sm:$0xff] %v13232_v55  ;;  %v13237_v11 = vmax.f32 %v13221_v62, 0.0  ;;  %v13206_v4 = vadd.f32 %v22283_v39, %v13190_v35  ;;  %v13188_v2 = vmul.f32 %v16460_v52, %v13156_v41  ;;  %v13161_v9 = vadd.f32 %v15976_v29, %v12864_v31  ;;  %v12838_v59 = vpop.f32.mrf.mxu0 }
 0x48c   : > { %v13219_v24 = vadd.f32 %v14155_v26, %v13203_v34  ;;  %v13132_v58 = vpop.f32.mrf.mxu1  ;;  %v12863_v13 = vadd.f32 %v12838_v59, %v12438_v53 }
 0x48d   : > { %14173 = vst [vmem:[%s21402_s21 + $0xd0] sm:$0xff] %v13237_v11  ;;  %v13222_v10 = vadd.f32 %v14158_v44, %v13206_v4  ;;  %v13204_v46 = vadd.f32 %v16461_v14, %v13188_v2  ;;  %v13193_v39 = vmul.f32 %v16460_v52, %v13161_v9  ;;  %v13159_v36 = vadd.f32 %v13132_v58, %v12862_v33 }
 0x48e   : > { %v13235_v61 = vmax.f32 %v13219_v24, 0.0  ;;  %v15977_v7 = vpop.f32.mrf.mxu1 }
 0x48f   : > { %v13238_v54 = vmax.f32 %v13222_v10, 0.0  ;;  %v13220_v32 = vadd.f32 %v14156_v18, %v13204_v46  ;;  %v13209_v8 = vadd.f32 %v16461_v14, %v13193_v39  ;;  %v13191_v1 = vmul.f32 %v16460_v52, %v13159_v36 }
 0x490   : > { %14171 = vst [vmem:[%s21402_s21 + $0xc0] sm:$0xff] %v13235_v61  ;;  %v13162_v21 = vadd.f32 %v15977_v7, %v12865_v57  ;;  %v13135_v56 = vpop.f32.mrf.mxu1 }
 0x491   : > { %14174 = vst [vmem:[%s21402_s21 + $0xd8] sm:$0xff] %v13238_v54  ;;  %v13236_v25 = vmax.f32 %v13220_v32, 0.0  ;;  %v13225_v3 = vadd.f32 %v14161_v23, %v13209_v8  ;;  %v13207_v37 = vadd.f32 %v16461_v14, %v13191_v1  ;;  %v13160_v43 = vadd.f32 %v13135_v56, %v12863_v13 }
 0x492   : > { %v13194_v28 = vmul.f32 %v16460_v52, %v13162_v21 }
 0x493   : > { %14172 = vst [vmem:[%s21402_s21 + $0xc8] sm:$0xff] %v13236_v25  ;;  %v13241_v12 = vmax.f32 %v13225_v3, 0.0  ;;  %v13223_v50 = vadd.f32 %v14159_v51, %v13207_v37  ;;  %v13192_v60 = vmul.f32 %v16460_v52, %v13160_v43 }
 0x494   : > { %v13210_v48 = vadd.f32 %v16461_v14, %v13194_v28 }
 0x495   : > { %14177 = vst [vmem:[%s21402_s21 + $0xf0] sm:$0xff] %v13241_v12  ;;  %v13239_v27 = vmax.f32 %v13223_v50, 0.0  ;;  %v13208_v0 = vadd.f32 %v16461_v14, %v13192_v60 }
 0x496   : > { %v13226_v6 = vadd.f32 %v14162_v40, %v13210_v48 }
 0x497   : > { %14175 = vst [vmem:[%s21402_s21 + $0xe0] sm:$0xff] %v13239_v27  ;;  %v13224_v30 = vadd.f32 %v14160_v22, %v13208_v0 }
 0x498   : > { %v13242_v15 = vmax.f32 %v13226_v6, 0.0 }
 0x499   : > { %v13240_v45 = vmax.f32 %v13224_v30, 0.0 }
 0x49a   : > { %14178 = vst [vmem:[%s21402_s21 + $0xf8] sm:$0xff] %v13242_v15 }
 0x49b   : > { %14176 = vst [vmem:[%s21402_s21 + $0xe8] sm:$0xff] %v13240_v45 }
 0x49c   : > { %16581 = shalt.err (!%p16578_p9)
}
 0x49d   : > { %s16582_s7 = scalar_lea.hbm %s21821_s12, 4096  ;;  %s16586_s20 = scalar_lea.hbm %s21872_s4, 8192 }
 0x49e   : > { %p16583_p1 = scmp.ne.s32.totalorder %s21821_s12, %s16582_s7  ;;  %p16587_p11 = scmp.lt.s32.totalorder %s21821_s12, %s21872_s4 }
 0x49f   : > { %p16588_p13 = scmp.lt.s32.totalorder %s16586_s20, %s16582_s7 }
 0x4a0   : > { %p16584_p8 = pnand %p16583_p1, %p22304_p6 }
 0x4a1   : > { %p16589_p2 = por %p16588_p13, %p16587_p11 }
 0x4a2   : > { %p16585_p10 = pneg %p16584_p8 }
 0x4a4   : > { %p16590_p4 = pnand %p16589_p2, %p16585_p10 }
 0x4a6   : > { %16593 = shalt.err (!%p16590_p4)
}
 0x4a7   : > { %s16652_s21 = smov 128   ;;  %s16653_s23 = smov 8  }
 0x4a8   : > { %15992 = dma.vmem_to_hbm [thread:$0]  (%p22304_p6), %s21823_s8, 4096, %s21821_s12, %s13261_s5, %s16652_s21, %s16652_s21, %s16653_s23  }
 0x4a9 PF: > { %s13289_s10 = sand.u32 1, %s16628_s15   ;;  %p22305_p12 = scmp.ne.s32.totalorder %s21915_s22, 0 }
 0x4aa   : > { %p22306_p0 = scmp.ge.s32.totalorder %s16640_s18, 2  ;;  %s13290_s11 = scalar_lea.sflag [#allocation6], %s13289_s10 }
 0x4ac   : > { %p16009_p5 = pnand %p22306_p0, %p22305_p12 }
 0x4ae   : > { %p16010_p3 = pneg %p16009_p5 }
 0x4b0   : > { %16623 = dma.done.wait (%p16010_p3), %s13290_s11, 4096  }
 0x4b1   : > { %16625 = vsyncadd (%p16010_p3), %s13290_s11, 4294963200  ;;  %p19_p7 = scmp.ge.s32.totalorder %s16759_s24, 4   ;;  %s22307_s15 = smov %s16632_s16 }
 0x4b2   : > { %s22308_s16 = smov %s16636_s17  ;;  %s22309_s17 = smov %s16769_s27 }
 0x4b3   : > { %s22310_s18 = smov %s16759_s24  ;;  %21 = sbr.rel (!%p19_p7) target bundleno = 7 (0x7), region = 123 }
 0x4b8   :  { %13295 = vsyncpa [#allocation5], 1 }
 0x4b9   :  { %13297 = vsyncpa [#allocation5 + $0x1], 1 }
 0x4ba   :  { %13298 = vsyncpa [#allocation8], 1 }
 0x4bb   :  { %13299 = vsyncpa [#allocation11], 1 }
 0x4bc   :  { %13300 = vsyncpa [#allocation6], 1 }
 0x4bd   :  { %13302 = vsyncpa [#allocation6 + $0x1], 1 }

</bundles_post_ra>
